<compile_context>
chip_gen: v7x
topology: tpu7x:2x2x1
jax: 0.10.0
libtpu: 0.0.40
codegen_flags: <defaults>
</compile_context>

<pallas_src>
import functools

import jax
import jax.numpy as jnp
from jax.experimental import pallas as pl
from jax.experimental.pallas import tpu as pltpu


def _round_up(x, m):
    return (x + m - 1) // m * m


def _pick_m_tiles(M):
    """Pick (tm, Mp). Prefer no padding; prefer >=2 tiles for megacore/v7x."""
    if M >= 1024 and M % 512 == 0:
        return 512, M
    if M >= 512 and M % 256 == 0:
        return 256, M
    for tm in (256, 128, 64, 32, 16):
        if M % tm == 0:
            return tm, M
    if M < 256:
        Mp = _round_up(M, 16)
        return Mp, Mp
    Mp = _round_up(M, 128)
    return 128, Mp


# ----------------------------------------------------------------------------
# Pallas kernels: single-pass (full-K) matmul, fused bias / ReLU / residual
# ----------------------------------------------------------------------------
def _mm_kernel(a_ref, b_ref, bias_ref, o_ref, *, relu):
    acc = jnp.dot(a_ref[...], b_ref[...], preferred_element_type=jnp.float32)
    acc = acc + bias_ref[...]
    if relu:
        acc = jnp.maximum(acc, 0.0)
    o_ref[...] = acc.astype(o_ref.dtype)


def _mm_res_kernel(a_ref, b_ref, bias_ref, r_ref, o_ref, *, relu):
    acc = jnp.dot(a_ref[...], b_ref[...], preferred_element_type=jnp.float32)
    acc = acc + bias_ref[...] + r_ref[...].astype(jnp.float32)
    if relu:
        acc = jnp.maximum(acc, 0.0)
    o_ref[...] = acc.astype(o_ref.dtype)


def pallas_matmul(a, b, bias=None, relu=False, residual=None, n_out=None,
                  out_dtype=jnp.bfloat16, keep_padded=False):
    """out = act(a @ b + bias [+ residual]); bf16 MXU operands, f32 accumulate.

    a: (M, K); b: (Kb, Nb) (weights usually pre-padded bf16);
    bias: (Nb,)/(1, Nb) f32; residual: bf16 (M, n_out) or already (Mp, Np).
    Full-K single pass: no K grid axis, no accumulator scratch, no pl.when.
    """
    M, Ka = a.shape
    Kb, Nb = b.shape
    if n_out is None:
        n_out = Nb

    Kp = _round_up(max(Ka, Kb), 16)          # bf16 sublane alignment only
    Np = _round_up(Nb, 128)                  # lane-dense stores
    tm, Mp = _pick_m_tiles(M)
    tn = 256 if Np % 256 == 0 else 128

    a_p = a if a.dtype == jnp.bfloat16 else a.astype(jnp.bfloat16)
    if a_p.shape != (Mp, Kp):
        a_p = jnp.pad(a_p, ((0, Mp - M), (0, Kp - Ka)))
    b_p = b if b.dtype == jnp.bfloat16 else b.astype(jnp.bfloat16)
    if b_p.shape != (Kp, Np):
        b_p = jnp.pad(b_p, ((0, Kp - Kb), (0, Np - Nb)))

    if bias is None:
        bias_p = jnp.zeros((1, Np), jnp.float32)
    else:
        bias_p = bias.astype(jnp.float32).reshape(1, -1)
        if bias_p.shape[1] != Np:
            bias_p = jnp.pad(bias_p, ((0, 0), (0, Np - bias_p.shape[1])))

    in_specs = [
        pl.BlockSpec((tm, Kp), lambda i, j: (i, 0)),
        pl.BlockSpec((Kp, tn), lambda i, j: (0, j)),
        pl.BlockSpec((1, tn), lambda i, j: (0, j)),
    ]
    args = [a_p, b_p, bias_p]
    if residual is not None:
        r_p = residual if residual.dtype == jnp.bfloat16 else residual.astype(jnp.bfloat16)
        if r_p.shape != (Mp, Np):
            r_p = jnp.pad(r_p, ((0, Mp - r_p.shape[0]), (0, Np - r_p.shape[1])))
        in_specs.append(pl.BlockSpec((tm, tn), lambda i, j: (i, j)))
        args.append(r_p)
        kernel = functools.partial(_mm_res_kernel, relu=relu)
    else:
        kernel = functools.partial(_mm_kernel, relu=relu)

    out = pl.pallas_call(
        kernel,
        out_shape=jax.ShapeDtypeStruct((Mp, Np), out_dtype),
        grid_spec=pltpu.PrefetchScalarGridSpec(
            num_scalar_prefetch=0,
            grid=(Mp // tm, Np // tn),
            in_specs=in_specs,
            out_specs=pl.BlockSpec((tm, tn), lambda i, j: (i, j)),
        ),
        compiler_params=pltpu.CompilerParams(
            dimension_semantics=("parallel", "parallel")),
    )(*args)

    if keep_padded:
        return out                                   # (Mp, Np), padded cols are 0(+bias)
    if out.shape != (M, n_out):
        out = out[:M, :n_out]
    return out


# ----------------------------------------------------------------------------
# NHWC conv / pool / resize building blocks (glue in JAX, compute in Pallas)
# ----------------------------------------------------------------------------
def conv_pre(x, cp, stride=1, padding=0, dilation=1, relu=True, residual=None,
             out_flat=False):
    """x: (N,H,W,C) NHWC; cp: prepared conv params (BN-folded, pre-padded bf16)."""
    N = x.shape[0]
    kh, kw, cout = cp["kh"], cp["kw"], cp["cout"]
    x = x if x.dtype == jnp.bfloat16 else x.astype(jnp.bfloat16)   # bf16 im2col
    if padding:
        x = jnp.pad(x, ((0, 0), (padding, padding), (padding, padding), (0, 0)))
    Hp, Wp, C = x.shape[1], x.shape[2], x.shape[3]
    Ho = (Hp - (kh - 1) * dilation - 1) // stride + 1
    Wo = (Wp - (kw - 1) * dilation - 1) // stride + 1
    if kh == 1 and kw == 1 and stride == 1:
        patches = x.reshape(N * Hp * Wp, C)
    else:
        cols = []
        for i in range(kh):
            for j in range(kw):
                cols.append(x[:, i * dilation:i * dilation + (Ho - 1) * stride + 1:stride,
                                 j * dilation:j * dilation + (Wo - 1) * stride + 1:stride, :])
        patches = jnp.concatenate(cols, axis=-1).reshape(N * Ho * Wo, kh * kw * C)
    out = pallas_matmul(patches, cp["wm"], bias=cp["bias"], relu=relu,
                        residual=residual, n_out=cout, keep_padded=out_flat)
    if out_flat:
        return out                                   # padded (Mp, Np) bf16 (for residual reuse)
    return out.reshape(N, Ho, Wo, cout)


def maxpool2d_nhwc(x, k=3, stride=2, padding=1):
    # TODO(synk): 3x3 max-pool window reduction done in plain JAX (single small layer).
    xp = jnp.pad(x, ((0, 0), (padding, padding), (padding, padding), (0, 0)),
                 constant_values=-jnp.inf)
    Hp, Wp = xp.shape[1], xp.shape[2]
    Ho = (Hp - k) // stride + 1
    Wo = (Wp - k) // stride + 1
    out = None
    for i in range(k):
        for j in range(k):
            v = xp[:, i:i + (Ho - 1) * stride + 1:stride,
                      j:j + (Wo - 1) * stride + 1:stride, :]
            out = v if out is None else jnp.maximum(out, v)
    return out


def _interp_matrix(n_out, n_in):
    """Bilinear interpolation matrix, align_corners=True semantics."""
    if n_in == 1:
        return jnp.ones((n_out, 1), jnp.float32)
    if n_out == 1:
        return jnp.zeros((1, n_in), jnp.float32).at[0, 0].set(1.0)
    scale = (n_in - 1) / (n_out - 1)
    src = jnp.arange(n_out, dtype=jnp.float32) * scale
    i0 = jnp.clip(jnp.floor(src).astype(jnp.int32), 0, n_in - 1)
    i1 = jnp.clip(i0 + 1, 0, n_in - 1)
    w1 = src - i0.astype(jnp.float32)
    w0 = 1.0 - w1
    return (w0[:, None] * jax.nn.one_hot(i0, n_in, dtype=jnp.float32)
            + w1[:, None] * jax.nn.one_hot(i1, n_in, dtype=jnp.float32))


def bilinear_resize_nhwc(x, Ho, Wo, out_dtype=jnp.bfloat16):
    """F.interpolate(mode='bilinear', align_corners=True), NHWC."""
    N, H, W, C = x.shape
    if H == 1 and W == 1:
        # single source pixel -> constant map; pure broadcast, no kernels
        return jnp.broadcast_to(x, (N, Ho, Wo, C)).astype(out_dtype)
    if H == Ho and W == Wo:
        return x.astype(out_dtype)
    x = x if x.dtype == jnp.bfloat16 else x.astype(jnp.bfloat16)
    Wh = _interp_matrix(Ho, H)
    Ww = _interp_matrix(Wo, W)
    # interpolate along H: (Ho,H) @ (H, N*W*C)  -- long dim on lanes
    xt = jnp.transpose(x, (1, 0, 2, 3)).reshape(H, N * W * C)
    y = pallas_matmul(Wh, xt).reshape(Ho, N, W, C)
    # interpolate along W: (Wo,W) @ (W, Ho*N*C)
    yt = jnp.transpose(y, (2, 0, 1, 3)).reshape(W, Ho * N * C)
    z = pallas_matmul(Ww, yt, out_dtype=out_dtype).reshape(Wo, Ho, N, C)
    return jnp.transpose(z, (2, 1, 0, 3))            # (N, Ho, Wo, C)


def global_avg_pool_nhwc(x):
    N, H, W, C = x.shape
    xt = x.reshape(N, H * W, C).transpose(1, 0, 2).reshape(H * W, N * C)
    ones = jnp.ones((1, H * W), jnp.float32)         # exact in bf16
    s = pallas_matmul(ones, xt, out_dtype=jnp.float32)   # (1, N*C) exact sum
    m = s * jnp.float32(1.0 / (H * W))               # scale kept in f32 (tiny tensor)
    return m.reshape(1, N, C).transpose(1, 0, 2).reshape(N, 1, 1, C)


# ----------------------------------------------------------------------------
# Model: backbone -> ASPP -> decoder -> final upsample (NHWC internally)
# ----------------------------------------------------------------------------
def bottleneck(x, p, stride=1, dilation=1):
    # identity branch returned padded/flat (bf16) and fused into c3's epilogue
    idn_flat = conv_pre(x, p["down"], stride=stride, relu=False, out_flat=True)
    out = conv_pre(x, p["c1"], relu=True)
    out = conv_pre(out, p["c2"], stride=stride, padding=dilation,
                   dilation=dilation, relu=True)
    return conv_pre(out, p["c3"], relu=True, residual=idn_flat)


def deeplab_forward(x_nchw, q):
    x = jnp.transpose(x_nchw, (0, 2, 3, 1)).astype(jnp.bfloat16)     # NHWC, bf16 once
    # ---- backbone (ResNet-style, output_stride=16) ----
    h = conv_pre(x, q["conv1"], stride=2, padding=3, relu=True)      # /2
    h = maxpool2d_nhwc(h)                                            # /4
    h = bottleneck(h, q["layer1"], stride=1)                         # /4
    low_level_feat = h
    h = bottleneck(h, q["layer2"], stride=2)                         # /8
    h = bottleneck(h, q["layer3"], stride=2)                         # /16
    h = bottleneck(h, q["layer4"], stride=1, dilation=2)             # /16 (atrous)

    # ---- ASPP ----
    a1 = conv_pre(h, q["aspp1"], relu=True)
    a2 = conv_pre(h, q["aspp2"], padding=6, dilation=6, relu=True)
    a3 = conv_pre(h, q["aspp3"], padding=12, dilation=12, relu=True)
    a4 = conv_pre(h, q["aspp4"], padding=18, dilation=18, relu=True)
    gap = global_avg_pool_nhwc(h)
    a5 = conv_pre(gap, q["gap_conv"], relu=True)
    a5 = bilinear_resize_nhwc(a5, h.shape[1], h.shape[2])            # pure broadcast
    h = jnp.concatenate([a1, a2, a3, a4, a5], axis=-1)
    h = conv_pre(h, q["aspp_proj"], relu=True)
    # (dropout: identity in eval mode)

    # ---- decoder ----
    low = conv_pre(low_level_feat, q["dec_low"], relu=True)
    h = bilinear_resize_nhwc(h, low.shape[1], low.shape[2])
    h = jnp.concatenate([h, low], axis=-1)
    h = conv_pre(h, q["dec_conv1"], padding=1, relu=True)
    h = conv_pre(h, q["dec_conv2"], padding=1, relu=True)
    h = conv_pre(h, q["cls"], relu=False)                            # 1x1 classifier

    # ---- final upsample to input resolution (f32 logits) ----
    h = bilinear_resize_nhwc(h, x_nchw.shape[2], x_nchw.shape[3],
                             out_dtype=jnp.float32)
    return jnp.transpose(h, (0, 3, 1, 2))                            # back to NCHW


# ----------------------------------------------------------------------------
# Parameter init (PyTorch layout) and one-time prep (BN fold, bf16, pre-pad)
# ----------------------------------------------------------------------------
def _init_bn(key, c):
    k1, k2, k3 = jax.random.split(key, 3)
    return {"gamma": 1.0 + 0.1 * jax.random.normal(k1, (c,), jnp.float32),
            "beta": 0.1 * jax.random.normal(k2, (c,), jnp.float32),
            "mean": 0.1 * jax.random.normal(k3, (c,), jnp.float32),
            "var": jnp.ones((c,), jnp.float32)}


def _make_cb(key, cin, cout, k):
    kw_, kb = jax.random.split(key)
    return {"w": 0.05 * jax.random.normal(kw_, (cout, cin, k, k), jnp.float32),
            "bn": _init_bn(kb, cout)}


def init_params(key, num_classes=21):
    keys = iter(jax.random.split(key, 64))
    nk = lambda: next(keys)

    def make_block(cin, mid, cout):
        return {"c1": _make_cb(nk(), cin, mid, 1),
                "c2": _make_cb(nk(), mid, mid, 3),
                "c3": _make_cb(nk(), mid, cout, 1),
                "down": _make_cb(nk(), cin, cout, 1)}

    p = {}
    p["conv1"] = _make_cb(nk(), 3, 16, 7)
    p["layer1"] = make_block(16, 8, 32)
    p["layer2"] = make_block(32, 16, 64)
    p["layer3"] = make_block(64, 32, 128)
    p["layer4"] = make_block(128, 64, 256)
    p["aspp1"] = _make_cb(nk(), 256, 64, 1)
    p["aspp2"] = _make_cb(nk(), 256, 64, 3)
    p["aspp3"] = _make_cb(nk(), 256, 64, 3)
    p["aspp4"] = _make_cb(nk(), 256, 64, 3)
    p["gap_conv"] = _make_cb(nk(), 256, 64, 1)
    p["aspp_proj"] = _make_cb(nk(), 5 * 64, 64, 1)
    p["dec_low"] = _make_cb(nk(), 32, 16, 1)
    p["dec_conv1"] = _make_cb(nk(), 64 + 16, 64, 3)
    p["dec_conv2"] = _make_cb(nk(), 64, 64, 3)
    p["cls_w"] = 0.05 * jax.random.normal(nk(), (num_classes, 64, 1, 1), jnp.float32)
    p["cls_b"] = 0.01 * jax.random.normal(nk(), (num_classes,), jnp.float32)
    return p


def _prep_conv(w, bias):
    """(Cout,Cin,kh,kw) torch weight -> pre-padded bf16 (Kp, Np) matrix + f32 bias."""
    cout, cin, kh, kw = w.shape
    K = kh * kw * cin
    Kp = _round_up(K, 16)
    Np = _round_up(cout, 128)
    wm = jnp.transpose(w, (2, 3, 1, 0)).reshape(K, cout)
    wm = jnp.pad(wm, ((0, Kp - K), (0, Np - cout))).astype(jnp.bfloat16)
    b = jnp.pad(bias.astype(jnp.float32), (0, Np - cout)).reshape(1, Np)
    return {"wm": wm, "bias": b, "kh": kh, "kw": kw, "cout": cout}


def _prep_conv_bn(cb, eps=1e-5):
    w, bn = cb["w"], cb["bn"]
    scale = bn["gamma"] / jnp.sqrt(bn["var"] + eps)
    bias = bn["beta"] - bn["mean"] * scale
    return _prep_conv(w * scale[:, None, None, None], bias)


def prepare_params(p):
    q = {}
    for name in ["conv1", "aspp1", "aspp2", "aspp3", "aspp4", "gap_conv",
                 "aspp_proj", "dec_low", "dec_conv1", "dec_conv2"]:
        q[name] = _prep_conv_bn(p[name])
    for name in ["layer1", "layer2", "layer3", "layer4"]:
        q[name] = {k: _prep_conv_bn(v) for k, v in p[name].items()}
    q["cls"] = _prep_conv(p["cls_w"], p["cls_b"])
    return q


if __name__ == "__main__":
    key = jax.random.PRNGKey(0)
    pkey, xkey = jax.random.split(key)
    params = init_params(pkey, num_classes=21)
    prepped = prepare_params(params)          # BN fold + bf16 + padding: once
    x = jax.random.normal(xkey, (2, 3, 64, 64), jnp.float32)

    # Close over the prepped params so kh/kw/cout remain static Python ints
    # (passing the dict through jit traced them and broke the kernel-shape logic).
    fwd = jax.jit(functools.partial(deeplab_forward, q=prepped))
    out = jax.block_until_ready(fwd(x))

    assert out.shape == (2, 21, 64, 64), out.shape
    assert out.dtype == jnp.float32
    assert bool(jnp.all(jnp.isfinite(out)))
    print("KERNEL_OK")
</pallas_src>

<mosaic_0001>
module attributes {stable_mosaic.version = 11 : i64} {
  func.func @_mm_kernel(%arg0: i32, %arg1: i32, %arg2: memref<512x160xbf16, #tpu.memory_space<vmem>>, %arg3: memref<160x128xbf16, #tpu.memory_space<vmem>>, %arg4: memref<1x128xf32, #tpu.memory_space<vmem>>, %arg5: memref<512x128xbf16, #tpu.memory_space<vmem>>) attributes {dimension_semantics = [#tpu.dimension_semantics<parallel>, #tpu.dimension_semantics<parallel>], iteration_bounds = array<i64: 4, 1>, scalar_prefetch = 0 : i64, scratch_operands = 0 : i64, tpu.core_type = #tpu.core_type<tc>, window_params = [{transform_indices = @transform_0, window_bounds = array<i64: 512, 160>}, {transform_indices = @transform_1, window_bounds = array<i64: 160, 128>}, {transform_indices = @transform_2, window_bounds = array<i64: 1, 128>}, {transform_indices = @transform_3, window_bounds = array<i64: 512, 128>}]} {
    %c0 = arith.constant 0 : index
    %c0_0 = arith.constant 0 : index
    %0 = vector.load %arg2[%c0, %c0_0] : memref<512x160xbf16, #tpu.memory_space<vmem>>, vector<512x160xbf16>
    %c0_1 = arith.constant 0 : index
    %c0_2 = arith.constant 0 : index
    %1 = vector.load %arg3[%c0_1, %c0_2] : memref<160x128xbf16, #tpu.memory_space<vmem>>, vector<160x128xbf16>
    %cst = arith.constant dense<0.000000e+00> : vector<512x128xf32>
    %2 = tpu.matmul %0, %1, %cst {dimension_numbers = #tpu.dot_dimension_numbers<[1], [0], [0], [1], [0, 0, 1, 1], [], []>} : vector<512x160xbf16>, vector<160x128xbf16>, vector<512x128xf32> -> vector<512x128xf32>
    %c0_3 = arith.constant 0 : index
    %c0_4 = arith.constant 0 : index
    %3 = vector.load %arg4[%c0_3, %c0_4] : memref<1x128xf32, #tpu.memory_space<vmem>>, vector<1x128xf32>
    %4 = vector.broadcast %3 : vector<1x128xf32> to vector<512x128xf32>
    %5 = arith.addf %2, %4 : vector<512x128xf32>
    %cst_5 = arith.constant 0.000000e+00 : f32
    %6 = vector.broadcast %cst_5 : f32 to vector<512x128xf32>
    %7 = arith.maximumf %5, %6 : vector<512x128xf32>
    %8 = arith.truncf %7 : vector<512x128xf32> to vector<512x128xbf16>
    %c0_6 = arith.constant 0 : index
    %c0_7 = arith.constant 0 : index
    %9 = vector.load %arg5[%c0_6, %c0_7] : memref<512x128xbf16, #tpu.memory_space<vmem>>, vector<512x128xbf16>
    tpu.vector_store %arg5[%c0_6, %c0_7], %8 {strides = array<i32>} : memref<512x128xbf16, #tpu.memory_space<vmem>>, vector<512x128xbf16>,
    return
  }
  func.func @transform_0(%arg0: i32, %arg1: i32) -> (i32, i32) {
    %c0_i32 = arith.constant 0 : i32
    %c0_i32_0 = arith.constant 0 : i32
    return %arg0, %c0_i32 : i32, i32
  }
  func.func @transform_1(%arg0: i32, %arg1: i32) -> (i32, i32) {
    %c0_i32 = arith.constant 0 : i32
    %c0_i32_0 = arith.constant 0 : i32
    return %c0_i32, %arg1 : i32, i32
  }
  func.func @transform_2(%arg0: i32, %arg1: i32) -> (i32, i32) {
    %c0_i32 = arith.constant 0 : i32
    %c0_i32_0 = arith.constant 0 : i32
    return %c0_i32, %arg1 : i32, i32
  }
  func.func @transform_3(%arg0: i32, %arg1: i32) -> (i32, i32) {
    %c0_i32 = arith.constant 0 : i32
    return %arg0, %arg1 : i32, i32
  }
}

module attributes {stable_mosaic.version = 11 : i64} {
  func.func @_mm_kernel(%arg0: i32, %arg1: i32, %arg2: memref<256x16xbf16, #tpu.memory_space<vmem>>, %arg3: memref<16x128xbf16, #tpu.memory_space<vmem>>, %arg4: memref<1x128xf32, #tpu.memory_space<vmem>>, %arg5: memref<256x128xbf16, #tpu.memory_space<vmem>>) attributes {dimension_semantics = [#tpu.dimension_semantics<parallel>, #tpu.dimension_semantics<parallel>], iteration_bounds = array<i64: 2, 1>, scalar_prefetch = 0 : i64, scratch_operands = 0 : i64, tpu.core_type = #tpu.core_type<tc>, window_params = [{transform_indices = @transform_0, window_bounds = array<i64: 256, 16>}, {transform_indices = @transform_1, window_bounds = array<i64: 16, 128>}, {transform_indices = @transform_2, window_bounds = array<i64: 1, 128>}, {transform_indices = @transform_3, window_bounds = array<i64: 256, 128>}]} {
    %c0 = arith.constant 0 : index
    %c0_0 = arith.constant 0 : index
    %0 = vector.load %arg2[%c0, %c0_0] : memref<256x16xbf16, #tpu.memory_space<vmem>>, vector<256x16xbf16>
    %c0_1 = arith.constant 0 : index
    %c0_2 = arith.constant 0 : index
    %1 = vector.load %arg3[%c0_1, %c0_2] : memref<16x128xbf16, #tpu.memory_space<vmem>>, vector<16x128xbf16>
    %cst = arith.constant dense<0.000000e+00> : vector<256x128xf32>
    %2 = tpu.matmul %0, %1, %cst {dimension_numbers = #tpu.dot_dimension_numbers<[1], [0], [0], [1], [0, 0, 1, 1], [], []>} : vector<256x16xbf16>, vector<16x128xbf16>, vector<256x128xf32> -> vector<256x128xf32>
    %c0_3 = arith.constant 0 : index
    %c0_4 = arith.constant 0 : index
    %3 = vector.load %arg4[%c0_3, %c0_4] : memref<1x128xf32, #tpu.memory_space<vmem>>, vector<1x128xf32>
    %4 = vector.broadcast %3 : vector<1x128xf32> to vector<256x128xf32>
    %5 = arith.addf %2, %4 : vector<256x128xf32>
    %cst_5 = arith.constant 0.000000e+00 : f32
    %6 = vector.broadcast %cst_5 : f32 to vector<256x128xf32>
    %7 = arith.maximumf %5, %6 : vector<256x128xf32>
    %8 = arith.truncf %7 : vector<256x128xf32> to vector<256x128xbf16>
    %c0_6 = arith.constant 0 : index
    %c0_7 = arith.constant 0 : index
    %9 = vector.load %arg5[%c0_6, %c0_7] : memref<256x128xbf16, #tpu.memory_space<vmem>>, vector<256x128xbf16>
    tpu.vector_store %arg5[%c0_6, %c0_7], %8 {strides = array<i32>} : memref<256x128xbf16, #tpu.memory_space<vmem>>, vector<256x128xbf16>,
    return
  }
  func.func @transform_0(%arg0: i32, %arg1: i32) -> (i32, i32) {
    %c0_i32 = arith.constant 0 : i32
    %c0_i32_0 = arith.constant 0 : i32
    return %arg0, %c0_i32 : i32, i32
  }
  func.func @transform_1(%arg0: i32, %arg1: i32) -> (i32, i32) {
    %c0_i32 = arith.constant 0 : i32
    %c0_i32_0 = arith.constant 0 : i32
    return %c0_i32, %arg1 : i32, i32
  }
  func.func @transform_2(%arg0: i32, %arg1: i32) -> (i32, i32) {
    %c0_i32 = arith.constant 0 : i32
    %c0_i32_0 = arith.constant 0 : i32
    return %c0_i32, %arg1 : i32, i32
  }
  func.func @transform_3(%arg0: i32, %arg1: i32) -> (i32, i32) {
    %c0_i32 = arith.constant 0 : i32
    return %arg0, %arg1 : i32, i32
  }
}

module attributes {stable_mosaic.version = 11 : i64} {
  func.func @_mm_kernel(%arg0: i32, %arg1: i32, %arg2: memref<256x80xbf16, #tpu.memory_space<vmem>>, %arg3: memref<80x128xbf16, #tpu.memory_space<vmem>>, %arg4: memref<1x128xf32, #tpu.memory_space<vmem>>, %arg5: memref<256x128xbf16, #tpu.memory_space<vmem>>) attributes {dimension_semantics = [#tpu.dimension_semantics<parallel>, #tpu.dimension_semantics<parallel>], iteration_bounds = array<i64: 2, 1>, scalar_prefetch = 0 : i64, scratch_operands = 0 : i64, tpu.core_type = #tpu.core_type<tc>, window_params = [{transform_indices = @transform_0, window_bounds = array<i64: 256, 80>}, {transform_indices = @transform_1, window_bounds = array<i64: 80, 128>}, {transform_indices = @transform_2, window_bounds = array<i64: 1, 128>}, {transform_indices = @transform_3, window_bounds = array<i64: 256, 128>}]} {
    %c0 = arith.constant 0 : index
    %c0_0 = arith.constant 0 : index
    %0 = vector.load %arg2[%c0, %c0_0] : memref<256x80xbf16, #tpu.memory_space<vmem>>, vector<256x80xbf16>
    %c0_1 = arith.constant 0 : index
    %c0_2 = arith.constant 0 : index
    %1 = vector.load %arg3[%c0_1, %c0_2] : memref<80x128xbf16, #tpu.memory_space<vmem>>, vector<80x128xbf16>
    %cst = arith.constant dense<0.000000e+00> : vector<256x128xf32>
    %2 = tpu.matmul %0, %1, %cst {dimension_numbers = #tpu.dot_dimension_numbers<[1], [0], [0], [1], [0, 0, 1, 1], [], []>} : vector<256x80xbf16>, vector<80x128xbf16>, vector<256x128xf32> -> vector<256x128xf32>
    %c0_3 = arith.constant 0 : index
    %c0_4 = arith.constant 0 : index
    %3 = vector.load %arg4[%c0_3, %c0_4] : memref<1x128xf32, #tpu.memory_space<vmem>>, vector<1x128xf32>
    %4 = vector.broadcast %3 : vector<1x128xf32> to vector<256x128xf32>
    %5 = arith.addf %2, %4 : vector<256x128xf32>
    %cst_5 = arith.constant 0.000000e+00 : f32
    %6 = vector.broadcast %cst_5 : f32 to vector<256x128xf32>
    %7 = arith.maximumf %5, %6 : vector<256x128xf32>
    %8 = arith.truncf %7 : vector<256x128xf32> to vector<256x128xbf16>
    %c0_6 = arith.constant 0 : index
    %c0_7 = arith.constant 0 : index
    %9 = vector.load %arg5[%c0_6, %c0_7] : memref<256x128xbf16, #tpu.memory_space<vmem>>, vector<256x128xbf16>
    tpu.vector_store %arg5[%c0_6, %c0_7], %8 {strides = array<i32>} : memref<256x128xbf16, #tpu.memory_space<vmem>>, vector<256x128xbf16>,
    return
  }
  func.func @transform_0(%arg0: i32, %arg1: i32) -> (i32, i32) {
    %c0_i32 = arith.constant 0 : i32
    %c0_i32_0 = arith.constant 0 : i32
    return %arg0, %c0_i32 : i32, i32
  }
  func.func @transform_1(%arg0: i32, %arg1: i32) -> (i32, i32) {
    %c0_i32 = arith.constant 0 : i32
    %c0_i32_0 = arith.constant 0 : i32
    return %c0_i32, %arg1 : i32, i32
  }
  func.func @transform_2(%arg0: i32, %arg1: i32) -> (i32, i32) {
    %c0_i32 = arith.constant 0 : i32
    %c0_i32_0 = arith.constant 0 : i32
    return %c0_i32, %arg1 : i32, i32
  }
  func.func @transform_3(%arg0: i32, %arg1: i32) -> (i32, i32) {
    %c0_i32 = arith.constant 0 : i32
    return %arg0, %arg1 : i32, i32
  }
}

module attributes {stable_mosaic.version = 11 : i64} {
  func.func @_mm_res_kernel(%arg0: i32, %arg1: i32, %arg2: memref<256x16xbf16, #tpu.memory_space<vmem>>, %arg3: memref<16x128xbf16, #tpu.memory_space<vmem>>, %arg4: memref<1x128xf32, #tpu.memory_space<vmem>>, %arg5: memref<256x128xbf16, #tpu.memory_space<vmem>>, %arg6: memref<256x128xbf16, #tpu.memory_space<vmem>>) attributes {dimension_semantics = [#tpu.dimension_semantics<parallel>, #tpu.dimension_semantics<parallel>], iteration_bounds = array<i64: 2, 1>, scalar_prefetch = 0 : i64, scratch_operands = 0 : i64, tpu.core_type = #tpu.core_type<tc>, window_params = [{transform_indices = @transform_0, window_bounds = array<i64: 256, 16>}, {transform_indices = @transform_1, window_bounds = array<i64: 16, 128>}, {transform_indices = @transform_2, window_bounds = array<i64: 1, 128>}, {transform_indices = @transform_3, window_bounds = array<i64: 256, 128>}, {transform_indices = @transform_4, window_bounds = array<i64: 256, 128>}]} {
    %c0 = arith.constant 0 : index
    %c0_0 = arith.constant 0 : index
    %0 = vector.load %arg2[%c0, %c0_0] : memref<256x16xbf16, #tpu.memory_space<vmem>>, vector<256x16xbf16>
    %c0_1 = arith.constant 0 : index
    %c0_2 = arith.constant 0 : index
    %1 = vector.load %arg3[%c0_1, %c0_2] : memref<16x128xbf16, #tpu.memory_space<vmem>>, vector<16x128xbf16>
    %cst = arith.constant dense<0.000000e+00> : vector<256x128xf32>
    %2 = tpu.matmul %0, %1, %cst {dimension_numbers = #tpu.dot_dimension_numbers<[1], [0], [0], [1], [0, 0, 1, 1], [], []>} : vector<256x16xbf16>, vector<16x128xbf16>, vector<256x128xf32> -> vector<256x128xf32>
    %c0_3 = arith.constant 0 : index
    %c0_4 = arith.constant 0 : index
    %3 = vector.load %arg4[%c0_3, %c0_4] : memref<1x128xf32, #tpu.memory_space<vmem>>, vector<1x128xf32>
    %4 = vector.broadcast %3 : vector<1x128xf32> to vector<256x128xf32>
    %5 = arith.addf %2, %4 : vector<256x128xf32>
    %c0_5 = arith.constant 0 : index
    %c0_6 = arith.constant 0 : index
    %6 = vector.load %arg5[%c0_5, %c0_6] : memref<256x128xbf16, #tpu.memory_space<vmem>>, vector<256x128xbf16>
    %7 = arith.extf %6 : vector<256x128xbf16> to vector<256x128xf32>
    %8 = arith.addf %5, %7 : vector<256x128xf32>
    %cst_7 = arith.constant 0.000000e+00 : f32
    %9 = vector.broadcast %cst_7 : f32 to vector<256x128xf32>
    %10 = arith.maximumf %8, %9 : vector<256x128xf32>
    %11 = arith.truncf %10 : vector<256x128xf32> to vector<256x128xbf16>
    %c0_8 = arith.constant 0 : index
    %c0_9 = arith.constant 0 : index
    %12 = vector.load %arg6[%c0_8, %c0_9] : memref<256x128xbf16, #tpu.memory_space<vmem>>, vector<256x128xbf16>
    tpu.vector_store %arg6[%c0_8, %c0_9], %11 {strides = array<i32>} : memref<256x128xbf16, #tpu.memory_space<vmem>>, vector<256x128xbf16>,
    return
  }
  func.func @transform_0(%arg0: i32, %arg1: i32) -> (i32, i32) {
    %c0_i32 = arith.constant 0 : i32
    %c0_i32_0 = arith.constant 0 : i32
    return %arg0, %c0_i32 : i32, i32
  }
  func.func @transform_1(%arg0: i32, %arg1: i32) -> (i32, i32) {
    %c0_i32 = arith.constant 0 : i32
    %c0_i32_0 = arith.constant 0 : i32
    return %c0_i32, %arg1 : i32, i32
  }
  func.func @transform_2(%arg0: i32, %arg1: i32) -> (i32, i32) {
    %c0_i32 = arith.constant 0 : i32
    %c0_i32_0 = arith.constant 0 : i32
    return %c0_i32, %arg1 : i32, i32
  }
  func.func @transform_3(%arg0: i32, %arg1: i32) -> (i32, i32) {
    %c0_i32 = arith.constant 0 : i32
    return %arg0, %arg1 : i32, i32
  }
  func.func @transform_4(%arg0: i32, %arg1: i32) -> (i32, i32) {
    %c0_i32 = arith.constant 0 : i32
    return %arg0, %arg1 : i32, i32
  }
}

module attributes {stable_mosaic.version = 11 : i64} {
  func.func @_mm_kernel(%arg0: i32, %arg1: i32, %arg2: memref<256x16xbf16, #tpu.memory_space<vmem>>, %arg3: memref<16x128xbf16, #tpu.memory_space<vmem>>, %arg4: memref<1x128xf32, #tpu.memory_space<vmem>>, %arg5: memref<256x128xbf16, #tpu.memory_space<vmem>>) attributes {dimension_semantics = [#tpu.dimension_semantics<parallel>, #tpu.dimension_semantics<parallel>], iteration_bounds = array<i64: 2, 1>, scalar_prefetch = 0 : i64, scratch_operands = 0 : i64, tpu.core_type = #tpu.core_type<tc>, window_params = [{transform_indices = @transform_0, window_bounds = array<i64: 256, 16>}, {transform_indices = @transform_1, window_bounds = array<i64: 16, 128>}, {transform_indices = @transform_2, window_bounds = array<i64: 1, 128>}, {transform_indices = @transform_3, window_bounds = array<i64: 256, 128>}]} {
    %c0 = arith.constant 0 : index
    %c0_0 = arith.constant 0 : index
    %0 = vector.load %arg2[%c0, %c0_0] : memref<256x16xbf16, #tpu.memory_space<vmem>>, vector<256x16xbf16>
    %c0_1 = arith.constant 0 : index
    %c0_2 = arith.constant 0 : index
    %1 = vector.load %arg3[%c0_1, %c0_2] : memref<16x128xbf16, #tpu.memory_space<vmem>>, vector<16x128xbf16>
    %cst = arith.constant dense<0.000000e+00> : vector<256x128xf32>
    %2 = tpu.matmul %0, %1, %cst {dimension_numbers = #tpu.dot_dimension_numbers<[1], [0], [0], [1], [0, 0, 1, 1], [], []>} : vector<256x16xbf16>, vector<16x128xbf16>, vector<256x128xf32> -> vector<256x128xf32>
    %c0_3 = arith.constant 0 : index
    %c0_4 = arith.constant 0 : index
    %3 = vector.load %arg4[%c0_3, %c0_4] : memref<1x128xf32, #tpu.memory_space<vmem>>, vector<1x128xf32>
    %4 = vector.broadcast %3 : vector<1x128xf32> to vector<256x128xf32>
    %5 = arith.addf %2, %4 : vector<256x128xf32>
    %6 = arith.truncf %5 : vector<256x128xf32> to vector<256x128xbf16>
    %c0_5 = arith.constant 0 : index
    %c0_6 = arith.constant 0 : index
    %7 = vector.load %arg5[%c0_5, %c0_6] : memref<256x128xbf16, #tpu.memory_space<vmem>>, vector<256x128xbf16>
    tpu.vector_store %arg5[%c0_5, %c0_6], %6 {strides = array<i32>} : memref<256x128xbf16, #tpu.memory_space<vmem>>, vector<256x128xbf16>,
    return
  }
  func.func @transform_0(%arg0: i32, %arg1: i32) -> (i32, i32) {
    %c0_i32 = arith.constant 0 : i32
    %c0_i32_0 = arith.constant 0 : i32
    return %arg0, %c0_i32 : i32, i32
  }
  func.func @transform_1(%arg0: i32, %arg1: i32) -> (i32, i32) {
    %c0_i32 = arith.constant 0 : i32
    %c0_i32_0 = arith.constant 0 : i32
    return %c0_i32, %arg1 : i32, i32
  }
  func.func @transform_2(%arg0: i32, %arg1: i32) -> (i32, i32) {
    %c0_i32 = arith.constant 0 : i32
    %c0_i32_0 = arith.constant 0 : i32
    return %c0_i32, %arg1 : i32, i32
  }
  func.func @transform_3(%arg0: i32, %arg1: i32) -> (i32, i32) {
    %c0_i32 = arith.constant 0 : i32
    return %arg0, %arg1 : i32, i32
  }
}

module attributes {stable_mosaic.version = 11 : i64} {
  func.func @_mm_kernel(%arg0: i32, %arg1: i32, %arg2: memref<256x32xbf16, #tpu.memory_space<vmem>>, %arg3: memref<32x128xbf16, #tpu.memory_space<vmem>>, %arg4: memref<1x128xf32, #tpu.memory_space<vmem>>, %arg5: memref<256x128xbf16, #tpu.memory_space<vmem>>) attributes {dimension_semantics = [#tpu.dimension_semantics<parallel>, #tpu.dimension_semantics<parallel>], iteration_bounds = array<i64: 2, 1>, scalar_prefetch = 0 : i64, scratch_operands = 0 : i64, tpu.core_type = #tpu.core_type<tc>, window_params = [{transform_indices = @transform_0, window_bounds = array<i64: 256, 32>}, {transform_indices = @transform_1, window_bounds = array<i64: 32, 128>}, {transform_indices = @transform_2, window_bounds = array<i64: 1, 128>}, {transform_indices = @transform_3, window_bounds = array<i64: 256, 128>}]} {
    %c0 = arith.constant 0 : index
    %c0_0 = arith.constant 0 : index
    %0 = vector.load %arg2[%c0, %c0_0] : memref<256x32xbf16, #tpu.memory_space<vmem>>, vector<256x32xbf16>
    %c0_1 = arith.constant 0 : index
    %c0_2 = arith.constant 0 : index
    %1 = vector.load %arg3[%c0_1, %c0_2] : memref<32x128xbf16, #tpu.memory_space<vmem>>, vector<32x128xbf16>
    %cst = arith.constant dense<0.000000e+00> : vector<256x128xf32>
    %2 = tpu.matmul %0, %1, %cst {dimension_numbers = #tpu.dot_dimension_numbers<[1], [0], [0], [1], [0, 0, 1, 1], [], []>} : vector<256x32xbf16>, vector<32x128xbf16>, vector<256x128xf32> -> vector<256x128xf32>
    %c0_3 = arith.constant 0 : index
    %c0_4 = arith.constant 0 : index
    %3 = vector.load %arg4[%c0_3, %c0_4] : memref<1x128xf32, #tpu.memory_space<vmem>>, vector<1x128xf32>
    %4 = vector.broadcast %3 : vector<1x128xf32> to vector<256x128xf32>
    %5 = arith.addf %2, %4 : vector<256x128xf32>
    %cst_5 = arith.constant 0.000000e+00 : f32
    %6 = vector.broadcast %cst_5 : f32 to vector<256x128xf32>
    %7 = arith.maximumf %5, %6 : vector<256x128xf32>
    %8 = arith.truncf %7 : vector<256x128xf32> to vector<256x128xbf16>
    %c0_6 = arith.constant 0 : index
    %c0_7 = arith.constant 0 : index
    %9 = vector.load %arg5[%c0_6, %c0_7] : memref<256x128xbf16, #tpu.memory_space<vmem>>, vector<256x128xbf16>
    tpu.vector_store %arg5[%c0_6, %c0_7], %8 {strides = array<i32>} : memref<256x128xbf16, #tpu.memory_space<vmem>>, vector<256x128xbf16>,
    return
  }
  func.func @transform_0(%arg0: i32, %arg1: i32) -> (i32, i32) {
    %c0_i32 = arith.constant 0 : i32
    %c0_i32_0 = arith.constant 0 : i32
    return %arg0, %c0_i32 : i32, i32
  }
  func.func @transform_1(%arg0: i32, %arg1: i32) -> (i32, i32) {
    %c0_i32 = arith.constant 0 : i32
    %c0_i32_0 = arith.constant 0 : i32
    return %c0_i32, %arg1 : i32, i32
  }
  func.func @transform_2(%arg0: i32, %arg1: i32) -> (i32, i32) {
    %c0_i32 = arith.constant 0 : i32
    %c0_i32_0 = arith.constant 0 : i32
    return %c0_i32, %arg1 : i32, i32
  }
  func.func @transform_3(%arg0: i32, %arg1: i32) -> (i32, i32) {
    %c0_i32 = arith.constant 0 : i32
    return %arg0, %arg1 : i32, i32
  }
}

module attributes {stable_mosaic.version = 11 : i64} {
  func.func @_mm_kernel(%arg0: i32, %arg1: i32, %arg2: memref<128x144xbf16, #tpu.memory_space<vmem>>, %arg3: memref<144x128xbf16, #tpu.memory_space<vmem>>, %arg4: memref<1x128xf32, #tpu.memory_space<vmem>>, %arg5: memref<128x128xbf16, #tpu.memory_space<vmem>>) attributes {dimension_semantics = [#tpu.dimension_semantics<parallel>, #tpu.dimension_semantics<parallel>], iteration_bounds = array<i64: 1, 1>, scalar_prefetch = 0 : i64, scratch_operands = 0 : i64, tpu.core_type = #tpu.core_type<tc>, window_params = [{transform_indices = @transform_0, window_bounds = array<i64: 128, 144>}, {transform_indices = @transform_1, window_bounds = array<i64: 144, 128>}, {transform_indices = @transform_2, window_bounds = array<i64: 1, 128>}, {transform_indices = @transform_3, window_bounds = array<i64: 128, 128>}]} {
    %c0 = arith.constant 0 : index
    %c0_0 = arith.constant 0 : index
    %0 = vector.load %arg2[%c0, %c0_0] : memref<128x144xbf16, #tpu.memory_space<vmem>>, vector<128x144xbf16>
    %c0_1 = arith.constant 0 : index
    %c0_2 = arith.constant 0 : index
    %1 = vector.load %arg3[%c0_1, %c0_2] : memref<144x128xbf16, #tpu.memory_space<vmem>>, vector<144x128xbf16>
    %cst = arith.constant dense<0.000000e+00> : vector<128x128xf32>
    %2 = tpu.matmul %0, %1, %cst {dimension_numbers = #tpu.dot_dimension_numbers<[1], [0], [0], [1], [0, 0, 1, 1], [], []>} : vector<128x144xbf16>, vector<144x128xbf16>, vector<128x128xf32> -> vector<128x128xf32>
    %c0_3 = arith.constant 0 : index
    %c0_4 = arith.constant 0 : index
    %3 = vector.load %arg4[%c0_3, %c0_4] : memref<1x128xf32, #tpu.memory_space<vmem>>, vector<1x128xf32>
    %4 = vector.broadcast %3 : vector<1x128xf32> to vector<128x128xf32>
    %5 = arith.addf %2, %4 : vector<128x128xf32>
    %cst_5 = arith.constant 0.000000e+00 : f32
    %6 = vector.broadcast %cst_5 : f32 to vector<128x128xf32>
    %7 = arith.maximumf %5, %6 : vector<128x128xf32>
    %8 = arith.truncf %7 : vector<128x128xf32> to vector<128x128xbf16>
    %c0_6 = arith.constant 0 : index
    %c0_7 = arith.constant 0 : index
    %9 = vector.load %arg5[%c0_6, %c0_7] : memref<128x128xbf16, #tpu.memory_space<vmem>>, vector<128x128xbf16>
    tpu.vector_store %arg5[%c0_6, %c0_7], %8 {strides = array<i32>} : memref<128x128xbf16, #tpu.memory_space<vmem>>, vector<128x128xbf16>,
    return
  }
  func.func @transform_0(%arg0: i32, %arg1: i32) -> (i32, i32) {
    %c0_i32 = arith.constant 0 : i32
    %c0_i32_0 = arith.constant 0 : i32
    return %arg0, %c0_i32 : i32, i32
  }
  func.func @transform_1(%arg0: i32, %arg1: i32) -> (i32, i32) {
    %c0_i32 = arith.constant 0 : i32
    %c0_i32_0 = arith.constant 0 : i32
    return %c0_i32, %arg1 : i32, i32
  }
  func.func @transform_2(%arg0: i32, %arg1: i32) -> (i32, i32) {
    %c0_i32 = arith.constant 0 : i32
    %c0_i32_0 = arith.constant 0 : i32
    return %c0_i32, %arg1 : i32, i32
  }
  func.func @transform_3(%arg0: i32, %arg1: i32) -> (i32, i32) {
    %c0_i32 = arith.constant 0 : i32
    return %arg0, %arg1 : i32, i32
  }
}

module attributes {stable_mosaic.version = 11 : i64} {
  func.func @_mm_kernel(%arg0: i32, %arg1: i32, %arg2: memref<128x32xbf16, #tpu.memory_space<vmem>>, %arg3: memref<32x128xbf16, #tpu.memory_space<vmem>>, %arg4: memref<1x128xf32, #tpu.memory_space<vmem>>, %arg5: memref<128x128xbf16, #tpu.memory_space<vmem>>) attributes {dimension_semantics = [#tpu.dimension_semantics<parallel>, #tpu.dimension_semantics<parallel>], iteration_bounds = array<i64: 1, 1>, scalar_prefetch = 0 : i64, scratch_operands = 0 : i64, tpu.core_type = #tpu.core_type<tc>, window_params = [{transform_indices = @transform_0, window_bounds = array<i64: 128, 32>}, {transform_indices = @transform_1, window_bounds = array<i64: 32, 128>}, {transform_indices = @transform_2, window_bounds = array<i64: 1, 128>}, {transform_indices = @transform_3, window_bounds = array<i64: 128, 128>}]} {
    %c0 = arith.constant 0 : index
    %c0_0 = arith.constant 0 : index
    %0 = vector.load %arg2[%c0, %c0_0] : memref<128x32xbf16, #tpu.memory_space<vmem>>, vector<128x32xbf16>
    %c0_1 = arith.constant 0 : index
    %c0_2 = arith.constant 0 : index
    %1 = vector.load %arg3[%c0_1, %c0_2] : memref<32x128xbf16, #tpu.memory_space<vmem>>, vector<32x128xbf16>
    %cst = arith.constant dense<0.000000e+00> : vector<128x128xf32>
    %2 = tpu.matmul %0, %1, %cst {dimension_numbers = #tpu.dot_dimension_numbers<[1], [0], [0], [1], [0, 0, 1, 1], [], []>} : vector<128x32xbf16>, vector<32x128xbf16>, vector<128x128xf32> -> vector<128x128xf32>
    %c0_3 = arith.constant 0 : index
    %c0_4 = arith.constant 0 : index
    %3 = vector.load %arg4[%c0_3, %c0_4] : memref<1x128xf32, #tpu.memory_space<vmem>>, vector<1x128xf32>
    %4 = vector.broadcast %3 : vector<1x128xf32> to vector<128x128xf32>
    %5 = arith.addf %2, %4 : vector<128x128xf32>
    %6 = arith.truncf %5 : vector<128x128xf32> to vector<128x128xbf16>
    %c0_5 = arith.constant 0 : index
    %c0_6 = arith.constant 0 : index
    %7 = vector.load %arg5[%c0_5, %c0_6] : memref<128x128xbf16, #tpu.memory_space<vmem>>, vector<128x128xbf16>
    tpu.vector_store %arg5[%c0_5, %c0_6], %6 {strides = array<i32>} : memref<128x128xbf16, #tpu.memory_space<vmem>>, vector<128x128xbf16>,
    return
  }
  func.func @transform_0(%arg0: i32, %arg1: i32) -> (i32, i32) {
    %c0_i32 = arith.constant 0 : i32
    %c0_i32_0 = arith.constant 0 : i32
    return %arg0, %c0_i32 : i32, i32
  }
  func.func @transform_1(%arg0: i32, %arg1: i32) -> (i32, i32) {
    %c0_i32 = arith.constant 0 : i32
    %c0_i32_0 = arith.constant 0 : i32
    return %c0_i32, %arg1 : i32, i32
  }
  func.func @transform_2(%arg0: i32, %arg1: i32) -> (i32, i32) {
    %c0_i32 = arith.constant 0 : i32
    %c0_i32_0 = arith.constant 0 : i32
    return %c0_i32, %arg1 : i32, i32
  }
  func.func @transform_3(%arg0: i32, %arg1: i32) -> (i32, i32) {
    %c0_i32 = arith.constant 0 : i32
    return %arg0, %arg1 : i32, i32
  }
}

module attributes {stable_mosaic.version = 11 : i64} {
  func.func @_mm_res_kernel(%arg0: i32, %arg1: i32, %arg2: memref<128x16xbf16, #tpu.memory_space<vmem>>, %arg3: memref<16x128xbf16, #tpu.memory_space<vmem>>, %arg4: memref<1x128xf32, #tpu.memory_space<vmem>>, %arg5: memref<128x128xbf16, #tpu.memory_space<vmem>>, %arg6: memref<128x128xbf16, #tpu.memory_space<vmem>>) attributes {dimension_semantics = [#tpu.dimension_semantics<parallel>, #tpu.dimension_semantics<parallel>], iteration_bounds = array<i64: 1, 1>, scalar_prefetch = 0 : i64, scratch_operands = 0 : i64, tpu.core_type = #tpu.core_type<tc>, window_params = [{transform_indices = @transform_0, window_bounds = array<i64: 128, 16>}, {transform_indices = @transform_1, window_bounds = array<i64: 16, 128>}, {transform_indices = @transform_2, window_bounds = array<i64: 1, 128>}, {transform_indices = @transform_3, window_bounds = array<i64: 128, 128>}, {transform_indices = @transform_4, window_bounds = array<i64: 128, 128>}]} {
    %c0 = arith.constant 0 : index
    %c0_0 = arith.constant 0 : index
    %0 = vector.load %arg2[%c0, %c0_0] : memref<128x16xbf16, #tpu.memory_space<vmem>>, vector<128x16xbf16>
    %c0_1 = arith.constant 0 : index
    %c0_2 = arith.constant 0 : index
    %1 = vector.load %arg3[%c0_1, %c0_2] : memref<16x128xbf16, #tpu.memory_space<vmem>>, vector<16x128xbf16>
    %cst = arith.constant dense<0.000000e+00> : vector<128x128xf32>
    %2 = tpu.matmul %0, %1, %cst {dimension_numbers = #tpu.dot_dimension_numbers<[1], [0], [0], [1], [0, 0, 1, 1], [], []>} : vector<128x16xbf16>, vector<16x128xbf16>, vector<128x128xf32> -> vector<128x128xf32>
    %c0_3 = arith.constant 0 : index
    %c0_4 = arith.constant 0 : index
    %3 = vector.load %arg4[%c0_3, %c0_4] : memref<1x128xf32, #tpu.memory_space<vmem>>, vector<1x128xf32>
    %4 = vector.broadcast %3 : vector<1x128xf32> to vector<128x128xf32>
    %5 = arith.addf %2, %4 : vector<128x128xf32>
    %c0_5 = arith.constant 0 : index
    %c0_6 = arith.constant 0 : index
    %6 = vector.load %arg5[%c0_5, %c0_6] : memref<128x128xbf16, #tpu.memory_space<vmem>>, vector<128x128xbf16>
    %7 = arith.extf %6 : vector<128x128xbf16> to vector<128x128xf32>
    %8 = arith.addf %5, %7 : vector<128x128xf32>
    %cst_7 = arith.constant 0.000000e+00 : f32
    %9 = vector.broadcast %cst_7 : f32 to vector<128x128xf32>
    %10 = arith.maximumf %8, %9 : vector<128x128xf32>
    %11 = arith.truncf %10 : vector<128x128xf32> to vector<128x128xbf16>
    %c0_8 = arith.constant 0 : index
    %c0_9 = arith.constant 0 : index
    %12 = vector.load %arg6[%c0_8, %c0_9] : memref<128x128xbf16, #tpu.memory_space<vmem>>, vector<128x128xbf16>
    tpu.vector_store %arg6[%c0_8, %c0_9], %11 {strides = array<i32>} : memref<128x128xbf16, #tpu.memory_space<vmem>>, vector<128x128xbf16>,
    return
  }
  func.func @transform_0(%arg0: i32, %arg1: i32) -> (i32, i32) {
    %c0_i32 = arith.constant 0 : i32
    %c0_i32_0 = arith.constant 0 : i32
    return %arg0, %c0_i32 : i32, i32
  }
  func.func @transform_1(%arg0: i32, %arg1: i32) -> (i32, i32) {
    %c0_i32 = arith.constant 0 : i32
    %c0_i32_0 = arith.constant 0 : i32
    return %c0_i32, %arg1 : i32, i32
  }
  func.func @transform_2(%arg0: i32, %arg1: i32) -> (i32, i32) {
    %c0_i32 = arith.constant 0 : i32
    %c0_i32_0 = arith.constant 0 : i32
    return %c0_i32, %arg1 : i32, i32
  }
  func.func @transform_3(%arg0: i32, %arg1: i32) -> (i32, i32) {
    %c0_i32 = arith.constant 0 : i32
    return %arg0, %arg1 : i32, i32
  }
  func.func @transform_4(%arg0: i32, %arg1: i32) -> (i32, i32) {
    %c0_i32 = arith.constant 0 : i32
    return %arg0, %arg1 : i32, i32
  }
}

module attributes {stable_mosaic.version = 11 : i64} {
  func.func @_mm_kernel(%arg0: i32, %arg1: i32, %arg2: memref<128x64xbf16, #tpu.memory_space<vmem>>, %arg3: memref<64x128xbf16, #tpu.memory_space<vmem>>, %arg4: memref<1x128xf32, #tpu.memory_space<vmem>>, %arg5: memref<128x128xbf16, #tpu.memory_space<vmem>>) attributes {dimension_semantics = [#tpu.dimension_semantics<parallel>, #tpu.dimension_semantics<parallel>], iteration_bounds = array<i64: 1, 1>, scalar_prefetch = 0 : i64, scratch_operands = 0 : i64, tpu.core_type = #tpu.core_type<tc>, window_params = [{transform_indices = @transform_0, window_bounds = array<i64: 128, 64>}, {transform_indices = @transform_1, window_bounds = array<i64: 64, 128>}, {transform_indices = @transform_2, window_bounds = array<i64: 1, 128>}, {transform_indices = @transform_3, window_bounds = array<i64: 128, 128>}]} {
    %c0 = arith.constant 0 : index
    %c0_0 = arith.constant 0 : index
    %0 = vector.load %arg2[%c0, %c0_0] : memref<128x64xbf16, #tpu.memory_space<vmem>>, vector<128x64xbf16>
    %c0_1 = arith.constant 0 : index
    %c0_2 = arith.constant 0 : index
    %1 = vector.load %arg3[%c0_1, %c0_2] : memref<64x128xbf16, #tpu.memory_space<vmem>>, vector<64x128xbf16>
    %cst = arith.constant dense<0.000000e+00> : vector<128x128xf32>
    %2 = tpu.matmul %0, %1, %cst {dimension_numbers = #tpu.dot_dimension_numbers<[1], [0], [0], [1], [0, 0, 1, 1], [], []>} : vector<128x64xbf16>, vector<64x128xbf16>, vector<128x128xf32> -> vector<128x128xf32>
    %c0_3 = arith.constant 0 : index
    %c0_4 = arith.constant 0 : index
    %3 = vector.load %arg4[%c0_3, %c0_4] : memref<1x128xf32, #tpu.memory_space<vmem>>, vector<1x128xf32>
    %4 = vector.broadcast %3 : vector<1x128xf32> to vector<128x128xf32>
    %5 = arith.addf %2, %4 : vector<128x128xf32>
    %cst_5 = arith.constant 0.000000e+00 : f32
    %6 = vector.broadcast %cst_5 : f32 to vector<128x128xf32>
    %7 = arith.maximumf %5, %6 : vector<128x128xf32>
    %8 = arith.truncf %7 : vector<128x128xf32> to vector<128x128xbf16>
    %c0_6 = arith.constant 0 : index
    %c0_7 = arith.constant 0 : index
    %9 = vector.load %arg5[%c0_6, %c0_7] : memref<128x128xbf16, #tpu.memory_space<vmem>>, vector<128x128xbf16>
    tpu.vector_store %arg5[%c0_6, %c0_7], %8 {strides = array<i32>} : memref<128x128xbf16, #tpu.memory_space<vmem>>, vector<128x128xbf16>,
    return
  }
  func.func @transform_0(%arg0: i32, %arg1: i32) -> (i32, i32) {
    %c0_i32 = arith.constant 0 : i32
    %c0_i32_0 = arith.constant 0 : i32
    return %arg0, %c0_i32 : i32, i32
  }
  func.func @transform_1(%arg0: i32, %arg1: i32) -> (i32, i32) {
    %c0_i32 = arith.constant 0 : i32
    %c0_i32_0 = arith.constant 0 : i32
    return %c0_i32, %arg1 : i32, i32
  }
  func.func @transform_2(%arg0: i32, %arg1: i32) -> (i32, i32) {
    %c0_i32 = arith.constant 0 : i32
    %c0_i32_0 = arith.constant 0 : i32
    return %c0_i32, %arg1 : i32, i32
  }
  func.func @transform_3(%arg0: i32, %arg1: i32) -> (i32, i32) {
    %c0_i32 = arith.constant 0 : i32
    return %arg0, %arg1 : i32, i32
  }
}

module attributes {stable_mosaic.version = 11 : i64} {
  func.func @_mm_kernel(%arg0: i32, %arg1: i32, %arg2: memref<32x288xbf16, #tpu.memory_space<vmem>>, %arg3: memref<288x128xbf16, #tpu.memory_space<vmem>>, %arg4: memref<1x128xf32, #tpu.memory_space<vmem>>, %arg5: memref<32x128xbf16, #tpu.memory_space<vmem>>) attributes {dimension_semantics = [#tpu.dimension_semantics<parallel>, #tpu.dimension_semantics<parallel>], iteration_bounds = array<i64: 1, 1>, scalar_prefetch = 0 : i64, scratch_operands = 0 : i64, tpu.core_type = #tpu.core_type<tc>, window_params = [{transform_indices = @transform_0, window_bounds = array<i64: 32, 288>}, {transform_indices = @transform_1, window_bounds = array<i64: 288, 128>}, {transform_indices = @transform_2, window_bounds = array<i64: 1, 128>}, {transform_indices = @transform_3, window_bounds = array<i64: 32, 128>}]} {
    %c0 = arith.constant 0 : index
    %c0_0 = arith.constant 0 : index
    %0 = vector.load %arg2[%c0, %c0_0] : memref<32x288xbf16, #tpu.memory_space<vmem>>, vector<32x288xbf16>
    %c0_1 = arith.constant 0 : index
    %c0_2 = arith.constant 0 : index
    %1 = vector.load %arg3[%c0_1, %c0_2] : memref<288x128xbf16, #tpu.memory_space<vmem>>, vector<288x128xbf16>
    %cst = arith.constant dense<0.000000e+00> : vector<32x128xf32>
    %2 = tpu.matmul %0, %1, %cst {dimension_numbers = #tpu.dot_dimension_numbers<[1], [0], [0], [1], [0, 0, 1, 1], [], []>} : vector<32x288xbf16>, vector<288x128xbf16>, vector<32x128xf32> -> vector<32x128xf32>
    %c0_3 = arith.constant 0 : index
    %c0_4 = arith.constant 0 : index
    %3 = vector.load %arg4[%c0_3, %c0_4] : memref<1x128xf32, #tpu.memory_space<vmem>>, vector<1x128xf32>
    %4 = vector.broadcast %3 : vector<1x128xf32> to vector<32x128xf32>
    %5 = arith.addf %2, %4 : vector<32x128xf32>
    %cst_5 = arith.constant 0.000000e+00 : f32
    %6 = vector.broadcast %cst_5 : f32 to vector<32x128xf32>
    %7 = arith.maximumf %5, %6 : vector<32x128xf32>
    %8 = arith.truncf %7 : vector<32x128xf32> to vector<32x128xbf16>
    %c0_6 = arith.constant 0 : index
    %c0_7 = arith.constant 0 : index
    %9 = vector.load %arg5[%c0_6, %c0_7] : memref<32x128xbf16, #tpu.memory_space<vmem>>, vector<32x128xbf16>
    tpu.vector_store %arg5[%c0_6, %c0_7], %8 {strides = array<i32>} : memref<32x128xbf16, #tpu.memory_space<vmem>>, vector<32x128xbf16>,
    return
  }
  func.func @transform_0(%arg0: i32, %arg1: i32) -> (i32, i32) {
    %c0_i32 = arith.constant 0 : i32
    %c0_i32_0 = arith.constant 0 : i32
    return %arg0, %c0_i32 : i32, i32
  }
  func.func @transform_1(%arg0: i32, %arg1: i32) -> (i32, i32) {
    %c0_i32 = arith.constant 0 : i32
    %c0_i32_0 = arith.constant 0 : i32
    return %c0_i32, %arg1 : i32, i32
  }
  func.func @transform_2(%arg0: i32, %arg1: i32) -> (i32, i32) {
    %c0_i32 = arith.constant 0 : i32
    %c0_i32_0 = arith.constant 0 : i32
    return %c0_i32, %arg1 : i32, i32
  }
  func.func @transform_3(%arg0: i32, %arg1: i32) -> (i32, i32) {
    %c0_i32 = arith.constant 0 : i32
    return %arg0, %arg1 : i32, i32
  }
}

module attributes {stable_mosaic.version = 11 : i64} {
  func.func @_mm_kernel(%arg0: i32, %arg1: i32, %arg2: memref<32x128xbf16, #tpu.memory_space<vmem>>, %arg3: memref<128x128xbf16, #tpu.memory_space<vmem>>, %arg4: memref<1x128xf32, #tpu.memory_space<vmem>>, %arg5: memref<32x128xbf16, #tpu.memory_space<vmem>>) attributes {dimension_semantics = [#tpu.dimension_semantics<parallel>, #tpu.dimension_semantics<parallel>], iteration_bounds = array<i64: 1, 1>, scalar_prefetch = 0 : i64, scratch_operands = 0 : i64, tpu.core_type = #tpu.core_type<tc>, window_params = [{transform_indices = @transform_0, window_bounds = array<i64: 32, 128>}, {transform_indices = @transform_1, window_bounds = array<i64: 128, 128>}, {transform_indices = @transform_2, window_bounds = array<i64: 1, 128>}, {transform_indices = @transform_3, window_bounds = array<i64: 32, 128>}]} {
    %c0 = arith.constant 0 : index
    %c0_0 = arith.constant 0 : index
    %0 = vector.load %arg2[%c0, %c0_0] : memref<32x128xbf16, #tpu.memory_space<vmem>>, vector<32x128xbf16>
    %c0_1 = arith.constant 0 : index
    %c0_2 = arith.constant 0 : index
    %1 = vector.load %arg3[%c0_1, %c0_2] : memref<128x128xbf16, #tpu.memory_space<vmem>>, vector<128x128xbf16>
    %cst = arith.constant dense<0.000000e+00> : vector<32x128xf32>
    %2 = tpu.matmul %0, %1, %cst {dimension_numbers = #tpu.dot_dimension_numbers<[1], [0], [0], [1], [0, 0, 1, 1], [], []>} : vector<32x128xbf16>, vector<128x128xbf16>, vector<32x128xf32> -> vector<32x128xf32>
    %c0_3 = arith.constant 0 : index
    %c0_4 = arith.constant 0 : index
    %3 = vector.load %arg4[%c0_3, %c0_4] : memref<1x128xf32, #tpu.memory_space<vmem>>, vector<1x128xf32>
    %4 = vector.broadcast %3 : vector<1x128xf32> to vector<32x128xf32>
    %5 = arith.addf %2, %4 : vector<32x128xf32>
    %cst_5 = arith.constant 0.000000e+00 : f32
    %6 = vector.broadcast %cst_5 : f32 to vector<32x128xf32>
    %7 = arith.maximumf %5, %6 : vector<32x128xf32>
    %8 = arith.truncf %7 : vector<32x128xf32> to vector<32x128xbf16>
    %c0_6 = arith.constant 0 : index
    %c0_7 = arith.constant 0 : index
    %9 = vector.load %arg5[%c0_6, %c0_7] : memref<32x128xbf16, #tpu.memory_space<vmem>>, vector<32x128xbf16>
    tpu.vector_store %arg5[%c0_6, %c0_7], %8 {strides = array<i32>} : memref<32x128xbf16, #tpu.memory_space<vmem>>, vector<32x128xbf16>,
    return
  }
  func.func @transform_0(%arg0: i32, %arg1: i32) -> (i32, i32) {
    %c0_i32 = arith.constant 0 : i32
    %c0_i32_0 = arith.constant 0 : i32
    return %arg0, %c0_i32 : i32, i32
  }
  func.func @transform_1(%arg0: i32, %arg1: i32) -> (i32, i32) {
    %c0_i32 = arith.constant 0 : i32
    %c0_i32_0 = arith.constant 0 : i32
    return %c0_i32, %arg1 : i32, i32
  }
  func.func @transform_2(%arg0: i32, %arg1: i32) -> (i32, i32) {
    %c0_i32 = arith.constant 0 : i32
    %c0_i32_0 = arith.constant 0 : i32
    return %c0_i32, %arg1 : i32, i32
  }
  func.func @transform_3(%arg0: i32, %arg1: i32) -> (i32, i32) {
    %c0_i32 = arith.constant 0 : i32
    return %arg0, %arg1 : i32, i32
  }
}

module attributes {stable_mosaic.version = 11 : i64} {
  func.func @_mm_res_kernel(%arg0: i32, %arg1: i32, %arg2: memref<32x32xbf16, #tpu.memory_space<vmem>>, %arg3: memref<32x128xbf16, #tpu.memory_space<vmem>>, %arg4: memref<1x128xf32, #tpu.memory_space<vmem>>, %arg5: memref<32x128xbf16, #tpu.memory_space<vmem>>, %arg6: memref<32x128xbf16, #tpu.memory_space<vmem>>) attributes {dimension_semantics = [#tpu.dimension_semantics<parallel>, #tpu.dimension_semantics<parallel>], iteration_bounds = array<i64: 1, 1>, scalar_prefetch = 0 : i64, scratch_operands = 0 : i64, tpu.core_type = #tpu.core_type<tc>, window_params = [{transform_indices = @transform_0, window_bounds = array<i64: 32, 32>}, {transform_indices = @transform_1, window_bounds = array<i64: 32, 128>}, {transform_indices = @transform_2, window_bounds = array<i64: 1, 128>}, {transform_indices = @transform_3, window_bounds = array<i64: 32, 128>}, {transform_indices = @transform_4, window_bounds = array<i64: 32, 128>}]} {
    %c0 = arith.constant 0 : index
    %c0_0 = arith.constant 0 : index
    %0 = vector.load %arg2[%c0, %c0_0] : memref<32x32xbf16, #tpu.memory_space<vmem>>, vector<32x32xbf16>
    %c0_1 = arith.constant 0 : index
    %c0_2 = arith.constant 0 : index
    %1 = vector.load %arg3[%c0_1, %c0_2] : memref<32x128xbf16, #tpu.memory_space<vmem>>, vector<32x128xbf16>
    %cst = arith.constant dense<0.000000e+00> : vector<32x128xf32>
    %2 = tpu.matmul %0, %1, %cst {dimension_numbers = #tpu.dot_dimension_numbers<[1], [0], [0], [1], [0, 0, 1, 1], [], []>} : vector<32x32xbf16>, vector<32x128xbf16>, vector<32x128xf32> -> vector<32x128xf32>
    %c0_3 = arith.constant 0 : index
    %c0_4 = arith.constant 0 : index
    %3 = vector.load %arg4[%c0_3, %c0_4] : memref<1x128xf32, #tpu.memory_space<vmem>>, vector<1x128xf32>
    %4 = vector.broadcast %3 : vector<1x128xf32> to vector<32x128xf32>
    %5 = arith.addf %2, %4 : vector<32x128xf32>
    %c0_5 = arith.constant 0 : index
    %c0_6 = arith.constant 0 : index
    %6 = vector.load %arg5[%c0_5, %c0_6] : memref<32x128xbf16, #tpu.memory_space<vmem>>, vector<32x128xbf16>
    %7 = arith.extf %6 : vector<32x128xbf16> to vector<32x128xf32>
    %8 = arith.addf %5, %7 : vector<32x128xf32>
    %cst_7 = arith.constant 0.000000e+00 : f32
    %9 = vector.broadcast %cst_7 : f32 to vector<32x128xf32>
    %10 = arith.maximumf %8, %9 : vector<32x128xf32>
    %11 = arith.truncf %10 : vector<32x128xf32> to vector<32x128xbf16>
    %c0_8 = arith.constant 0 : index
    %c0_9 = arith.constant 0 : index
    %12 = vector.load %arg6[%c0_8, %c0_9] : memref<32x128xbf16, #tpu.memory_space<vmem>>, vector<32x128xbf16>
    tpu.vector_store %arg6[%c0_8, %c0_9], %11 {strides = array<i32>} : memref<32x128xbf16, #tpu.memory_space<vmem>>, vector<32x128xbf16>,
    return
  }
  func.func @transform_0(%arg0: i32, %arg1: i32) -> (i32, i32) {
    %c0_i32 = arith.constant 0 : i32
    %c0_i32_0 = arith.constant 0 : i32
    return %arg0, %c0_i32 : i32, i32
  }
  func.func @transform_1(%arg0: i32, %arg1: i32) -> (i32, i32) {
    %c0_i32 = arith.constant 0 : i32
    %c0_i32_0 = arith.constant 0 : i32
    return %c0_i32, %arg1 : i32, i32
  }
  func.func @transform_2(%arg0: i32, %arg1: i32) -> (i32, i32) {
    %c0_i32 = arith.constant 0 : i32
    %c0_i32_0 = arith.constant 0 : i32
    return %c0_i32, %arg1 : i32, i32
  }
  func.func @transform_3(%arg0: i32, %arg1: i32) -> (i32, i32) {
    %c0_i32 = arith.constant 0 : i32
    return %arg0, %arg1 : i32, i32
  }
  func.func @transform_4(%arg0: i32, %arg1: i32) -> (i32, i32) {
    %c0_i32 = arith.constant 0 : i32
    return %arg0, %arg1 : i32, i32
  }
}

module attributes {stable_mosaic.version = 11 : i64} {
  func.func @_mm_kernel(%arg0: i32, %arg1: i32, %arg2: memref<32x64xbf16, #tpu.memory_space<vmem>>, %arg3: memref<64x128xbf16, #tpu.memory_space<vmem>>, %arg4: memref<1x128xf32, #tpu.memory_space<vmem>>, %arg5: memref<32x128xbf16, #tpu.memory_space<vmem>>) attributes {dimension_semantics = [#tpu.dimension_semantics<parallel>, #tpu.dimension_semantics<parallel>], iteration_bounds = array<i64: 1, 1>, scalar_prefetch = 0 : i64, scratch_operands = 0 : i64, tpu.core_type = #tpu.core_type<tc>, window_params = [{transform_indices = @transform_0, window_bounds = array<i64: 32, 64>}, {transform_indices = @transform_1, window_bounds = array<i64: 64, 128>}, {transform_indices = @transform_2, window_bounds = array<i64: 1, 128>}, {transform_indices = @transform_3, window_bounds = array<i64: 32, 128>}]} {
    %c0 = arith.constant 0 : index
    %c0_0 = arith.constant 0 : index
    %0 = vector.load %arg2[%c0, %c0_0] : memref<32x64xbf16, #tpu.memory_space<vmem>>, vector<32x64xbf16>
    %c0_1 = arith.constant 0 : index
    %c0_2 = arith.constant 0 : index
    %1 = vector.load %arg3[%c0_1, %c0_2] : memref<64x128xbf16, #tpu.memory_space<vmem>>, vector<64x128xbf16>
    %cst = arith.constant dense<0.000000e+00> : vector<32x128xf32>
    %2 = tpu.matmul %0, %1, %cst {dimension_numbers = #tpu.dot_dimension_numbers<[1], [0], [0], [1], [0, 0, 1, 1], [], []>} : vector<32x64xbf16>, vector<64x128xbf16>, vector<32x128xf32> -> vector<32x128xf32>
    %c0_3 = arith.constant 0 : index
    %c0_4 = arith.constant 0 : index
    %3 = vector.load %arg4[%c0_3, %c0_4] : memref<1x128xf32, #tpu.memory_space<vmem>>, vector<1x128xf32>
    %4 = vector.broadcast %3 : vector<1x128xf32> to vector<32x128xf32>
    %5 = arith.addf %2, %4 : vector<32x128xf32>
    %6 = arith.truncf %5 : vector<32x128xf32> to vector<32x128xbf16>
    %c0_5 = arith.constant 0 : index
    %c0_6 = arith.constant 0 : index
    %7 = vector.load %arg5[%c0_5, %c0_6] : memref<32x128xbf16, #tpu.memory_space<vmem>>, vector<32x128xbf16>
    tpu.vector_store %arg5[%c0_5, %c0_6], %6 {strides = array<i32>} : memref<32x128xbf16, #tpu.memory_space<vmem>>, vector<32x128xbf16>,
    return
  }
  func.func @transform_0(%arg0: i32, %arg1: i32) -> (i32, i32) {
    %c0_i32 = arith.constant 0 : i32
    %c0_i32_0 = arith.constant 0 : i32
    return %arg0, %c0_i32 : i32, i32
  }
  func.func @transform_1(%arg0: i32, %arg1: i32) -> (i32, i32) {
    %c0_i32 = arith.constant 0 : i32
    %c0_i32_0 = arith.constant 0 : i32
    return %c0_i32, %arg1 : i32, i32
  }
  func.func @transform_2(%arg0: i32, %arg1: i32) -> (i32, i32) {
    %c0_i32 = arith.constant 0 : i32
    %c0_i32_0 = arith.constant 0 : i32
    return %c0_i32, %arg1 : i32, i32
  }
  func.func @transform_3(%arg0: i32, %arg1: i32) -> (i32, i32) {
    %c0_i32 = arith.constant 0 : i32
    return %arg0, %arg1 : i32, i32
  }
}

module attributes {stable_mosaic.version = 11 : i64} {
  func.func @_mm_kernel(%arg0: i32, %arg1: i32, %arg2: memref<32x576xbf16, #tpu.memory_space<vmem>>, %arg3: memref<576x128xbf16, #tpu.memory_space<vmem>>, %arg4: memref<1x128xf32, #tpu.memory_space<vmem>>, %arg5: memref<32x128xbf16, #tpu.memory_space<vmem>>) attributes {dimension_semantics = [#tpu.dimension_semantics<parallel>, #tpu.dimension_semantics<parallel>], iteration_bounds = array<i64: 1, 1>, scalar_prefetch = 0 : i64, scratch_operands = 0 : i64, tpu.core_type = #tpu.core_type<tc>, window_params = [{transform_indices = @transform_0, window_bounds = array<i64: 32, 576>}, {transform_indices = @transform_1, window_bounds = array<i64: 576, 128>}, {transform_indices = @transform_2, window_bounds = array<i64: 1, 128>}, {transform_indices = @transform_3, window_bounds = array<i64: 32, 128>}]} {
    %c0 = arith.constant 0 : index
    %c0_0 = arith.constant 0 : index
    %0 = vector.load %arg2[%c0, %c0_0] : memref<32x576xbf16, #tpu.memory_space<vmem>>, vector<32x576xbf16>
    %c0_1 = arith.constant 0 : index
    %c0_2 = arith.constant 0 : index
    %1 = vector.load %arg3[%c0_1, %c0_2] : memref<576x128xbf16, #tpu.memory_space<vmem>>, vector<576x128xbf16>
    %cst = arith.constant dense<0.000000e+00> : vector<32x128xf32>
    %2 = tpu.matmul %0, %1, %cst {dimension_numbers = #tpu.dot_dimension_numbers<[1], [0], [0], [1], [0, 0, 1, 1], [], []>} : vector<32x576xbf16>, vector<576x128xbf16>, vector<32x128xf32> -> vector<32x128xf32>
    %c0_3 = arith.constant 0 : index
    %c0_4 = arith.constant 0 : index
    %3 = vector.load %arg4[%c0_3, %c0_4] : memref<1x128xf32, #tpu.memory_space<vmem>>, vector<1x128xf32>
    %4 = vector.broadcast %3 : vector<1x128xf32> to vector<32x128xf32>
    %5 = arith.addf %2, %4 : vector<32x128xf32>
    %cst_5 = arith.constant 0.000000e+00 : f32
    %6 = vector.broadcast %cst_5 : f32 to vector<32x128xf32>
    %7 = arith.maximumf %5, %6 : vector<32x128xf32>
    %8 = arith.truncf %7 : vector<32x128xf32> to vector<32x128xbf16>
    %c0_6 = arith.constant 0 : index
    %c0_7 = arith.constant 0 : index
    %9 = vector.load %arg5[%c0_6, %c0_7] : memref<32x128xbf16, #tpu.memory_space<vmem>>, vector<32x128xbf16>
    tpu.vector_store %arg5[%c0_6, %c0_7], %8 {strides = array<i32>} : memref<32x128xbf16, #tpu.memory_space<vmem>>, vector<32x128xbf16>,
    return
  }
  func.func @transform_0(%arg0: i32, %arg1: i32) -> (i32, i32) {
    %c0_i32 = arith.constant 0 : i32
    %c0_i32_0 = arith.constant 0 : i32
    return %arg0, %c0_i32 : i32, i32
  }
  func.func @transform_1(%arg0: i32, %arg1: i32) -> (i32, i32) {
    %c0_i32 = arith.constant 0 : i32
    %c0_i32_0 = arith.constant 0 : i32
    return %c0_i32, %arg1 : i32, i32
  }
  func.func @transform_2(%arg0: i32, %arg1: i32) -> (i32, i32) {
    %c0_i32 = arith.constant 0 : i32
    %c0_i32_0 = arith.constant 0 : i32
    return %c0_i32, %arg1 : i32, i32
  }
  func.func @transform_3(%arg0: i32, %arg1: i32) -> (i32, i32) {
    %c0_i32 = arith.constant 0 : i32
    return %arg0, %arg1 : i32, i32
  }
}

module attributes {stable_mosaic.version = 11 : i64} {
  func.func @_mm_kernel(%arg0: i32, %arg1: i32, %arg2: memref<32x128xbf16, #tpu.memory_space<vmem>>, %arg3: memref<128x256xbf16, #tpu.memory_space<vmem>>, %arg4: memref<1x256xf32, #tpu.memory_space<vmem>>, %arg5: memref<32x256xbf16, #tpu.memory_space<vmem>>) attributes {dimension_semantics = [#tpu.dimension_semantics<parallel>, #tpu.dimension_semantics<parallel>], iteration_bounds = array<i64: 1, 1>, scalar_prefetch = 0 : i64, scratch_operands = 0 : i64, tpu.core_type = #tpu.core_type<tc>, window_params = [{transform_indices = @transform_0, window_bounds = array<i64: 32, 128>}, {transform_indices = @transform_1, window_bounds = array<i64: 128, 256>}, {transform_indices = @transform_2, window_bounds = array<i64: 1, 256>}, {transform_indices = @transform_3, window_bounds = array<i64: 32, 256>}]} {
    %c0 = arith.constant 0 : index
    %c0_0 = arith.constant 0 : index
    %0 = vector.load %arg2[%c0, %c0_0] : memref<32x128xbf16, #tpu.memory_space<vmem>>, vector<32x128xbf16>
    %c0_1 = arith.constant 0 : index
    %c0_2 = arith.constant 0 : index
    %1 = vector.load %arg3[%c0_1, %c0_2] : memref<128x256xbf16, #tpu.memory_space<vmem>>, vector<128x256xbf16>
    %cst = arith.constant dense<0.000000e+00> : vector<32x256xf32>
    %2 = tpu.matmul %0, %1, %cst {dimension_numbers = #tpu.dot_dimension_numbers<[1], [0], [0], [1], [0, 0, 1, 1], [], []>} : vector<32x128xbf16>, vector<128x256xbf16>, vector<32x256xf32> -> vector<32x256xf32>
    %c0_3 = arith.constant 0 : index
    %c0_4 = arith.constant 0 : index
    %3 = vector.load %arg4[%c0_3, %c0_4] : memref<1x256xf32, #tpu.memory_space<vmem>>, vector<1x256xf32>
    %4 = vector.broadcast %3 : vector<1x256xf32> to vector<32x256xf32>
    %5 = arith.addf %2, %4 : vector<32x256xf32>
    %6 = arith.truncf %5 : vector<32x256xf32> to vector<32x256xbf16>
    %c0_5 = arith.constant 0 : index
    %c0_6 = arith.constant 0 : index
    %7 = vector.load %arg5[%c0_5, %c0_6] : memref<32x256xbf16, #tpu.memory_space<vmem>>, vector<32x256xbf16>
    tpu.vector_store %arg5[%c0_5, %c0_6], %6 {strides = array<i32>} : memref<32x256xbf16, #tpu.memory_space<vmem>>, vector<32x256xbf16>,
    return
  }
  func.func @transform_0(%arg0: i32, %arg1: i32) -> (i32, i32) {
    %c0_i32 = arith.constant 0 : i32
    %c0_i32_0 = arith.constant 0 : i32
    return %arg0, %c0_i32 : i32, i32
  }
  func.func @transform_1(%arg0: i32, %arg1: i32) -> (i32, i32) {
    %c0_i32 = arith.constant 0 : i32
    %c0_i32_0 = arith.constant 0 : i32
    return %c0_i32, %arg1 : i32, i32
  }
  func.func @transform_2(%arg0: i32, %arg1: i32) -> (i32, i32) {
    %c0_i32 = arith.constant 0 : i32
    %c0_i32_0 = arith.constant 0 : i32
    return %c0_i32, %arg1 : i32, i32
  }
  func.func @transform_3(%arg0: i32, %arg1: i32) -> (i32, i32) {
    %c0_i32 = arith.constant 0 : i32
    return %arg0, %arg1 : i32, i32
  }
}

module attributes {stable_mosaic.version = 11 : i64} {
  func.func @_mm_res_kernel(%arg0: i32, %arg1: i32, %arg2: memref<32x64xbf16, #tpu.memory_space<vmem>>, %arg3: memref<64x256xbf16, #tpu.memory_space<vmem>>, %arg4: memref<1x256xf32, #tpu.memory_space<vmem>>, %arg5: memref<32x256xbf16, #tpu.memory_space<vmem>>, %arg6: memref<32x256xbf16, #tpu.memory_space<vmem>>) attributes {dimension_semantics = [#tpu.dimension_semantics<parallel>, #tpu.dimension_semantics<parallel>], iteration_bounds = array<i64: 1, 1>, scalar_prefetch = 0 : i64, scratch_operands = 0 : i64, tpu.core_type = #tpu.core_type<tc>, window_params = [{transform_indices = @transform_0, window_bounds = array<i64: 32, 64>}, {transform_indices = @transform_1, window_bounds = array<i64: 64, 256>}, {transform_indices = @transform_2, window_bounds = array<i64: 1, 256>}, {transform_indices = @transform_3, window_bounds = array<i64: 32, 256>}, {transform_indices = @transform_4, window_bounds = array<i64: 32, 256>}]} {
    %c0 = arith.constant 0 : index
    %c0_0 = arith.constant 0 : index
    %0 = vector.load %arg2[%c0, %c0_0] : memref<32x64xbf16, #tpu.memory_space<vmem>>, vector<32x64xbf16>
    %c0_1 = arith.constant 0 : index
    %c0_2 = arith.constant 0 : index
    %1 = vector.load %arg3[%c0_1, %c0_2] : memref<64x256xbf16, #tpu.memory_space<vmem>>, vector<64x256xbf16>
    %cst = arith.constant dense<0.000000e+00> : vector<32x256xf32>
    %2 = tpu.matmul %0, %1, %cst {dimension_numbers = #tpu.dot_dimension_numbers<[1], [0], [0], [1], [0, 0, 1, 1], [], []>} : vector<32x64xbf16>, vector<64x256xbf16>, vector<32x256xf32> -> vector<32x256xf32>
    %c0_3 = arith.constant 0 : index
    %c0_4 = arith.constant 0 : index
    %3 = vector.load %arg4[%c0_3, %c0_4] : memref<1x256xf32, #tpu.memory_space<vmem>>, vector<1x256xf32>
    %4 = vector.broadcast %3 : vector<1x256xf32> to vector<32x256xf32>
    %5 = arith.addf %2, %4 : vector<32x256xf32>
    %c0_5 = arith.constant 0 : index
    %c0_6 = arith.constant 0 : index
    %6 = vector.load %arg5[%c0_5, %c0_6] : memref<32x256xbf16, #tpu.memory_space<vmem>>, vector<32x256xbf16>
    %7 = arith.extf %6 : vector<32x256xbf16> to vector<32x256xf32>
    %8 = arith.addf %5, %7 : vector<32x256xf32>
    %cst_7 = arith.constant 0.000000e+00 : f32
    %9 = vector.broadcast %cst_7 : f32 to vector<32x256xf32>
    %10 = arith.maximumf %8, %9 : vector<32x256xf32>
    %11 = arith.truncf %10 : vector<32x256xf32> to vector<32x256xbf16>
    %c0_8 = arith.constant 0 : index
    %c0_9 = arith.constant 0 : index
    %12 = vector.load %arg6[%c0_8, %c0_9] : memref<32x256xbf16, #tpu.memory_space<vmem>>, vector<32x256xbf16>
    tpu.vector_store %arg6[%c0_8, %c0_9], %11 {strides = array<i32>} : memref<32x256xbf16, #tpu.memory_space<vmem>>, vector<32x256xbf16>,
    return
  }
  func.func @transform_0(%arg0: i32, %arg1: i32) -> (i32, i32) {
    %c0_i32 = arith.constant 0 : i32
    %c0_i32_0 = arith.constant 0 : i32
    return %arg0, %c0_i32 : i32, i32
  }
  func.func @transform_1(%arg0: i32, %arg1: i32) -> (i32, i32) {
    %c0_i32 = arith.constant 0 : i32
    %c0_i32_0 = arith.constant 0 : i32
    return %c0_i32, %arg1 : i32, i32
  }
  func.func @transform_2(%arg0: i32, %arg1: i32) -> (i32, i32) {
    %c0_i32 = arith.constant 0 : i32
    %c0_i32_0 = arith.constant 0 : i32
    return %c0_i32, %arg1 : i32, i32
  }
  func.func @transform_3(%arg0: i32, %arg1: i32) -> (i32, i32) {
    %c0_i32 = arith.constant 0 : i32
    return %arg0, %arg1 : i32, i32
  }
  func.func @transform_4(%arg0: i32, %arg1: i32) -> (i32, i32) {
    %c0_i32 = arith.constant 0 : i32
    return %arg0, %arg1 : i32, i32
  }
}

module attributes {stable_mosaic.version = 11 : i64} {
  func.func @_mm_kernel(%arg0: i32, %arg1: i32, %arg2: memref<32x2304xbf16, #tpu.memory_space<vmem>>, %arg3: memref<2304x128xbf16, #tpu.memory_space<vmem>>, %arg4: memref<1x128xf32, #tpu.memory_space<vmem>>, %arg5: memref<32x128xbf16, #tpu.memory_space<vmem>>) attributes {dimension_semantics = [#tpu.dimension_semantics<parallel>, #tpu.dimension_semantics<parallel>], iteration_bounds = array<i64: 1, 1>, scalar_prefetch = 0 : i64, scratch_operands = 0 : i64, tpu.core_type = #tpu.core_type<tc>, window_params = [{transform_indices = @transform_0, window_bounds = array<i64: 32, 2304>}, {transform_indices = @transform_1, window_bounds = array<i64: 2304, 128>}, {transform_indices = @transform_2, window_bounds = array<i64: 1, 128>}, {transform_indices = @transform_3, window_bounds = array<i64: 32, 128>}]} {
    %c0 = arith.constant 0 : index
    %c0_0 = arith.constant 0 : index
    %0 = vector.load %arg2[%c0, %c0_0] : memref<32x2304xbf16, #tpu.memory_space<vmem>>, vector<32x2304xbf16>
    %c0_1 = arith.constant 0 : index
    %c0_2 = arith.constant 0 : index
    %1 = vector.load %arg3[%c0_1, %c0_2] : memref<2304x128xbf16, #tpu.memory_space<vmem>>, vector<2304x128xbf16>
    %cst = arith.constant dense<0.000000e+00> : vector<32x128xf32>
    %2 = tpu.matmul %0, %1, %cst {dimension_numbers = #tpu.dot_dimension_numbers<[1], [0], [0], [1], [0, 0, 1, 1], [], []>} : vector<32x2304xbf16>, vector<2304x128xbf16>, vector<32x128xf32> -> vector<32x128xf32>
    %c0_3 = arith.constant 0 : index
    %c0_4 = arith.constant 0 : index
    %3 = vector.load %arg4[%c0_3, %c0_4] : memref<1x128xf32, #tpu.memory_space<vmem>>, vector<1x128xf32>
    %4 = vector.broadcast %3 : vector<1x128xf32> to vector<32x128xf32>
    %5 = arith.addf %2, %4 : vector<32x128xf32>
    %cst_5 = arith.constant 0.000000e+00 : f32
    %6 = vector.broadcast %cst_5 : f32 to vector<32x128xf32>
    %7 = arith.maximumf %5, %6 : vector<32x128xf32>
    %8 = arith.truncf %7 : vector<32x128xf32> to vector<32x128xbf16>
    %c0_6 = arith.constant 0 : index
    %c0_7 = arith.constant 0 : index
    %9 = vector.load %arg5[%c0_6, %c0_7] : memref<32x128xbf16, #tpu.memory_space<vmem>>, vector<32x128xbf16>
    tpu.vector_store %arg5[%c0_6, %c0_7], %8 {strides = array<i32>} : memref<32x128xbf16, #tpu.memory_space<vmem>>, vector<32x128xbf16>,
    return
  }
  func.func @transform_0(%arg0: i32, %arg1: i32) -> (i32, i32) {
    %c0_i32 = arith.constant 0 : i32
    %c0_i32_0 = arith.constant 0 : i32
    return %arg0, %c0_i32 : i32, i32
  }
  func.func @transform_1(%arg0: i32, %arg1: i32) -> (i32, i32) {
    %c0_i32 = arith.constant 0 : i32
    %c0_i32_0 = arith.constant 0 : i32
    return %c0_i32, %arg1 : i32, i32
  }
  func.func @transform_2(%arg0: i32, %arg1: i32) -> (i32, i32) {
    %c0_i32 = arith.constant 0 : i32
    %c0_i32_0 = arith.constant 0 : i32
    return %c0_i32, %arg1 : i32, i32
  }
  func.func @transform_3(%arg0: i32, %arg1: i32) -> (i32, i32) {
    %c0_i32 = arith.constant 0 : i32
    return %arg0, %arg1 : i32, i32
  }
}

module attributes {stable_mosaic.version = 11 : i64} {
  func.func @_mm_kernel(%arg0: i32, %arg1: i32, %arg2: memref<16x16xbf16, #tpu.memory_space<vmem>>, %arg3: memref<16x256xbf16, #tpu.memory_space<vmem>>, %arg4: memref<1x256xf32, #tpu.memory_space<vmem>>, %arg5: memref<16x256xf32, #tpu.memory_space<vmem>>) attributes {dimension_semantics = [#tpu.dimension_semantics<parallel>, #tpu.dimension_semantics<parallel>], iteration_bounds = array<i64: 1, 2>, scalar_prefetch = 0 : i64, scratch_operands = 0 : i64, tpu.core_type = #tpu.core_type<tc>, window_params = [{transform_indices = @transform_0, window_bounds = array<i64: 16, 16>}, {transform_indices = @transform_1, window_bounds = array<i64: 16, 256>}, {transform_indices = @transform_2, window_bounds = array<i64: 1, 256>}, {transform_indices = @transform_3, window_bounds = array<i64: 16, 256>}]} {
    %c0 = arith.constant 0 : index
    %c0_0 = arith.constant 0 : index
    %0 = vector.load %arg2[%c0, %c0_0] : memref<16x16xbf16, #tpu.memory_space<vmem>>, vector<16x16xbf16>
    %c0_1 = arith.constant 0 : index
    %c0_2 = arith.constant 0 : index
    %1 = vector.load %arg3[%c0_1, %c0_2] : memref<16x256xbf16, #tpu.memory_space<vmem>>, vector<16x256xbf16>
    %cst = arith.constant dense<0.000000e+00> : vector<16x256xf32>
    %2 = tpu.matmul %0, %1, %cst {dimension_numbers = #tpu.dot_dimension_numbers<[1], [0], [0], [1], [0, 0, 1, 1], [], []>} : vector<16x16xbf16>, vector<16x256xbf16>, vector<16x256xf32> -> vector<16x256xf32>
    %c0_3 = arith.constant 0 : index
    %c0_4 = arith.constant 0 : index
    %3 = vector.load %arg4[%c0_3, %c0_4] : memref<1x256xf32, #tpu.memory_space<vmem>>, vector<1x256xf32>
    %4 = vector.broadcast %3 : vector<1x256xf32> to vector<16x256xf32>
    %5 = arith.addf %2, %4 : vector<16x256xf32>
    %c0_5 = arith.constant 0 : index
    %c0_6 = arith.constant 0 : index
    %6 = vector.load %arg5[%c0_5, %c0_6] : memref<16x256xf32, #tpu.memory_space<vmem>>, vector<16x256xf32>
    tpu.vector_store %arg5[%c0_5, %c0_6], %5 {strides = array<i32>} : memref<16x256xf32, #tpu.memory_space<vmem>>, vector<16x256xf32>,
    return
  }
  func.func @transform_0(%arg0: i32, %arg1: i32) -> (i32, i32) {
    %c0_i32 = arith.constant 0 : i32
    %c0_i32_0 = arith.constant 0 : i32
    return %arg0, %c0_i32 : i32, i32
  }
  func.func @transform_1(%arg0: i32, %arg1: i32) -> (i32, i32) {
    %c0_i32 = arith.constant 0 : i32
    %c0_i32_0 = arith.constant 0 : i32
    return %c0_i32, %arg1 : i32, i32
  }
  func.func @transform_2(%arg0: i32, %arg1: i32) -> (i32, i32) {
    %c0_i32 = arith.constant 0 : i32
    %c0_i32_0 = arith.constant 0 : i32
    return %c0_i32, %arg1 : i32, i32
  }
  func.func @transform_3(%arg0: i32, %arg1: i32) -> (i32, i32) {
    %c0_i32 = arith.constant 0 : i32
    return %arg0, %arg1 : i32, i32
  }
}

module attributes {stable_mosaic.version = 11 : i64} {
  func.func @_mm_kernel(%arg0: i32, %arg1: i32, %arg2: memref<16x256xbf16, #tpu.memory_space<vmem>>, %arg3: memref<256x128xbf16, #tpu.memory_space<vmem>>, %arg4: memref<1x128xf32, #tpu.memory_space<vmem>>, %arg5: memref<16x128xbf16, #tpu.memory_space<vmem>>) attributes {dimension_semantics = [#tpu.dimension_semantics<parallel>, #tpu.dimension_semantics<parallel>], iteration_bounds = array<i64: 1, 1>, scalar_prefetch = 0 : i64, scratch_operands = 0 : i64, tpu.core_type = #tpu.core_type<tc>, window_params = [{transform_indices = @transform_0, window_bounds = array<i64: 16, 256>}, {transform_indices = @transform_1, window_bounds = array<i64: 256, 128>}, {transform_indices = @transform_2, window_bounds = array<i64: 1, 128>}, {transform_indices = @transform_3, window_bounds = array<i64: 16, 128>}]} {
    %c0 = arith.constant 0 : index
    %c0_0 = arith.constant 0 : index
    %0 = vector.load %arg2[%c0, %c0_0] : memref<16x256xbf16, #tpu.memory_space<vmem>>, vector<16x256xbf16>
    %c0_1 = arith.constant 0 : index
    %c0_2 = arith.constant 0 : index
    %1 = vector.load %arg3[%c0_1, %c0_2] : memref<256x128xbf16, #tpu.memory_space<vmem>>, vector<256x128xbf16>
    %cst = arith.constant dense<0.000000e+00> : vector<16x128xf32>
    %2 = tpu.matmul %0, %1, %cst {dimension_numbers = #tpu.dot_dimension_numbers<[1], [0], [0], [1], [0, 0, 1, 1], [], []>} : vector<16x256xbf16>, vector<256x128xbf16>, vector<16x128xf32> -> vector<16x128xf32>
    %c0_3 = arith.constant 0 : index
    %c0_4 = arith.constant 0 : index
    %3 = vector.load %arg4[%c0_3, %c0_4] : memref<1x128xf32, #tpu.memory_space<vmem>>, vector<1x128xf32>
    %4 = vector.broadcast %3 : vector<1x128xf32> to vector<16x128xf32>
    %5 = arith.addf %2, %4 : vector<16x128xf32>
    %cst_5 = arith.constant 0.000000e+00 : f32
    %6 = vector.broadcast %cst_5 : f32 to vector<16x128xf32>
    %7 = arith.maximumf %5, %6 : vector<16x128xf32>
    %8 = arith.truncf %7 : vector<16x128xf32> to vector<16x128xbf16>
    %c0_6 = arith.constant 0 : index
    %c0_7 = arith.constant 0 : index
    %9 = vector.load %arg5[%c0_6, %c0_7] : memref<16x128xbf16, #tpu.memory_space<vmem>>, vector<16x128xbf16>
    tpu.vector_store %arg5[%c0_6, %c0_7], %8 {strides = array<i32>} : memref<16x128xbf16, #tpu.memory_space<vmem>>, vector<16x128xbf16>,
    return
  }
  func.func @transform_0(%arg0: i32, %arg1: i32) -> (i32, i32) {
    %c0_i32 = arith.constant 0 : i32
    %c0_i32_0 = arith.constant 0 : i32
    return %arg0, %c0_i32 : i32, i32
  }
  func.func @transform_1(%arg0: i32, %arg1: i32) -> (i32, i32) {
    %c0_i32 = arith.constant 0 : i32
    %c0_i32_0 = arith.constant 0 : i32
    return %c0_i32, %arg1 : i32, i32
  }
  func.func @transform_2(%arg0: i32, %arg1: i32) -> (i32, i32) {
    %c0_i32 = arith.constant 0 : i32
    %c0_i32_0 = arith.constant 0 : i32
    return %c0_i32, %arg1 : i32, i32
  }
  func.func @transform_3(%arg0: i32, %arg1: i32) -> (i32, i32) {
    %c0_i32 = arith.constant 0 : i32
    return %arg0, %arg1 : i32, i32
  }
}

module attributes {stable_mosaic.version = 11 : i64} {
  func.func @_mm_kernel(%arg0: i32, %arg1: i32, %arg2: memref<32x256xbf16, #tpu.memory_space<vmem>>, %arg3: memref<256x128xbf16, #tpu.memory_space<vmem>>, %arg4: memref<1x128xf32, #tpu.memory_space<vmem>>, %arg5: memref<32x128xbf16, #tpu.memory_space<vmem>>) attributes {dimension_semantics = [#tpu.dimension_semantics<parallel>, #tpu.dimension_semantics<parallel>], iteration_bounds = array<i64: 1, 1>, scalar_prefetch = 0 : i64, scratch_operands = 0 : i64, tpu.core_type = #tpu.core_type<tc>, window_params = [{transform_indices = @transform_0, window_bounds = array<i64: 32, 256>}, {transform_indices = @transform_1, window_bounds = array<i64: 256, 128>}, {transform_indices = @transform_2, window_bounds = array<i64: 1, 128>}, {transform_indices = @transform_3, window_bounds = array<i64: 32, 128>}]} {
    %c0 = arith.constant 0 : index
    %c0_0 = arith.constant 0 : index
    %0 = vector.load %arg2[%c0, %c0_0] : memref<32x256xbf16, #tpu.memory_space<vmem>>, vector<32x256xbf16>
    %c0_1 = arith.constant 0 : index
    %c0_2 = arith.constant 0 : index
    %1 = vector.load %arg3[%c0_1, %c0_2] : memref<256x128xbf16, #tpu.memory_space<vmem>>, vector<256x128xbf16>
    %cst = arith.constant dense<0.000000e+00> : vector<32x128xf32>
    %2 = tpu.matmul %0, %1, %cst {dimension_numbers = #tpu.dot_dimension_numbers<[1], [0], [0], [1], [0, 0, 1, 1], [], []>} : vector<32x256xbf16>, vector<256x128xbf16>, vector<32x128xf32> -> vector<32x128xf32>
    %c0_3 = arith.constant 0 : index
    %c0_4 = arith.constant 0 : index
    %3 = vector.load %arg4[%c0_3, %c0_4] : memref<1x128xf32, #tpu.memory_space<vmem>>, vector<1x128xf32>
    %4 = vector.broadcast %3 : vector<1x128xf32> to vector<32x128xf32>
    %5 = arith.addf %2, %4 : vector<32x128xf32>
    %cst_5 = arith.constant 0.000000e+00 : f32
    %6 = vector.broadcast %cst_5 : f32 to vector<32x128xf32>
    %7 = arith.maximumf %5, %6 : vector<32x128xf32>
    %8 = arith.truncf %7 : vector<32x128xf32> to vector<32x128xbf16>
    %c0_6 = arith.constant 0 : index
    %c0_7 = arith.constant 0 : index
    %9 = vector.load %arg5[%c0_6, %c0_7] : memref<32x128xbf16, #tpu.memory_space<vmem>>, vector<32x128xbf16>
    tpu.vector_store %arg5[%c0_6, %c0_7], %8 {strides = array<i32>} : memref<32x128xbf16, #tpu.memory_space<vmem>>, vector<32x128xbf16>,
    return
  }
  func.func @transform_0(%arg0: i32, %arg1: i32) -> (i32, i32) {
    %c0_i32 = arith.constant 0 : i32
    %c0_i32_0 = arith.constant 0 : i32
    return %arg0, %c0_i32 : i32, i32
  }
  func.func @transform_1(%arg0: i32, %arg1: i32) -> (i32, i32) {
    %c0_i32 = arith.constant 0 : i32
    %c0_i32_0 = arith.constant 0 : i32
    return %c0_i32, %arg1 : i32, i32
  }
  func.func @transform_2(%arg0: i32, %arg1: i32) -> (i32, i32) {
    %c0_i32 = arith.constant 0 : i32
    %c0_i32_0 = arith.constant 0 : i32
    return %c0_i32, %arg1 : i32, i32
  }
  func.func @transform_3(%arg0: i32, %arg1: i32) -> (i32, i32) {
    %c0_i32 = arith.constant 0 : i32
    return %arg0, %arg1 : i32, i32
  }
}

module attributes {stable_mosaic.version = 11 : i64} {
  func.func @_mm_kernel(%arg0: i32, %arg1: i32, %arg2: memref<32x320xbf16, #tpu.memory_space<vmem>>, %arg3: memref<320x128xbf16, #tpu.memory_space<vmem>>, %arg4: memref<1x128xf32, #tpu.memory_space<vmem>>, %arg5: memref<32x128xbf16, #tpu.memory_space<vmem>>) attributes {dimension_semantics = [#tpu.dimension_semantics<parallel>, #tpu.dimension_semantics<parallel>], iteration_bounds = array<i64: 1, 1>, scalar_prefetch = 0 : i64, scratch_operands = 0 : i64, tpu.core_type = #tpu.core_type<tc>, window_params = [{transform_indices = @transform_0, window_bounds = array<i64: 32, 320>}, {transform_indices = @transform_1, window_bounds = array<i64: 320, 128>}, {transform_indices = @transform_2, window_bounds = array<i64: 1, 128>}, {transform_indices = @transform_3, window_bounds = array<i64: 32, 128>}]} {
    %c0 = arith.constant 0 : index
    %c0_0 = arith.constant 0 : index
    %0 = vector.load %arg2[%c0, %c0_0] : memref<32x320xbf16, #tpu.memory_space<vmem>>, vector<32x320xbf16>
    %c0_1 = arith.constant 0 : index
    %c0_2 = arith.constant 0 : index
    %1 = vector.load %arg3[%c0_1, %c0_2] : memref<320x128xbf16, #tpu.memory_space<vmem>>, vector<320x128xbf16>
    %cst = arith.constant dense<0.000000e+00> : vector<32x128xf32>
    %2 = tpu.matmul %0, %1, %cst {dimension_numbers = #tpu.dot_dimension_numbers<[1], [0], [0], [1], [0, 0, 1, 1], [], []>} : vector<32x320xbf16>, vector<320x128xbf16>, vector<32x128xf32> -> vector<32x128xf32>
    %c0_3 = arith.constant 0 : index
    %c0_4 = arith.constant 0 : index
    %3 = vector.load %arg4[%c0_3, %c0_4] : memref<1x128xf32, #tpu.memory_space<vmem>>, vector<1x128xf32>
    %4 = vector.broadcast %3 : vector<1x128xf32> to vector<32x128xf32>
    %5 = arith.addf %2, %4 : vector<32x128xf32>
    %cst_5 = arith.constant 0.000000e+00 : f32
    %6 = vector.broadcast %cst_5 : f32 to vector<32x128xf32>
    %7 = arith.maximumf %5, %6 : vector<32x128xf32>
    %8 = arith.truncf %7 : vector<32x128xf32> to vector<32x128xbf16>
    %c0_6 = arith.constant 0 : index
    %c0_7 = arith.constant 0 : index
    %9 = vector.load %arg5[%c0_6, %c0_7] : memref<32x128xbf16, #tpu.memory_space<vmem>>, vector<32x128xbf16>
    tpu.vector_store %arg5[%c0_6, %c0_7], %8 {strides = array<i32>} : memref<32x128xbf16, #tpu.memory_space<vmem>>, vector<32x128xbf16>,
    return
  }
  func.func @transform_0(%arg0: i32, %arg1: i32) -> (i32, i32) {
    %c0_i32 = arith.constant 0 : i32
    %c0_i32_0 = arith.constant 0 : i32
    return %arg0, %c0_i32 : i32, i32
  }
  func.func @transform_1(%arg0: i32, %arg1: i32) -> (i32, i32) {
    %c0_i32 = arith.constant 0 : i32
    %c0_i32_0 = arith.constant 0 : i32
    return %c0_i32, %arg1 : i32, i32
  }
  func.func @transform_2(%arg0: i32, %arg1: i32) -> (i32, i32) {
    %c0_i32 = arith.constant 0 : i32
    %c0_i32_0 = arith.constant 0 : i32
    return %c0_i32, %arg1 : i32, i32
  }
  func.func @transform_3(%arg0: i32, %arg1: i32) -> (i32, i32) {
    %c0_i32 = arith.constant 0 : i32
    return %arg0, %arg1 : i32, i32
  }
}

module attributes {stable_mosaic.version = 11 : i64} {
  func.func @_mm_kernel(%arg0: i32, %arg1: i32, %arg2: memref<16x16xbf16, #tpu.memory_space<vmem>>, %arg3: memref<16x256xbf16, #tpu.memory_space<vmem>>, %arg4: memref<1x256xf32, #tpu.memory_space<vmem>>, %arg5: memref<16x256xbf16, #tpu.memory_space<vmem>>) attributes {dimension_semantics = [#tpu.dimension_semantics<parallel>, #tpu.dimension_semantics<parallel>], iteration_bounds = array<i64: 1, 2>, scalar_prefetch = 0 : i64, scratch_operands = 0 : i64, tpu.core_type = #tpu.core_type<tc>, window_params = [{transform_indices = @transform_0, window_bounds = array<i64: 16, 16>}, {transform_indices = @transform_1, window_bounds = array<i64: 16, 256>}, {transform_indices = @transform_2, window_bounds = array<i64: 1, 256>}, {transform_indices = @transform_3, window_bounds = array<i64: 16, 256>}]} {
    %c0 = arith.constant 0 : index
    %c0_0 = arith.constant 0 : index
    %0 = vector.load %arg2[%c0, %c0_0] : memref<16x16xbf16, #tpu.memory_space<vmem>>, vector<16x16xbf16>
    %c0_1 = arith.constant 0 : index
    %c0_2 = arith.constant 0 : index
    %1 = vector.load %arg3[%c0_1, %c0_2] : memref<16x256xbf16, #tpu.memory_space<vmem>>, vector<16x256xbf16>
    %cst = arith.constant dense<0.000000e+00> : vector<16x256xf32>
    %2 = tpu.matmul %0, %1, %cst {dimension_numbers = #tpu.dot_dimension_numbers<[1], [0], [0], [1], [0, 0, 1, 1], [], []>} : vector<16x16xbf16>, vector<16x256xbf16>, vector<16x256xf32> -> vector<16x256xf32>
    %c0_3 = arith.constant 0 : index
    %c0_4 = arith.constant 0 : index
    %3 = vector.load %arg4[%c0_3, %c0_4] : memref<1x256xf32, #tpu.memory_space<vmem>>, vector<1x256xf32>
    %4 = vector.broadcast %3 : vector<1x256xf32> to vector<16x256xf32>
    %5 = arith.addf %2, %4 : vector<16x256xf32>
    %6 = arith.truncf %5 : vector<16x256xf32> to vector<16x256xbf16>
    %c0_5 = arith.constant 0 : index
    %c0_6 = arith.constant 0 : index
    %7 = vector.load %arg5[%c0_5, %c0_6] : memref<16x256xbf16, #tpu.memory_space<vmem>>, vector<16x256xbf16>
    tpu.vector_store %arg5[%c0_5, %c0_6], %6 {strides = array<i32>} : memref<16x256xbf16, #tpu.memory_space<vmem>>, vector<16x256xbf16>,
    return
  }
  func.func @transform_0(%arg0: i32, %arg1: i32) -> (i32, i32) {
    %c0_i32 = arith.constant 0 : i32
    %c0_i32_0 = arith.constant 0 : i32
    return %arg0, %c0_i32 : i32, i32
  }
  func.func @transform_1(%arg0: i32, %arg1: i32) -> (i32, i32) {
    %c0_i32 = arith.constant 0 : i32
    %c0_i32_0 = arith.constant 0 : i32
    return %c0_i32, %arg1 : i32, i32
  }
  func.func @transform_2(%arg0: i32, %arg1: i32) -> (i32, i32) {
    %c0_i32 = arith.constant 0 : i32
    %c0_i32_0 = arith.constant 0 : i32
    return %c0_i32, %arg1 : i32, i32
  }
  func.func @transform_3(%arg0: i32, %arg1: i32) -> (i32, i32) {
    %c0_i32 = arith.constant 0 : i32
    return %arg0, %arg1 : i32, i32
  }
}

module attributes {stable_mosaic.version = 11 : i64} {
  func.func @_mm_kernel(%arg0: i32, %arg1: i32, %arg2: memref<16x16xbf16, #tpu.memory_space<vmem>>, %arg3: memref<16x256xbf16, #tpu.memory_space<vmem>>, %arg4: memref<1x256xf32, #tpu.memory_space<vmem>>, %arg5: memref<16x256xbf16, #tpu.memory_space<vmem>>) attributes {dimension_semantics = [#tpu.dimension_semantics<parallel>, #tpu.dimension_semantics<parallel>], iteration_bounds = array<i64: 1, 8>, scalar_prefetch = 0 : i64, scratch_operands = 0 : i64, tpu.core_type = #tpu.core_type<tc>, window_params = [{transform_indices = @transform_0, window_bounds = array<i64: 16, 16>}, {transform_indices = @transform_1, window_bounds = array<i64: 16, 256>}, {transform_indices = @transform_2, window_bounds = array<i64: 1, 256>}, {transform_indices = @transform_3, window_bounds = array<i64: 16, 256>}]} {
    %c0 = arith.constant 0 : index
    %c0_0 = arith.constant 0 : index
    %0 = vector.load %arg2[%c0, %c0_0] : memref<16x16xbf16, #tpu.memory_space<vmem>>, vector<16x16xbf16>
    %c0_1 = arith.constant 0 : index
    %c0_2 = arith.constant 0 : index
    %1 = vector.load %arg3[%c0_1, %c0_2] : memref<16x256xbf16, #tpu.memory_space<vmem>>, vector<16x256xbf16>
    %cst = arith.constant dense<0.000000e+00> : vector<16x256xf32>
    %2 = tpu.matmul %0, %1, %cst {dimension_numbers = #tpu.dot_dimension_numbers<[1], [0], [0], [1], [0, 0, 1, 1], [], []>} : vector<16x16xbf16>, vector<16x256xbf16>, vector<16x256xf32> -> vector<16x256xf32>
    %c0_3 = arith.constant 0 : index
    %c0_4 = arith.constant 0 : index
    %3 = vector.load %arg4[%c0_3, %c0_4] : memref<1x256xf32, #tpu.memory_space<vmem>>, vector<1x256xf32>
    %4 = vector.broadcast %3 : vector<1x256xf32> to vector<16x256xf32>
    %5 = arith.addf %2, %4 : vector<16x256xf32>
    %6 = arith.truncf %5 : vector<16x256xf32> to vector<16x256xbf16>
    %c0_5 = arith.constant 0 : index
    %c0_6 = arith.constant 0 : index
    %7 = vector.load %arg5[%c0_5, %c0_6] : memref<16x256xbf16, #tpu.memory_space<vmem>>, vector<16x256xbf16>
    tpu.vector_store %arg5[%c0_5, %c0_6], %6 {strides = array<i32>} : memref<16x256xbf16, #tpu.memory_space<vmem>>, vector<16x256xbf16>,
    return
  }
  func.func @transform_0(%arg0: i32, %arg1: i32) -> (i32, i32) {
    %c0_i32 = arith.constant 0 : i32
    %c0_i32_0 = arith.constant 0 : i32
    return %arg0, %c0_i32 : i32, i32
  }
  func.func @transform_1(%arg0: i32, %arg1: i32) -> (i32, i32) {
    %c0_i32 = arith.constant 0 : i32
    %c0_i32_0 = arith.constant 0 : i32
    return %c0_i32, %arg1 : i32, i32
  }
  func.func @transform_2(%arg0: i32, %arg1: i32) -> (i32, i32) {
    %c0_i32 = arith.constant 0 : i32
    %c0_i32_0 = arith.constant 0 : i32
    return %c0_i32, %arg1 : i32, i32
  }
  func.func @transform_3(%arg0: i32, %arg1: i32) -> (i32, i32) {
    %c0_i32 = arith.constant 0 : i32
    return %arg0, %arg1 : i32, i32
  }
}

module attributes {stable_mosaic.version = 11 : i64} {
  func.func @_mm_kernel(%arg0: i32, %arg1: i32, %arg2: memref<256x720xbf16, #tpu.memory_space<vmem>>, %arg3: memref<720x128xbf16, #tpu.memory_space<vmem>>, %arg4: memref<1x128xf32, #tpu.memory_space<vmem>>, %arg5: memref<256x128xbf16, #tpu.memory_space<vmem>>) attributes {dimension_semantics = [#tpu.dimension_semantics<parallel>, #tpu.dimension_semantics<parallel>], iteration_bounds = array<i64: 2, 1>, scalar_prefetch = 0 : i64, scratch_operands = 0 : i64, tpu.core_type = #tpu.core_type<tc>, window_params = [{transform_indices = @transform_0, window_bounds = array<i64: 256, 720>}, {transform_indices = @transform_1, window_bounds = array<i64: 720, 128>}, {transform_indices = @transform_2, window_bounds = array<i64: 1, 128>}, {transform_indices = @transform_3, window_bounds = array<i64: 256, 128>}]} {
    %c0 = arith.constant 0 : index
    %c0_0 = arith.constant 0 : index
    %0 = vector.load %arg2[%c0, %c0_0] : memref<256x720xbf16, #tpu.memory_space<vmem>>, vector<256x720xbf16>
    %c0_1 = arith.constant 0 : index
    %c0_2 = arith.constant 0 : index
    %1 = vector.load %arg3[%c0_1, %c0_2] : memref<720x128xbf16, #tpu.memory_space<vmem>>, vector<720x128xbf16>
    %cst = arith.constant dense<0.000000e+00> : vector<256x128xf32>
    %2 = tpu.matmul %0, %1, %cst {dimension_numbers = #tpu.dot_dimension_numbers<[1], [0], [0], [1], [0, 0, 1, 1], [], []>} : vector<256x720xbf16>, vector<720x128xbf16>, vector<256x128xf32> -> vector<256x128xf32>
    %c0_3 = arith.constant 0 : index
    %c0_4 = arith.constant 0 : index
    %3 = vector.load %arg4[%c0_3, %c0_4] : memref<1x128xf32, #tpu.memory_space<vmem>>, vector<1x128xf32>
    %4 = vector.broadcast %3 : vector<1x128xf32> to vector<256x128xf32>
    %5 = arith.addf %2, %4 : vector<256x128xf32>
    %cst_5 = arith.constant 0.000000e+00 : f32
    %6 = vector.broadcast %cst_5 : f32 to vector<256x128xf32>
    %7 = arith.maximumf %5, %6 : vector<256x128xf32>
    %8 = arith.truncf %7 : vector<256x128xf32> to vector<256x128xbf16>
    %c0_6 = arith.constant 0 : index
    %c0_7 = arith.constant 0 : index
    %9 = vector.load %arg5[%c0_6, %c0_7] : memref<256x128xbf16, #tpu.memory_space<vmem>>, vector<256x128xbf16>
    tpu.vector_store %arg5[%c0_6, %c0_7], %8 {strides = array<i32>} : memref<256x128xbf16, #tpu.memory_space<vmem>>, vector<256x128xbf16>,
    return
  }
  func.func @transform_0(%arg0: i32, %arg1: i32) -> (i32, i32) {
    %c0_i32 = arith.constant 0 : i32
    %c0_i32_0 = arith.constant 0 : i32
    return %arg0, %c0_i32 : i32, i32
  }
  func.func @transform_1(%arg0: i32, %arg1: i32) -> (i32, i32) {
    %c0_i32 = arith.constant 0 : i32
    %c0_i32_0 = arith.constant 0 : i32
    return %c0_i32, %arg1 : i32, i32
  }
  func.func @transform_2(%arg0: i32, %arg1: i32) -> (i32, i32) {
    %c0_i32 = arith.constant 0 : i32
    %c0_i32_0 = arith.constant 0 : i32
    return %c0_i32, %arg1 : i32, i32
  }
  func.func @transform_3(%arg0: i32, %arg1: i32) -> (i32, i32) {
    %c0_i32 = arith.constant 0 : i32
    return %arg0, %arg1 : i32, i32
  }
}

module attributes {stable_mosaic.version = 11 : i64} {
  func.func @_mm_kernel(%arg0: i32, %arg1: i32, %arg2: memref<256x576xbf16, #tpu.memory_space<vmem>>, %arg3: memref<576x128xbf16, #tpu.memory_space<vmem>>, %arg4: memref<1x128xf32, #tpu.memory_space<vmem>>, %arg5: memref<256x128xbf16, #tpu.memory_space<vmem>>) attributes {dimension_semantics = [#tpu.dimension_semantics<parallel>, #tpu.dimension_semantics<parallel>], iteration_bounds = array<i64: 2, 1>, scalar_prefetch = 0 : i64, scratch_operands = 0 : i64, tpu.core_type = #tpu.core_type<tc>, window_params = [{transform_indices = @transform_0, window_bounds = array<i64: 256, 576>}, {transform_indices = @transform_1, window_bounds = array<i64: 576, 128>}, {transform_indices = @transform_2, window_bounds = array<i64: 1, 128>}, {transform_indices = @transform_3, window_bounds = array<i64: 256, 128>}]} {
    %c0 = arith.constant 0 : index
    %c0_0 = arith.constant 0 : index
    %0 = vector.load %arg2[%c0, %c0_0] : memref<256x576xbf16, #tpu.memory_space<vmem>>, vector<256x576xbf16>
    %c0_1 = arith.constant 0 : index
    %c0_2 = arith.constant 0 : index
    %1 = vector.load %arg3[%c0_1, %c0_2] : memref<576x128xbf16, #tpu.memory_space<vmem>>, vector<576x128xbf16>
    %cst = arith.constant dense<0.000000e+00> : vector<256x128xf32>
    %2 = tpu.matmul %0, %1, %cst {dimension_numbers = #tpu.dot_dimension_numbers<[1], [0], [0], [1], [0, 0, 1, 1], [], []>} : vector<256x576xbf16>, vector<576x128xbf16>, vector<256x128xf32> -> vector<256x128xf32>
    %c0_3 = arith.constant 0 : index
    %c0_4 = arith.constant 0 : index
    %3 = vector.load %arg4[%c0_3, %c0_4] : memref<1x128xf32, #tpu.memory_space<vmem>>, vector<1x128xf32>
    %4 = vector.broadcast %3 : vector<1x128xf32> to vector<256x128xf32>
    %5 = arith.addf %2, %4 : vector<256x128xf32>
    %cst_5 = arith.constant 0.000000e+00 : f32
    %6 = vector.broadcast %cst_5 : f32 to vector<256x128xf32>
    %7 = arith.maximumf %5, %6 : vector<256x128xf32>
    %8 = arith.truncf %7 : vector<256x128xf32> to vector<256x128xbf16>
    %c0_6 = arith.constant 0 : index
    %c0_7 = arith.constant 0 : index
    %9 = vector.load %arg5[%c0_6, %c0_7] : memref<256x128xbf16, #tpu.memory_space<vmem>>, vector<256x128xbf16>
    tpu.vector_store %arg5[%c0_6, %c0_7], %8 {strides = array<i32>} : memref<256x128xbf16, #tpu.memory_space<vmem>>, vector<256x128xbf16>,
    return
  }
  func.func @transform_0(%arg0: i32, %arg1: i32) -> (i32, i32) {
    %c0_i32 = arith.constant 0 : i32
    %c0_i32_0 = arith.constant 0 : i32
    return %arg0, %c0_i32 : i32, i32
  }
  func.func @transform_1(%arg0: i32, %arg1: i32) -> (i32, i32) {
    %c0_i32 = arith.constant 0 : i32
    %c0_i32_0 = arith.constant 0 : i32
    return %c0_i32, %arg1 : i32, i32
  }
  func.func @transform_2(%arg0: i32, %arg1: i32) -> (i32, i32) {
    %c0_i32 = arith.constant 0 : i32
    %c0_i32_0 = arith.constant 0 : i32
    return %c0_i32, %arg1 : i32, i32
  }
  func.func @transform_3(%arg0: i32, %arg1: i32) -> (i32, i32) {
    %c0_i32 = arith.constant 0 : i32
    return %arg0, %arg1 : i32, i32
  }
}

module attributes {stable_mosaic.version = 11 : i64} {
  func.func @_mm_kernel(%arg0: i32, %arg1: i32, %arg2: memref<256x64xbf16, #tpu.memory_space<vmem>>, %arg3: memref<64x128xbf16, #tpu.memory_space<vmem>>, %arg4: memref<1x128xf32, #tpu.memory_space<vmem>>, %arg5: memref<256x128xbf16, #tpu.memory_space<vmem>>) attributes {dimension_semantics = [#tpu.dimension_semantics<parallel>, #tpu.dimension_semantics<parallel>], iteration_bounds = array<i64: 2, 1>, scalar_prefetch = 0 : i64, scratch_operands = 0 : i64, tpu.core_type = #tpu.core_type<tc>, window_params = [{transform_indices = @transform_0, window_bounds = array<i64: 256, 64>}, {transform_indices = @transform_1, window_bounds = array<i64: 64, 128>}, {transform_indices = @transform_2, window_bounds = array<i64: 1, 128>}, {transform_indices = @transform_3, window_bounds = array<i64: 256, 128>}]} {
    %c0 = arith.constant 0 : index
    %c0_0 = arith.constant 0 : index
    %0 = vector.load %arg2[%c0, %c0_0] : memref<256x64xbf16, #tpu.memory_space<vmem>>, vector<256x64xbf16>
    %c0_1 = arith.constant 0 : index
    %c0_2 = arith.constant 0 : index
    %1 = vector.load %arg3[%c0_1, %c0_2] : memref<64x128xbf16, #tpu.memory_space<vmem>>, vector<64x128xbf16>
    %cst = arith.constant dense<0.000000e+00> : vector<256x128xf32>
    %2 = tpu.matmul %0, %1, %cst {dimension_numbers = #tpu.dot_dimension_numbers<[1], [0], [0], [1], [0, 0, 1, 1], [], []>} : vector<256x64xbf16>, vector<64x128xbf16>, vector<256x128xf32> -> vector<256x128xf32>
    %c0_3 = arith.constant 0 : index
    %c0_4 = arith.constant 0 : index
    %3 = vector.load %arg4[%c0_3, %c0_4] : memref<1x128xf32, #tpu.memory_space<vmem>>, vector<1x128xf32>
    %4 = vector.broadcast %3 : vector<1x128xf32> to vector<256x128xf32>
    %5 = arith.addf %2, %4 : vector<256x128xf32>
    %6 = arith.truncf %5 : vector<256x128xf32> to vector<256x128xbf16>
    %c0_5 = arith.constant 0 : index
    %c0_6 = arith.constant 0 : index
    %7 = vector.load %arg5[%c0_5, %c0_6] : memref<256x128xbf16, #tpu.memory_space<vmem>>, vector<256x128xbf16>
    tpu.vector_store %arg5[%c0_5, %c0_6], %6 {strides = array<i32>} : memref<256x128xbf16, #tpu.memory_space<vmem>>, vector<256x128xbf16>,
    return
  }
  func.func @transform_0(%arg0: i32, %arg1: i32) -> (i32, i32) {
    %c0_i32 = arith.constant 0 : i32
    %c0_i32_0 = arith.constant 0 : i32
    return %arg0, %c0_i32 : i32, i32
  }
  func.func @transform_1(%arg0: i32, %arg1: i32) -> (i32, i32) {
    %c0_i32 = arith.constant 0 : i32
    %c0_i32_0 = arith.constant 0 : i32
    return %c0_i32, %arg1 : i32, i32
  }
  func.func @transform_2(%arg0: i32, %arg1: i32) -> (i32, i32) {
    %c0_i32 = arith.constant 0 : i32
    %c0_i32_0 = arith.constant 0 : i32
    return %c0_i32, %arg1 : i32, i32
  }
  func.func @transform_3(%arg0: i32, %arg1: i32) -> (i32, i32) {
    %c0_i32 = arith.constant 0 : i32
    return %arg0, %arg1 : i32, i32
  }
}

module attributes {stable_mosaic.version = 11 : i64} {
  func.func @_mm_kernel(%arg0: i32, %arg1: i32, %arg2: memref<64x16xbf16, #tpu.memory_space<vmem>>, %arg3: memref<16x256xbf16, #tpu.memory_space<vmem>>, %arg4: memref<1x256xf32, #tpu.memory_space<vmem>>, %arg5: memref<64x256xbf16, #tpu.memory_space<vmem>>) attributes {dimension_semantics = [#tpu.dimension_semantics<parallel>, #tpu.dimension_semantics<parallel>], iteration_bounds = array<i64: 1, 3>, scalar_prefetch = 0 : i64, scratch_operands = 0 : i64, tpu.core_type = #tpu.core_type<tc>, window_params = [{transform_indices = @transform_0, window_bounds = array<i64: 64, 16>}, {transform_indices = @transform_1, window_bounds = array<i64: 16, 256>}, {transform_indices = @transform_2, window_bounds = array<i64: 1, 256>}, {transform_indices = @transform_3, window_bounds = array<i64: 64, 256>}]} {
    %c0 = arith.constant 0 : index
    %c0_0 = arith.constant 0 : index
    %0 = vector.load %arg2[%c0, %c0_0] : memref<64x16xbf16, #tpu.memory_space<vmem>>, vector<64x16xbf16>
    %c0_1 = arith.constant 0 : index
    %c0_2 = arith.constant 0 : index
    %1 = vector.load %arg3[%c0_1, %c0_2] : memref<16x256xbf16, #tpu.memory_space<vmem>>, vector<16x256xbf16>
    %cst = arith.constant dense<0.000000e+00> : vector<64x256xf32>
    %2 = tpu.matmul %0, %1, %cst {dimension_numbers = #tpu.dot_dimension_numbers<[1], [0], [0], [1], [0, 0, 1, 1], [], []>} : vector<64x16xbf16>, vector<16x256xbf16>, vector<64x256xf32> -> vector<64x256xf32>
    %c0_3 = arith.constant 0 : index
    %c0_4 = arith.constant 0 : index
    %3 = vector.load %arg4[%c0_3, %c0_4] : memref<1x256xf32, #tpu.memory_space<vmem>>, vector<1x256xf32>
    %4 = vector.broadcast %3 : vector<1x256xf32> to vector<64x256xf32>
    %5 = arith.addf %2, %4 : vector<64x256xf32>
    %6 = arith.truncf %5 : vector<64x256xf32> to vector<64x256xbf16>
    %c0_5 = arith.constant 0 : index
    %c0_6 = arith.constant 0 : index
    %7 = vector.load %arg5[%c0_5, %c0_6] : memref<64x256xbf16, #tpu.memory_space<vmem>>, vector<64x256xbf16>
    tpu.vector_store %arg5[%c0_5, %c0_6], %6 {strides = array<i32>} : memref<64x256xbf16, #tpu.memory_space<vmem>>, vector<64x256xbf16>,
    return
  }
  func.func @transform_0(%arg0: i32, %arg1: i32) -> (i32, i32) {
    %c0_i32 = arith.constant 0 : i32
    %c0_i32_0 = arith.constant 0 : i32
    return %arg0, %c0_i32 : i32, i32
  }
  func.func @transform_1(%arg0: i32, %arg1: i32) -> (i32, i32) {
    %c0_i32 = arith.constant 0 : i32
    %c0_i32_0 = arith.constant 0 : i32
    return %c0_i32, %arg1 : i32, i32
  }
  func.func @transform_2(%arg0: i32, %arg1: i32) -> (i32, i32) {
    %c0_i32 = arith.constant 0 : i32
    %c0_i32_0 = arith.constant 0 : i32
    return %c0_i32, %arg1 : i32, i32
  }
  func.func @transform_3(%arg0: i32, %arg1: i32) -> (i32, i32) {
    %c0_i32 = arith.constant 0 : i32
    return %arg0, %arg1 : i32, i32
  }
}

module attributes {stable_mosaic.version = 11 : i64} {
  func.func @_mm_kernel(%arg0: i32, %arg1: i32, %arg2: memref<64x16xbf16, #tpu.memory_space<vmem>>, %arg3: memref<16x128xbf16, #tpu.memory_space<vmem>>, %arg4: memref<1x128xf32, #tpu.memory_space<vmem>>, %arg5: memref<64x128xf32, #tpu.memory_space<vmem>>) attributes {dimension_semantics = [#tpu.dimension_semantics<parallel>, #tpu.dimension_semantics<parallel>], iteration_bounds = array<i64: 1, 21>, scalar_prefetch = 0 : i64, scratch_operands = 0 : i64, tpu.core_type = #tpu.core_type<tc>, window_params = [{transform_indices = @transform_0, window_bounds = array<i64: 64, 16>}, {transform_indices = @transform_1, window_bounds = array<i64: 16, 128>}, {transform_indices = @transform_2, window_bounds = array<i64: 1, 128>}, {transform_indices = @transform_3, window_bounds = array<i64: 64, 128>}]} {
    %c0 = arith.constant 0 : index
    %c0_0 = arith.constant 0 : index
    %0 = vector.load %arg2[%c0, %c0_0] : memref<64x16xbf16, #tpu.memory_space<vmem>>, vector<64x16xbf16>
    %c0_1 = arith.constant 0 : index
    %c0_2 = arith.constant 0 : index
    %1 = vector.load %arg3[%c0_1, %c0_2] : memref<16x128xbf16, #tpu.memory_space<vmem>>, vector<16x128xbf16>
    %cst = arith.constant dense<0.000000e+00> : vector<64x128xf32>
    %2 = tpu.matmul %0, %1, %cst {dimension_numbers = #tpu.dot_dimension_numbers<[1], [0], [0], [1], [0, 0, 1, 1], [], []>} : vector<64x16xbf16>, vector<16x128xbf16>, vector<64x128xf32> -> vector<64x128xf32>
    %c0_3 = arith.constant 0 : index
    %c0_4 = arith.constant 0 : index
    %3 = vector.load %arg4[%c0_3, %c0_4] : memref<1x128xf32, #tpu.memory_space<vmem>>, vector<1x128xf32>
    %4 = vector.broadcast %3 : vector<1x128xf32> to vector<64x128xf32>
    %5 = arith.addf %2, %4 : vector<64x128xf32>
    %c0_5 = arith.constant 0 : index
    %c0_6 = arith.constant 0 : index
    %6 = vector.load %arg5[%c0_5, %c0_6] : memref<64x128xf32, #tpu.memory_space<vmem>>, vector<64x128xf32>
    tpu.vector_store %arg5[%c0_5, %c0_6], %5 {strides = array<i32>} : memref<64x128xf32, #tpu.memory_space<vmem>>, vector<64x128xf32>,
    return
  }
  func.func @transform_0(%arg0: i32, %arg1: i32) -> (i32, i32) {
    %c0_i32 = arith.constant 0 : i32
    %c0_i32_0 = arith.constant 0 : i32
    return %arg0, %c0_i32 : i32, i32
  }
  func.func @transform_1(%arg0: i32, %arg1: i32) -> (i32, i32) {
    %c0_i32 = arith.constant 0 : i32
    %c0_i32_0 = arith.constant 0 : i32
    return %c0_i32, %arg1 : i32, i32
  }
  func.func @transform_2(%arg0: i32, %arg1: i32) -> (i32, i32) {
    %c0_i32 = arith.constant 0 : i32
    %c0_i32_0 = arith.constant 0 : i32
    return %c0_i32, %arg1 : i32, i32
  }
  func.func @transform_3(%arg0: i32, %arg1: i32) -> (i32, i32) {
    %c0_i32 = arith.constant 0 : i32
    return %arg0, %arg1 : i32, i32
  }
}

</mosaic_0001>

<bundles_post_ra>
// kernel: deeplab_forward.32
= control target key start
LH: loop header
LB: loop body
LE: loop exit
PB: predicated region body
PF: predicated region fallthrough
CT: control target
= control target key end

     0   :  { %s2177_s12 = smov 0   ;;  %s2179_s13 = smov 0   ;;  %s2445_s0 = inlined_call_operand.vmem [shape: bf16[2048,160], index: 0, kind: input, shape index: {}]   ;;  %s2446_s1 = inlined_call_operand.vmem [shape: bf16[160,128], index: 1, kind: input, shape index: {}]   ;;  %s2447_s2 = inlined_call_operand.vmem [shape: f32[1,128], index: 2, kind: input, shape index: {}]   ;;  %s2448_s3 = inlined_call_operand.vmem [shape: bf16[2048,128], index: 3, kind: output, shape index: {}]  }
   0x1   :  { %s2181_s14 = smov 0  }
   0x2 LB: > { %s25_s15 = sadd.s32 1, %s2150_s13  ;;  %p1546_p0 = scmp.ge.s32.totalorder %s2154_s14, 1  ;;  %s2154_s14 = sphi %s2181_s14, %s13_s14   ;;  %s2150_s13 = sphi %s2179_s13, %s2450_s13   ;;  %s2146_s12 = sphi %s2177_s12, %s2449_s12  }
   0x3   : > { %p27_p1 = scmp.ge.s32.totalorder %s25_s15, 4  ;;  %p170_p2 = scmp.lt.s32.totalorder %s2154_s14, 5 }
   0x5   : > { %s2452_s15 = smov (%p27_p1, %s25_s15), 0  ;;  %p171_p3 = pnand %p1546_p0, %p170_p2 }
   0x6   : > { %v2026_v0 = vld [vmem:[%s2446_s1] sm:$0xff] (!%p171_p3)   ;;  %v2156_v1 = vmov (!%p171_p3), 0   ;;  %s1547_s18 = sshll.u32 (!%p171_p3), %s2146_s12, 6  ;;  %v2027_v2 = vld [vmem:[%s2446_s1 + $0x8] sm:$0xff] (!%p171_p3)   ;;  %v2028_v3 = vld [vmem:[%s2446_s1 + $0x10] sm:$0xff] (!%p171_p3)   ;;  %vm668_vm0 = vcmask (!%p171_p3), 261120  }
   0x7   : > { %174 = sbr.rel (%p171_p3) target bundleno = 388 (0x184), region = 32  ;;  %765 = vmatprep.subr.bf16.mxu0 (!%p171_p3), %v2156_v1  ;;  %1981 = vmatprep.subr.bf16.mxu1 (!%p171_p3), %v2156_v1  ;;  %p206_p4 = scmp.lt.s32.totalorder (!%p171_p3), %s1547_s18, 255  ;;  %v2029_v4 = vld [vmem:[%s2446_s1 + $0x18] sm:$0xff] (!%p171_p3)   ;;  %v2030_v7 = vld [vmem:[%s2446_s1 + $0x20] sm:$0xff] (!%p171_p3)   ;;  %v2031_v8 = vld [vmem:[%s2446_s1 + $0x28] sm:$0xff] (!%p171_p3)  }
   0x8   : > { %766 = vmatpush1.bf16.msra.mxu0 (!%p171_p3), %v2026_v0  ;;  %1991 = vmatpush1.bf16.msra.mxu1 (!%p171_p3), %v2026_v0  ;;  %v2032_v9 = vld [vmem:[%s2446_s1 + $0x30] sm:$0xff] (!%p171_p3)   ;;  %v2033_v10 = vld [vmem:[%s2446_s1 + $0x38] sm:$0xff] (!%p171_p3)   ;;  %v2034_v11 = vld [vmem:[%s2446_s1 + $0x40] sm:$0xff] (!%p171_p3)  }
   0x9   : > { %767 = vmatprep.subr.bf16.mxu0 (!%p171_p3), %v2156_v1  ;;  %1982 = vmatprep.subr.bf16.mxu1 (!%p171_p3), %v2156_v1  ;;  %v2035_v12 = vld [vmem:[%s2446_s1 + $0x48] sm:$0xff] (!%p171_p3)  }
   0xc   : > { %768 = vmatpush1.bf16.msra.mxu0 (!%p171_p3), %v2027_v2  ;;  %1992 = vmatpush1.bf16.msra.mxu1 (!%p171_p3), %v2027_v2 }
   0xd   : > { %769 = vmatprep.subr.bf16.mxu0 (!%p171_p3), %v2156_v1  ;;  %1983 = vmatprep.subr.bf16.mxu1 (!%p171_p3), %v2156_v1 }
   0xe   : > { %s2454_s18 = smov (!%p206_p4, %s1547_s18), 255 }
   0xf   : > { %s1725_s23 = sshll.u32 %s2454_s18, 3  ;;  %s1551_s20 = sshll.u32 %s2454_s18, 2 }
  0x10   : > { %s2210_s26 = scalar_lea.vmem %s2445_s0, %s1725_s23  ;;  %770 = vmatpush1.bf16.msra.mxu0 %v2028_v3  ;;  %1993 = vmatpush1.bf16.msra.mxu1 %v2028_v3  ;;  %s2342_s23 = scalar_lea.vmem %s2448_s3, %s1551_s20 }
  0x11   : > { %771 = vmatprep.subr.bf16.mxu0 %v2156_v1  ;;  %1984 = vmatprep.subr.bf16.mxu1 %v2156_v1  ;;  %v2038_v5 = vld [vmem:[%s2210_s26 + $0x4] ss:$8 sps:$4 sm:$0xff]   ;;  %v2036_v13 = vld [vmem:[%s2210_s26] ss:$8 sps:$4 sm:$0xff]   ;;  %v2042_v15 = vld [vmem:[%s2210_s26 + $0x14] ss:$8 sps:$4 sm:$0xff]  }
  0x12   : > { %v2041_v6 = vld [vmem:[%s2210_s26 + $0x104] ss:$8 sps:$4 sm:$0xff]   ;;  %1627 = vmatprep.mubr.msk.bf16.mxu0 %vm668_vm0, %v2038_v5  ;;  %v2039_v14 = vld [vmem:[%s2210_s26 + $0x100] ss:$8 sps:$4 sm:$0xff]   ;;  %v2044_v16 = vld [vmem:[%s2210_s26 + $0x114] ss:$8 sps:$4 sm:$0xff]  }
  0x13   : > { %1643 = vmatprep.mubr.msk.bf16.mxu1 %vm668_vm0, %v2041_v6  ;;  %v2046_v17 = vld [vmem:[%s2210_s26 + $0x10] ss:$8 sps:$4 sm:$0xff]   ;;  %v2048_v19 = vld [vmem:[%s2210_s26 + $0x24] ss:$8 sps:$4 sm:$0xff]   ;;  %v2052_v21 = vld [vmem:[%s2210_s26 + $0x20] ss:$8 sps:$4 sm:$0xff]  }
  0x14   : > { %772 = vmatpush1.bf16.msra.mxu0 %v2029_v4  ;;  %1994 = vmatpush1.bf16.msra.mxu1 %v2029_v4  ;;  %v2047_v18 = vld [vmem:[%s2210_s26 + $0x110] ss:$8 sps:$4 sm:$0xff]   ;;  %v2050_v20 = vld [vmem:[%s2210_s26 + $0x124] ss:$8 sps:$4 sm:$0xff]   ;;  %v2053_v22 = vld [vmem:[%s2210_s26 + $0x120] ss:$8 sps:$4 sm:$0xff]  }
  0x15   : > { %773 = vmatprep.subr.bf16.mxu0 %v2156_v1  ;;  %1985 = vmatprep.subr.bf16.mxu1 %v2156_v1  ;;  %v2054_v23 = vld [vmem:[%s2210_s26 + $0x34] ss:$8 sps:$4 sm:$0xff]   ;;  %v2058_v25 = vld [vmem:[%s2210_s26 + $0x30] ss:$8 sps:$4 sm:$0xff]   ;;  %v2060_v27 = vld [vmem:[%s2210_s26 + $0x44] ss:$8 sps:$4 sm:$0xff]  }
  0x16   : > { %v2056_v24 = vld [vmem:[%s2210_s26 + $0x134] ss:$8 sps:$4 sm:$0xff]   ;;  %v2059_v26 = vld [vmem:[%s2210_s26 + $0x130] ss:$8 sps:$4 sm:$0xff]   ;;  %v2062_v28 = vld [vmem:[%s2210_s26 + $0x144] ss:$8 sps:$4 sm:$0xff]  }
  0x17   : > { %v2064_v29 = vld [vmem:[%s2210_s26 + $0x40] ss:$8 sps:$4 sm:$0xff]   ;;  %v2066_v31 = vld [vmem:[%s2210_s26 + $0x54] ss:$8 sps:$4 sm:$0xff]   ;;  %v2070_v33 = vld [vmem:[%s2210_s26 + $0x50] ss:$8 sps:$4 sm:$0xff]  }
  0x18   : > { %774 = vmatpush1.bf16.msra.mxu0 %v2030_v7  ;;  %1995 = vmatpush1.bf16.msra.mxu1 %v2030_v7  ;;  %v2065_v30 = vld [vmem:[%s2210_s26 + $0x140] ss:$8 sps:$4 sm:$0xff]   ;;  %v2068_v32 = vld [vmem:[%s2210_s26 + $0x154] ss:$8 sps:$4 sm:$0xff]   ;;  %v2071_v34 = vld [vmem:[%s2210_s26 + $0x150] ss:$8 sps:$4 sm:$0xff]  }
  0x19   : > { %775 = vmatprep.subr.bf16.mxu0 %v2156_v1  ;;  %1986 = vmatprep.subr.bf16.mxu1 %v2156_v1  ;;  %v2072_v35 = vld [vmem:[%s2210_s26 + $0x64] ss:$8 sps:$4 sm:$0xff]   ;;  %v2076_v37 = vld [vmem:[%s2210_s26 + $0x60] ss:$8 sps:$4 sm:$0xff]   ;;  %v2078_v39 = vld [vmem:[%s2210_s26 + $0x74] ss:$8 sps:$4 sm:$0xff]  }
  0x1a   : > { %v2074_v36 = vld [vmem:[%s2210_s26 + $0x164] ss:$8 sps:$4 sm:$0xff]   ;;  %v2077_v38 = vld [vmem:[%s2210_s26 + $0x160] ss:$8 sps:$4 sm:$0xff]   ;;  %v2080_v40 = vld [vmem:[%s2210_s26 + $0x174] ss:$8 sps:$4 sm:$0xff]  }
  0x1b   : > { %v2082_v41 = vld [vmem:[%s2210_s26 + $0x70] ss:$8 sps:$4 sm:$0xff]   ;;  %v2084_v43 = vld [vmem:[%s2210_s26 + $0x84] ss:$8 sps:$4 sm:$0xff]   ;;  %v2088_v45 = vld [vmem:[%s2210_s26 + $0x80] ss:$8 sps:$4 sm:$0xff]  }
  0x1c   : > { %776 = vmatpush1.bf16.msra.mxu0 %v2031_v8  ;;  %1996 = vmatpush1.bf16.msra.mxu1 %v2031_v8  ;;  %v2083_v42 = vld [vmem:[%s2210_s26 + $0x170] ss:$8 sps:$4 sm:$0xff]   ;;  %v2086_v44 = vld [vmem:[%s2210_s26 + $0x184] ss:$8 sps:$4 sm:$0xff]   ;;  %v2089_v46 = vld [vmem:[%s2210_s26 + $0x180] ss:$8 sps:$4 sm:$0xff]  }
  0x1d   : > { %777 = vmatprep.subr.bf16.mxu0 %v2156_v1  ;;  %1987 = vmatprep.subr.bf16.mxu1 %v2156_v1  ;;  %v2090_v47 = vld [vmem:[%s2210_s26 + $0x94] ss:$8 sps:$4 sm:$0xff]   ;;  %v2094_v49 = vld [vmem:[%s2210_s26 + $0x90] ss:$8 sps:$4 sm:$0xff]   ;;  %v2096_v51 = vld [vmem:[%s2210_s26 + $0xa4] ss:$8 sps:$4 sm:$0xff]  }
  0x1e   : > { %v2092_v48 = vld [vmem:[%s2210_s26 + $0x194] ss:$8 sps:$4 sm:$0xff]   ;;  %v2095_v50 = vld [vmem:[%s2210_s26 + $0x190] ss:$8 sps:$4 sm:$0xff]   ;;  %v2098_v52 = vld [vmem:[%s2210_s26 + $0x1a4] ss:$8 sps:$4 sm:$0xff]  }
  0x1f   : > { %v2100_v53 = vld [vmem:[%s2210_s26 + $0xa0] ss:$8 sps:$4 sm:$0xff]   ;;  %v2102_v55 = vld [vmem:[%s2210_s26 + $0xb4] ss:$8 sps:$4 sm:$0xff]   ;;  %v2106_v57 = vld [vmem:[%s2210_s26 + $0xb0] ss:$8 sps:$4 sm:$0xff]  }
  0x20   : > { %778 = vmatpush1.bf16.msra.mxu0 %v2032_v9  ;;  %1997 = vmatpush1.bf16.msra.mxu1 %v2032_v9  ;;  %v2101_v54 = vld [vmem:[%s2210_s26 + $0x1a0] ss:$8 sps:$4 sm:$0xff]   ;;  %v2104_v56 = vld [vmem:[%s2210_s26 + $0x1b4] ss:$8 sps:$4 sm:$0xff]   ;;  %v2107_v58 = vld [vmem:[%s2210_s26 + $0x1b0] ss:$8 sps:$4 sm:$0xff]  }
  0x21   : > { %779 = vmatprep.subr.bf16.mxu0 %v2156_v1  ;;  %1988 = vmatprep.subr.bf16.mxu1 %v2156_v1  ;;  %v2108_v59 = vld [vmem:[%s2210_s26 + $0xc4] ss:$8 sps:$4 sm:$0xff]   ;;  %v2112_v61 = vld [vmem:[%s2210_s26 + $0xc0] ss:$8 sps:$4 sm:$0xff]   ;;  %v2114_v63 = vld [vmem:[%s2210_s26 + $0xd4] ss:$8 sps:$4 sm:$0xff]  }
  0x22   : > { %v2110_v60 = vld [vmem:[%s2210_s26 + $0x1c4] ss:$8 sps:$4 sm:$0xff]   ;;  %v2113_v62 = vld [vmem:[%s2210_s26 + $0x1c0] ss:$8 sps:$4 sm:$0xff]   ;;  %v2116_v0 = vld [vmem:[%s2210_s26 + $0x1d4] ss:$8 sps:$4 sm:$0xff]  }
  0x23   : > { %v2119_v2 = vld [vmem:[%s2210_s26 + $0x1d0] ss:$8 sps:$4 sm:$0xff]   ;;  %v2120_v3 = vld [vmem:[%s2210_s26 + $0xe4] ss:$8 sps:$4 sm:$0xff]   ;;  %v2124_v5 = vld [vmem:[%s2210_s26 + $0xe0] ss:$8 sps:$4 sm:$0xff]  }
  0x24   : > { %780 = vmatpush1.bf16.msra.mxu0 %v2033_v10  ;;  %1998 = vmatpush1.bf16.msra.mxu1 %v2033_v10  ;;  %v2122_v4 = vld [vmem:[%s2210_s26 + $0x1e4] ss:$8 sps:$4 sm:$0xff]   ;;  %v2125_v6 = vld [vmem:[%s2210_s26 + $0x1e0] ss:$8 sps:$4 sm:$0xff]   ;;  %v2126_v7 = vld [vmem:[%s2210_s26 + $0xf4] ss:$8 sps:$4 sm:$0xff]  }
  0x25   : > { %781 = vmatprep.subr.bf16.mxu0 %v2156_v1  ;;  %1989 = vmatprep.subr.bf16.mxu1 %v2156_v1  ;;  %v2128_v8 = vld [vmem:[%s2210_s26 + $0x1f4] ss:$8 sps:$4 sm:$0xff]   ;;  %v2130_v9 = vld [vmem:[%s2210_s26 + $0xf0] ss:$8 sps:$4 sm:$0xff]  }
  0x26   : > { %v2131_v10 = vld [vmem:[%s2210_s26 + $0x1f0] ss:$8 sps:$4 sm:$0xff]  }
  0x28   : > { %782 = vmatpush1.bf16.msra.mxu0 %v2034_v11  ;;  %1999 = vmatpush1.bf16.msra.mxu1 %v2034_v11  ;;  %v2332_v11 = vld [vmem:[%s2447_s2] ss:$0 sm:$0xff] }
  0x29   : > { %783 = vmatprep.subr.bf16.mxu0 %v2156_v1  ;;  %1990 = vmatprep.subr.bf16.mxu1 %v2156_v1  ;;  %v2118_v1 = vld [vmem:[%s2210_s26 + $0xd0] ss:$8 sps:$4 sm:$0xff]  }
  0x2c   : > { %784 = vmatpush1.bf16.msra.mxu0 %v2035_v12  ;;  %2000 = vmatpush1.bf16.msra.mxu1 %v2035_v12 }
  0x2f   : > { %798 = vmatmul.mubr.bf16.vlgmr.msra.gmra.mrb[0].mxu0 %v2036_v13  ;;  %926 = vmatmul.mubr.bf16.vlgmr.msra.gmra.mrb[0].mxu1 %v2039_v14 }
  0x30   : > { %1628 = vmatprep.mubr.msk.bf16.mxu0 %vm668_vm0, %v2042_v15  ;;  %1644 = vmatprep.mubr.msk.bf16.mxu1 %vm668_vm0, %v2044_v16 }
  0x37   : > { %806 = vmatmul.mubr.bf16.gmra.mrb[4].mxu0 %v2046_v17  ;;  %934 = vmatmul.mubr.bf16.gmra.mrb[4].mxu1 %v2047_v18 }
  0x38   : > { %1629 = vmatprep.mubr.msk.bf16.mxu0 %vm668_vm0, %v2048_v19  ;;  %1645 = vmatprep.mubr.msk.bf16.mxu1 %vm668_vm0, %v2050_v20 }
  0x3f   : > { %814 = vmatmul.mubr.bf16.gmra.mrb[8].mxu0 %v2052_v21  ;;  %942 = vmatmul.mubr.bf16.gmra.mrb[8].mxu1 %v2053_v22 }
  0x40   : > { %1630 = vmatprep.mubr.msk.bf16.mxu0 %vm668_vm0, %v2054_v23  ;;  %1646 = vmatprep.mubr.msk.bf16.mxu1 %vm668_vm0, %v2056_v24 }
  0x47   : > { %822 = vmatmul.mubr.bf16.gmra.mrb[12].mxu0 %v2058_v25  ;;  %950 = vmatmul.mubr.bf16.gmra.mrb[12].mxu1 %v2059_v26 }
  0x48   : > { %1631 = vmatprep.mubr.msk.bf16.mxu0 %vm668_vm0, %v2060_v27  ;;  %1647 = vmatprep.mubr.msk.bf16.mxu1 %vm668_vm0, %v2062_v28 }
  0x4f   : > { %830 = vmatmul.mubr.bf16.gmra.mrb[16].mxu0 %v2064_v29  ;;  %958 = vmatmul.mubr.bf16.gmra.mrb[16].mxu1 %v2065_v30 }
  0x50   : > { %1632 = vmatprep.mubr.msk.bf16.mxu0 %vm668_vm0, %v2066_v31  ;;  %1648 = vmatprep.mubr.msk.bf16.mxu1 %vm668_vm0, %v2068_v32 }
  0x57   : > { %838 = vmatmul.mubr.bf16.gmra.mrb[20].mxu0 %v2070_v33  ;;  %966 = vmatmul.mubr.bf16.gmra.mrb[20].mxu1 %v2071_v34 }
  0x58   : > { %1633 = vmatprep.mubr.msk.bf16.mxu0 %vm668_vm0, %v2072_v35  ;;  %1649 = vmatprep.mubr.msk.bf16.mxu1 %vm668_vm0, %v2074_v36 }
  0x5f   : > { %846 = vmatmul.mubr.bf16.gmra.mrb[24].mxu0 %v2076_v37  ;;  %974 = vmatmul.mubr.bf16.gmra.mrb[24].mxu1 %v2077_v38 }
  0x60   : > { %1634 = vmatprep.mubr.msk.bf16.mxu0 %vm668_vm0, %v2078_v39  ;;  %1650 = vmatprep.mubr.msk.bf16.mxu1 %vm668_vm0, %v2080_v40 }
  0x67   : > { %854 = vmatmul.mubr.bf16.gmra.mrb[28].mxu0 %v2082_v41  ;;  %982 = vmatmul.mubr.bf16.gmra.mrb[28].mxu1 %v2083_v42 }
  0x68   : > { %1635 = vmatprep.mubr.msk.bf16.mxu0 %vm668_vm0, %v2084_v43  ;;  %1651 = vmatprep.mubr.msk.bf16.mxu1 %vm668_vm0, %v2086_v44 }
  0x6f   : > { %862 = vmatmul.mubr.bf16.gmra.mrb[32].mxu0 %v2088_v45  ;;  %990 = vmatmul.mubr.bf16.gmra.mrb[32].mxu1 %v2089_v46 }
  0x70   : > { %1636 = vmatprep.mubr.msk.bf16.mxu0 %vm668_vm0, %v2090_v47  ;;  %1652 = vmatprep.mubr.msk.bf16.mxu1 %vm668_vm0, %v2092_v48 }
  0x77   : > { %870 = vmatmul.mubr.bf16.gmra.mrb[36].mxu0 %v2094_v49  ;;  %998 = vmatmul.mubr.bf16.gmra.mrb[36].mxu1 %v2095_v50 }
  0x78   : > { %1637 = vmatprep.mubr.msk.bf16.mxu0 %vm668_vm0, %v2096_v51  ;;  %1653 = vmatprep.mubr.msk.bf16.mxu1 %vm668_vm0, %v2098_v52 }
  0x7f   : > { %878 = vmatmul.mubr.bf16.gmra.mrb[40].mxu0 %v2100_v53  ;;  %1006 = vmatmul.mubr.bf16.gmra.mrb[40].mxu1 %v2101_v54 }
  0x80   : > { %1638 = vmatprep.mubr.msk.bf16.mxu0 %vm668_vm0, %v2102_v55  ;;  %1654 = vmatprep.mubr.msk.bf16.mxu1 %vm668_vm0, %v2104_v56 }
  0x87   : > { %886 = vmatmul.mubr.bf16.gmra.mrb[44].mxu0 %v2106_v57  ;;  %1014 = vmatmul.mubr.bf16.gmra.mrb[44].mxu1 %v2107_v58 }
  0x88   : > { %1639 = vmatprep.mubr.msk.bf16.mxu0 %vm668_vm0, %v2108_v59  ;;  %1655 = vmatprep.mubr.msk.bf16.mxu1 %vm668_vm0, %v2110_v60 }
  0x8f   : > { %894 = vmatmul.mubr.bf16.gmra.mrb[48].mxu0 %v2112_v61  ;;  %1022 = vmatmul.mubr.bf16.gmra.mrb[48].mxu1 %v2113_v62 }
  0x90   : > { %1640 = vmatprep.mubr.msk.bf16.mxu0 %vm668_vm0, %v2114_v63  ;;  %1656 = vmatprep.mubr.msk.bf16.mxu1 %vm668_vm0, %v2116_v0 }
  0x97   : > { %902 = vmatmul.mubr.bf16.gmra.mrb[52].mxu0 %v2118_v1  ;;  %1030 = vmatmul.mubr.bf16.gmra.mrb[52].mxu1 %v2119_v2 }
  0x98   : > { %1641 = vmatprep.mubr.msk.bf16.mxu0 %vm668_vm0, %v2120_v3  ;;  %1657 = vmatprep.mubr.msk.bf16.mxu1 %vm668_vm0, %v2122_v4 }
  0x9f   : > { %910 = vmatmul.mubr.bf16.gmra.mrb[56].mxu0 %v2124_v5  ;;  %1038 = vmatmul.mubr.bf16.gmra.mrb[56].mxu1 %v2125_v6 }
  0xa0   : > { %1642 = vmatprep.mubr.msk.bf16.mxu0 %vm668_vm0, %v2126_v7  ;;  %1658 = vmatprep.mubr.msk.bf16.mxu1 %vm668_vm0, %v2128_v8 }
  0xa7   : > { %918 = vmatmul.mubr.bf16.gmra.mrb[60].mxu0 %v2130_v9  ;;  %1046 = vmatmul.mubr.bf16.gmra.mrb[60].mxu1 %v2131_v10 }
 0x102   : > { %v799_v12 = vpop.f32.mrb[0].mxu0  ;;  %v927_v13 = vpop.f32.mrb[0].mxu1 }
 0x103   : > { %v800_v14 = vadd.f32 %v2332_v11, %v799_v12  ;;  %v928_v15 = vadd.f32 %v2332_v11, %v927_v13  ;;  %v801_v16 = vpop.f32.mrb[1].mxu0  ;;  %v929_v17 = vpop.f32.mrb[1].mxu1 }
 0x104   : > { %v802_v18 = vpop.f32.mrb[2].mxu0  ;;  %v930_v19 = vpop.f32.mrb[2].mxu1 }
 0x105   : > { %v803_v20 = vadd.f32 %v2332_v11, %v802_v18  ;;  %v931_v21 = vadd.f32 %v2332_v11, %v930_v19  ;;  %v804_v22 = vpop.f32.mrb[3].mxu0  ;;  %v932_v23 = vpop.f32.mrb[3].mxu1  ;;  %v1054_v24 = vmax.f32 %v800_v14, 0.0  ;;  %v1086_v25 = vmax.f32 %v928_v15, 0.0 }
 0x107   : > { %v1055_v26 = vmax.f32 %v803_v20, 0.0  ;;  %v1087_v27 = vmax.f32 %v931_v21, 0.0 }
 0x109   : > { %v1793_v28 = vpack.c.bf16 %v1055_v26, %v1054_v24  ;;  %v1873_v29 = vpack.c.bf16 %v1087_v27, %v1086_v25 }
 0x10a   : > { %v807_v30 = vpop.f32.mrb[4].mxu0  ;;  %v935_v31 = vpop.f32.mrb[4].mxu1 }
 0x10b   : > { %1794 = vst [vmem:[%s2342_s23] sm:$0xff] %v1793_v28   ;;  %1965 = vst [vmem:[%s2342_s23 + $0x80] sm:$0xff] %v1873_v29   ;;  %v808_v32 = vadd.f32 %v2332_v11, %v807_v30  ;;  %v936_v33 = vadd.f32 %v2332_v11, %v935_v31  ;;  %v809_v34 = vpop.f32.mrb[5].mxu0  ;;  %v937_v35 = vpop.f32.mrb[5].mxu1 }
 0x10c   : > { %v810_v36 = vpop.f32.mrb[6].mxu0  ;;  %v938_v37 = vpop.f32.mrb[6].mxu1 }
 0x10d   : > { %v811_v38 = vadd.f32 %v2332_v11, %v810_v36  ;;  %v939_v39 = vadd.f32 %v2332_v11, %v938_v37  ;;  %v812_v40 = vpop.f32.mrb[7].mxu0  ;;  %v940_v41 = vpop.f32.mrb[7].mxu1  ;;  %v1056_v42 = vmax.f32 %v808_v32, 0.0  ;;  %v1088_v43 = vmax.f32 %v936_v33, 0.0 }
 0x10f   : > { %v1057_v44 = vmax.f32 %v811_v38, 0.0  ;;  %v1089_v45 = vmax.f32 %v939_v39, 0.0 }
 0x111   : > { %v1798_v46 = vpack.c.bf16 %v1057_v44, %v1056_v42  ;;  %v1878_v47 = vpack.c.bf16 %v1089_v45, %v1088_v43 }
 0x112   : > { %v815_v48 = vpop.f32.mrb[8].mxu0  ;;  %v943_v49 = vpop.f32.mrb[8].mxu1 }
 0x113   : > { %1950 = vst [vmem:[%s2342_s23 + $0x8] sm:$0xff] %v1798_v46   ;;  %1966 = vst [vmem:[%s2342_s23 + $0x88] sm:$0xff] %v1878_v47   ;;  %v816_v50 = vadd.f32 %v2332_v11, %v815_v48  ;;  %v944_v51 = vadd.f32 %v2332_v11, %v943_v49  ;;  %v817_v52 = vpop.f32.mrb[9].mxu0  ;;  %v945_v53 = vpop.f32.mrb[9].mxu1 }
 0x114   : > { %v818_v54 = vpop.f32.mrb[10].mxu0  ;;  %v946_v55 = vpop.f32.mrb[10].mxu1 }
 0x115   : > { %v819_v56 = vadd.f32 %v2332_v11, %v818_v54  ;;  %v947_v57 = vadd.f32 %v2332_v11, %v946_v55  ;;  %v820_v58 = vpop.f32.mrb[11].mxu0  ;;  %v948_v59 = vpop.f32.mrb[11].mxu1  ;;  %v1058_v60 = vmax.f32 %v816_v50, 0.0  ;;  %v1090_v61 = vmax.f32 %v944_v51, 0.0 }
 0x117   : > { %v1059_v62 = vmax.f32 %v819_v56, 0.0  ;;  %v1091_v63 = vmax.f32 %v947_v57, 0.0 }
 0x119   : > { %v1803_v0 = vpack.c.bf16 %v1059_v62, %v1058_v60  ;;  %v1883_v1 = vpack.c.bf16 %v1091_v63, %v1090_v61 }
 0x11a   : > { %v823_v2 = vpop.f32.mrb[12].mxu0  ;;  %v951_v3 = vpop.f32.mrb[12].mxu1 }
 0x11b   : > { %1951 = vst [vmem:[%s2342_s23 + $0x10] sm:$0xff] %v1803_v0   ;;  %1967 = vst [vmem:[%s2342_s23 + $0x90] sm:$0xff] %v1883_v1   ;;  %v824_v4 = vadd.f32 %v2332_v11, %v823_v2  ;;  %v952_v5 = vadd.f32 %v2332_v11, %v951_v3  ;;  %v825_v6 = vpop.f32.mrb[13].mxu0  ;;  %v953_v7 = vpop.f32.mrb[13].mxu1 }
 0x11c   : > { %v826_v8 = vpop.f32.mrb[14].mxu0  ;;  %v954_v9 = vpop.f32.mrb[14].mxu1 }
 0x11d   : > { %v827_v10 = vadd.f32 %v2332_v11, %v826_v8  ;;  %v955_v12 = vadd.f32 %v2332_v11, %v954_v9  ;;  %v828_v13 = vpop.f32.mrb[15].mxu0  ;;  %v956_v14 = vpop.f32.mrb[15].mxu1  ;;  %v1060_v15 = vmax.f32 %v824_v4, 0.0  ;;  %v1092_v16 = vmax.f32 %v952_v5, 0.0 }
 0x11f   : > { %v1061_v17 = vmax.f32 %v827_v10, 0.0  ;;  %v1093_v18 = vmax.f32 %v955_v12, 0.0 }
 0x121   : > { %v1808_v19 = vpack.c.bf16 %v1061_v17, %v1060_v15  ;;  %v1888_v20 = vpack.c.bf16 %v1093_v18, %v1092_v16 }
 0x122   : > { %v831_v21 = vpop.f32.mrb[16].mxu0  ;;  %v959_v22 = vpop.f32.mrb[16].mxu1 }
 0x123   : > { %1952 = vst [vmem:[%s2342_s23 + $0x18] sm:$0xff] %v1808_v19   ;;  %1968 = vst [vmem:[%s2342_s23 + $0x98] sm:$0xff] %v1888_v20   ;;  %v832_v23 = vadd.f32 %v2332_v11, %v831_v21  ;;  %v960_v24 = vadd.f32 %v2332_v11, %v959_v22  ;;  %v833_v25 = vpop.f32.mrb[17].mxu0  ;;  %v961_v26 = vpop.f32.mrb[17].mxu1 }
 0x124   : > { %v834_v27 = vpop.f32.mrb[18].mxu0  ;;  %v962_v28 = vpop.f32.mrb[18].mxu1 }
 0x125   : > { %v835_v29 = vadd.f32 %v2332_v11, %v834_v27  ;;  %v963_v30 = vadd.f32 %v2332_v11, %v962_v28  ;;  %v836_v31 = vpop.f32.mrb[19].mxu0  ;;  %v964_v32 = vpop.f32.mrb[19].mxu1  ;;  %v1062_v33 = vmax.f32 %v832_v23, 0.0  ;;  %v1094_v34 = vmax.f32 %v960_v24, 0.0 }
 0x127   : > { %v1063_v35 = vmax.f32 %v835_v29, 0.0  ;;  %v1095_v36 = vmax.f32 %v963_v30, 0.0 }
 0x129   : > { %v1813_v37 = vpack.c.bf16 %v1063_v35, %v1062_v33  ;;  %v1893_v38 = vpack.c.bf16 %v1095_v36, %v1094_v34 }
 0x12a   : > { %v839_v39 = vpop.f32.mrb[20].mxu0  ;;  %v967_v40 = vpop.f32.mrb[20].mxu1 }
 0x12b   : > { %1953 = vst [vmem:[%s2342_s23 + $0x20] sm:$0xff] %v1813_v37   ;;  %1969 = vst [vmem:[%s2342_s23 + $0xa0] sm:$0xff] %v1893_v38   ;;  %v840_v41 = vadd.f32 %v2332_v11, %v839_v39  ;;  %v968_v42 = vadd.f32 %v2332_v11, %v967_v40  ;;  %v841_v43 = vpop.f32.mrb[21].mxu0  ;;  %v969_v44 = vpop.f32.mrb[21].mxu1 }
 0x12c   : > { %v842_v45 = vpop.f32.mrb[22].mxu0  ;;  %v970_v46 = vpop.f32.mrb[22].mxu1 }
 0x12d   : > { %v843_v47 = vadd.f32 %v2332_v11, %v842_v45  ;;  %v971_v48 = vadd.f32 %v2332_v11, %v970_v46  ;;  %v844_v49 = vpop.f32.mrb[23].mxu0  ;;  %v972_v50 = vpop.f32.mrb[23].mxu1  ;;  %v1064_v51 = vmax.f32 %v840_v41, 0.0  ;;  %v1096_v52 = vmax.f32 %v968_v42, 0.0 }
 0x12f   : > { %v1065_v53 = vmax.f32 %v843_v47, 0.0  ;;  %v1097_v54 = vmax.f32 %v971_v48, 0.0 }
 0x131   : > { %v1818_v55 = vpack.c.bf16 %v1065_v53, %v1064_v51  ;;  %v1898_v56 = vpack.c.bf16 %v1097_v54, %v1096_v52 }
 0x132   : > { %v847_v57 = vpop.f32.mrb[24].mxu0  ;;  %v975_v58 = vpop.f32.mrb[24].mxu1 }
 0x133   : > { %1954 = vst [vmem:[%s2342_s23 + $0x28] sm:$0xff] %v1818_v55   ;;  %1970 = vst [vmem:[%s2342_s23 + $0xa8] sm:$0xff] %v1898_v56   ;;  %v848_v59 = vadd.f32 %v2332_v11, %v847_v57  ;;  %v976_v60 = vadd.f32 %v2332_v11, %v975_v58  ;;  %v849_v61 = vpop.f32.mrb[25].mxu0  ;;  %v977_v62 = vpop.f32.mrb[25].mxu1 }
 0x134   : > { %v850_v63 = vpop.f32.mrb[26].mxu0  ;;  %v978_v0 = vpop.f32.mrb[26].mxu1 }
 0x135   : > { %v851_v1 = vadd.f32 %v2332_v11, %v850_v63  ;;  %v979_v2 = vadd.f32 %v2332_v11, %v978_v0  ;;  %v852_v3 = vpop.f32.mrb[27].mxu0  ;;  %v980_v4 = vpop.f32.mrb[27].mxu1  ;;  %v1066_v5 = vmax.f32 %v848_v59, 0.0  ;;  %v1098_v6 = vmax.f32 %v976_v60, 0.0 }
 0x137   : > { %v1067_v7 = vmax.f32 %v851_v1, 0.0  ;;  %v1099_v8 = vmax.f32 %v979_v2, 0.0 }
 0x139   : > { %v1823_v9 = vpack.c.bf16 %v1067_v7, %v1066_v5  ;;  %v1903_v10 = vpack.c.bf16 %v1099_v8, %v1098_v6 }
 0x13a   : > { %v855_v12 = vpop.f32.mrb[28].mxu0  ;;  %v983_v13 = vpop.f32.mrb[28].mxu1 }
 0x13b   : > { %1955 = vst [vmem:[%s2342_s23 + $0x30] sm:$0xff] %v1823_v9   ;;  %1971 = vst [vmem:[%s2342_s23 + $0xb0] sm:$0xff] %v1903_v10   ;;  %v856_v14 = vadd.f32 %v2332_v11, %v855_v12  ;;  %v984_v15 = vadd.f32 %v2332_v11, %v983_v13  ;;  %v857_v16 = vpop.f32.mrb[29].mxu0  ;;  %v985_v17 = vpop.f32.mrb[29].mxu1 }
 0x13c   : > { %v858_v18 = vpop.f32.mrb[30].mxu0  ;;  %v986_v19 = vpop.f32.mrb[30].mxu1 }
 0x13d   : > { %v859_v20 = vadd.f32 %v2332_v11, %v858_v18  ;;  %v987_v21 = vadd.f32 %v2332_v11, %v986_v19  ;;  %v860_v22 = vpop.f32.mrb[31].mxu0  ;;  %v988_v23 = vpop.f32.mrb[31].mxu1  ;;  %v1068_v24 = vmax.f32 %v856_v14, 0.0  ;;  %v1100_v25 = vmax.f32 %v984_v15, 0.0 }
 0x13f   : > { %v1069_v26 = vmax.f32 %v859_v20, 0.0  ;;  %v1101_v27 = vmax.f32 %v987_v21, 0.0 }
 0x141   : > { %v1828_v28 = vpack.c.bf16 %v1069_v26, %v1068_v24  ;;  %v1908_v29 = vpack.c.bf16 %v1101_v27, %v1100_v25 }
 0x142   : > { %v863_v30 = vpop.f32.mrb[32].mxu0  ;;  %v991_v31 = vpop.f32.mrb[32].mxu1 }
 0x143   : > { %1956 = vst [vmem:[%s2342_s23 + $0x38] sm:$0xff] %v1828_v28   ;;  %1972 = vst [vmem:[%s2342_s23 + $0xb8] sm:$0xff] %v1908_v29   ;;  %v864_v32 = vadd.f32 %v2332_v11, %v863_v30  ;;  %v992_v33 = vadd.f32 %v2332_v11, %v991_v31  ;;  %v865_v34 = vpop.f32.mrb[33].mxu0  ;;  %v993_v35 = vpop.f32.mrb[33].mxu1 }
 0x144   : > { %v866_v36 = vpop.f32.mrb[34].mxu0  ;;  %v994_v37 = vpop.f32.mrb[34].mxu1 }
 0x145   : > { %v867_v38 = vadd.f32 %v2332_v11, %v866_v36  ;;  %v995_v39 = vadd.f32 %v2332_v11, %v994_v37  ;;  %v868_v40 = vpop.f32.mrb[35].mxu0  ;;  %v996_v41 = vpop.f32.mrb[35].mxu1  ;;  %v1070_v42 = vmax.f32 %v864_v32, 0.0  ;;  %v1102_v43 = vmax.f32 %v992_v33, 0.0 }
 0x147   : > { %v1071_v44 = vmax.f32 %v867_v38, 0.0  ;;  %v1103_v45 = vmax.f32 %v995_v39, 0.0 }
 0x149   : > { %v1833_v46 = vpack.c.bf16 %v1071_v44, %v1070_v42  ;;  %v1913_v47 = vpack.c.bf16 %v1103_v45, %v1102_v43 }
 0x14a   : > { %v871_v48 = vpop.f32.mrb[36].mxu0  ;;  %v999_v49 = vpop.f32.mrb[36].mxu1 }
 0x14b   : > { %1957 = vst [vmem:[%s2342_s23 + $0x40] sm:$0xff] %v1833_v46   ;;  %1973 = vst [vmem:[%s2342_s23 + $0xc0] sm:$0xff] %v1913_v47   ;;  %v872_v50 = vadd.f32 %v2332_v11, %v871_v48  ;;  %v1000_v51 = vadd.f32 %v2332_v11, %v999_v49  ;;  %v873_v52 = vpop.f32.mrb[37].mxu0  ;;  %v1001_v53 = vpop.f32.mrb[37].mxu1 }
 0x14c   : > { %v874_v54 = vpop.f32.mrb[38].mxu0  ;;  %v1002_v55 = vpop.f32.mrb[38].mxu1 }
 0x14d   : > { %v875_v56 = vadd.f32 %v2332_v11, %v874_v54  ;;  %v1003_v57 = vadd.f32 %v2332_v11, %v1002_v55  ;;  %v876_v58 = vpop.f32.mrb[39].mxu0  ;;  %v1004_v59 = vpop.f32.mrb[39].mxu1  ;;  %v1072_v60 = vmax.f32 %v872_v50, 0.0  ;;  %v1104_v61 = vmax.f32 %v1000_v51, 0.0 }
 0x14f   : > { %v1073_v62 = vmax.f32 %v875_v56, 0.0  ;;  %v1105_v63 = vmax.f32 %v1003_v57, 0.0 }
 0x151   : > { %v1838_v0 = vpack.c.bf16 %v1073_v62, %v1072_v60  ;;  %v1918_v1 = vpack.c.bf16 %v1105_v63, %v1104_v61 }
 0x152   : > { %v879_v2 = vpop.f32.mrb[40].mxu0  ;;  %v1007_v3 = vpop.f32.mrb[40].mxu1 }
 0x153   : > { %1958 = vst [vmem:[%s2342_s23 + $0x48] sm:$0xff] %v1838_v0   ;;  %1974 = vst [vmem:[%s2342_s23 + $0xc8] sm:$0xff] %v1918_v1   ;;  %v880_v4 = vadd.f32 %v2332_v11, %v879_v2  ;;  %v1008_v5 = vadd.f32 %v2332_v11, %v1007_v3  ;;  %v881_v6 = vpop.f32.mrb[41].mxu0  ;;  %v1009_v7 = vpop.f32.mrb[41].mxu1 }
 0x154   : > { %v882_v8 = vpop.f32.mrb[42].mxu0  ;;  %v1010_v9 = vpop.f32.mrb[42].mxu1 }
 0x155   : > { %v883_v10 = vadd.f32 %v2332_v11, %v882_v8  ;;  %v1011_v12 = vadd.f32 %v2332_v11, %v1010_v9  ;;  %v884_v13 = vpop.f32.mrb[43].mxu0  ;;  %v1012_v14 = vpop.f32.mrb[43].mxu1  ;;  %v1074_v15 = vmax.f32 %v880_v4, 0.0  ;;  %v1106_v16 = vmax.f32 %v1008_v5, 0.0 }
 0x157   : > { %v1075_v17 = vmax.f32 %v883_v10, 0.0  ;;  %v1107_v18 = vmax.f32 %v1011_v12, 0.0 }
 0x159   : > { %v1843_v19 = vpack.c.bf16 %v1075_v17, %v1074_v15  ;;  %v1923_v20 = vpack.c.bf16 %v1107_v18, %v1106_v16 }
 0x15a   : > { %v887_v21 = vpop.f32.mrb[44].mxu0  ;;  %v1015_v22 = vpop.f32.mrb[44].mxu1 }
 0x15b   : > { %1959 = vst [vmem:[%s2342_s23 + $0x50] sm:$0xff] %v1843_v19   ;;  %1975 = vst [vmem:[%s2342_s23 + $0xd0] sm:$0xff] %v1923_v20   ;;  %v888_v23 = vadd.f32 %v2332_v11, %v887_v21  ;;  %v1016_v24 = vadd.f32 %v2332_v11, %v1015_v22  ;;  %v889_v25 = vpop.f32.mrb[45].mxu0  ;;  %v1017_v26 = vpop.f32.mrb[45].mxu1 }
 0x15c   : > { %v890_v27 = vpop.f32.mrb[46].mxu0  ;;  %v1018_v28 = vpop.f32.mrb[46].mxu1 }
 0x15d   : > { %v891_v29 = vadd.f32 %v2332_v11, %v890_v27  ;;  %v1019_v30 = vadd.f32 %v2332_v11, %v1018_v28  ;;  %v892_v31 = vpop.f32.mrb[47].mxu0  ;;  %v1020_v32 = vpop.f32.mrb[47].mxu1  ;;  %v1076_v33 = vmax.f32 %v888_v23, 0.0  ;;  %v1108_v34 = vmax.f32 %v1016_v24, 0.0 }
 0x15f   : > { %v1077_v35 = vmax.f32 %v891_v29, 0.0  ;;  %v1109_v36 = vmax.f32 %v1019_v30, 0.0 }
 0x161   : > { %v1848_v37 = vpack.c.bf16 %v1077_v35, %v1076_v33  ;;  %v1928_v38 = vpack.c.bf16 %v1109_v36, %v1108_v34 }
 0x162   : > { %v895_v39 = vpop.f32.mrb[48].mxu0  ;;  %v1023_v40 = vpop.f32.mrb[48].mxu1 }
 0x163   : > { %1960 = vst [vmem:[%s2342_s23 + $0x58] sm:$0xff] %v1848_v37   ;;  %1976 = vst [vmem:[%s2342_s23 + $0xd8] sm:$0xff] %v1928_v38   ;;  %v896_v41 = vadd.f32 %v2332_v11, %v895_v39  ;;  %v1024_v42 = vadd.f32 %v2332_v11, %v1023_v40  ;;  %v897_v43 = vpop.f32.mrb[49].mxu0  ;;  %v1025_v44 = vpop.f32.mrb[49].mxu1 }
 0x164   : > { %v898_v45 = vpop.f32.mrb[50].mxu0  ;;  %v1026_v46 = vpop.f32.mrb[50].mxu1 }
 0x165   : > { %v899_v47 = vadd.f32 %v2332_v11, %v898_v45  ;;  %v1027_v48 = vadd.f32 %v2332_v11, %v1026_v46  ;;  %v900_v49 = vpop.f32.mrb[51].mxu0  ;;  %v1028_v50 = vpop.f32.mrb[51].mxu1  ;;  %v1078_v51 = vmax.f32 %v896_v41, 0.0  ;;  %v1110_v52 = vmax.f32 %v1024_v42, 0.0 }
 0x167   : > { %v1079_v53 = vmax.f32 %v899_v47, 0.0  ;;  %v1111_v54 = vmax.f32 %v1027_v48, 0.0 }
 0x169   : > { %v1853_v55 = vpack.c.bf16 %v1079_v53, %v1078_v51  ;;  %v1933_v56 = vpack.c.bf16 %v1111_v54, %v1110_v52 }
 0x16a   : > { %v903_v57 = vpop.f32.mrb[52].mxu0  ;;  %v1031_v58 = vpop.f32.mrb[52].mxu1 }
 0x16b   : > { %1961 = vst [vmem:[%s2342_s23 + $0x60] sm:$0xff] %v1853_v55   ;;  %1977 = vst [vmem:[%s2342_s23 + $0xe0] sm:$0xff] %v1933_v56   ;;  %v904_v59 = vadd.f32 %v2332_v11, %v903_v57  ;;  %v1032_v60 = vadd.f32 %v2332_v11, %v1031_v58  ;;  %v905_v61 = vpop.f32.mrb[53].mxu0  ;;  %v1033_v62 = vpop.f32.mrb[53].mxu1 }
 0x16c   : > { %v906_v63 = vpop.f32.mrb[54].mxu0  ;;  %v1034_v0 = vpop.f32.mrb[54].mxu1 }
 0x16d   : > { %v907_v1 = vadd.f32 %v2332_v11, %v906_v63  ;;  %v1035_v2 = vadd.f32 %v2332_v11, %v1034_v0  ;;  %v908_v3 = vpop.f32.mrb[55].mxu0  ;;  %v1036_v4 = vpop.f32.mrb[55].mxu1  ;;  %v1080_v5 = vmax.f32 %v904_v59, 0.0  ;;  %v1112_v6 = vmax.f32 %v1032_v60, 0.0 }
 0x16f   : > { %v1081_v7 = vmax.f32 %v907_v1, 0.0  ;;  %v1113_v8 = vmax.f32 %v1035_v2, 0.0 }
 0x171   : > { %v1858_v9 = vpack.c.bf16 %v1081_v7, %v1080_v5  ;;  %v1938_v10 = vpack.c.bf16 %v1113_v8, %v1112_v6 }
 0x172   : > { %v911_v12 = vpop.f32.mrb[56].mxu0  ;;  %v1039_v13 = vpop.f32.mrb[56].mxu1 }
 0x173   : > { %1962 = vst [vmem:[%s2342_s23 + $0x68] sm:$0xff] %v1858_v9   ;;  %1978 = vst [vmem:[%s2342_s23 + $0xe8] sm:$0xff] %v1938_v10   ;;  %v912_v14 = vadd.f32 %v2332_v11, %v911_v12  ;;  %v1040_v15 = vadd.f32 %v2332_v11, %v1039_v13  ;;  %v913_v16 = vpop.f32.mrb[57].mxu0  ;;  %v1041_v17 = vpop.f32.mrb[57].mxu1 }
 0x174   : > { %v914_v18 = vpop.f32.mrb[58].mxu0  ;;  %v1042_v19 = vpop.f32.mrb[58].mxu1 }
 0x175   : > { %v915_v20 = vadd.f32 %v2332_v11, %v914_v18  ;;  %v1043_v21 = vadd.f32 %v2332_v11, %v1042_v19  ;;  %v916_v22 = vpop.f32.mrb[59].mxu0  ;;  %v1044_v23 = vpop.f32.mrb[59].mxu1  ;;  %v1082_v24 = vmax.f32 %v912_v14, 0.0  ;;  %v1114_v25 = vmax.f32 %v1040_v15, 0.0 }
 0x177   : > { %v1083_v26 = vmax.f32 %v915_v20, 0.0  ;;  %v1115_v27 = vmax.f32 %v1043_v21, 0.0 }
 0x179   : > { %v1863_v28 = vpack.c.bf16 %v1083_v26, %v1082_v24  ;;  %v1943_v29 = vpack.c.bf16 %v1115_v27, %v1114_v25 }
 0x17a   : > { %v919_v30 = vpop.f32.mrb[60].mxu0  ;;  %v1047_v31 = vpop.f32.mrb[60].mxu1 }
 0x17b   : > { %1963 = vst [vmem:[%s2342_s23 + $0x70] sm:$0xff] %v1863_v28   ;;  %1979 = vst [vmem:[%s2342_s23 + $0xf0] sm:$0xff] %v1943_v29   ;;  %v920_v32 = vadd.f32 %v2332_v11, %v919_v30  ;;  %v1048_v33 = vadd.f32 %v2332_v11, %v1047_v31  ;;  %v921_v34 = vpop.f32.mrb[61].mxu0  ;;  %v1049_v35 = vpop.f32.mrb[61].mxu1 }
 0x17c   : > { %v922_v36 = vpop.f32.mrb[62].mxu0  ;;  %v1050_v37 = vpop.f32.mrb[62].mxu1 }
 0x17d   : > { %v923_v38 = vadd.f32 %v2332_v11, %v922_v36  ;;  %v1051_v39 = vadd.f32 %v2332_v11, %v1050_v37  ;;  %v924_v40 = vpop.f32.mrb[63].mxu0  ;;  %v1052_v41 = vpop.f32.mrb[63].mxu1  ;;  %v1084_v42 = vmax.f32 %v920_v32, 0.0  ;;  %v1116_v43 = vmax.f32 %v1048_v33, 0.0 }
 0x17f   : > { %v1085_v44 = vmax.f32 %v923_v38, 0.0  ;;  %v1117_v45 = vmax.f32 %v1051_v39, 0.0 }
 0x181   : > { %v1868_v46 = vpack.c.bf16 %v1085_v44, %v1084_v42  ;;  %v1948_v47 = vpack.c.bf16 %v1117_v45, %v1116_v43 }
 0x183   : > { %1964 = vst [vmem:[%s2342_s23 + $0x78] sm:$0xff] %v1868_v46   ;;  %1980 = vst [vmem:[%s2342_s23 + $0xf8] sm:$0xff] %v1948_v47  }
 0x184 PF: > { %s13_s14 = sadd.s32 1, %s2154_s14   ;;  %s2449_s12 = smov %s2150_s13 }
 0x185   : > { %p10_p5 = scmp.ge.s32.totalorder %s13_s14, 6   ;;  %s2450_s13 = smov %s2452_s15 }
 0x187   :  { %12 = sbr.rel (!%p10_p5) target bundleno = 2 (0x2), region = 68 }

// kernel: deeplab_forward.34
= control target key start
LH: loop header
LB: loop body
LE: loop exit
PB: predicated region body
PF: predicated region fallthrough
CT: control target
= control target key end

     0   :  { %s1201_s12 = smov 0   ;;  %s1203_s13 = smov 0   ;;  %s1333_s0 = inlined_call_operand.vmem [shape: bf16[512,16], index: 0, kind: input, shape index: {}]   ;;  %s1334_s1 = inlined_call_operand.vmem [shape: bf16[16,128], index: 1, kind: input, shape index: {}]   ;;  %s1335_s2 = inlined_call_operand.vmem [shape: f32[1,128], index: 2, kind: input, shape index: {}]   ;;  %s1336_s3 = inlined_call_operand.vmem [shape: bf16[512,128], index: 3, kind: output, shape index: {}]  }
   0x1   :  { %s1205_s14 = smov 0  }
   0x2 LB: > { %s25_s15 = sadd.s32 1, %s1175_s13  ;;  %p863_p0 = scmp.ge.s32.totalorder %s1179_s14, 1  ;;  %s1179_s14 = sphi %s1205_s14, %s13_s14   ;;  %s1175_s13 = sphi %s1203_s13, %s1338_s13   ;;  %s1171_s12 = sphi %s1201_s12, %s1337_s12  }
   0x3   : > { %p27_p1 = scmp.ge.s32.totalorder %s25_s15, 2  ;;  %p169_p2 = scmp.lt.s32.totalorder %s1179_s14, 3 }
   0x5   : > { %s1340_s15 = smov (%p27_p1, %s25_s15), 0  ;;  %p170_p3 = pnand %p863_p0, %p169_p2 }
   0x6   : > { %v1140_v0 = vld [vmem:[%s1334_s1] sm:$0xff] (!%p170_p3)   ;;  %s864_s18 = sshll.u32 (!%p170_p3), %s1171_s12, 5  ;;  %vm353_vm0 = vcmask (!%p170_p3), 130048  }
   0x7   : > { %173 = sbr.rel (%p170_p3) target bundleno = 266 (0x10a), region = 32  ;;  %p204_p4 = scmp.lt.s32.totalorder (!%p170_p3), %s864_s18, 63  ;;  %1080 = vmatprep.subr.bf16.mxu0 (!%p170_p3), %v1140_v0  ;;  %1114 = vmatprep.subr.bf16.mxu1 (!%p170_p3), %v1140_v0  ;;  %v1267_v17 = vld [vmem:[%s1335_s2] ss:$0 sm:$0xff] (!%p170_p3) }
   0x8   : > { %1081 = vmatpush3.bf16.msra.mxu0 (!%p170_p3), %v1140_v0  ;;  %1115 = vmatpush3.bf16.msra.mxu1 (!%p170_p3), %v1140_v0 }
   0xe   : > { %s1342_s18 = smov (!%p204_p4, %s864_s18), 63 }
   0xf   : > { %s865_s19 = sshll.u32 %s1342_s18, 2 }
  0x10   : > { %s1230_s22 = scalar_lea.vmem %s1333_s0, %s865_s19  ;;  %s1282_s27 = scalar_lea.vmem %s1336_s3, %s865_s19 }
  0x11   : > { %v1141_v1 = vld [vmem:[%s1230_s22] sm:$0xff]   ;;  %v1143_v3 = vld [vmem:[%s1230_s22 + $0x8] sm:$0xff]   ;;  %v1145_v5 = vld [vmem:[%s1230_s22 + $0x10] sm:$0xff]  }
  0x12   : > { %v1142_v2 = vld [vmem:[%s1230_s22 + $0x40] sm:$0xff]   ;;  %1082 = vmatprep.mubr.msk.bf16.mxu0 %vm353_vm0, %v1141_v1  ;;  %v1144_v4 = vld [vmem:[%s1230_s22 + $0x48] sm:$0xff]   ;;  %v1146_v6 = vld [vmem:[%s1230_s22 + $0x50] sm:$0xff]  }
  0x13   : > { %1098 = vmatprep.mubr.msk.bf16.mxu1 %vm353_vm0, %v1142_v2  ;;  %1083 = vmatmul.mubr.msk.bf16.vlgmr.msra.gmra.mrb[0].mxu0 %vm353_vm0, %v1143_v3  ;;  %v1147_v7 = vld [vmem:[%s1230_s22 + $0x18] sm:$0xff]   ;;  %v1149_v9 = vld [vmem:[%s1230_s22 + $0x20] sm:$0xff]   ;;  %v1151_v11 = vld [vmem:[%s1230_s22 + $0x28] sm:$0xff]  }
  0x14   : > { %1099 = vmatmul.mubr.msk.bf16.vlgmr.msra.gmra.mrb[0].mxu1 %vm353_vm0, %v1144_v4  ;;  %1086 = vmatprep.mubr.msk.bf16.mxu0 %vm353_vm0, %v1145_v5  ;;  %v1148_v8 = vld [vmem:[%s1230_s22 + $0x58] sm:$0xff]   ;;  %v1150_v10 = vld [vmem:[%s1230_s22 + $0x60] sm:$0xff]   ;;  %v1152_v12 = vld [vmem:[%s1230_s22 + $0x68] sm:$0xff]  }
  0x15   : > { %1102 = vmatprep.mubr.msk.bf16.mxu1 %vm353_vm0, %v1146_v6  ;;  %v1153_v13 = vld [vmem:[%s1230_s22 + $0x30] sm:$0xff]   ;;  %v1155_v15 = vld [vmem:[%s1230_s22 + $0x38] sm:$0xff]  }
  0x16   : > { %v1154_v14 = vld [vmem:[%s1230_s22 + $0x70] sm:$0xff]   ;;  %v1156_v16 = vld [vmem:[%s1230_s22 + $0x78] sm:$0xff]  }
  0x1b   : > { %1087 = vmatmul.mubr.msk.bf16.gmra.mrb[4].mxu0 %vm353_vm0, %v1147_v7 }
  0x1c   : > { %1103 = vmatmul.mubr.msk.bf16.gmra.mrb[4].mxu1 %vm353_vm0, %v1148_v8  ;;  %1090 = vmatprep.mubr.msk.bf16.mxu0 %vm353_vm0, %v1149_v9 }
  0x1d   : > { %1106 = vmatprep.mubr.msk.bf16.mxu1 %vm353_vm0, %v1150_v10 }
  0x23   : > { %1091 = vmatmul.mubr.msk.bf16.gmra.mrb[8].mxu0 %vm353_vm0, %v1151_v11 }
  0x24   : > { %1107 = vmatmul.mubr.msk.bf16.gmra.mrb[8].mxu1 %vm353_vm0, %v1152_v12  ;;  %1094 = vmatprep.mubr.msk.bf16.mxu0 %vm353_vm0, %v1153_v13 }
  0x25   : > { %1110 = vmatprep.mubr.msk.bf16.mxu1 %vm353_vm0, %v1154_v14 }
  0x2b   : > { %1095 = vmatmul.mubr.msk.bf16.gmra.mrb[12].mxu0 %vm353_vm0, %v1155_v15 }
  0x2c   : > { %1111 = vmatmul.mubr.msk.bf16.gmra.mrb[12].mxu1 %vm353_vm0, %v1156_v16 }
  0xe6   : > { %v1084_v18 = vpop.f32.mrb[0].mxu0 }
  0xe7   : > { %v445_v19 = vadd.f32 %v1084_v18, %v1267_v17  ;;  %v1100_v20 = vpop.f32.mrb[0].mxu1  ;;  %v436_v21 = vpop.f32.mrb[1].mxu0 }
  0xe8   : > { %v509_v22 = vadd.f32 %v1100_v20, %v1267_v17  ;;  %v437_v23 = vadd.f32 %v1267_v17, %v436_v21  ;;  %v500_v24 = vpop.f32.mrb[1].mxu1  ;;  %v1085_v25 = vpop.f32.mrb[2].mxu0 }
  0xe9   : > { %v501_v26 = vadd.f32 %v1267_v17, %v500_v24  ;;  %v448_v27 = vadd.f32 %v1085_v25, %v1267_v17  ;;  %v1101_v28 = vpop.f32.mrb[2].mxu1  ;;  %v439_v29 = vpop.f32.mrb[3].mxu0  ;;  %v565_v33 = vmax.f32 %v445_v19, 0.0 }
  0xea   : > { %v512_v30 = vadd.f32 %v1101_v28, %v1267_v17  ;;  %v440_v31 = vadd.f32 %v1267_v17, %v439_v29  ;;  %v503_v32 = vpop.f32.mrb[3].mxu1  ;;  %v581_v36 = vmax.f32 %v509_v22, 0.0  ;;  %v563_v37 = vmax.f32 %v437_v23, 0.0 }
  0xeb   : > { %v566_v34 = vmax.f32 %v448_v27, 0.0  ;;  %v504_v35 = vadd.f32 %v1267_v17, %v503_v32  ;;  %v579_v40 = vmax.f32 %v501_v26, 0.0 }
  0xec   : > { %v582_v38 = vmax.f32 %v512_v30, 0.0  ;;  %v564_v39 = vmax.f32 %v440_v31, 0.0 }
  0xed   : > { %v976_v41 = vpack.c.bf16 %v566_v34, %v565_v33  ;;  %v580_v42 = vmax.f32 %v504_v35, 0.0 }
  0xee   : > { %v1016_v43 = vpack.c.bf16 %v582_v38, %v581_v36  ;;  %v971_v44 = vpack.c.bf16 %v564_v39, %v563_v37  ;;  %v1088_v45 = vpop.f32.mrb[4].mxu0 }
  0xef   : > { %1048 = vst [vmem:[%s1282_s27 + $0x8] sm:$0xff] %v976_v41   ;;  %v1011_v46 = vpack.c.bf16 %v580_v42, %v579_v40  ;;  %v461_v47 = vadd.f32 %v1088_v45, %v1267_v17  ;;  %v1104_v48 = vpop.f32.mrb[4].mxu1  ;;  %v452_v49 = vpop.f32.mrb[5].mxu0 }
  0xf0   : > { %1056 = vst [vmem:[%s1282_s27 + $0x48] sm:$0xff] %v1016_v43   ;;  %972 = vst [vmem:[%s1282_s27] sm:$0xff] %v971_v44   ;;  %v525_v50 = vadd.f32 %v1104_v48, %v1267_v17  ;;  %v453_v51 = vadd.f32 %v1267_v17, %v452_v49  ;;  %v516_v52 = vpop.f32.mrb[5].mxu1  ;;  %v1089_v53 = vpop.f32.mrb[6].mxu0 }
  0xf1   : > { %1055 = vst [vmem:[%s1282_s27 + $0x40] sm:$0xff] %v1011_v46   ;;  %v517_v54 = vadd.f32 %v1267_v17, %v516_v52  ;;  %v464_v55 = vadd.f32 %v1089_v53, %v1267_v17  ;;  %v1105_v56 = vpop.f32.mrb[6].mxu1  ;;  %v455_v57 = vpop.f32.mrb[7].mxu0  ;;  %v569_v61 = vmax.f32 %v461_v47, 0.0 }
  0xf2   : > { %v528_v58 = vadd.f32 %v1105_v56, %v1267_v17  ;;  %v456_v59 = vadd.f32 %v1267_v17, %v455_v57  ;;  %v519_v60 = vpop.f32.mrb[7].mxu1  ;;  %v585_v0 = vmax.f32 %v525_v50, 0.0  ;;  %v567_v1 = vmax.f32 %v453_v51, 0.0 }
  0xf3   : > { %v570_v62 = vmax.f32 %v464_v55, 0.0  ;;  %v520_v63 = vadd.f32 %v1267_v17, %v519_v60  ;;  %v583_v4 = vmax.f32 %v517_v54, 0.0 }
  0xf4   : > { %v586_v2 = vmax.f32 %v528_v58, 0.0  ;;  %v568_v3 = vmax.f32 %v456_v59, 0.0 }
  0xf5   : > { %v986_v5 = vpack.c.bf16 %v570_v62, %v569_v61  ;;  %v584_v6 = vmax.f32 %v520_v63, 0.0 }
  0xf6   : > { %v1026_v7 = vpack.c.bf16 %v586_v2, %v585_v0  ;;  %v981_v8 = vpack.c.bf16 %v568_v3, %v567_v1  ;;  %v1092_v9 = vpop.f32.mrb[8].mxu0 }
  0xf7   : > { %1050 = vst [vmem:[%s1282_s27 + $0x18] sm:$0xff] %v986_v5   ;;  %v1021_v10 = vpack.c.bf16 %v584_v6, %v583_v4  ;;  %v477_v11 = vadd.f32 %v1092_v9, %v1267_v17  ;;  %v1108_v12 = vpop.f32.mrb[8].mxu1  ;;  %v468_v13 = vpop.f32.mrb[9].mxu0 }
  0xf8   : > { %1058 = vst [vmem:[%s1282_s27 + $0x58] sm:$0xff] %v1026_v7   ;;  %1049 = vst [vmem:[%s1282_s27 + $0x10] sm:$0xff] %v981_v8   ;;  %v541_v14 = vadd.f32 %v1108_v12, %v1267_v17  ;;  %v469_v15 = vadd.f32 %v1267_v17, %v468_v13  ;;  %v532_v16 = vpop.f32.mrb[9].mxu1  ;;  %v1093_v18 = vpop.f32.mrb[10].mxu0 }
  0xf9   : > { %1057 = vst [vmem:[%s1282_s27 + $0x50] sm:$0xff] %v1021_v10   ;;  %v533_v19 = vadd.f32 %v1267_v17, %v532_v16  ;;  %v480_v20 = vadd.f32 %v1093_v18, %v1267_v17  ;;  %v1109_v21 = vpop.f32.mrb[10].mxu1  ;;  %v471_v22 = vpop.f32.mrb[11].mxu0  ;;  %v573_v26 = vmax.f32 %v477_v11, 0.0 }
  0xfa   : > { %v544_v23 = vadd.f32 %v1109_v21, %v1267_v17  ;;  %v472_v24 = vadd.f32 %v1267_v17, %v471_v22  ;;  %v535_v25 = vpop.f32.mrb[11].mxu1  ;;  %v589_v29 = vmax.f32 %v541_v14, 0.0  ;;  %v571_v30 = vmax.f32 %v469_v15, 0.0 }
  0xfb   : > { %v574_v27 = vmax.f32 %v480_v20, 0.0  ;;  %v536_v28 = vadd.f32 %v1267_v17, %v535_v25  ;;  %v587_v33 = vmax.f32 %v533_v19, 0.0 }
  0xfc   : > { %v590_v31 = vmax.f32 %v544_v23, 0.0  ;;  %v572_v32 = vmax.f32 %v472_v24, 0.0 }
  0xfd   : > { %v996_v34 = vpack.c.bf16 %v574_v27, %v573_v26  ;;  %v588_v35 = vmax.f32 %v536_v28, 0.0 }
  0xfe   : > { %v1036_v36 = vpack.c.bf16 %v590_v31, %v589_v29  ;;  %v991_v37 = vpack.c.bf16 %v572_v32, %v571_v30  ;;  %v1096_v38 = vpop.f32.mrb[12].mxu0 }
  0xff   : > { %1052 = vst [vmem:[%s1282_s27 + $0x28] sm:$0xff] %v996_v34   ;;  %v1031_v39 = vpack.c.bf16 %v588_v35, %v587_v33  ;;  %v493_v40 = vadd.f32 %v1096_v38, %v1267_v17  ;;  %v1112_v41 = vpop.f32.mrb[12].mxu1  ;;  %v484_v42 = vpop.f32.mrb[13].mxu0 }
 0x100   : > { %1060 = vst [vmem:[%s1282_s27 + $0x68] sm:$0xff] %v1036_v36   ;;  %1051 = vst [vmem:[%s1282_s27 + $0x20] sm:$0xff] %v991_v37   ;;  %v557_v43 = vadd.f32 %v1112_v41, %v1267_v17  ;;  %v485_v44 = vadd.f32 %v1267_v17, %v484_v42  ;;  %v548_v45 = vpop.f32.mrb[13].mxu1  ;;  %v1097_v46 = vpop.f32.mrb[14].mxu0 }
 0x101   : > { %1059 = vst [vmem:[%s1282_s27 + $0x60] sm:$0xff] %v1031_v39   ;;  %v549_v47 = vadd.f32 %v1267_v17, %v548_v45  ;;  %v496_v48 = vadd.f32 %v1097_v46, %v1267_v17  ;;  %v1113_v49 = vpop.f32.mrb[14].mxu1  ;;  %v487_v50 = vpop.f32.mrb[15].mxu0  ;;  %v577_v54 = vmax.f32 %v493_v40, 0.0 }
 0x102   : > { %v560_v51 = vadd.f32 %v1113_v49, %v1267_v17  ;;  %v488_v52 = vadd.f32 %v1267_v17, %v487_v50  ;;  %v551_v53 = vpop.f32.mrb[15].mxu1  ;;  %v593_v57 = vmax.f32 %v557_v43, 0.0  ;;  %v575_v58 = vmax.f32 %v485_v44, 0.0 }
 0x103   : > { %v578_v55 = vmax.f32 %v496_v48, 0.0  ;;  %v552_v56 = vadd.f32 %v1267_v17, %v551_v53  ;;  %v591_v61 = vmax.f32 %v549_v47, 0.0 }
 0x104   : > { %v594_v59 = vmax.f32 %v560_v51, 0.0  ;;  %v576_v60 = vmax.f32 %v488_v52, 0.0 }
 0x105   : > { %v1006_v62 = vpack.c.bf16 %v578_v55, %v577_v54  ;;  %v592_v63 = vmax.f32 %v552_v56, 0.0 }
 0x106   : > { %v1046_v0 = vpack.c.bf16 %v594_v59, %v593_v57  ;;  %v1001_v1 = vpack.c.bf16 %v576_v60, %v575_v58 }
 0x107   : > { %1054 = vst [vmem:[%s1282_s27 + $0x38] sm:$0xff] %v1006_v62   ;;  %v1041_v2 = vpack.c.bf16 %v592_v63, %v591_v61 }
 0x108   : > { %1062 = vst [vmem:[%s1282_s27 + $0x78] sm:$0xff] %v1046_v0   ;;  %1053 = vst [vmem:[%s1282_s27 + $0x30] sm:$0xff] %v1001_v1  }
 0x109   : > { %1061 = vst [vmem:[%s1282_s27 + $0x70] sm:$0xff] %v1041_v2  }
 0x10a PF: > { %s13_s14 = sadd.s32 1, %s1179_s14   ;;  %s1337_s12 = smov %s1175_s13 }
 0x10b   : > { %p10_p5 = scmp.ge.s32.totalorder %s13_s14, 4   ;;  %s1338_s13 = smov %s1340_s15 }
 0x10d   :  { %12 = sbr.rel (!%p10_p5) target bundleno = 2 (0x2), region = 68 }

// kernel: deeplab_forward.35
= control target key start
LH: loop header
LB: loop body
LE: loop exit
PB: predicated region body
PF: predicated region fallthrough
CT: control target
= control target key end

     0   :  { %s1261_s12 = smov 0   ;;  %s1263_s13 = smov 0   ;;  %s1405_s0 = inlined_call_operand.vmem [shape: bf16[512,80], index: 0, kind: input, shape index: {}]   ;;  %s1406_s1 = inlined_call_operand.vmem [shape: bf16[80,128], index: 1, kind: input, shape index: {}]   ;;  %s1407_s2 = inlined_call_operand.vmem [shape: f32[1,128], index: 2, kind: input, shape index: {}]   ;;  %s1408_s3 = inlined_call_operand.vmem [shape: bf16[512,128], index: 3, kind: output, shape index: {}]  }
   0x1   :  { %s1265_s14 = smov 0  }
   0x2 LB: > { %s25_s15 = sadd.s32 1, %s1235_s13  ;;  %p895_p0 = scmp.ge.s32.totalorder %s1239_s14, 1  ;;  %s1239_s14 = sphi %s1265_s14, %s13_s14   ;;  %s1235_s13 = sphi %s1263_s13, %s1410_s13   ;;  %s1231_s12 = sphi %s1261_s12, %s1409_s12  }
   0x3   : > { %p27_p1 = scmp.ge.s32.totalorder %s25_s15, 2  ;;  %p169_p2 = scmp.lt.s32.totalorder %s1239_s14, 3 }
   0x5   : > { %s1412_s15 = smov (%p27_p1, %s25_s15), 0  ;;  %p170_p3 = pnand %p895_p0, %p169_p2 }
   0x6   : > { %v1196_v0 = vld [vmem:[%s1406_s1] sm:$0xff] (!%p170_p3)   ;;  %s896_s18 = sshll.u32 (!%p170_p3), %s1231_s12, 5  ;;  %v1197_v1 = vld [vmem:[%s1406_s1 + $0x8] sm:$0xff] (!%p170_p3)   ;;  %v1198_v2 = vld [vmem:[%s1406_s1 + $0x10] sm:$0xff] (!%p170_p3)   ;;  %vm385_vm0 = vcmask (!%p170_p3), 654336  }
   0x7   : > { %173 = sbr.rel (%p170_p3) target bundleno = 273 (0x111), region = 32  ;;  %p204_p4 = scmp.lt.s32.totalorder (!%p170_p3), %s896_s18, 63  ;;  %1120 = vmatprep.subr.bf16.mxu0 (!%p170_p3), %v1196_v0  ;;  %1162 = vmatprep.subr.bf16.mxu1 (!%p170_p3), %v1196_v0  ;;  %v1199_v3 = vld [vmem:[%s1406_s1 + $0x18] sm:$0xff] (!%p170_p3)   ;;  %v1200_v6 = vld [vmem:[%s1406_s1 + $0x20] sm:$0xff] (!%p170_p3)  }
   0x8   : > { %1121 = vmatpush3.bf16.msra.mxu0 (!%p170_p3), %v1196_v0  ;;  %1167 = vmatpush3.bf16.msra.mxu1 (!%p170_p3), %v1196_v0  ;;  %v1339_v21 = vld [vmem:[%s1407_s2] ss:$0 sm:$0xff] (!%p170_p3) }
   0x9   : > { %1122 = vmatprep.subr.bf16.mxu0 (!%p170_p3), %v1197_v1  ;;  %1163 = vmatprep.subr.bf16.mxu1 (!%p170_p3), %v1197_v1 }
   0xc   : > { %1123 = vmatpush3.bf16.msra.mxu0 (!%p170_p3), %v1197_v1  ;;  %1168 = vmatpush3.bf16.msra.mxu1 (!%p170_p3), %v1197_v1 }
   0xd   : > { %1124 = vmatprep.subr.bf16.mxu0 (!%p170_p3), %v1198_v2  ;;  %1164 = vmatprep.subr.bf16.mxu1 (!%p170_p3), %v1198_v2 }
   0xe   : > { %s1414_s18 = smov (!%p204_p4, %s896_s18), 63 }
   0xf   : > { %s897_s23 = sshll.u32 %s1414_s18, 2 }
  0x10   : > { %s1299_s28 = scalar_lea.vmem %s1405_s0, %s897_s23  ;;  %1125 = vmatpush3.bf16.msra.mxu0 %v1198_v2  ;;  %1169 = vmatpush3.bf16.msra.mxu1 %v1198_v2  ;;  %s1354_s8 = scalar_lea.vmem %s1408_s3, %s897_s23 }
  0x11   : > { %v1201_v4 = vld [vmem:[%s1299_s28] sm:$0xff]   ;;  %1126 = vmatprep.subr.bf16.mxu0 %v1199_v3  ;;  %1165 = vmatprep.subr.bf16.mxu1 %v1199_v3  ;;  %v1203_v7 = vld [vmem:[%s1299_s28 + $0x8] sm:$0xff]   ;;  %v1205_v9 = vld [vmem:[%s1299_s28 + $0x10] sm:$0xff]  }
  0x12   : > { %v1202_v5 = vld [vmem:[%s1299_s28 + $0x40] sm:$0xff]   ;;  %1130 = vmatprep.mubr.msk.bf16.mxu0 %vm385_vm0, %v1201_v4  ;;  %v1204_v8 = vld [vmem:[%s1299_s28 + $0x48] sm:$0xff]   ;;  %v1206_v10 = vld [vmem:[%s1299_s28 + $0x50] sm:$0xff]  }
  0x13   : > { %1146 = vmatprep.mubr.msk.bf16.mxu1 %vm385_vm0, %v1202_v5  ;;  %v1207_v11 = vld [vmem:[%s1299_s28 + $0x18] sm:$0xff]   ;;  %v1209_v13 = vld [vmem:[%s1299_s28 + $0x20] sm:$0xff]   ;;  %v1211_v15 = vld [vmem:[%s1299_s28 + $0x28] sm:$0xff]  }
  0x14   : > { %1127 = vmatpush3.bf16.msra.mxu0 %v1199_v3  ;;  %1170 = vmatpush3.bf16.msra.mxu1 %v1199_v3  ;;  %v1208_v12 = vld [vmem:[%s1299_s28 + $0x58] sm:$0xff]   ;;  %v1210_v14 = vld [vmem:[%s1299_s28 + $0x60] sm:$0xff]   ;;  %v1212_v16 = vld [vmem:[%s1299_s28 + $0x68] sm:$0xff]  }
  0x15   : > { %1128 = vmatprep.subr.bf16.mxu0 %v1200_v6  ;;  %1166 = vmatprep.subr.bf16.mxu1 %v1200_v6  ;;  %v1213_v17 = vld [vmem:[%s1299_s28 + $0x30] sm:$0xff]   ;;  %v1215_v19 = vld [vmem:[%s1299_s28 + $0x38] sm:$0xff]  }
  0x16   : > { %v1214_v18 = vld [vmem:[%s1299_s28 + $0x70] sm:$0xff]   ;;  %v1216_v20 = vld [vmem:[%s1299_s28 + $0x78] sm:$0xff]  }
  0x18   : > { %1129 = vmatpush3.bf16.msra.mxu0 %v1200_v6  ;;  %1171 = vmatpush3.bf16.msra.mxu1 %v1200_v6 }
  0x1b   : > { %1131 = vmatmul.mubr.msk.bf16.vlgmr.msra.gmra.mrb[0].mxu0 %vm385_vm0, %v1203_v7  ;;  %1147 = vmatmul.mubr.msk.bf16.vlgmr.msra.gmra.mrb[0].mxu1 %vm385_vm0, %v1204_v8 }
  0x1c   : > { %1134 = vmatprep.mubr.msk.bf16.mxu0 %vm385_vm0, %v1205_v9  ;;  %1150 = vmatprep.mubr.msk.bf16.mxu1 %vm385_vm0, %v1206_v10 }
  0x23   : > { %1135 = vmatmul.mubr.msk.bf16.gmra.mrb[4].mxu0 %vm385_vm0, %v1207_v11  ;;  %1151 = vmatmul.mubr.msk.bf16.gmra.mrb[4].mxu1 %vm385_vm0, %v1208_v12 }
  0x24   : > { %1138 = vmatprep.mubr.msk.bf16.mxu0 %vm385_vm0, %v1209_v13  ;;  %1154 = vmatprep.mubr.msk.bf16.mxu1 %vm385_vm0, %v1210_v14 }
  0x2b   : > { %1139 = vmatmul.mubr.msk.bf16.gmra.mrb[8].mxu0 %vm385_vm0, %v1211_v15  ;;  %1155 = vmatmul.mubr.msk.bf16.gmra.mrb[8].mxu1 %vm385_vm0, %v1212_v16 }
  0x2c   : > { %1142 = vmatprep.mubr.msk.bf16.mxu0 %vm385_vm0, %v1213_v17  ;;  %1158 = vmatprep.mubr.msk.bf16.mxu1 %vm385_vm0, %v1214_v18 }
  0x33   : > { %1143 = vmatmul.mubr.msk.bf16.gmra.mrb[12].mxu0 %vm385_vm0, %v1215_v19  ;;  %1159 = vmatmul.mubr.msk.bf16.gmra.mrb[12].mxu1 %vm385_vm0, %v1216_v20 }
  0xee   : > { %v1132_v22 = vpop.f32.mrb[0].mxu0  ;;  %v1148_v23 = vpop.f32.mrb[0].mxu1 }
  0xef   : > { %v477_v24 = vadd.f32 %v1132_v22, %v1339_v21  ;;  %v541_v25 = vadd.f32 %v1148_v23, %v1339_v21  ;;  %v468_v26 = vpop.f32.mrb[1].mxu0  ;;  %v532_v27 = vpop.f32.mrb[1].mxu1 }
  0xf0   : > { %v469_v28 = vadd.f32 %v1339_v21, %v468_v26  ;;  %v533_v29 = vadd.f32 %v1339_v21, %v532_v27  ;;  %v1133_v30 = vpop.f32.mrb[2].mxu0  ;;  %v1149_v31 = vpop.f32.mrb[2].mxu1 }
  0xf1   : > { %v480_v32 = vadd.f32 %v1133_v30, %v1339_v21  ;;  %v544_v33 = vadd.f32 %v1149_v31, %v1339_v21  ;;  %v471_v34 = vpop.f32.mrb[3].mxu0  ;;  %v535_v35 = vpop.f32.mrb[3].mxu1  ;;  %v597_v38 = vmax.f32 %v477_v24, 0.0  ;;  %v613_v39 = vmax.f32 %v541_v25, 0.0 }
  0xf2   : > { %v472_v36 = vadd.f32 %v1339_v21, %v471_v34  ;;  %v536_v37 = vadd.f32 %v1339_v21, %v535_v35  ;;  %v595_v42 = vmax.f32 %v469_v28, 0.0  ;;  %v611_v43 = vmax.f32 %v533_v29, 0.0 }
  0xf3   : > { %v598_v40 = vmax.f32 %v480_v32, 0.0  ;;  %v614_v41 = vmax.f32 %v544_v33, 0.0 }
  0xf4   : > { %v596_v44 = vmax.f32 %v472_v36, 0.0  ;;  %v612_v45 = vmax.f32 %v536_v37, 0.0 }
  0xf5   : > { %v1012_v46 = vpack.c.bf16 %v598_v40, %v597_v38  ;;  %v1052_v47 = vpack.c.bf16 %v614_v41, %v613_v39 }
  0xf6   : > { %v1007_v48 = vpack.c.bf16 %v596_v44, %v595_v42  ;;  %v1047_v49 = vpack.c.bf16 %v612_v45, %v611_v43  ;;  %v1136_v50 = vpop.f32.mrb[4].mxu0  ;;  %v1152_v51 = vpop.f32.mrb[4].mxu1 }
  0xf7   : > { %1084 = vst [vmem:[%s1354_s8 + $0x8] sm:$0xff] %v1012_v46   ;;  %1092 = vst [vmem:[%s1354_s8 + $0x48] sm:$0xff] %v1052_v47   ;;  %v493_v52 = vadd.f32 %v1136_v50, %v1339_v21  ;;  %v557_v53 = vadd.f32 %v1152_v51, %v1339_v21  ;;  %v484_v54 = vpop.f32.mrb[5].mxu0  ;;  %v548_v55 = vpop.f32.mrb[5].mxu1 }
  0xf8   : > { %1008 = vst [vmem:[%s1354_s8] sm:$0xff] %v1007_v48   ;;  %1091 = vst [vmem:[%s1354_s8 + $0x40] sm:$0xff] %v1047_v49   ;;  %v485_v56 = vadd.f32 %v1339_v21, %v484_v54  ;;  %v549_v57 = vadd.f32 %v1339_v21, %v548_v55  ;;  %v1137_v58 = vpop.f32.mrb[6].mxu0  ;;  %v1153_v59 = vpop.f32.mrb[6].mxu1 }
  0xf9   : > { %v496_v60 = vadd.f32 %v1137_v58, %v1339_v21  ;;  %v560_v61 = vadd.f32 %v1153_v59, %v1339_v21  ;;  %v487_v62 = vpop.f32.mrb[7].mxu0  ;;  %v551_v63 = vpop.f32.mrb[7].mxu1  ;;  %v601_v2 = vmax.f32 %v493_v52, 0.0  ;;  %v617_v3 = vmax.f32 %v557_v53, 0.0 }
  0xfa   : > { %v488_v0 = vadd.f32 %v1339_v21, %v487_v62  ;;  %v552_v1 = vadd.f32 %v1339_v21, %v551_v63  ;;  %v599_v6 = vmax.f32 %v485_v56, 0.0  ;;  %v615_v7 = vmax.f32 %v549_v57, 0.0 }
  0xfb   : > { %v602_v4 = vmax.f32 %v496_v60, 0.0  ;;  %v618_v5 = vmax.f32 %v560_v61, 0.0 }
  0xfc   : > { %v600_v8 = vmax.f32 %v488_v0, 0.0  ;;  %v616_v9 = vmax.f32 %v552_v1, 0.0 }
  0xfd   : > { %v1022_v10 = vpack.c.bf16 %v602_v4, %v601_v2  ;;  %v1062_v11 = vpack.c.bf16 %v618_v5, %v617_v3 }
  0xfe   : > { %v1017_v12 = vpack.c.bf16 %v600_v8, %v599_v6  ;;  %v1057_v13 = vpack.c.bf16 %v616_v9, %v615_v7  ;;  %v1140_v14 = vpop.f32.mrb[8].mxu0  ;;  %v1156_v15 = vpop.f32.mrb[8].mxu1 }
  0xff   : > { %1086 = vst [vmem:[%s1354_s8 + $0x18] sm:$0xff] %v1022_v10   ;;  %1094 = vst [vmem:[%s1354_s8 + $0x58] sm:$0xff] %v1062_v11   ;;  %v509_v16 = vadd.f32 %v1140_v14, %v1339_v21  ;;  %v573_v17 = vadd.f32 %v1156_v15, %v1339_v21  ;;  %v500_v18 = vpop.f32.mrb[9].mxu0  ;;  %v564_v19 = vpop.f32.mrb[9].mxu1 }
 0x100   : > { %1085 = vst [vmem:[%s1354_s8 + $0x10] sm:$0xff] %v1017_v12   ;;  %1093 = vst [vmem:[%s1354_s8 + $0x50] sm:$0xff] %v1057_v13   ;;  %v501_v20 = vadd.f32 %v1339_v21, %v500_v18  ;;  %v565_v22 = vadd.f32 %v1339_v21, %v564_v19  ;;  %v1141_v23 = vpop.f32.mrb[10].mxu0  ;;  %v1157_v24 = vpop.f32.mrb[10].mxu1 }
 0x101   : > { %v512_v25 = vadd.f32 %v1141_v23, %v1339_v21  ;;  %v576_v26 = vadd.f32 %v1157_v24, %v1339_v21  ;;  %v503_v27 = vpop.f32.mrb[11].mxu0  ;;  %v567_v28 = vpop.f32.mrb[11].mxu1  ;;  %v605_v31 = vmax.f32 %v509_v16, 0.0  ;;  %v621_v32 = vmax.f32 %v573_v17, 0.0 }
 0x102   : > { %v504_v29 = vadd.f32 %v1339_v21, %v503_v27  ;;  %v568_v30 = vadd.f32 %v1339_v21, %v567_v28  ;;  %v603_v35 = vmax.f32 %v501_v20, 0.0  ;;  %v619_v36 = vmax.f32 %v565_v22, 0.0 }
 0x103   : > { %v606_v33 = vmax.f32 %v512_v25, 0.0  ;;  %v622_v34 = vmax.f32 %v576_v26, 0.0 }
 0x104   : > { %v604_v37 = vmax.f32 %v504_v29, 0.0  ;;  %v620_v38 = vmax.f32 %v568_v30, 0.0 }
 0x105   : > { %v1032_v39 = vpack.c.bf16 %v606_v33, %v605_v31  ;;  %v1072_v40 = vpack.c.bf16 %v622_v34, %v621_v32 }
 0x106   : > { %v1027_v41 = vpack.c.bf16 %v604_v37, %v603_v35  ;;  %v1067_v42 = vpack.c.bf16 %v620_v38, %v619_v36  ;;  %v1144_v43 = vpop.f32.mrb[12].mxu0  ;;  %v1160_v44 = vpop.f32.mrb[12].mxu1 }
 0x107   : > { %1088 = vst [vmem:[%s1354_s8 + $0x28] sm:$0xff] %v1032_v39   ;;  %1096 = vst [vmem:[%s1354_s8 + $0x68] sm:$0xff] %v1072_v40   ;;  %v525_v45 = vadd.f32 %v1144_v43, %v1339_v21  ;;  %v589_v46 = vadd.f32 %v1160_v44, %v1339_v21  ;;  %v516_v47 = vpop.f32.mrb[13].mxu0  ;;  %v580_v48 = vpop.f32.mrb[13].mxu1 }
 0x108   : > { %1087 = vst [vmem:[%s1354_s8 + $0x20] sm:$0xff] %v1027_v41   ;;  %1095 = vst [vmem:[%s1354_s8 + $0x60] sm:$0xff] %v1067_v42   ;;  %v517_v49 = vadd.f32 %v1339_v21, %v516_v47  ;;  %v581_v50 = vadd.f32 %v1339_v21, %v580_v48  ;;  %v1145_v51 = vpop.f32.mrb[14].mxu0  ;;  %v1161_v52 = vpop.f32.mrb[14].mxu1 }
 0x109   : > { %v528_v53 = vadd.f32 %v1145_v51, %v1339_v21  ;;  %v592_v54 = vadd.f32 %v1161_v52, %v1339_v21  ;;  %v519_v55 = vpop.f32.mrb[15].mxu0  ;;  %v583_v56 = vpop.f32.mrb[15].mxu1  ;;  %v609_v59 = vmax.f32 %v525_v45, 0.0  ;;  %v625_v60 = vmax.f32 %v589_v46, 0.0 }
 0x10a   : > { %v520_v57 = vadd.f32 %v1339_v21, %v519_v55  ;;  %v584_v58 = vadd.f32 %v1339_v21, %v583_v56  ;;  %v607_v63 = vmax.f32 %v517_v49, 0.0  ;;  %v623_v0 = vmax.f32 %v581_v50, 0.0 }
 0x10b   : > { %v610_v61 = vmax.f32 %v528_v53, 0.0  ;;  %v626_v62 = vmax.f32 %v592_v54, 0.0 }
 0x10c   : > { %v608_v1 = vmax.f32 %v520_v57, 0.0  ;;  %v624_v2 = vmax.f32 %v584_v58, 0.0 }
 0x10d   : > { %v1042_v3 = vpack.c.bf16 %v610_v61, %v609_v59  ;;  %v1082_v4 = vpack.c.bf16 %v626_v62, %v625_v60 }
 0x10e   : > { %v1037_v5 = vpack.c.bf16 %v608_v1, %v607_v63  ;;  %v1077_v6 = vpack.c.bf16 %v624_v2, %v623_v0 }
 0x10f   : > { %1090 = vst [vmem:[%s1354_s8 + $0x38] sm:$0xff] %v1042_v3   ;;  %1098 = vst [vmem:[%s1354_s8 + $0x78] sm:$0xff] %v1082_v4  }
 0x110   : > { %1089 = vst [vmem:[%s1354_s8 + $0x30] sm:$0xff] %v1037_v5   ;;  %1097 = vst [vmem:[%s1354_s8 + $0x70] sm:$0xff] %v1077_v6  }
 0x111 PF: > { %s13_s14 = sadd.s32 1, %s1239_s14   ;;  %s1409_s12 = smov %s1235_s13 }
 0x112   : > { %p10_p5 = scmp.ge.s32.totalorder %s13_s14, 4   ;;  %s1410_s13 = smov %s1412_s15 }
 0x114   :  { %12 = sbr.rel (!%p10_p5) target bundleno = 2 (0x2), region = 68 }

// kernel: deeplab_forward.36
= control target key start
LH: loop header
LB: loop body
LE: loop exit
PB: predicated region body
PF: predicated region fallthrough
CT: control target
= control target key end

     0   :  { %s1458_s15 = smov 0   ;;  %s1460_s16 = smov 0   ;;  %s1697_s0 = inlined_call_operand.vmem [shape: bf16[512,16], index: 0, kind: input, shape index: {}]   ;;  %s1698_s1 = inlined_call_operand.vmem [shape: bf16[16,128], index: 1, kind: input, shape index: {}]   ;;  %s1699_s2 = inlined_call_operand.vmem [shape: f32[1,128], index: 2, kind: input, shape index: {}]   ;;  %s1700_s3 = inlined_call_operand.vmem [shape: bf16[512,128], index: 3, kind: input, shape index: {}]   ;;  %s1701_s4 = inlined_call_operand.vmem [shape: bf16[512,128], index: 4, kind: output, shape index: {}]  }
   0x1   :  { %s1462_s17 = smov 0  }
   0x2 LB: > { %s26_s18 = sadd.s32 1, %s1427_s16  ;;  %p1034_p0 = scmp.ge.s32.totalorder %s1431_s17, 1  ;;  %s1431_s17 = sphi %s1462_s17, %s14_s17   ;;  %s1427_s16 = sphi %s1460_s16, %s1703_s16   ;;  %s1423_s15 = sphi %s1458_s15, %s1702_s15  }
   0x3   : > { %p28_p1 = scmp.ge.s32.totalorder %s26_s18, 2  ;;  %p210_p2 = scmp.lt.s32.totalorder %s1431_s17, 3 }
   0x5   : > { %s1705_s18 = smov (%p28_p1, %s26_s18), 0  ;;  %p211_p3 = pnand %p1034_p0, %p210_p2 }
   0x6   : > { %v1392_v0 = vld [vmem:[%s1698_s1] sm:$0xff] (!%p211_p3)   ;;  %s1035_s21 = sshll.u32 (!%p211_p3), %s1423_s15, 5  ;;  %vm413_vm0 = vcmask (!%p211_p3), 130048  }
   0x7   : > { %214 = sbr.rel (%p211_p3) target bundleno = 269 (0x10d), region = 36  ;;  %p255_p4 = scmp.lt.s32.totalorder (!%p211_p3), %s1035_s21, 63  ;;  %1332 = vmatprep.subr.bf16.mxu0 (!%p211_p3), %v1392_v0  ;;  %1366 = vmatprep.subr.bf16.mxu1 (!%p211_p3), %v1392_v0  ;;  %v1544_v27 = vld [vmem:[%s1699_s2] ss:$0 sm:$0xff] (!%p211_p3) }
   0x8   : > { %1333 = vmatpush3.bf16.msra.mxu0 (!%p211_p3), %v1392_v0  ;;  %1367 = vmatpush3.bf16.msra.mxu1 (!%p211_p3), %v1392_v0 }
   0xe   : > { %s1707_s21 = smov (!%p255_p4, %s1035_s21), 63 }
   0xf   : > { %s1479_s22 = sshll.u32 %s1707_s21, 2 }
  0x10   : > { %s1485_s25 = scalar_lea.vmem %s1697_s0, %s1479_s22  ;;  %s1523_s28 = scalar_lea.vmem %s1700_s3, %s1479_s22 }
  0x11   : > { %v1393_v1 = vld [vmem:[%s1485_s25] sm:$0xff]   ;;  %v1395_v3 = vld [vmem:[%s1485_s25 + $0x8] sm:$0xff]   ;;  %v1397_v5 = vld [vmem:[%s1485_s25 + $0x10] sm:$0xff]   ;;  %s1586_s7 = scalar_lea.vmem %s1701_s4, %s1479_s22 }
  0x12   : > { %v1394_v2 = vld [vmem:[%s1485_s25 + $0x40] sm:$0xff]   ;;  %1334 = vmatprep.mubr.msk.bf16.mxu0 %vm413_vm0, %v1393_v1  ;;  %v1396_v4 = vld [vmem:[%s1485_s25 + $0x48] sm:$0xff]   ;;  %v1398_v6 = vld [vmem:[%s1485_s25 + $0x50] sm:$0xff]  }
  0x13   : > { %1350 = vmatprep.mubr.msk.bf16.mxu1 %vm413_vm0, %v1394_v2  ;;  %1335 = vmatmul.mubr.msk.bf16.vlgmr.msra.gmra.mrb[0].mxu0 %vm413_vm0, %v1395_v3  ;;  %v1399_v7 = vld [vmem:[%s1485_s25 + $0x18] sm:$0xff]   ;;  %v1401_v9 = vld [vmem:[%s1485_s25 + $0x20] sm:$0xff]   ;;  %v1403_v11 = vld [vmem:[%s1485_s25 + $0x28] sm:$0xff]  }
  0x14   : > { %1351 = vmatmul.mubr.msk.bf16.vlgmr.msra.gmra.mrb[0].mxu1 %vm413_vm0, %v1396_v4  ;;  %1338 = vmatprep.mubr.msk.bf16.mxu0 %vm413_vm0, %v1397_v5  ;;  %v1400_v8 = vld [vmem:[%s1485_s25 + $0x58] sm:$0xff]   ;;  %v1402_v10 = vld [vmem:[%s1485_s25 + $0x60] sm:$0xff]   ;;  %v1404_v12 = vld [vmem:[%s1485_s25 + $0x68] sm:$0xff]  }
  0x15   : > { %1354 = vmatprep.mubr.msk.bf16.mxu1 %vm413_vm0, %v1398_v6  ;;  %v1405_v13 = vld [vmem:[%s1485_s25 + $0x30] sm:$0xff]   ;;  %v1407_v15 = vld [vmem:[%s1485_s25 + $0x38] sm:$0xff]   ;;  %v1285_v17 = vld [vmem:[%s1523_s28 + $0x8] sm:$0xff]  }
  0x16   : > { %v1406_v14 = vld [vmem:[%s1485_s25 + $0x70] sm:$0xff]   ;;  %v1408_v16 = vld [vmem:[%s1485_s25 + $0x78] sm:$0xff]   ;;  %v1293_v18 = vld [vmem:[%s1523_s28 + $0x48] sm:$0xff]   ;;  %v1147_v23 = vunpack.c.l.bf16 %v1285_v17  ;;  %v1148_v30 = vunpack.c.h.bf16 %v1285_v17 }
  0x17   : > { %v1142_v19 = vld [vmem:[%s1523_s28] sm:$0xff]   ;;  %v1530_v21 = vld [vmem:[%s1523_s28 + $0x18] sm:$0xff]   ;;  %v1179_v24 = vunpack.c.l.bf16 %v1293_v18  ;;  %v1536_v25 = vld [vmem:[%s1523_s28 + $0x10] sm:$0xff]   ;;  %v1180_v31 = vunpack.c.h.bf16 %v1293_v18 }
  0x18   : > { %v1292_v20 = vld [vmem:[%s1523_s28 + $0x40] sm:$0xff]   ;;  %v1533_v22 = vld [vmem:[%s1523_s28 + $0x58] sm:$0xff]   ;;  %v1539_v26 = vld [vmem:[%s1523_s28 + $0x50] sm:$0xff]   ;;  %v1143_v28 = vunpack.c.l.bf16 %v1142_v19  ;;  %v1144_v33 = vunpack.c.h.bf16 %v1142_v19  ;;  %v1155_v35 = vunpack.c.l.bf16 %v1530_v21  ;;  %v1151_v40 = vunpack.c.l.bf16 %v1536_v25 }
  0x19   : > { %v1175_v29 = vunpack.c.l.bf16 %v1292_v20  ;;  %v1547_v32 = vld [vmem:[%s1523_s28 + $0x28] sm:$0xff]   ;;  %v1176_v34 = vunpack.c.h.bf16 %v1292_v20  ;;  %v1187_v36 = vunpack.c.l.bf16 %v1533_v22  ;;  %v1555_v38 = vld [vmem:[%s1523_s28 + $0x20] sm:$0xff]   ;;  %v1183_v41 = vunpack.c.l.bf16 %v1539_v26 }
  0x1a   : > { %v1552_v37 = vld [vmem:[%s1523_s28 + $0x68] sm:$0xff]   ;;  %v1156_v42 = vunpack.c.h.bf16 %v1530_v21  ;;  %v1188_v43 = vunpack.c.h.bf16 %v1533_v22  ;;  %v1562_v44 = vld [vmem:[%s1523_s28 + $0x60] sm:$0xff]   ;;  %v1152_v48 = vunpack.c.h.bf16 %v1536_v25  ;;  %v1184_v49 = vunpack.c.h.bf16 %v1539_v26 }
  0x1b   : > { %1339 = vmatmul.mubr.msk.bf16.gmra.mrb[4].mxu0 %vm413_vm0, %v1399_v7  ;;  %v1163_v50 = vunpack.c.l.bf16 %v1547_v32  ;;  %v1195_v55 = vunpack.c.l.bf16 %v1552_v37  ;;  %v1159_v56 = vunpack.c.l.bf16 %v1555_v38  ;;  %v1191_v62 = vunpack.c.l.bf16 %v1562_v44 }
  0x1c   : > { %1355 = vmatmul.mubr.msk.bf16.gmra.mrb[4].mxu1 %vm413_vm0, %v1400_v8  ;;  %1342 = vmatprep.mubr.msk.bf16.mxu0 %vm413_vm0, %v1401_v9  ;;  %v1164_v7 = vunpack.c.h.bf16 %v1547_v32 }
  0x1d   : > { %1358 = vmatprep.mubr.msk.bf16.mxu1 %vm413_vm0, %v1402_v10  ;;  %v1196_v10 = vunpack.c.h.bf16 %v1552_v37 }
  0x23   : > { %1343 = vmatmul.mubr.msk.bf16.gmra.mrb[8].mxu0 %vm413_vm0, %v1403_v11  ;;  %v1160_v11 = vunpack.c.h.bf16 %v1555_v38 }
  0x24   : > { %1359 = vmatmul.mubr.msk.bf16.gmra.mrb[8].mxu1 %vm413_vm0, %v1404_v12  ;;  %1346 = vmatprep.mubr.msk.bf16.mxu0 %vm413_vm0, %v1405_v13 }
  0x25   : > { %1362 = vmatprep.mubr.msk.bf16.mxu1 %vm413_vm0, %v1406_v14 }
  0x2b   : > { %1347 = vmatmul.mubr.msk.bf16.gmra.mrb[12].mxu0 %vm413_vm0, %v1407_v15  ;;  %v1192_v15 = vunpack.c.h.bf16 %v1562_v44 }
  0x2c   : > { %1363 = vmatmul.mubr.msk.bf16.gmra.mrb[12].mxu1 %vm413_vm0, %v1408_v16 }
  0xe6   : > { %v1336_v39 = vpop.f32.mrb[0].mxu0 }
  0xe7   : > { %v505_v45 = vadd.f32 %v1336_v39, %v1544_v27  ;;  %v1352_v46 = vpop.f32.mrb[0].mxu1  ;;  %v496_v47 = vpop.f32.mrb[1].mxu0 }
  0xe8   : > { %v569_v51 = vadd.f32 %v1352_v46, %v1544_v27  ;;  %v497_v52 = vadd.f32 %v1544_v27, %v496_v47  ;;  %v560_v53 = vpop.f32.mrb[1].mxu1  ;;  %v1337_v54 = vpop.f32.mrb[2].mxu0 }
  0xe9   : > { %v689_v57 = vadd.f32 %v1147_v23, %v505_v45  ;;  %v561_v58 = vadd.f32 %v1544_v27, %v560_v53  ;;  %v508_v59 = vadd.f32 %v1337_v54, %v1544_v27  ;;  %v1353_v60 = vpop.f32.mrb[2].mxu1  ;;  %v499_v61 = vpop.f32.mrb[3].mxu0 }
  0xea   : > { %v705_v63 = vadd.f32 %v1179_v24, %v569_v51  ;;  %v687_v0 = vadd.f32 %v1143_v28, %v497_v52  ;;  %v572_v1 = vadd.f32 %v1353_v60, %v1544_v27  ;;  %v500_v2 = vadd.f32 %v1544_v27, %v499_v61  ;;  %v563_v3 = vpop.f32.mrb[3].mxu1  ;;  %v1592_v51 = vld [vmem:[%s1523_s28 + $0x38] sm:$0xff]   ;;  %v1603_v61 = vld [vmem:[%s1523_s28 + $0x30] sm:$0xff]  }
  0xeb   : > { %v703_v4 = vadd.f32 %v1175_v29, %v561_v58  ;;  %v690_v5 = vadd.f32 %v1148_v30, %v508_v59  ;;  %v564_v6 = vadd.f32 %v1544_v27, %v563_v3  ;;  %v721_v12 = vmax.f32 %v689_v57, 0.0  ;;  %v1600_v60 = vld [vmem:[%s1523_s28 + $0x78] sm:$0xff]   ;;  %v1614_v3 = vld [vmem:[%s1523_s28 + $0x70] sm:$0xff]  }
  0xec   : > { %v706_v8 = vadd.f32 %v1180_v31, %v572_v1  ;;  %v688_v9 = vadd.f32 %v1144_v33, %v500_v2  ;;  %v737_v16 = vmax.f32 %v705_v63, 0.0  ;;  %v719_v17 = vmax.f32 %v687_v0, 0.0 }
  0xed   : > { %v722_v13 = vmax.f32 %v690_v5, 0.0  ;;  %v704_v14 = vadd.f32 %v1176_v34, %v564_v6  ;;  %v735_v23 = vmax.f32 %v703_v4, 0.0 }
  0xee   : > { %v738_v18 = vmax.f32 %v706_v8, 0.0  ;;  %v720_v19 = vmax.f32 %v688_v9, 0.0  ;;  %v1340_v20 = vpop.f32.mrb[4].mxu0  ;;  %v1203_v9 = vunpack.c.l.bf16 %v1600_v60 }
  0xef   : > { %v1213_v24 = vpack.c.bf16 %v722_v13, %v721_v12  ;;  %v736_v28 = vmax.f32 %v704_v14, 0.0  ;;  %v521_v29 = vadd.f32 %v1340_v20, %v1544_v27  ;;  %v1356_v30 = vpop.f32.mrb[4].mxu1  ;;  %v512_v31 = vpop.f32.mrb[5].mxu0  ;;  %v1167_v12 = vunpack.c.l.bf16 %v1603_v61 }
  0xf0   : > { %v1253_v33 = vpack.c.bf16 %v738_v18, %v737_v16  ;;  %v1208_v34 = vpack.c.bf16 %v720_v19, %v719_v17  ;;  %v585_v39 = vadd.f32 %v1356_v30, %v1544_v27  ;;  %v513_v45 = vadd.f32 %v1544_v27, %v512_v31  ;;  %v576_v46 = vpop.f32.mrb[5].mxu1  ;;  %v1341_v47 = vpop.f32.mrb[6].mxu0 }
  0xf1   : > { %1300 = vst [vmem:[%s1586_s7 + $0x8] sm:$0xff] %v1213_v24   ;;  %v1248_v52 = vpack.c.bf16 %v736_v28, %v735_v23  ;;  %v693_v53 = vadd.f32 %v1155_v35, %v521_v29  ;;  %v577_v54 = vadd.f32 %v1544_v27, %v576_v46  ;;  %v524_v57 = vadd.f32 %v1341_v47, %v1544_v27  ;;  %v1357_v58 = vpop.f32.mrb[6].mxu1  ;;  %v515_v59 = vpop.f32.mrb[7].mxu0 }
  0xf2   : > { %1308 = vst [vmem:[%s1586_s7 + $0x48] sm:$0xff] %v1253_v33   ;;  %1209 = vst [vmem:[%s1586_s7] sm:$0xff] %v1208_v34   ;;  %v709_v63 = vadd.f32 %v1187_v36, %v585_v39  ;;  %v691_v0 = vadd.f32 %v1151_v40, %v513_v45  ;;  %v588_v35 = vadd.f32 %v1357_v58, %v1544_v27  ;;  %v579_v2 = vpop.f32.mrb[7].mxu1  ;;  %v1171_v36 = vunpack.c.l.bf16 %v1592_v51 }
  0xf3   : > { %v516_v1 = vadd.f32 %v1544_v27, %v515_v59  ;;  %1307 = vst [vmem:[%s1586_s7 + $0x40] sm:$0xff] %v1248_v52   ;;  %v707_v4 = vadd.f32 %v1183_v41, %v577_v54  ;;  %v694_v5 = vadd.f32 %v1156_v42, %v524_v57  ;;  %v580_v6 = vadd.f32 %v1544_v27, %v579_v2 }
  0xf4   : > { %v710_v40 = vadd.f32 %v1188_v43, %v588_v35  ;;  %v725_v13 = vmax.f32 %v693_v53, 0.0  ;;  %v1199_v41 = vunpack.c.l.bf16 %v1614_v3  ;;  %v741_v42 = vmax.f32 %v709_v63, 0.0 }
  0xf5   : > { %v692_v8 = vadd.f32 %v1152_v48, %v516_v1  ;;  %v726_v14 = vmax.f32 %v694_v5, 0.0  ;;  %v708_v21 = vadd.f32 %v1184_v49, %v580_v6  ;;  %v723_v16 = vmax.f32 %v691_v0, 0.0 }
  0xf6   : > { %v742_v17 = vmax.f32 %v710_v40, 0.0  ;;  %v1344_v43 = vpop.f32.mrb[8].mxu0  ;;  %v739_v18 = vmax.f32 %v707_v4, 0.0  ;;  %v1172_v63 = vunpack.c.h.bf16 %v1592_v51  ;;  %v1204_v0 = vunpack.c.h.bf16 %v1600_v60 }
  0xf7   : > { %v724_v22 = vmax.f32 %v692_v8, 0.0  ;;  %v1223_v25 = vpack.c.bf16 %v726_v14, %v725_v13  ;;  %v740_v48 = vmax.f32 %v708_v21, 0.0  ;;  %v537_v19 = vadd.f32 %v1344_v43, %v1544_v27  ;;  %v1360_v20 = vpop.f32.mrb[8].mxu1  ;;  %v528_v23 = vpop.f32.mrb[9].mxu0 }
  0xf8   : > { %v1263_v24 = vpack.c.bf16 %v742_v17, %v741_v42  ;;  %v601_v49 = vadd.f32 %v1360_v20, %v1544_v27  ;;  %v529_v28 = vadd.f32 %v1544_v27, %v528_v23  ;;  %v592_v29 = vpop.f32.mrb[9].mxu1  ;;  %v1345_v30 = vpop.f32.mrb[10].mxu0  ;;  %v1168_v35 = vunpack.c.h.bf16 %v1603_v61 }
  0xf9   : > { %v1218_v26 = vpack.c.bf16 %v724_v22, %v723_v16  ;;  %1302 = vst [vmem:[%s1586_s7 + $0x18] sm:$0xff] %v1223_v25   ;;  %v1258_v31 = vpack.c.bf16 %v740_v48, %v739_v18  ;;  %v697_v33 = vadd.f32 %v1163_v50, %v537_v19  ;;  %v593_v34 = vadd.f32 %v1544_v27, %v592_v29  ;;  %v1361_v45 = vpop.f32.mrb[10].mxu1  ;;  %v531_v46 = vpop.f32.mrb[11].mxu0 }
  0xfa   : > { %v540_v39 = vadd.f32 %v1345_v30, %v1544_v27  ;;  %1310 = vst [vmem:[%s1586_s7 + $0x58] sm:$0xff] %v1263_v24   ;;  %v713_v47 = vadd.f32 %v1195_v55, %v601_v49  ;;  %v695_v52 = vadd.f32 %v1159_v56, %v529_v28  ;;  %v604_v53 = vadd.f32 %v1361_v45, %v1544_v27  ;;  %v595_v57 = vpop.f32.mrb[11].mxu1 }
  0xfb   : > { %1301 = vst [vmem:[%s1586_s7 + $0x10] sm:$0xff] %v1218_v26   ;;  %v532_v54 = vadd.f32 %v1544_v27, %v531_v46  ;;  %1309 = vst [vmem:[%s1586_s7 + $0x50] sm:$0xff] %v1258_v31   ;;  %v711_v50 = vadd.f32 %v1191_v62, %v593_v34  ;;  %v596_v59 = vadd.f32 %v1544_v27, %v595_v57  ;;  %v729_v1 = vmax.f32 %v697_v33, 0.0 }
  0xfc   : > { %v698_v58 = vadd.f32 %v1164_v7, %v540_v39  ;;  %v714_v55 = vadd.f32 %v1196_v10, %v604_v53  ;;  %v1200_v62 = vunpack.c.h.bf16 %v1614_v3  ;;  %v745_v7 = vmax.f32 %v713_v47, 0.0 }
  0xfd   : > { %v696_v56 = vadd.f32 %v1160_v11, %v532_v54  ;;  %v712_v32 = vadd.f32 %v1192_v15, %v596_v59  ;;  %v727_v4 = vmax.f32 %v695_v52, 0.0  ;;  %v743_v6 = vmax.f32 %v711_v50, 0.0 }
  0xfe   : > { %v730_v2 = vmax.f32 %v698_v58, 0.0  ;;  %v746_v5 = vmax.f32 %v714_v55, 0.0  ;;  %v1348_v10 = vpop.f32.mrb[12].mxu0 }
  0xff   : > { %v728_v37 = vmax.f32 %v696_v56, 0.0  ;;  %v744_v11 = vmax.f32 %v712_v32, 0.0  ;;  %v553_v40 = vadd.f32 %v1348_v10, %v1544_v27  ;;  %v1364_v8 = vpop.f32.mrb[12].mxu1  ;;  %v544_v13 = vpop.f32.mrb[13].mxu0 }
 0x100   : > { %v1233_v38 = vpack.c.bf16 %v730_v2, %v729_v1  ;;  %v1273_v14 = vpack.c.bf16 %v746_v5, %v745_v7  ;;  %v617_v15 = vadd.f32 %v1364_v8, %v1544_v27  ;;  %v545_v21 = vadd.f32 %v1544_v27, %v544_v13  ;;  %v608_v42 = vpop.f32.mrb[13].mxu1  ;;  %v1349_v16 = vpop.f32.mrb[14].mxu0 }
 0x101   : > { %v1228_v44 = vpack.c.bf16 %v728_v37, %v727_v4  ;;  %v1268_v17 = vpack.c.bf16 %v744_v11, %v743_v6  ;;  %v701_v22 = vadd.f32 %v1171_v36, %v553_v40  ;;  %v609_v43 = vadd.f32 %v1544_v27, %v608_v42  ;;  %v1365_v25 = vpop.f32.mrb[14].mxu1  ;;  %v547_v48 = vpop.f32.mrb[15].mxu0 }
 0x102   : > { %1304 = vst [vmem:[%s1586_s7 + $0x28] sm:$0xff] %v1233_v38   ;;  %v556_v18 = vadd.f32 %v1349_v16, %v1544_v27  ;;  %1312 = vst [vmem:[%s1586_s7 + $0x68] sm:$0xff] %v1273_v14   ;;  %v717_v19 = vadd.f32 %v1203_v9, %v617_v15  ;;  %v699_v20 = vadd.f32 %v1167_v12, %v545_v21  ;;  %v611_v51 = vpop.f32.mrb[15].mxu1 }
 0x103   : > { %1303 = vst [vmem:[%s1586_s7 + $0x20] sm:$0xff] %v1228_v44   ;;  %v620_v23 = vadd.f32 %v1365_v25, %v1544_v27  ;;  %v548_v24 = vadd.f32 %v1544_v27, %v547_v48  ;;  %1311 = vst [vmem:[%s1586_s7 + $0x60] sm:$0xff] %v1268_v17   ;;  %v715_v36 = vadd.f32 %v1199_v41, %v609_v43  ;;  %v733_v9 = vmax.f32 %v701_v22, 0.0 }
 0x104   : > { %v702_v26 = vadd.f32 %v1172_v63, %v556_v18  ;;  %v612_v49 = vadd.f32 %v1544_v27, %v611_v51  ;;  %v749_v29 = vmax.f32 %v717_v19, 0.0  ;;  %v731_v30 = vmax.f32 %v699_v20, 0.0 }
 0x105   : > { %v718_v28 = vadd.f32 %v1204_v0, %v620_v23  ;;  %v700_v60 = vadd.f32 %v1168_v35, %v548_v24  ;;  %v747_v34 = vmax.f32 %v715_v36, 0.0 }
 0x106   : > { %v734_v61 = vmax.f32 %v702_v26, 0.0  ;;  %v716_v12 = vadd.f32 %v1200_v62, %v612_v49 }
 0x107   : > { %v750_v31 = vmax.f32 %v718_v28, 0.0  ;;  %v732_v33 = vmax.f32 %v700_v60, 0.0 }
 0x108   : > { %v1243_v39 = vpack.c.bf16 %v734_v61, %v733_v9  ;;  %v748_v3 = vmax.f32 %v716_v12, 0.0 }
 0x109   : > { %v1283_v41 = vpack.c.bf16 %v750_v31, %v749_v29  ;;  %v1238_v45 = vpack.c.bf16 %v732_v33, %v731_v30 }
 0x10a   : > { %1306 = vst [vmem:[%s1586_s7 + $0x38] sm:$0xff] %v1243_v39   ;;  %v1278_v46 = vpack.c.bf16 %v748_v3, %v747_v34 }
 0x10b   : > { %1314 = vst [vmem:[%s1586_s7 + $0x78] sm:$0xff] %v1283_v41   ;;  %1305 = vst [vmem:[%s1586_s7 + $0x30] sm:$0xff] %v1238_v45  }
 0x10c   : > { %1313 = vst [vmem:[%s1586_s7 + $0x70] sm:$0xff] %v1278_v46  }
 0x10d PF: > { %s14_s17 = sadd.s32 1, %s1431_s17   ;;  %s1702_s15 = smov %s1427_s16 }
 0x10e   : > { %p11_p5 = scmp.ge.s32.totalorder %s14_s17, 4   ;;  %s1703_s16 = smov %s1705_s18 }
 0x110   :  { %13 = sbr.rel (!%p11_p5) target bundleno = 2 (0x2), region = 75 }

// kernel: deeplab_forward.38
= control target key start
LH: loop header
LB: loop body
LE: loop exit
PB: predicated region body
PF: predicated region fallthrough
CT: control target
= control target key end

     0   :  { %s1216_s12 = smov 0   ;;  %s1218_s13 = smov 0   ;;  %s1351_s0 = inlined_call_operand.vmem [shape: bf16[512,32], index: 0, kind: input, shape index: {}]   ;;  %s1352_s1 = inlined_call_operand.vmem [shape: bf16[32,128], index: 1, kind: input, shape index: {}]   ;;  %s1353_s2 = inlined_call_operand.vmem [shape: f32[1,128], index: 2, kind: input, shape index: {}]   ;;  %s1354_s3 = inlined_call_operand.vmem [shape: bf16[512,128], index: 3, kind: output, shape index: {}]  }
   0x1   :  { %s1220_s14 = smov 0  }
   0x2 LB: > { %s25_s15 = sadd.s32 1, %s1190_s13  ;;  %p871_p0 = scmp.ge.s32.totalorder %s1194_s14, 1  ;;  %s1194_s14 = sphi %s1220_s14, %s13_s14   ;;  %s1190_s13 = sphi %s1218_s13, %s1356_s13   ;;  %s1186_s12 = sphi %s1216_s12, %s1355_s12  }
   0x3   : > { %p27_p1 = scmp.ge.s32.totalorder %s25_s15, 2  ;;  %p169_p2 = scmp.lt.s32.totalorder %s1194_s14, 3 }
   0x5   : > { %s1358_s15 = smov (%p27_p1, %s25_s15), 0  ;;  %p170_p3 = pnand %p871_p0, %p169_p2 }
   0x6   : > { %v1154_v0 = vld [vmem:[%s1352_s1] sm:$0xff] (!%p170_p3)   ;;  %s872_s18 = sshll.u32 (!%p170_p3), %s1186_s12, 5  ;;  %v1155_v1 = vld [vmem:[%s1352_s1 + $0x8] sm:$0xff] (!%p170_p3)   ;;  %vm361_vm0 = vcmask (!%p170_p3), 261120  }
   0x7   : > { %173 = sbr.rel (%p170_p3) target bundleno = 266 (0x10a), region = 32  ;;  %p204_p4 = scmp.lt.s32.totalorder (!%p170_p3), %s872_s18, 63  ;;  %1090 = vmatprep.subr.bf16.mxu0 (!%p170_p3), %v1154_v0  ;;  %1126 = vmatprep.subr.bf16.mxu1 (!%p170_p3), %v1154_v0  ;;  %v1285_v18 = vld [vmem:[%s1353_s2] ss:$0 sm:$0xff] (!%p170_p3) }
   0x8   : > { %1091 = vmatpush3.bf16.msra.mxu0 (!%p170_p3), %v1154_v0  ;;  %1128 = vmatpush3.bf16.msra.mxu1 (!%p170_p3), %v1154_v0 }
   0x9   : > { %1092 = vmatprep.subr.bf16.mxu0 (!%p170_p3), %v1155_v1  ;;  %1127 = vmatprep.subr.bf16.mxu1 (!%p170_p3), %v1155_v1 }
   0xc   : > { %1093 = vmatpush3.bf16.msra.mxu0 (!%p170_p3), %v1155_v1  ;;  %1129 = vmatpush3.bf16.msra.mxu1 (!%p170_p3), %v1155_v1 }
   0xe   : > { %s1360_s18 = smov (!%p204_p4, %s872_s18), 63 }
   0xf   : > { %s873_s21 = sshll.u32 %s1360_s18, 2 }
  0x10   : > { %s1248_s24 = scalar_lea.vmem %s1351_s0, %s873_s21  ;;  %s1300_s29 = scalar_lea.vmem %s1354_s3, %s873_s21 }
  0x11   : > { %v1156_v2 = vld [vmem:[%s1248_s24] sm:$0xff]   ;;  %v1158_v4 = vld [vmem:[%s1248_s24 + $0x8] sm:$0xff]   ;;  %v1160_v6 = vld [vmem:[%s1248_s24 + $0x10] sm:$0xff]  }
  0x12   : > { %v1157_v3 = vld [vmem:[%s1248_s24 + $0x40] sm:$0xff]   ;;  %1094 = vmatprep.mubr.msk.bf16.mxu0 %vm361_vm0, %v1156_v2  ;;  %v1159_v5 = vld [vmem:[%s1248_s24 + $0x48] sm:$0xff]   ;;  %v1161_v7 = vld [vmem:[%s1248_s24 + $0x50] sm:$0xff]  }
  0x13   : > { %1110 = vmatprep.mubr.msk.bf16.mxu1 %vm361_vm0, %v1157_v3  ;;  %1095 = vmatmul.mubr.msk.bf16.vlgmr.msra.gmra.mrb[0].mxu0 %vm361_vm0, %v1158_v4  ;;  %v1162_v8 = vld [vmem:[%s1248_s24 + $0x18] sm:$0xff]   ;;  %v1164_v10 = vld [vmem:[%s1248_s24 + $0x20] sm:$0xff]   ;;  %v1166_v12 = vld [vmem:[%s1248_s24 + $0x28] sm:$0xff]  }
  0x14   : > { %1111 = vmatmul.mubr.msk.bf16.vlgmr.msra.gmra.mrb[0].mxu1 %vm361_vm0, %v1159_v5  ;;  %1098 = vmatprep.mubr.msk.bf16.mxu0 %vm361_vm0, %v1160_v6  ;;  %v1163_v9 = vld [vmem:[%s1248_s24 + $0x58] sm:$0xff]   ;;  %v1165_v11 = vld [vmem:[%s1248_s24 + $0x60] sm:$0xff]   ;;  %v1167_v13 = vld [vmem:[%s1248_s24 + $0x68] sm:$0xff]  }
  0x15   : > { %1114 = vmatprep.mubr.msk.bf16.mxu1 %vm361_vm0, %v1161_v7  ;;  %v1168_v14 = vld [vmem:[%s1248_s24 + $0x30] sm:$0xff]   ;;  %v1170_v16 = vld [vmem:[%s1248_s24 + $0x38] sm:$0xff]  }
  0x16   : > { %v1169_v15 = vld [vmem:[%s1248_s24 + $0x70] sm:$0xff]   ;;  %v1171_v17 = vld [vmem:[%s1248_s24 + $0x78] sm:$0xff]  }
  0x1b   : > { %1099 = vmatmul.mubr.msk.bf16.gmra.mrb[4].mxu0 %vm361_vm0, %v1162_v8 }
  0x1c   : > { %1115 = vmatmul.mubr.msk.bf16.gmra.mrb[4].mxu1 %vm361_vm0, %v1163_v9  ;;  %1102 = vmatprep.mubr.msk.bf16.mxu0 %vm361_vm0, %v1164_v10 }
  0x1d   : > { %1118 = vmatprep.mubr.msk.bf16.mxu1 %vm361_vm0, %v1165_v11 }
  0x23   : > { %1103 = vmatmul.mubr.msk.bf16.gmra.mrb[8].mxu0 %vm361_vm0, %v1166_v12 }
  0x24   : > { %1119 = vmatmul.mubr.msk.bf16.gmra.mrb[8].mxu1 %vm361_vm0, %v1167_v13  ;;  %1106 = vmatprep.mubr.msk.bf16.mxu0 %vm361_vm0, %v1168_v14 }
  0x25   : > { %1122 = vmatprep.mubr.msk.bf16.mxu1 %vm361_vm0, %v1169_v15 }
  0x2b   : > { %1107 = vmatmul.mubr.msk.bf16.gmra.mrb[12].mxu0 %vm361_vm0, %v1170_v16 }
  0x2c   : > { %1123 = vmatmul.mubr.msk.bf16.gmra.mrb[12].mxu1 %vm361_vm0, %v1171_v17 }
  0xe6   : > { %v1096_v19 = vpop.f32.mrb[0].mxu0 }
  0xe7   : > { %v453_v20 = vadd.f32 %v1096_v19, %v1285_v18  ;;  %v1112_v21 = vpop.f32.mrb[0].mxu1  ;;  %v444_v22 = vpop.f32.mrb[1].mxu0 }
  0xe8   : > { %v517_v23 = vadd.f32 %v1112_v21, %v1285_v18  ;;  %v445_v24 = vadd.f32 %v1285_v18, %v444_v22  ;;  %v508_v25 = vpop.f32.mrb[1].mxu1  ;;  %v1097_v26 = vpop.f32.mrb[2].mxu0 }
  0xe9   : > { %v509_v27 = vadd.f32 %v1285_v18, %v508_v25  ;;  %v456_v28 = vadd.f32 %v1097_v26, %v1285_v18  ;;  %v1113_v29 = vpop.f32.mrb[2].mxu1  ;;  %v447_v30 = vpop.f32.mrb[3].mxu0  ;;  %v573_v34 = vmax.f32 %v453_v20, 0.0 }
  0xea   : > { %v520_v31 = vadd.f32 %v1113_v29, %v1285_v18  ;;  %v448_v32 = vadd.f32 %v1285_v18, %v447_v30  ;;  %v511_v33 = vpop.f32.mrb[3].mxu1  ;;  %v589_v37 = vmax.f32 %v517_v23, 0.0  ;;  %v571_v38 = vmax.f32 %v445_v24, 0.0 }
  0xeb   : > { %v574_v35 = vmax.f32 %v456_v28, 0.0  ;;  %v512_v36 = vadd.f32 %v1285_v18, %v511_v33  ;;  %v587_v41 = vmax.f32 %v509_v27, 0.0 }
  0xec   : > { %v590_v39 = vmax.f32 %v520_v31, 0.0  ;;  %v572_v40 = vmax.f32 %v448_v32, 0.0 }
  0xed   : > { %v985_v42 = vpack.c.bf16 %v574_v35, %v573_v34  ;;  %v588_v43 = vmax.f32 %v512_v36, 0.0 }
  0xee   : > { %v1025_v44 = vpack.c.bf16 %v590_v39, %v589_v37  ;;  %v980_v45 = vpack.c.bf16 %v572_v40, %v571_v38  ;;  %v1100_v46 = vpop.f32.mrb[4].mxu0 }
  0xef   : > { %1057 = vst [vmem:[%s1300_s29 + $0x8] sm:$0xff] %v985_v42   ;;  %v1020_v47 = vpack.c.bf16 %v588_v43, %v587_v41  ;;  %v469_v48 = vadd.f32 %v1100_v46, %v1285_v18  ;;  %v1116_v49 = vpop.f32.mrb[4].mxu1  ;;  %v460_v50 = vpop.f32.mrb[5].mxu0 }
  0xf0   : > { %1065 = vst [vmem:[%s1300_s29 + $0x48] sm:$0xff] %v1025_v44   ;;  %981 = vst [vmem:[%s1300_s29] sm:$0xff] %v980_v45   ;;  %v533_v51 = vadd.f32 %v1116_v49, %v1285_v18  ;;  %v461_v52 = vadd.f32 %v1285_v18, %v460_v50  ;;  %v524_v53 = vpop.f32.mrb[5].mxu1  ;;  %v1101_v54 = vpop.f32.mrb[6].mxu0 }
  0xf1   : > { %1064 = vst [vmem:[%s1300_s29 + $0x40] sm:$0xff] %v1020_v47   ;;  %v525_v55 = vadd.f32 %v1285_v18, %v524_v53  ;;  %v472_v56 = vadd.f32 %v1101_v54, %v1285_v18  ;;  %v1117_v57 = vpop.f32.mrb[6].mxu1  ;;  %v463_v58 = vpop.f32.mrb[7].mxu0  ;;  %v577_v62 = vmax.f32 %v469_v48, 0.0 }
  0xf2   : > { %v536_v59 = vadd.f32 %v1117_v57, %v1285_v18  ;;  %v464_v60 = vadd.f32 %v1285_v18, %v463_v58  ;;  %v527_v61 = vpop.f32.mrb[7].mxu1  ;;  %v593_v1 = vmax.f32 %v533_v51, 0.0  ;;  %v575_v2 = vmax.f32 %v461_v52, 0.0 }
  0xf3   : > { %v578_v63 = vmax.f32 %v472_v56, 0.0  ;;  %v528_v0 = vadd.f32 %v1285_v18, %v527_v61  ;;  %v591_v5 = vmax.f32 %v525_v55, 0.0 }
  0xf4   : > { %v594_v3 = vmax.f32 %v536_v59, 0.0  ;;  %v576_v4 = vmax.f32 %v464_v60, 0.0 }
  0xf5   : > { %v995_v6 = vpack.c.bf16 %v578_v63, %v577_v62  ;;  %v592_v7 = vmax.f32 %v528_v0, 0.0 }
  0xf6   : > { %v1035_v8 = vpack.c.bf16 %v594_v3, %v593_v1  ;;  %v990_v9 = vpack.c.bf16 %v576_v4, %v575_v2  ;;  %v1104_v10 = vpop.f32.mrb[8].mxu0 }
  0xf7   : > { %1059 = vst [vmem:[%s1300_s29 + $0x18] sm:$0xff] %v995_v6   ;;  %v1030_v11 = vpack.c.bf16 %v592_v7, %v591_v5  ;;  %v485_v12 = vadd.f32 %v1104_v10, %v1285_v18  ;;  %v1120_v13 = vpop.f32.mrb[8].mxu1  ;;  %v476_v14 = vpop.f32.mrb[9].mxu0 }
  0xf8   : > { %1067 = vst [vmem:[%s1300_s29 + $0x58] sm:$0xff] %v1035_v8   ;;  %1058 = vst [vmem:[%s1300_s29 + $0x10] sm:$0xff] %v990_v9   ;;  %v549_v15 = vadd.f32 %v1120_v13, %v1285_v18  ;;  %v477_v16 = vadd.f32 %v1285_v18, %v476_v14  ;;  %v540_v17 = vpop.f32.mrb[9].mxu1  ;;  %v1105_v19 = vpop.f32.mrb[10].mxu0 }
  0xf9   : > { %1066 = vst [vmem:[%s1300_s29 + $0x50] sm:$0xff] %v1030_v11   ;;  %v541_v20 = vadd.f32 %v1285_v18, %v540_v17  ;;  %v488_v21 = vadd.f32 %v1105_v19, %v1285_v18  ;;  %v1121_v22 = vpop.f32.mrb[10].mxu1  ;;  %v479_v23 = vpop.f32.mrb[11].mxu0  ;;  %v581_v27 = vmax.f32 %v485_v12, 0.0 }
  0xfa   : > { %v552_v24 = vadd.f32 %v1121_v22, %v1285_v18  ;;  %v480_v25 = vadd.f32 %v1285_v18, %v479_v23  ;;  %v543_v26 = vpop.f32.mrb[11].mxu1  ;;  %v597_v30 = vmax.f32 %v549_v15, 0.0  ;;  %v579_v31 = vmax.f32 %v477_v16, 0.0 }
  0xfb   : > { %v582_v28 = vmax.f32 %v488_v21, 0.0  ;;  %v544_v29 = vadd.f32 %v1285_v18, %v543_v26  ;;  %v595_v34 = vmax.f32 %v541_v20, 0.0 }
  0xfc   : > { %v598_v32 = vmax.f32 %v552_v24, 0.0  ;;  %v580_v33 = vmax.f32 %v480_v25, 0.0 }
  0xfd   : > { %v1005_v35 = vpack.c.bf16 %v582_v28, %v581_v27  ;;  %v596_v36 = vmax.f32 %v544_v29, 0.0 }
  0xfe   : > { %v1045_v37 = vpack.c.bf16 %v598_v32, %v597_v30  ;;  %v1000_v38 = vpack.c.bf16 %v580_v33, %v579_v31  ;;  %v1108_v39 = vpop.f32.mrb[12].mxu0 }
  0xff   : > { %1061 = vst [vmem:[%s1300_s29 + $0x28] sm:$0xff] %v1005_v35   ;;  %v1040_v40 = vpack.c.bf16 %v596_v36, %v595_v34  ;;  %v501_v41 = vadd.f32 %v1108_v39, %v1285_v18  ;;  %v1124_v42 = vpop.f32.mrb[12].mxu1  ;;  %v492_v43 = vpop.f32.mrb[13].mxu0 }
 0x100   : > { %1069 = vst [vmem:[%s1300_s29 + $0x68] sm:$0xff] %v1045_v37   ;;  %1060 = vst [vmem:[%s1300_s29 + $0x20] sm:$0xff] %v1000_v38   ;;  %v565_v44 = vadd.f32 %v1124_v42, %v1285_v18  ;;  %v493_v45 = vadd.f32 %v1285_v18, %v492_v43  ;;  %v556_v46 = vpop.f32.mrb[13].mxu1  ;;  %v1109_v47 = vpop.f32.mrb[14].mxu0 }
 0x101   : > { %1068 = vst [vmem:[%s1300_s29 + $0x60] sm:$0xff] %v1040_v40   ;;  %v557_v48 = vadd.f32 %v1285_v18, %v556_v46  ;;  %v504_v49 = vadd.f32 %v1109_v47, %v1285_v18  ;;  %v1125_v50 = vpop.f32.mrb[14].mxu1  ;;  %v495_v51 = vpop.f32.mrb[15].mxu0  ;;  %v585_v55 = vmax.f32 %v501_v41, 0.0 }
 0x102   : > { %v568_v52 = vadd.f32 %v1125_v50, %v1285_v18  ;;  %v496_v53 = vadd.f32 %v1285_v18, %v495_v51  ;;  %v559_v54 = vpop.f32.mrb[15].mxu1  ;;  %v601_v58 = vmax.f32 %v565_v44, 0.0  ;;  %v583_v59 = vmax.f32 %v493_v45, 0.0 }
 0x103   : > { %v586_v56 = vmax.f32 %v504_v49, 0.0  ;;  %v560_v57 = vadd.f32 %v1285_v18, %v559_v54  ;;  %v599_v62 = vmax.f32 %v557_v48, 0.0 }
 0x104   : > { %v602_v60 = vmax.f32 %v568_v52, 0.0  ;;  %v584_v61 = vmax.f32 %v496_v53, 0.0 }
 0x105   : > { %v1015_v63 = vpack.c.bf16 %v586_v56, %v585_v55  ;;  %v600_v0 = vmax.f32 %v560_v57, 0.0 }
 0x106   : > { %v1055_v1 = vpack.c.bf16 %v602_v60, %v601_v58  ;;  %v1010_v2 = vpack.c.bf16 %v584_v61, %v583_v59 }
 0x107   : > { %1063 = vst [vmem:[%s1300_s29 + $0x38] sm:$0xff] %v1015_v63   ;;  %v1050_v3 = vpack.c.bf16 %v600_v0, %v599_v62 }
 0x108   : > { %1071 = vst [vmem:[%s1300_s29 + $0x78] sm:$0xff] %v1055_v1   ;;  %1062 = vst [vmem:[%s1300_s29 + $0x30] sm:$0xff] %v1010_v2  }
 0x109   : > { %1070 = vst [vmem:[%s1300_s29 + $0x70] sm:$0xff] %v1050_v3  }
 0x10a PF: > { %s13_s14 = sadd.s32 1, %s1194_s14   ;;  %s1355_s12 = smov %s1190_s13 }
 0x10b   : > { %p10_p5 = scmp.ge.s32.totalorder %s13_s14, 4   ;;  %s1356_s13 = smov %s1358_s15 }
 0x10d   :  { %12 = sbr.rel (!%p10_p5) target bundleno = 2 (0x2), region = 68 }

// kernel: deeplab_forward.33
= control target key start
LH: loop header
LB: loop body
LE: loop exit
PB: predicated region body
PF: predicated region fallthrough
CT: control target
= control target key end

     0   :  { %s1169_s12 = smov 0   ;;  %s1171_s13 = smov 0   ;;  %s1301_s0 = inlined_call_operand.vmem [shape: bf16[512,16], index: 0, kind: input, shape index: {}]   ;;  %s1302_s1 = inlined_call_operand.vmem [shape: bf16[16,128], index: 1, kind: input, shape index: {}]   ;;  %s1303_s2 = inlined_call_operand.vmem [shape: f32[1,128], index: 2, kind: input, shape index: {}]   ;;  %s1304_s3 = inlined_call_operand.vmem [shape: bf16[512,128], index: 3, kind: output, shape index: {}]  }
   0x1   :  { %s1173_s14 = smov 0  }
   0x2 LB: > { %s25_s15 = sadd.s32 1, %s1143_s13  ;;  %p831_p0 = scmp.ge.s32.totalorder %s1147_s14, 1  ;;  %s1147_s14 = sphi %s1173_s14, %s13_s14   ;;  %s1143_s13 = sphi %s1171_s13, %s1306_s13   ;;  %s1139_s12 = sphi %s1169_s12, %s1305_s12  }
   0x3   : > { %p27_p1 = scmp.ge.s32.totalorder %s25_s15, 2  ;;  %p169_p2 = scmp.lt.s32.totalorder %s1147_s14, 3 }
   0x5   : > { %s1308_s15 = smov (%p27_p1, %s25_s15), 0  ;;  %p170_p3 = pnand %p831_p0, %p169_p2 }
   0x6   : > { %v1108_v0 = vld [vmem:[%s1302_s1] sm:$0xff] (!%p170_p3)   ;;  %s832_s18 = sshll.u32 (!%p170_p3), %s1139_s12, 5  ;;  %vm353_vm0 = vcmask (!%p170_p3), 130048  }
   0x7   : > { %173 = sbr.rel (%p170_p3) target bundleno = 264 (0x108), region = 32  ;;  %p204_p4 = scmp.lt.s32.totalorder (!%p170_p3), %s832_s18, 63  ;;  %1048 = vmatprep.subr.bf16.mxu0 (!%p170_p3), %v1108_v0  ;;  %1082 = vmatprep.subr.bf16.mxu1 (!%p170_p3), %v1108_v0  ;;  %v1235_v18 = vld [vmem:[%s1303_s2] ss:$0 sm:$0xff] (!%p170_p3) }
   0x8   : > { %1049 = vmatpush3.bf16.msra.mxu0 (!%p170_p3), %v1108_v0  ;;  %1083 = vmatpush3.bf16.msra.mxu1 (!%p170_p3), %v1108_v0 }
   0xe   : > { %s1310_s18 = smov (!%p204_p4, %s832_s18), 63 }
   0xf   : > { %s833_s19 = sshll.u32 %s1310_s18, 2 }
  0x10   : > { %s1198_s22 = scalar_lea.vmem %s1301_s0, %s833_s19  ;;  %s1246_s27 = scalar_lea.vmem %s1304_s3, %s833_s19 }
  0x11   : > { %v1109_v1 = vld [vmem:[%s1198_s22] sm:$0xff]   ;;  %v1111_v3 = vld [vmem:[%s1198_s22 + $0x8] sm:$0xff]   ;;  %v1113_v5 = vld [vmem:[%s1198_s22 + $0x10] sm:$0xff]  }
  0x12   : > { %v1110_v2 = vld [vmem:[%s1198_s22 + $0x40] sm:$0xff]   ;;  %1050 = vmatprep.mubr.msk.bf16.mxu0 %vm353_vm0, %v1109_v1  ;;  %v1112_v4 = vld [vmem:[%s1198_s22 + $0x48] sm:$0xff]   ;;  %v1114_v6 = vld [vmem:[%s1198_s22 + $0x50] sm:$0xff]  }
  0x13   : > { %1066 = vmatprep.mubr.msk.bf16.mxu1 %vm353_vm0, %v1110_v2  ;;  %1051 = vmatmul.mubr.msk.bf16.vlgmr.msra.gmra.mrb[0].mxu0 %vm353_vm0, %v1111_v3  ;;  %v1115_v7 = vld [vmem:[%s1198_s22 + $0x18] sm:$0xff]   ;;  %v1117_v9 = vld [vmem:[%s1198_s22 + $0x20] sm:$0xff]   ;;  %v1119_v11 = vld [vmem:[%s1198_s22 + $0x28] sm:$0xff]  }
  0x14   : > { %1067 = vmatmul.mubr.msk.bf16.vlgmr.msra.gmra.mrb[0].mxu1 %vm353_vm0, %v1112_v4  ;;  %1054 = vmatprep.mubr.msk.bf16.mxu0 %vm353_vm0, %v1113_v5  ;;  %v1116_v8 = vld [vmem:[%s1198_s22 + $0x58] sm:$0xff]   ;;  %v1118_v10 = vld [vmem:[%s1198_s22 + $0x60] sm:$0xff]   ;;  %v1120_v12 = vld [vmem:[%s1198_s22 + $0x68] sm:$0xff]  }
  0x15   : > { %1070 = vmatprep.mubr.msk.bf16.mxu1 %vm353_vm0, %v1114_v6  ;;  %v1121_v13 = vld [vmem:[%s1198_s22 + $0x30] sm:$0xff]   ;;  %v1123_v15 = vld [vmem:[%s1198_s22 + $0x38] sm:$0xff]  }
  0x16   : > { %v1122_v14 = vld [vmem:[%s1198_s22 + $0x70] sm:$0xff]   ;;  %v1124_v16 = vld [vmem:[%s1198_s22 + $0x78] sm:$0xff]  }
  0x1b   : > { %1055 = vmatmul.mubr.msk.bf16.gmra.mrb[4].mxu0 %vm353_vm0, %v1115_v7 }
  0x1c   : > { %1071 = vmatmul.mubr.msk.bf16.gmra.mrb[4].mxu1 %vm353_vm0, %v1116_v8  ;;  %1058 = vmatprep.mubr.msk.bf16.mxu0 %vm353_vm0, %v1117_v9 }
  0x1d   : > { %1074 = vmatprep.mubr.msk.bf16.mxu1 %vm353_vm0, %v1118_v10 }
  0x23   : > { %1059 = vmatmul.mubr.msk.bf16.gmra.mrb[8].mxu0 %vm353_vm0, %v1119_v11 }
  0x24   : > { %1075 = vmatmul.mubr.msk.bf16.gmra.mrb[8].mxu1 %vm353_vm0, %v1120_v12  ;;  %1062 = vmatprep.mubr.msk.bf16.mxu0 %vm353_vm0, %v1121_v13 }
  0x25   : > { %1078 = vmatprep.mubr.msk.bf16.mxu1 %vm353_vm0, %v1122_v14 }
  0x2b   : > { %1063 = vmatmul.mubr.msk.bf16.gmra.mrb[12].mxu0 %vm353_vm0, %v1123_v15 }
  0x2c   : > { %1079 = vmatmul.mubr.msk.bf16.gmra.mrb[12].mxu1 %vm353_vm0, %v1124_v16 }
  0xe6   : > { %v1052_v17 = vpop.f32.mrb[0].mxu0 }
  0xe7   : > { %v1068_v19 = vpop.f32.mrb[0].mxu1  ;;  %v436_v20 = vpop.f32.mrb[1].mxu0  ;;  %v445_v23 = vadd.f32 %v1052_v17, %v1235_v18 }
  0xe8   : > { %v500_v21 = vpop.f32.mrb[1].mxu1  ;;  %v1053_v22 = vpop.f32.mrb[2].mxu0  ;;  %v509_v27 = vadd.f32 %v1068_v19, %v1235_v18  ;;  %v437_v28 = vadd.f32 %v1235_v18, %v436_v20 }
  0xe9   : > { %v448_v24 = vadd.f32 %v1053_v22, %v1235_v18  ;;  %v1069_v25 = vpop.f32.mrb[2].mxu1  ;;  %v439_v26 = vpop.f32.mrb[3].mxu0  ;;  %v501_v32 = vadd.f32 %v1235_v18, %v500_v21 }
  0xea   : > { %v512_v29 = vadd.f32 %v1069_v25, %v1235_v18  ;;  %v440_v30 = vadd.f32 %v1235_v18, %v439_v26  ;;  %v503_v31 = vpop.f32.mrb[3].mxu1 }
  0xeb   : > { %v944_v33 = vpack.c.bf16 %v448_v24, %v445_v23  ;;  %v504_v34 = vadd.f32 %v1235_v18, %v503_v31 }
  0xec   : > { %v984_v35 = vpack.c.bf16 %v512_v29, %v509_v27  ;;  %v939_v36 = vpack.c.bf16 %v440_v30, %v437_v28 }
  0xed   : > { %1016 = vst [vmem:[%s1246_s27 + $0x8] sm:$0xff] %v944_v33   ;;  %v979_v37 = vpack.c.bf16 %v504_v34, %v501_v32 }
  0xee   : > { %1024 = vst [vmem:[%s1246_s27 + $0x48] sm:$0xff] %v984_v35   ;;  %940 = vst [vmem:[%s1246_s27] sm:$0xff] %v939_v36   ;;  %v1056_v38 = vpop.f32.mrb[4].mxu0 }
  0xef   : > { %1023 = vst [vmem:[%s1246_s27 + $0x40] sm:$0xff] %v979_v37   ;;  %v1072_v39 = vpop.f32.mrb[4].mxu1  ;;  %v452_v40 = vpop.f32.mrb[5].mxu0  ;;  %v461_v43 = vadd.f32 %v1056_v38, %v1235_v18 }
  0xf0   : > { %v516_v41 = vpop.f32.mrb[5].mxu1  ;;  %v1057_v42 = vpop.f32.mrb[6].mxu0  ;;  %v525_v47 = vadd.f32 %v1072_v39, %v1235_v18  ;;  %v453_v48 = vadd.f32 %v1235_v18, %v452_v40 }
  0xf1   : > { %v464_v44 = vadd.f32 %v1057_v42, %v1235_v18  ;;  %v1073_v45 = vpop.f32.mrb[6].mxu1  ;;  %v455_v46 = vpop.f32.mrb[7].mxu0  ;;  %v517_v52 = vadd.f32 %v1235_v18, %v516_v41 }
  0xf2   : > { %v528_v49 = vadd.f32 %v1073_v45, %v1235_v18  ;;  %v456_v50 = vadd.f32 %v1235_v18, %v455_v46  ;;  %v519_v51 = vpop.f32.mrb[7].mxu1 }
  0xf3   : > { %v954_v53 = vpack.c.bf16 %v464_v44, %v461_v43  ;;  %v520_v54 = vadd.f32 %v1235_v18, %v519_v51 }
  0xf4   : > { %v994_v55 = vpack.c.bf16 %v528_v49, %v525_v47  ;;  %v949_v56 = vpack.c.bf16 %v456_v50, %v453_v48 }
  0xf5   : > { %1018 = vst [vmem:[%s1246_s27 + $0x18] sm:$0xff] %v954_v53   ;;  %v989_v57 = vpack.c.bf16 %v520_v54, %v517_v52 }
  0xf6   : > { %1026 = vst [vmem:[%s1246_s27 + $0x58] sm:$0xff] %v994_v55   ;;  %1017 = vst [vmem:[%s1246_s27 + $0x10] sm:$0xff] %v949_v56   ;;  %v1060_v58 = vpop.f32.mrb[8].mxu0 }
  0xf7   : > { %1025 = vst [vmem:[%s1246_s27 + $0x50] sm:$0xff] %v989_v57   ;;  %v1076_v59 = vpop.f32.mrb[8].mxu1  ;;  %v468_v60 = vpop.f32.mrb[9].mxu0  ;;  %v477_v63 = vadd.f32 %v1060_v58, %v1235_v18 }
  0xf8   : > { %v532_v61 = vpop.f32.mrb[9].mxu1  ;;  %v1061_v62 = vpop.f32.mrb[10].mxu0  ;;  %v541_v3 = vadd.f32 %v1076_v59, %v1235_v18  ;;  %v469_v4 = vadd.f32 %v1235_v18, %v468_v60 }
  0xf9   : > { %v480_v0 = vadd.f32 %v1061_v62, %v1235_v18  ;;  %v1077_v1 = vpop.f32.mrb[10].mxu1  ;;  %v471_v2 = vpop.f32.mrb[11].mxu0  ;;  %v533_v8 = vadd.f32 %v1235_v18, %v532_v61 }
  0xfa   : > { %v544_v5 = vadd.f32 %v1077_v1, %v1235_v18  ;;  %v472_v6 = vadd.f32 %v1235_v18, %v471_v2  ;;  %v535_v7 = vpop.f32.mrb[11].mxu1 }
  0xfb   : > { %v964_v9 = vpack.c.bf16 %v480_v0, %v477_v63  ;;  %v536_v10 = vadd.f32 %v1235_v18, %v535_v7 }
  0xfc   : > { %v1004_v11 = vpack.c.bf16 %v544_v5, %v541_v3  ;;  %v959_v12 = vpack.c.bf16 %v472_v6, %v469_v4 }
  0xfd   : > { %1020 = vst [vmem:[%s1246_s27 + $0x28] sm:$0xff] %v964_v9   ;;  %v999_v13 = vpack.c.bf16 %v536_v10, %v533_v8 }
  0xfe   : > { %1028 = vst [vmem:[%s1246_s27 + $0x68] sm:$0xff] %v1004_v11   ;;  %1019 = vst [vmem:[%s1246_s27 + $0x20] sm:$0xff] %v959_v12   ;;  %v1064_v14 = vpop.f32.mrb[12].mxu0 }
  0xff   : > { %1027 = vst [vmem:[%s1246_s27 + $0x60] sm:$0xff] %v999_v13   ;;  %v1080_v15 = vpop.f32.mrb[12].mxu1  ;;  %v484_v16 = vpop.f32.mrb[13].mxu0  ;;  %v493_v20 = vadd.f32 %v1064_v14, %v1235_v18 }
 0x100   : > { %v548_v17 = vpop.f32.mrb[13].mxu1  ;;  %v1065_v19 = vpop.f32.mrb[14].mxu0  ;;  %v557_v24 = vadd.f32 %v1080_v15, %v1235_v18  ;;  %v485_v25 = vadd.f32 %v1235_v18, %v484_v16 }
 0x101   : > { %v496_v21 = vadd.f32 %v1065_v19, %v1235_v18  ;;  %v1081_v22 = vpop.f32.mrb[14].mxu1  ;;  %v487_v23 = vpop.f32.mrb[15].mxu0  ;;  %v549_v29 = vadd.f32 %v1235_v18, %v548_v17 }
 0x102   : > { %v560_v26 = vadd.f32 %v1081_v22, %v1235_v18  ;;  %v488_v27 = vadd.f32 %v1235_v18, %v487_v23  ;;  %v551_v28 = vpop.f32.mrb[15].mxu1 }
 0x103   : > { %v974_v30 = vpack.c.bf16 %v496_v21, %v493_v20  ;;  %v552_v31 = vadd.f32 %v1235_v18, %v551_v28 }
 0x104   : > { %v1014_v32 = vpack.c.bf16 %v560_v26, %v557_v24  ;;  %v969_v33 = vpack.c.bf16 %v488_v27, %v485_v25 }
 0x105   : > { %1022 = vst [vmem:[%s1246_s27 + $0x38] sm:$0xff] %v974_v30   ;;  %v1009_v34 = vpack.c.bf16 %v552_v31, %v549_v29 }
 0x106   : > { %1030 = vst [vmem:[%s1246_s27 + $0x78] sm:$0xff] %v1014_v32   ;;  %1021 = vst [vmem:[%s1246_s27 + $0x30] sm:$0xff] %v969_v33  }
 0x107   : > { %1029 = vst [vmem:[%s1246_s27 + $0x70] sm:$0xff] %v1009_v34  }
 0x108 PF: > { %s13_s14 = sadd.s32 1, %s1147_s14   ;;  %s1305_s12 = smov %s1143_s13 }
 0x109   : > { %p10_p5 = scmp.ge.s32.totalorder %s13_s14, 4   ;;  %s1306_s13 = smov %s1308_s15 }
 0x10b   :  { %12 = sbr.rel (!%p10_p5) target bundleno = 2 (0x2), region = 68 }

// kernel: deeplab_forward.39
= control target key start
LH: loop header
LB: loop body
LE: loop exit
PB: predicated region body
PF: predicated region fallthrough
CT: control target
= control target key end

     0   :  { %v569_v0 = vmov 0   ;;  %vm182_vm0 = vcmask 130048   ;;  %s718_s1 = inlined_call_operand.vmem [shape: bf16[144,128], index: 1, kind: input, shape index: {}]   ;;  %s719_s0 = inlined_call_operand.vmem [shape: bf16[128,144], index: 0, kind: input, shape index: {}]   ;;  %s720_s2 = inlined_call_operand.vmem [shape: f32[1,128], index: 2, kind: input, shape index: {}]   ;;  %s721_s3 = inlined_call_operand.vmem [shape: bf16[128,128], index: 3, kind: output, shape index: {}]  }
   0x1   :  { %207 = vmatprep.subr.bf16.mxu0 %v569_v0  ;;  %517 = vmatprep.subr.bf16.mxu1 %v569_v0  ;;  %v536_v1 = vld [vmem:[%s718_s1] sm:$0xff]   ;;  %v537_v2 = vld [vmem:[%s718_s1 + $0x8] sm:$0xff]   ;;  %v538_v3 = vld [vmem:[%s718_s1 + $0x10] sm:$0xff]  }
   0x2   :  { %208 = vmatpush1.bf16.msra.mxu0 %v536_v1  ;;  %526 = vmatpush1.bf16.msra.mxu1 %v536_v1  ;;  %v539_v4 = vld [vmem:[%s718_s1 + $0x18] sm:$0xff]   ;;  %v547_v5 = vld [vmem:[%s719_s0 + $0x4] ss:$8 sps:$4 sm:$0xff]   ;;  %v542_v9 = vld [vmem:[%s718_s1 + $0x30] sm:$0xff]  }
   0x3   :  { %209 = vmatprep.subr.bf16.mxu0 %v569_v0  ;;  %518 = vmatprep.subr.bf16.mxu1 %v569_v0  ;;  %v550_v6 = vld [vmem:[%s719_s0 + $0x44] ss:$8 sps:$4 sm:$0xff]   ;;  %v543_v10 = vld [vmem:[%s718_s1 + $0x38] sm:$0xff]   ;;  %v545_v12 = vld [vmem:[%s719_s0] ss:$8 sps:$4 sm:$0xff]  }
   0x4   :  { %430 = vmatprep.mubr.msk.bf16.mxu0 %vm182_vm0, %v547_v5  ;;  %434 = vmatprep.mubr.msk.bf16.mxu1 %vm182_vm0, %v550_v6  ;;  %v540_v7 = vld [vmem:[%s718_s1 + $0x20] sm:$0xff]   ;;  %v541_v8 = vld [vmem:[%s718_s1 + $0x28] sm:$0xff]   ;;  %v551_v14 = vld [vmem:[%s719_s0 + $0x14] ss:$8 sps:$4 sm:$0xff]  }
   0x5   :  { %v544_v11 = vld [vmem:[%s718_s1 + $0x40] sm:$0xff]   ;;  %v553_v15 = vld [vmem:[%s719_s0 + $0x54] ss:$8 sps:$4 sm:$0xff]   ;;  %v555_v16 = vld [vmem:[%s719_s0 + $0x10] ss:$8 sps:$4 sm:$0xff]  }
   0x6   :  { %210 = vmatpush1.bf16.msra.mxu0 %v537_v2  ;;  %527 = vmatpush1.bf16.msra.mxu1 %v537_v2  ;;  %v548_v13 = vld [vmem:[%s719_s0 + $0x40] ss:$8 sps:$4 sm:$0xff]   ;;  %v556_v17 = vld [vmem:[%s719_s0 + $0x50] ss:$8 sps:$4 sm:$0xff]   ;;  %v557_v18 = vld [vmem:[%s719_s0 + $0x24] ss:$8 sps:$4 sm:$0xff]  }
   0x7   :  { %211 = vmatprep.subr.bf16.mxu0 %v569_v0  ;;  %519 = vmatprep.subr.bf16.mxu1 %v569_v0  ;;  %v559_v19 = vld [vmem:[%s719_s0 + $0x64] ss:$8 sps:$4 sm:$0xff]   ;;  %v561_v20 = vld [vmem:[%s719_s0 + $0x20] ss:$8 sps:$4 sm:$0xff]   ;;  %v563_v22 = vld [vmem:[%s719_s0 + $0x34] ss:$8 sps:$4 sm:$0xff]  }
   0x8   :  { %v562_v21 = vld [vmem:[%s719_s0 + $0x60] ss:$8 sps:$4 sm:$0xff]   ;;  %v565_v23 = vld [vmem:[%s719_s0 + $0x74] ss:$8 sps:$4 sm:$0xff]   ;;  %v567_v24 = vld [vmem:[%s719_s0 + $0x30] ss:$8 sps:$4 sm:$0xff]  }
   0x9   :  { %v568_v25 = vld [vmem:[%s719_s0 + $0x70] ss:$8 sps:$4 sm:$0xff]   ;;  %v676_v26 = vld [vmem:[%s720_s2] ss:$0 sm:$0xff] }
   0xa   :  { %212 = vmatpush1.bf16.msra.mxu0 %v538_v3  ;;  %528 = vmatpush1.bf16.msra.mxu1 %v538_v3 }
   0xb   :  { %213 = vmatprep.subr.bf16.mxu0 %v569_v0  ;;  %520 = vmatprep.subr.bf16.mxu1 %v569_v0 }
   0xe   :  { %214 = vmatpush1.bf16.msra.mxu0 %v539_v4  ;;  %529 = vmatpush1.bf16.msra.mxu1 %v539_v4 }
   0xf   :  { %215 = vmatprep.subr.bf16.mxu0 %v569_v0  ;;  %521 = vmatprep.subr.bf16.mxu1 %v569_v0 }
  0x12   :  { %216 = vmatpush1.bf16.msra.mxu0 %v540_v7  ;;  %530 = vmatpush1.bf16.msra.mxu1 %v540_v7 }
  0x13   :  { %217 = vmatprep.subr.bf16.mxu0 %v569_v0  ;;  %522 = vmatprep.subr.bf16.mxu1 %v569_v0 }
  0x16   :  { %218 = vmatpush1.bf16.msra.mxu0 %v541_v8  ;;  %531 = vmatpush1.bf16.msra.mxu1 %v541_v8 }
  0x17   :  { %219 = vmatprep.subr.bf16.mxu0 %v569_v0  ;;  %523 = vmatprep.subr.bf16.mxu1 %v569_v0 }
  0x1a   :  { %220 = vmatpush1.bf16.msra.mxu0 %v542_v9  ;;  %532 = vmatpush1.bf16.msra.mxu1 %v542_v9 }
  0x1b   :  { %221 = vmatprep.subr.bf16.mxu0 %v569_v0  ;;  %524 = vmatprep.subr.bf16.mxu1 %v569_v0 }
  0x1e   :  { %222 = vmatpush1.bf16.msra.mxu0 %v543_v10  ;;  %533 = vmatpush1.bf16.msra.mxu1 %v543_v10 }
  0x1f   :  { %223 = vmatprep.subr.bf16.mxu0 %v569_v0  ;;  %525 = vmatprep.subr.bf16.mxu1 %v569_v0 }
  0x22   :  { %224 = vmatpush1.bf16.msra.mxu0 %v544_v11  ;;  %534 = vmatpush1.bf16.msra.mxu1 %v544_v11 }
  0x25   :  { %240 = vmatmul.mubr.bf16.vlgmr.msra.gmra.mrb[0].mxu0 %v545_v12  ;;  %272 = vmatmul.mubr.bf16.vlgmr.msra.gmra.mrb[0].mxu1 %v548_v13 }
  0x26   :  { %431 = vmatprep.mubr.msk.bf16.mxu0 %vm182_vm0, %v551_v14  ;;  %435 = vmatprep.mubr.msk.bf16.mxu1 %vm182_vm0, %v553_v15 }
  0x2d   :  { %248 = vmatmul.mubr.bf16.gmra.mrb[4].mxu0 %v555_v16  ;;  %280 = vmatmul.mubr.bf16.gmra.mrb[4].mxu1 %v556_v17 }
  0x2e   :  { %432 = vmatprep.mubr.msk.bf16.mxu0 %vm182_vm0, %v557_v18  ;;  %436 = vmatprep.mubr.msk.bf16.mxu1 %vm182_vm0, %v559_v19 }
  0x35   :  { %256 = vmatmul.mubr.bf16.gmra.mrb[8].mxu0 %v561_v20  ;;  %288 = vmatmul.mubr.bf16.gmra.mrb[8].mxu1 %v562_v21 }
  0x36   :  { %433 = vmatprep.mubr.msk.bf16.mxu0 %vm182_vm0, %v563_v22  ;;  %437 = vmatprep.mubr.msk.bf16.mxu1 %vm182_vm0, %v565_v23 }
  0x3d   :  { %264 = vmatmul.mubr.bf16.gmra.mrb[12].mxu0 %v567_v24  ;;  %296 = vmatmul.mubr.bf16.gmra.mrb[12].mxu1 %v568_v25 }
  0xf8   :  { %v241_v27 = vpop.f32.mrb[0].mxu0  ;;  %v273_v28 = vpop.f32.mrb[0].mxu1 }
  0xf9   :  { %v242_v29 = vadd.f32 %v676_v26, %v241_v27  ;;  %v274_v30 = vadd.f32 %v676_v26, %v273_v28  ;;  %v243_v31 = vpop.f32.mrb[1].mxu0  ;;  %v275_v32 = vpop.f32.mrb[1].mxu1 }
  0xfa   :  { %v244_v33 = vpop.f32.mrb[2].mxu0  ;;  %v276_v34 = vpop.f32.mrb[2].mxu1 }
  0xfb   :  { %v245_v35 = vadd.f32 %v676_v26, %v244_v33  ;;  %v277_v36 = vadd.f32 %v676_v26, %v276_v34  ;;  %v246_v37 = vpop.f32.mrb[3].mxu0  ;;  %v278_v38 = vpop.f32.mrb[3].mxu1  ;;  %v304_v39 = vmax.f32 %v242_v29, 0.0  ;;  %v312_v40 = vmax.f32 %v274_v30, 0.0 }
  0xfd   :  { %v305_v41 = vmax.f32 %v245_v35, 0.0  ;;  %v313_v42 = vmax.f32 %v277_v36, 0.0 }
  0xff   :  { %v473_v43 = vpack.c.bf16 %v305_v41, %v304_v39  ;;  %v493_v44 = vpack.c.bf16 %v313_v42, %v312_v40 }
 0x100   :  { %v249_v45 = vpop.f32.mrb[4].mxu0  ;;  %v281_v46 = vpop.f32.mrb[4].mxu1 }
 0x101   :  { %474 = vst [vmem:[%s721_s3] sm:$0xff] %v473_v43   ;;  %513 = vst [vmem:[%s721_s3 + $0x20] sm:$0xff] %v493_v44   ;;  %v250_v47 = vadd.f32 %v676_v26, %v249_v45  ;;  %v282_v48 = vadd.f32 %v676_v26, %v281_v46  ;;  %v251_v49 = vpop.f32.mrb[5].mxu0  ;;  %v283_v50 = vpop.f32.mrb[5].mxu1 }
 0x102   :  { %v252_v51 = vpop.f32.mrb[6].mxu0  ;;  %v284_v52 = vpop.f32.mrb[6].mxu1 }
 0x103   :  { %v253_v53 = vadd.f32 %v676_v26, %v252_v51  ;;  %v285_v54 = vadd.f32 %v676_v26, %v284_v52  ;;  %v254_v55 = vpop.f32.mrb[7].mxu0  ;;  %v286_v56 = vpop.f32.mrb[7].mxu1  ;;  %v306_v57 = vmax.f32 %v250_v47, 0.0  ;;  %v314_v58 = vmax.f32 %v282_v48, 0.0 }
 0x105   :  { %v307_v59 = vmax.f32 %v253_v53, 0.0  ;;  %v315_v60 = vmax.f32 %v285_v54, 0.0 }
 0x107   :  { %v478_v61 = vpack.c.bf16 %v307_v59, %v306_v57  ;;  %v498_v62 = vpack.c.bf16 %v315_v60, %v314_v58 }
 0x108   :  { %v257_v63 = vpop.f32.mrb[8].mxu0  ;;  %v289_v0 = vpop.f32.mrb[8].mxu1 }
 0x109   :  { %510 = vst [vmem:[%s721_s3 + $0x8] sm:$0xff] %v478_v61   ;;  %514 = vst [vmem:[%s721_s3 + $0x28] sm:$0xff] %v498_v62   ;;  %v258_v1 = vadd.f32 %v676_v26, %v257_v63  ;;  %v290_v2 = vadd.f32 %v676_v26, %v289_v0  ;;  %v259_v3 = vpop.f32.mrb[9].mxu0  ;;  %v291_v4 = vpop.f32.mrb[9].mxu1 }
 0x10a   :  { %v260_v5 = vpop.f32.mrb[10].mxu0  ;;  %v292_v6 = vpop.f32.mrb[10].mxu1 }
 0x10b   :  { %v261_v7 = vadd.f32 %v676_v26, %v260_v5  ;;  %v293_v8 = vadd.f32 %v676_v26, %v292_v6  ;;  %v262_v9 = vpop.f32.mrb[11].mxu0  ;;  %v294_v10 = vpop.f32.mrb[11].mxu1  ;;  %v308_v11 = vmax.f32 %v258_v1, 0.0  ;;  %v316_v12 = vmax.f32 %v290_v2, 0.0 }
 0x10d   :  { %v309_v13 = vmax.f32 %v261_v7, 0.0  ;;  %v317_v14 = vmax.f32 %v293_v8, 0.0 }
 0x10f   :  { %v483_v15 = vpack.c.bf16 %v309_v13, %v308_v11  ;;  %v503_v16 = vpack.c.bf16 %v317_v14, %v316_v12 }
 0x110   :  { %v265_v17 = vpop.f32.mrb[12].mxu0  ;;  %v297_v18 = vpop.f32.mrb[12].mxu1 }
 0x111   :  { %511 = vst [vmem:[%s721_s3 + $0x10] sm:$0xff] %v483_v15   ;;  %515 = vst [vmem:[%s721_s3 + $0x30] sm:$0xff] %v503_v16   ;;  %v266_v19 = vadd.f32 %v676_v26, %v265_v17  ;;  %v298_v20 = vadd.f32 %v676_v26, %v297_v18  ;;  %v267_v21 = vpop.f32.mrb[13].mxu0  ;;  %v299_v22 = vpop.f32.mrb[13].mxu1 }
 0x112   :  { %v268_v23 = vpop.f32.mrb[14].mxu0  ;;  %v300_v24 = vpop.f32.mrb[14].mxu1 }
 0x113   :  { %v269_v25 = vadd.f32 %v676_v26, %v268_v23  ;;  %v301_v27 = vadd.f32 %v676_v26, %v300_v24  ;;  %v270_v28 = vpop.f32.mrb[15].mxu0  ;;  %v302_v29 = vpop.f32.mrb[15].mxu1  ;;  %v310_v30 = vmax.f32 %v266_v19, 0.0  ;;  %v318_v31 = vmax.f32 %v298_v20, 0.0 }
 0x115   :  { %v311_v32 = vmax.f32 %v269_v25, 0.0  ;;  %v319_v33 = vmax.f32 %v301_v27, 0.0 }
 0x117   :  { %v488_v34 = vpack.c.bf16 %v311_v32, %v310_v30  ;;  %v508_v35 = vpack.c.bf16 %v319_v33, %v318_v31 }
 0x119   :  { %512 = vst [vmem:[%s721_s3 + $0x18] sm:$0xff] %v488_v34   ;;  %516 = vst [vmem:[%s721_s3 + $0x38] sm:$0xff] %v508_v35  }

// kernel: deeplab_forward.37
= control target key start
LH: loop header
LB: loop body
LE: loop exit
PB: predicated region body
PF: predicated region fallthrough
CT: control target
= control target key end

     0   :  { %vm94_vm0 = vcmask 261120   ;;  %s527_s1 = inlined_call_operand.vmem [shape: bf16[32,128], index: 1, kind: input, shape index: {}]   ;;  %s528_s0 = inlined_call_operand.vmem [shape: bf16[128,32], index: 0, kind: input, shape index: {}]   ;;  %s529_s2 = inlined_call_operand.vmem [shape: f32[1,128], index: 2, kind: input, shape index: {}]   ;;  %s530_s3 = inlined_call_operand.vmem [shape: bf16[128,128], index: 3, kind: output, shape index: {}]  }
   0x1   :  { %v432_v0 = vld [vmem:[%s527_s1] sm:$0xff]   ;;  %v433_v1 = vld [vmem:[%s527_s1 + $0x8] sm:$0xff]   ;;  %v438_v6 = vld [vmem:[%s528_s0 + $0x10] sm:$0xff]  }
   0x2   :  { %408 = vmatprep.subr.bf16.mxu0 %v432_v0  ;;  %428 = vmatprep.subr.bf16.mxu1 %v432_v0  ;;  %v434_v2 = vld [vmem:[%s528_s0] sm:$0xff]   ;;  %v436_v4 = vld [vmem:[%s528_s0 + $0x8] sm:$0xff]   ;;  %v439_v7 = vld [vmem:[%s528_s0 + $0x30] sm:$0xff]  }
   0x3   :  { %409 = vmatpush3.bf16.msra.mxu0 %v432_v0  ;;  %430 = vmatpush3.bf16.msra.mxu1 %v432_v0  ;;  %v435_v3 = vld [vmem:[%s528_s0 + $0x20] sm:$0xff]   ;;  %v437_v5 = vld [vmem:[%s528_s0 + $0x28] sm:$0xff]   ;;  %v440_v8 = vld [vmem:[%s528_s0 + $0x18] sm:$0xff]  }
   0x4   :  { %410 = vmatprep.subr.bf16.mxu0 %v433_v1  ;;  %429 = vmatprep.subr.bf16.mxu1 %v433_v1  ;;  %v441_v9 = vld [vmem:[%s528_s0 + $0x38] sm:$0xff]   ;;  %v300_v11 = vld [vmem:[%s529_s2] ss:$0 sm:$0xff] }
   0x5   :  { %412 = vmatprep.mubr.msk.bf16.mxu0 %vm94_vm0, %v434_v2  ;;  %420 = vmatprep.mubr.msk.bf16.mxu1 %vm94_vm0, %v435_v3 }
   0x7   :  { %411 = vmatpush3.bf16.msra.mxu0 %v433_v1  ;;  %431 = vmatpush3.bf16.msra.mxu1 %v433_v1 }
   0xa   :  { %413 = vmatmul.mubr.msk.bf16.vlgmr.msra.gmra.mrb[0].mxu0 %vm94_vm0, %v436_v4  ;;  %421 = vmatmul.mubr.msk.bf16.vlgmr.msra.gmra.mrb[0].mxu1 %vm94_vm0, %v437_v5 }
   0xb   :  { %416 = vmatprep.mubr.msk.bf16.mxu0 %vm94_vm0, %v438_v6  ;;  %424 = vmatprep.mubr.msk.bf16.mxu1 %vm94_vm0, %v439_v7 }
  0x12   :  { %417 = vmatmul.mubr.msk.bf16.gmra.mrb[4].mxu0 %vm94_vm0, %v440_v8  ;;  %425 = vmatmul.mubr.msk.bf16.gmra.mrb[4].mxu1 %vm94_vm0, %v441_v9 }
  0xdd   :  { %v414_v10 = vpop.f32.mrb[0].mxu0  ;;  %v422_v12 = vpop.f32.mrb[0].mxu1 }
  0xde   :  { %v153_v13 = vpop.f32.mrb[1].mxu0  ;;  %v185_v14 = vpop.f32.mrb[1].mxu1  ;;  %v162_v17 = vadd.f32 %v414_v10, %v300_v11  ;;  %v194_v18 = vadd.f32 %v422_v12, %v300_v11 }
  0xdf   :  { %v415_v15 = vpop.f32.mrb[2].mxu0  ;;  %v423_v16 = vpop.f32.mrb[2].mxu1  ;;  %v154_v23 = vadd.f32 %v300_v11, %v153_v13  ;;  %v186_v24 = vadd.f32 %v300_v11, %v185_v14 }
  0xe0   :  { %v165_v19 = vadd.f32 %v415_v15, %v300_v11  ;;  %v197_v20 = vadd.f32 %v423_v16, %v300_v11  ;;  %v156_v21 = vpop.f32.mrb[3].mxu0  ;;  %v188_v22 = vpop.f32.mrb[3].mxu1 }
  0xe1   :  { %v157_v25 = vadd.f32 %v300_v11, %v156_v21  ;;  %v189_v26 = vadd.f32 %v300_v11, %v188_v22 }
  0xe2   :  { %v359_v27 = vpack.c.bf16 %v165_v19, %v162_v17  ;;  %v379_v28 = vpack.c.bf16 %v197_v20, %v194_v18 }
  0xe3   :  { %v354_v29 = vpack.c.bf16 %v157_v25, %v154_v23  ;;  %v374_v30 = vpack.c.bf16 %v189_v26, %v186_v24 }
  0xe4   :  { %391 = vst [vmem:[%s530_s3 + $0x8] sm:$0xff] %v359_v27   ;;  %395 = vst [vmem:[%s530_s3 + $0x28] sm:$0xff] %v379_v28  }
  0xe5   :  { %355 = vst [vmem:[%s530_s3] sm:$0xff] %v354_v29   ;;  %394 = vst [vmem:[%s530_s3 + $0x20] sm:$0xff] %v374_v30   ;;  %v418_v31 = vpop.f32.mrb[4].mxu0  ;;  %v426_v32 = vpop.f32.mrb[4].mxu1 }
  0xe6   :  { %v169_v33 = vpop.f32.mrb[5].mxu0  ;;  %v201_v34 = vpop.f32.mrb[5].mxu1  ;;  %v178_v37 = vadd.f32 %v418_v31, %v300_v11  ;;  %v210_v38 = vadd.f32 %v426_v32, %v300_v11 }
  0xe7   :  { %v419_v35 = vpop.f32.mrb[6].mxu0  ;;  %v427_v36 = vpop.f32.mrb[6].mxu1  ;;  %v170_v43 = vadd.f32 %v300_v11, %v169_v33  ;;  %v202_v44 = vadd.f32 %v300_v11, %v201_v34 }
  0xe8   :  { %v181_v39 = vadd.f32 %v419_v35, %v300_v11  ;;  %v213_v40 = vadd.f32 %v427_v36, %v300_v11  ;;  %v172_v41 = vpop.f32.mrb[7].mxu0  ;;  %v204_v42 = vpop.f32.mrb[7].mxu1 }
  0xe9   :  { %v173_v45 = vadd.f32 %v300_v11, %v172_v41  ;;  %v205_v46 = vadd.f32 %v300_v11, %v204_v42 }
  0xea   :  { %v369_v47 = vpack.c.bf16 %v181_v39, %v178_v37  ;;  %v389_v48 = vpack.c.bf16 %v213_v40, %v210_v38 }
  0xeb   :  { %v364_v49 = vpack.c.bf16 %v173_v45, %v170_v43  ;;  %v384_v50 = vpack.c.bf16 %v205_v46, %v202_v44 }
  0xec   :  { %393 = vst [vmem:[%s530_s3 + $0x18] sm:$0xff] %v369_v47   ;;  %397 = vst [vmem:[%s530_s3 + $0x38] sm:$0xff] %v389_v48  }
  0xed   :  { %392 = vst [vmem:[%s530_s3 + $0x10] sm:$0xff] %v364_v49   ;;  %396 = vst [vmem:[%s530_s3 + $0x30] sm:$0xff] %v384_v50  }

// kernel: deeplab_forward.40
= control target key start
LH: loop header
LB: loop body
LE: loop exit
PB: predicated region body
PF: predicated region fallthrough
CT: control target
= control target key end

     0   :  { %vm89_vm0 = vcmask 130048   ;;  %s678_s1 = inlined_call_operand.vmem [shape: bf16[16,128], index: 1, kind: input, shape index: {}]   ;;  %s679_s0 = inlined_call_operand.vmem [shape: bf16[128,16], index: 0, kind: input, shape index: {}]   ;;  %s680_s3 = inlined_call_operand.vmem [shape: bf16[128,128], index: 3, kind: input, shape index: {}]   ;;  %s681_s2 = inlined_call_operand.vmem [shape: f32[1,128], index: 2, kind: input, shape index: {}]   ;;  %s682_s4 = inlined_call_operand.vmem [shape: bf16[128,128], index: 4, kind: output, shape index: {}]  }
   0x1   :  { %v524_v0 = vld [vmem:[%s678_s1] sm:$0xff]   ;;  %v527_v3 = vld [vmem:[%s679_s0 + $0x8] sm:$0xff]   ;;  %v529_v5 = vld [vmem:[%s679_s0 + $0x10] sm:$0xff]  }
   0x2   :  { %v525_v1 = vld [vmem:[%s679_s0] sm:$0xff]   ;;  %504 = vmatprep.subr.bf16.mxu0 %v524_v0  ;;  %522 = vmatprep.subr.bf16.mxu1 %v524_v0  ;;  %v528_v4 = vld [vmem:[%s679_s0 + $0x28] sm:$0xff]   ;;  %v530_v6 = vld [vmem:[%s679_s0 + $0x30] sm:$0xff]  }
   0x3   :  { %v526_v2 = vld [vmem:[%s679_s0 + $0x20] sm:$0xff]   ;;  %505 = vmatpush3.bf16.msra.mxu0 %v524_v0  ;;  %523 = vmatpush3.bf16.msra.mxu1 %v524_v0  ;;  %v531_v7 = vld [vmem:[%s679_s0 + $0x18] sm:$0xff]   ;;  %v481_v9 = vld [vmem:[%s680_s3 + $0x8] sm:$0xff]  }
   0x4   :  { %506 = vmatprep.mubr.msk.bf16.mxu0 %vm89_vm0, %v525_v1  ;;  %514 = vmatprep.mubr.msk.bf16.mxu1 %vm89_vm0, %v526_v2  ;;  %v532_v8 = vld [vmem:[%s679_s0 + $0x38] sm:$0xff]   ;;  %v485_v10 = vld [vmem:[%s680_s3 + $0x28] sm:$0xff]   ;;  %v410_v11 = vld [vmem:[%s680_s3] sm:$0xff]   ;;  %v415_v16 = vunpack.c.l.bf16 %v481_v9  ;;  %v416_v24 = vunpack.c.h.bf16 %v481_v9 }
   0x5   :  { %v484_v12 = vld [vmem:[%s680_s3 + $0x20] sm:$0xff]   ;;  %v613_v14 = vld [vmem:[%s680_s3 + $0x18] sm:$0xff]   ;;  %v431_v17 = vunpack.c.l.bf16 %v485_v10  ;;  %v411_v18 = vunpack.c.l.bf16 %v410_v11  ;;  %v623_v20 = vld [vmem:[%s680_s3 + $0x10] sm:$0xff]   ;;  %v432_v25 = vunpack.c.h.bf16 %v485_v10  ;;  %v412_v26 = vunpack.c.h.bf16 %v410_v11 }
   0x6   :  { %507 = vmatmul.mubr.msk.bf16.vlgmr.msra.gmra.mrb[0].mxu0 %vm89_vm0, %v527_v3  ;;  %515 = vmatmul.mubr.msk.bf16.vlgmr.msra.gmra.mrb[0].mxu1 %vm89_vm0, %v528_v4  ;;  %v608_v13 = vld [vmem:[%s681_s2] ss:$0 sm:$0xff]  ;;  %v618_v15 = vld [vmem:[%s680_s3 + $0x38] sm:$0xff]   ;;  %v427_v19 = vunpack.c.l.bf16 %v484_v12  ;;  %v628_v21 = vld [vmem:[%s680_s3 + $0x30] sm:$0xff]   ;;  %v428_v27 = vunpack.c.h.bf16 %v484_v12  ;;  %v423_v32 = vunpack.c.l.bf16 %v613_v14  ;;  %v419_v38 = vunpack.c.l.bf16 %v623_v20 }
   0x7   :  { %510 = vmatprep.mubr.msk.bf16.mxu0 %vm89_vm0, %v529_v5  ;;  %518 = vmatprep.mubr.msk.bf16.mxu1 %vm89_vm0, %v530_v6  ;;  %v439_v33 = vunpack.c.l.bf16 %v618_v15  ;;  %v435_v39 = vunpack.c.l.bf16 %v628_v21  ;;  %v424_v52 = vunpack.c.h.bf16 %v613_v14  ;;  %v440_v53 = vunpack.c.h.bf16 %v618_v15 }
   0x8   :  { %v420_v56 = vunpack.c.h.bf16 %v623_v20  ;;  %v436_v57 = vunpack.c.h.bf16 %v628_v21 }
   0xe   :  { %511 = vmatmul.mubr.msk.bf16.gmra.mrb[4].mxu0 %vm89_vm0, %v531_v7  ;;  %519 = vmatmul.mubr.msk.bf16.gmra.mrb[4].mxu1 %vm89_vm0, %v532_v8 }
  0xd9   :  { %v508_v22 = vpop.f32.mrb[0].mxu0  ;;  %v516_v23 = vpop.f32.mrb[0].mxu1 }
  0xda   :  { %v157_v28 = vadd.f32 %v508_v22, %v608_v13  ;;  %v189_v29 = vadd.f32 %v516_v23, %v608_v13  ;;  %v148_v30 = vpop.f32.mrb[1].mxu0  ;;  %v180_v31 = vpop.f32.mrb[1].mxu1 }
  0xdb   :  { %v149_v34 = vadd.f32 %v608_v13, %v148_v30  ;;  %v181_v35 = vadd.f32 %v608_v13, %v180_v31  ;;  %v509_v36 = vpop.f32.mrb[2].mxu0  ;;  %v517_v37 = vpop.f32.mrb[2].mxu1 }
  0xdc   :  { %v245_v40 = vadd.f32 %v415_v16, %v157_v28  ;;  %v253_v41 = vadd.f32 %v431_v17, %v189_v29  ;;  %v160_v42 = vadd.f32 %v509_v36, %v608_v13  ;;  %v192_v43 = vadd.f32 %v517_v37, %v608_v13  ;;  %v151_v44 = vpop.f32.mrb[3].mxu0  ;;  %v183_v45 = vpop.f32.mrb[3].mxu1 }
  0xdd   :  { %v243_v46 = vadd.f32 %v411_v18, %v149_v34  ;;  %v251_v47 = vadd.f32 %v427_v19, %v181_v35  ;;  %v152_v48 = vadd.f32 %v608_v13, %v151_v44  ;;  %v184_v49 = vadd.f32 %v608_v13, %v183_v45 }
  0xde   :  { %v246_v50 = vadd.f32 %v416_v24, %v160_v42  ;;  %v254_v51 = vadd.f32 %v432_v25, %v192_v43  ;;  %v261_v58 = vmax.f32 %v245_v40, 0.0  ;;  %v269_v59 = vmax.f32 %v253_v41, 0.0 }
  0xdf   :  { %v244_v54 = vadd.f32 %v412_v26, %v152_v48  ;;  %v252_v55 = vadd.f32 %v428_v27, %v184_v49  ;;  %v259_v62 = vmax.f32 %v243_v46, 0.0  ;;  %v267_v63 = vmax.f32 %v251_v47, 0.0 }
  0xe0   :  { %v262_v60 = vmax.f32 %v246_v50, 0.0  ;;  %v270_v61 = vmax.f32 %v254_v51, 0.0 }
  0xe1   :  { %v260_v0 = vmax.f32 %v244_v54, 0.0  ;;  %v268_v1 = vmax.f32 %v252_v55, 0.0  ;;  %v512_v2 = vpop.f32.mrb[4].mxu0  ;;  %v520_v3 = vpop.f32.mrb[4].mxu1 }
  0xe2   :  { %v449_v4 = vpack.c.bf16 %v262_v60, %v261_v58  ;;  %v469_v5 = vpack.c.bf16 %v270_v61, %v269_v59  ;;  %v173_v6 = vadd.f32 %v512_v2, %v608_v13  ;;  %v205_v7 = vadd.f32 %v520_v3, %v608_v13  ;;  %v164_v8 = vpop.f32.mrb[5].mxu0  ;;  %v196_v9 = vpop.f32.mrb[5].mxu1 }
  0xe3   :  { %v444_v10 = vpack.c.bf16 %v260_v0, %v259_v62  ;;  %v464_v11 = vpack.c.bf16 %v268_v1, %v267_v63  ;;  %v165_v12 = vadd.f32 %v608_v13, %v164_v8  ;;  %v197_v14 = vadd.f32 %v608_v13, %v196_v9  ;;  %v513_v15 = vpop.f32.mrb[6].mxu0  ;;  %v521_v16 = vpop.f32.mrb[6].mxu1 }
  0xe4   :  { %488 = vst [vmem:[%s682_s4 + $0x8] sm:$0xff] %v449_v4   ;;  %492 = vst [vmem:[%s682_s4 + $0x28] sm:$0xff] %v469_v5   ;;  %v249_v17 = vadd.f32 %v423_v32, %v173_v6  ;;  %v257_v18 = vadd.f32 %v439_v33, %v205_v7  ;;  %v176_v19 = vadd.f32 %v513_v15, %v608_v13  ;;  %v167_v21 = vpop.f32.mrb[7].mxu0  ;;  %v199_v22 = vpop.f32.mrb[7].mxu1 }
  0xe5   :  { %v208_v20 = vadd.f32 %v521_v16, %v608_v13  ;;  %445 = vst [vmem:[%s682_s4] sm:$0xff] %v444_v10   ;;  %491 = vst [vmem:[%s682_s4 + $0x20] sm:$0xff] %v464_v11   ;;  %v247_v23 = vadd.f32 %v419_v38, %v165_v12  ;;  %v255_v24 = vadd.f32 %v435_v39, %v197_v14 }
  0xe6   :  { %v168_v25 = vadd.f32 %v608_v13, %v167_v21  ;;  %v200_v26 = vadd.f32 %v608_v13, %v199_v22  ;;  %v250_v27 = vadd.f32 %v424_v52, %v176_v19  ;;  %v265_v31 = vmax.f32 %v249_v17, 0.0 }
  0xe7   :  { %v258_v28 = vadd.f32 %v440_v53, %v208_v20  ;;  %v273_v32 = vmax.f32 %v257_v18, 0.0  ;;  %v263_v35 = vmax.f32 %v247_v23, 0.0  ;;  %v271_v36 = vmax.f32 %v255_v24, 0.0 }
  0xe8   :  { %v248_v29 = vadd.f32 %v420_v56, %v168_v25  ;;  %v256_v30 = vadd.f32 %v436_v57, %v200_v26  ;;  %v266_v33 = vmax.f32 %v250_v27, 0.0 }
  0xe9   :  { %v274_v34 = vmax.f32 %v258_v28, 0.0 }
  0xea   :  { %v264_v37 = vmax.f32 %v248_v29, 0.0  ;;  %v272_v40 = vmax.f32 %v256_v30, 0.0  ;;  %v459_v41 = vpack.c.bf16 %v266_v33, %v265_v31 }
  0xeb   :  { %v479_v42 = vpack.c.bf16 %v274_v34, %v273_v32 }
  0xec   :  { %v454_v38 = vpack.c.bf16 %v264_v37, %v263_v35  ;;  %v474_v39 = vpack.c.bf16 %v272_v40, %v271_v36  ;;  %490 = vst [vmem:[%s682_s4 + $0x18] sm:$0xff] %v459_v41  }
  0xed   :  { %494 = vst [vmem:[%s682_s4 + $0x38] sm:$0xff] %v479_v42  }
  0xee   :  { %489 = vst [vmem:[%s682_s4 + $0x10] sm:$0xff] %v454_v38   ;;  %493 = vst [vmem:[%s682_s4 + $0x30] sm:$0xff] %v474_v39  }

// kernel: deeplab_forward.42
= control target key start
LH: loop header
LB: loop body
LE: loop exit
PB: predicated region body
PF: predicated region fallthrough
CT: control target
= control target key end

     0   :  { %vm110_vm0 = vcmask 523264   ;;  %s579_s1 = inlined_call_operand.vmem [shape: bf16[64,128], index: 1, kind: input, shape index: {}]   ;;  %s580_s0 = inlined_call_operand.vmem [shape: bf16[128,64], index: 0, kind: input, shape index: {}]   ;;  %s581_s2 = inlined_call_operand.vmem [shape: f32[1,128], index: 2, kind: input, shape index: {}]   ;;  %s582_s3 = inlined_call_operand.vmem [shape: bf16[128,128], index: 3, kind: output, shape index: {}]  }
   0x1   :  { %v476_v0 = vld [vmem:[%s579_s1] sm:$0xff]   ;;  %v477_v1 = vld [vmem:[%s579_s1 + $0x8] sm:$0xff]   ;;  %v478_v2 = vld [vmem:[%s579_s1 + $0x10] sm:$0xff]  }
   0x2   :  { %444 = vmatprep.subr.bf16.mxu0 %v476_v0  ;;  %468 = vmatprep.subr.bf16.mxu1 %v476_v0  ;;  %v480_v3 = vld [vmem:[%s580_s0] sm:$0xff]   ;;  %v479_v5 = vld [vmem:[%s579_s1 + $0x18] sm:$0xff]   ;;  %v482_v6 = vld [vmem:[%s580_s0 + $0x8] sm:$0xff]  }
   0x3   :  { %445 = vmatpush3.bf16.msra.mxu0 %v476_v0  ;;  %472 = vmatpush3.bf16.msra.mxu1 %v476_v0  ;;  %v481_v4 = vld [vmem:[%s580_s0 + $0x20] sm:$0xff]   ;;  %v483_v7 = vld [vmem:[%s580_s0 + $0x28] sm:$0xff]   ;;  %v484_v8 = vld [vmem:[%s580_s0 + $0x10] sm:$0xff]  }
   0x4   :  { %446 = vmatprep.subr.bf16.mxu0 %v477_v1  ;;  %469 = vmatprep.subr.bf16.mxu1 %v477_v1  ;;  %v485_v9 = vld [vmem:[%s580_s0 + $0x30] sm:$0xff]   ;;  %v486_v10 = vld [vmem:[%s580_s0 + $0x18] sm:$0xff]   ;;  %v332_v12 = vld [vmem:[%s581_s2] ss:$0 sm:$0xff] }
   0x5   :  { %452 = vmatprep.mubr.msk.bf16.mxu0 %vm110_vm0, %v480_v3  ;;  %460 = vmatprep.mubr.msk.bf16.mxu1 %vm110_vm0, %v481_v4  ;;  %v487_v11 = vld [vmem:[%s580_s0 + $0x38] sm:$0xff]  }
   0x7   :  { %447 = vmatpush3.bf16.msra.mxu0 %v477_v1  ;;  %473 = vmatpush3.bf16.msra.mxu1 %v477_v1 }
   0x8   :  { %448 = vmatprep.subr.bf16.mxu0 %v478_v2  ;;  %470 = vmatprep.subr.bf16.mxu1 %v478_v2 }
   0xb   :  { %449 = vmatpush3.bf16.msra.mxu0 %v478_v2  ;;  %474 = vmatpush3.bf16.msra.mxu1 %v478_v2 }
   0xc   :  { %450 = vmatprep.subr.bf16.mxu0 %v479_v5  ;;  %471 = vmatprep.subr.bf16.mxu1 %v479_v5 }
   0xf   :  { %451 = vmatpush3.bf16.msra.mxu0 %v479_v5  ;;  %475 = vmatpush3.bf16.msra.mxu1 %v479_v5 }
  0x12   :  { %453 = vmatmul.mubr.msk.bf16.vlgmr.msra.gmra.mrb[0].mxu0 %vm110_vm0, %v482_v6  ;;  %461 = vmatmul.mubr.msk.bf16.vlgmr.msra.gmra.mrb[0].mxu1 %vm110_vm0, %v483_v7 }
  0x13   :  { %456 = vmatprep.mubr.msk.bf16.mxu0 %vm110_vm0, %v484_v8  ;;  %464 = vmatprep.mubr.msk.bf16.mxu1 %vm110_vm0, %v485_v9 }
  0x1a   :  { %457 = vmatmul.mubr.msk.bf16.gmra.mrb[4].mxu0 %vm110_vm0, %v486_v10  ;;  %465 = vmatmul.mubr.msk.bf16.gmra.mrb[4].mxu1 %vm110_vm0, %v487_v11 }
  0xe5   :  { %v454_v13 = vpop.f32.mrb[0].mxu0  ;;  %v462_v14 = vpop.f32.mrb[0].mxu1 }
  0xe6   :  { %v178_v15 = vadd.f32 %v454_v13, %v332_v12  ;;  %v210_v16 = vadd.f32 %v462_v14, %v332_v12  ;;  %v169_v17 = vpop.f32.mrb[1].mxu0  ;;  %v201_v18 = vpop.f32.mrb[1].mxu1 }
  0xe7   :  { %v170_v19 = vadd.f32 %v332_v12, %v169_v17  ;;  %v202_v20 = vadd.f32 %v332_v12, %v201_v18  ;;  %v455_v21 = vpop.f32.mrb[2].mxu0  ;;  %v463_v22 = vpop.f32.mrb[2].mxu1 }
  0xe8   :  { %v181_v23 = vadd.f32 %v455_v21, %v332_v12  ;;  %v213_v24 = vadd.f32 %v463_v22, %v332_v12  ;;  %v172_v25 = vpop.f32.mrb[3].mxu0  ;;  %v204_v26 = vpop.f32.mrb[3].mxu1  ;;  %v234_v29 = vmax.f32 %v178_v15, 0.0  ;;  %v242_v30 = vmax.f32 %v210_v16, 0.0 }
  0xe9   :  { %v173_v27 = vadd.f32 %v332_v12, %v172_v25  ;;  %v205_v28 = vadd.f32 %v332_v12, %v204_v26  ;;  %v232_v33 = vmax.f32 %v170_v19, 0.0  ;;  %v240_v34 = vmax.f32 %v202_v20, 0.0 }
  0xea   :  { %v235_v31 = vmax.f32 %v181_v23, 0.0  ;;  %v243_v32 = vmax.f32 %v213_v24, 0.0 }
  0xeb   :  { %v233_v35 = vmax.f32 %v173_v27, 0.0  ;;  %v241_v36 = vmax.f32 %v205_v28, 0.0 }
  0xec   :  { %v393_v37 = vpack.c.bf16 %v235_v31, %v234_v29  ;;  %v413_v38 = vpack.c.bf16 %v243_v32, %v242_v30 }
  0xed   :  { %v388_v39 = vpack.c.bf16 %v233_v35, %v232_v33  ;;  %v408_v40 = vpack.c.bf16 %v241_v36, %v240_v34  ;;  %v458_v41 = vpop.f32.mrb[4].mxu0  ;;  %v466_v42 = vpop.f32.mrb[4].mxu1 }
  0xee   :  { %425 = vst [vmem:[%s582_s3 + $0x8] sm:$0xff] %v393_v37   ;;  %429 = vst [vmem:[%s582_s3 + $0x28] sm:$0xff] %v413_v38   ;;  %v194_v43 = vadd.f32 %v458_v41, %v332_v12  ;;  %v226_v44 = vadd.f32 %v466_v42, %v332_v12  ;;  %v185_v45 = vpop.f32.mrb[5].mxu0  ;;  %v217_v46 = vpop.f32.mrb[5].mxu1 }
  0xef   :  { %389 = vst [vmem:[%s582_s3] sm:$0xff] %v388_v39   ;;  %428 = vst [vmem:[%s582_s3 + $0x20] sm:$0xff] %v408_v40   ;;  %v186_v47 = vadd.f32 %v332_v12, %v185_v45  ;;  %v218_v48 = vadd.f32 %v332_v12, %v217_v46  ;;  %v459_v49 = vpop.f32.mrb[6].mxu0  ;;  %v467_v50 = vpop.f32.mrb[6].mxu1 }
  0xf0   :  { %v197_v51 = vadd.f32 %v459_v49, %v332_v12  ;;  %v229_v52 = vadd.f32 %v467_v50, %v332_v12  ;;  %v188_v53 = vpop.f32.mrb[7].mxu0  ;;  %v220_v54 = vpop.f32.mrb[7].mxu1  ;;  %v238_v57 = vmax.f32 %v194_v43, 0.0  ;;  %v246_v58 = vmax.f32 %v226_v44, 0.0 }
  0xf1   :  { %v189_v55 = vadd.f32 %v332_v12, %v188_v53  ;;  %v221_v56 = vadd.f32 %v332_v12, %v220_v54  ;;  %v236_v61 = vmax.f32 %v186_v47, 0.0  ;;  %v244_v62 = vmax.f32 %v218_v48, 0.0 }
  0xf2   :  { %v239_v59 = vmax.f32 %v197_v51, 0.0  ;;  %v247_v60 = vmax.f32 %v229_v52, 0.0 }
  0xf3   :  { %v237_v63 = vmax.f32 %v189_v55, 0.0  ;;  %v245_v0 = vmax.f32 %v221_v56, 0.0 }
  0xf4   :  { %v403_v1 = vpack.c.bf16 %v239_v59, %v238_v57  ;;  %v423_v2 = vpack.c.bf16 %v247_v60, %v246_v58 }
  0xf5   :  { %v398_v3 = vpack.c.bf16 %v237_v63, %v236_v61  ;;  %v418_v4 = vpack.c.bf16 %v245_v0, %v244_v62 }
  0xf6   :  { %427 = vst [vmem:[%s582_s3 + $0x18] sm:$0xff] %v403_v1   ;;  %431 = vst [vmem:[%s582_s3 + $0x38] sm:$0xff] %v423_v2  }
  0xf7   :  { %426 = vst [vmem:[%s582_s3 + $0x10] sm:$0xff] %v398_v3   ;;  %430 = vst [vmem:[%s582_s3 + $0x30] sm:$0xff] %v418_v4  }

// kernel: deeplab_forward.46
= control target key start
LH: loop header
LB: loop body
LE: loop exit
PB: predicated region body
PF: predicated region fallthrough
CT: control target
= control target key end

     0   :  { %s308_s1 = inlined_call_operand.vmem [shape: bf16[128,128], index: 1, kind: input, shape index: {}]   ;;  %s309_s0 = inlined_call_operand.vmem [shape: bf16[32,128], index: 0, kind: input, shape index: {}]   ;;  %s310_s2 = inlined_call_operand.vmem [shape: f32[1,128], index: 2, kind: input, shape index: {}]   ;;  %s311_s3 = inlined_call_operand.vmem [shape: bf16[32,128], index: 3, kind: output, shape index: {}]  }
   0x1   :  { %v239_v0 = vld [vmem:[%s308_s1] sm:$0xff]   ;;  %v240_v1 = vld [vmem:[%s308_s1 + $0x8] sm:$0xff]   ;;  %v241_v2 = vld [vmem:[%s308_s1 + $0x10] sm:$0xff]  }
   0x2   :  { %219 = vmatprep.subr.bf16.mxu0 %v239_v0  ;;  %v242_v3 = vld [vmem:[%s308_s1 + $0x18] sm:$0xff]   ;;  %v247_v4 = vld [vmem:[%s309_s0] sm:$0xff]   ;;  %v244_v6 = vld [vmem:[%s308_s1 + $0x28] sm:$0xff]  }
   0x3   :  { %220 = vmatpush3.bf16.msra.mxu0 %v239_v0  ;;  %235 = vmatprep.mubr.bf16.mxu0 %v247_v4  ;;  %v243_v5 = vld [vmem:[%s308_s1 + $0x20] sm:$0xff]   ;;  %v245_v7 = vld [vmem:[%s308_s1 + $0x30] sm:$0xff]   ;;  %v246_v8 = vld [vmem:[%s308_s1 + $0x38] sm:$0xff]  }
   0x4   :  { %221 = vmatprep.subr.bf16.mxu0 %v240_v1  ;;  %v248_v9 = vld [vmem:[%s309_s0 + $0x8] sm:$0xff]   ;;  %v179_v10 = vld [vmem:[%s310_s2] ss:$0 sm:$0xff] }
   0x7   :  { %222 = vmatpush3.bf16.msra.mxu0 %v240_v1 }
   0x8   :  { %223 = vmatprep.subr.bf16.mxu0 %v241_v2 }
   0xb   :  { %224 = vmatpush3.bf16.msra.mxu0 %v241_v2 }
   0xc   :  { %225 = vmatprep.subr.bf16.mxu0 %v242_v3 }
   0xf   :  { %226 = vmatpush3.bf16.msra.mxu0 %v242_v3 }
  0x10   :  { %227 = vmatprep.subr.bf16.mxu0 %v243_v5 }
  0x13   :  { %228 = vmatpush3.bf16.msra.mxu0 %v243_v5 }
  0x14   :  { %229 = vmatprep.subr.bf16.mxu0 %v244_v6 }
  0x17   :  { %230 = vmatpush3.bf16.msra.mxu0 %v244_v6 }
  0x18   :  { %231 = vmatprep.subr.bf16.mxu0 %v245_v7 }
  0x1b   :  { %232 = vmatpush3.bf16.msra.mxu0 %v245_v7 }
  0x1c   :  { %233 = vmatprep.subr.bf16.mxu0 %v246_v8 }
  0x1f   :  { %234 = vmatpush3.bf16.msra.mxu0 %v246_v8 }
  0x22   :  { %236 = vmatmul.mubr.bf16.vlgmr.msra.gmra.mrb[0].mxu0 %v248_v9 }
  0xf5   :  { %v237_v11 = vpop.f32.mrb[0].mxu0 }
  0xf6   :  { %v145_v12 = vadd.f32 %v237_v11, %v179_v10  ;;  %v136_v13 = vpop.f32.mrb[1].mxu0 }
  0xf7   :  { %v137_v14 = vadd.f32 %v179_v10, %v136_v13  ;;  %v238_v15 = vpop.f32.mrb[2].mxu0 }
  0xf8   :  { %v148_v16 = vadd.f32 %v238_v15, %v179_v10  ;;  %v139_v17 = vpop.f32.mrb[3].mxu0  ;;  %v153_v19 = vmax.f32 %v145_v12, 0.0 }
  0xf9   :  { %v140_v18 = vadd.f32 %v179_v10, %v139_v17  ;;  %v151_v21 = vmax.f32 %v137_v14, 0.0 }
  0xfa   :  { %v154_v20 = vmax.f32 %v148_v16, 0.0 }
  0xfb   :  { %v152_v22 = vmax.f32 %v140_v18, 0.0 }
  0xfc   :  { %v206_v23 = vpack.c.bf16 %v154_v20, %v153_v19 }
  0xfd   :  { %v201_v24 = vpack.c.bf16 %v152_v22, %v151_v21 }
  0xfe   :  { %208 = vst [vmem:[%s311_s3 + $0x8] sm:$0xff] %v206_v23  }
  0xff   :  { %202 = vst [vmem:[%s311_s3] sm:$0xff] %v201_v24  }

// kernel: deeplab_forward.43
= control target key start
LH: loop header
LB: loop body
LE: loop exit
PB: predicated region body
PF: predicated region fallthrough
CT: control target
= control target key end

     0   :  { %vm204_vm0 = vcmask 261120   ;;  %s550_s1 = inlined_call_operand.vmem [shape: bf16[288,128], index: 1, kind: input, shape index: {}]   ;;  %s551_s0 = inlined_call_operand.vmem [shape: bf16[32,288], index: 0, kind: input, shape index: {}]   ;;  %s552_s2 = inlined_call_operand.vmem [shape: f32[1,128], index: 2, kind: input, shape index: {}]   ;;  %s553_s3 = inlined_call_operand.vmem [shape: bf16[32,128], index: 3, kind: output, shape index: {}]  }
   0x1   :  { %v423_v0 = vld [vmem:[%s550_s1 + $0x40] sm:$0xff]   ;;  %v425_v2 = vld [vmem:[%s550_s1 + $0x48] sm:$0xff]   ;;  %v427_v4 = vld [vmem:[%s550_s1 + $0x50] sm:$0xff]  }
   0x2   :  { %v424_v1 = vld [vmem:[%s550_s1] sm:$0xff]   ;;  %383 = vmatprep.subr.bf16.mxu0 %v423_v0  ;;  %v426_v3 = vld [vmem:[%s550_s1 + $0x8] sm:$0xff]   ;;  %v428_v5 = vld [vmem:[%s550_s1 + $0x10] sm:$0xff]  }
   0x3   :  { %384 = vmatpush3.bf16.msra.mxu0 %v424_v1  ;;  %v429_v6 = vld [vmem:[%s550_s1 + $0x58] sm:$0xff]   ;;  %v431_v8 = vld [vmem:[%s550_s1 + $0x60] sm:$0xff]   ;;  %v433_v11 = vld [vmem:[%s550_s1 + $0x68] sm:$0xff]  }
   0x4   :  { %385 = vmatprep.subr.bf16.mxu0 %v425_v2  ;;  %v430_v7 = vld [vmem:[%s550_s1 + $0x18] sm:$0xff]   ;;  %v432_v9 = vld [vmem:[%s550_s1 + $0x20] sm:$0xff]   ;;  %v434_v12 = vld [vmem:[%s550_s1 + $0x28] sm:$0xff]  }
   0x5   :  { %v438_v10 = vld [vmem:[%s550_s1 + $0x80] sm:$0xff]   ;;  %v435_v13 = vld [vmem:[%s550_s1 + $0x70] sm:$0xff]   ;;  %v443_v15 = vld [vmem:[%s550_s1 + $0x88] sm:$0xff]  }
   0x6   :  { %415 = vmatprep.subr.bf16.mxu1 %v438_v10  ;;  %v442_v14 = vld [vmem:[%s551_s0 + $0x4] ss:$12 sps:$4 sm:$0xff]   ;;  %v444_v16 = vld [vmem:[%s551_s0 + $0x8] ss:$12 sps:$4 sm:$0xff]   ;;  %v445_v17 = vld [vmem:[%s551_s0 + $0x20] ss:$12 sps:$4 sm:$0xff]  }
   0x7   :  { %386 = vmatpush3.bf16.msra.mxu0 %v426_v3  ;;  %416 = vmatpush3.bf16.msra.mxu1 %v438_v10  ;;  %v436_v18 = vld [vmem:[%s550_s1 + $0x30] sm:$0xff]   ;;  %v437_v19 = vld [vmem:[%s550_s1 + $0x78] sm:$0xff]   ;;  %v440_v21 = vld [vmem:[%s551_s0] ss:$12 sps:$4 sm:$0xff]  }
   0x8   :  { %387 = vmatprep.subr.bf16.mxu0 %v427_v4  ;;  %243 = vmatprep.mubr.bf16.mxu0 %v442_v14  ;;  %v439_v20 = vld [vmem:[%s550_s1 + $0x38] sm:$0xff]   ;;  %v337_v30 = vld [vmem:[%s552_s2] ss:$0 sm:$0xff] }
   0x9   :  { %417 = vmatprep.subr.bf16.mxu1 %v443_v15  ;;  %419 = vmatprep.mubr.msk.bf16.mxu1 %vm204_vm0, %v444_v16  ;;  %v446_v22 = vld [vmem:[%s551_s0 + $0x1c] ss:$12 sps:$4 sm:$0xff]   ;;  %v448_v23 = vld [vmem:[%s551_s0 + $0x18] ss:$12 sps:$4 sm:$0xff]  }
   0xb   :  { %388 = vmatpush3.bf16.msra.mxu0 %v428_v5  ;;  %418 = vmatpush3.bf16.msra.mxu1 %v443_v15 }
   0xc   :  { %389 = vmatprep.subr.bf16.mxu0 %v429_v6 }
   0xe   :  { %420 = vmatmul.mubr.msk.bf16.vlgmr.msra.gmra.mrb[0].mxu1 %vm204_vm0, %v445_v17 }
   0xf   :  { %390 = vmatpush3.bf16.msra.mxu0 %v430_v7 }
  0x10   :  { %391 = vmatprep.subr.bf16.mxu0 %v431_v8 }
  0x13   :  { %392 = vmatpush3.bf16.msra.mxu0 %v432_v9 }
  0x14   :  { %393 = vmatprep.subr.bf16.mxu0 %v433_v11 }
  0x17   :  { %394 = vmatpush3.bf16.msra.mxu0 %v434_v12 }
  0x18   :  { %395 = vmatprep.subr.bf16.mxu0 %v435_v13 }
  0x1b   :  { %396 = vmatpush3.bf16.msra.mxu0 %v436_v18 }
  0x1c   :  { %397 = vmatprep.subr.bf16.mxu0 %v437_v19 }
  0x1f   :  { %398 = vmatpush3.bf16.msra.mxu0 %v439_v20 }
  0x22   :  { %244 = vmatmul.mubr.bf16.vlgmr.msra.gmra.mrb[0].mxu0 %v440_v21 }
  0x23   :  { %251 = vmatprep.mubr.bf16.mxu0 %v446_v22 }
  0x2a   :  { %252 = vmatmul.mubr.bf16.gmra.mrb[4].mxu0 %v448_v23 }
  0xe1   :  { %v421_v24 = vpop.f32.mrb[0].mxu1 }
  0xe2   :  { %v294_v25 = vpop.f32.mrb[1].mxu1 }
  0xe3   :  { %v422_v26 = vpop.f32.mrb[2].mxu1 }
  0xe4   :  { %v297_v27 = vpop.f32.mrb[3].mxu1 }
  0xf5   :  { %v399_v28 = vpop.f32.mrb[0].mxu0 }
  0xf6   :  { %v400_v29 = vpop.f32.mrb[1].mxu0 }
  0xf7   :  { %v401_v31 = vadd.f32 %v400_v29, %v399_v28  ;;  %v402_v32 = vpop.f32.mrb[2].mxu0 }
  0xf8   :  { %v403_v33 = vpop.f32.mrb[3].mxu0 }
  0xf9   :  { %v404_v34 = vadd.f32 %v403_v33, %v402_v32  ;;  %v246_v35 = vadd.f32 %v401_v31, %v337_v30 }
  0xfb   :  { %v295_v36 = vadd.f32 %v294_v25, %v246_v35  ;;  %v249_v37 = vadd.f32 %v404_v34, %v337_v30 }
  0xfd   :  { %v298_v38 = vadd.f32 %v297_v27, %v249_v37  ;;  %v405_v39 = vpop.f32.mrb[4].mxu0  ;;  %v309_v41 = vmax.f32 %v295_v36, 0.0 }
  0xfe   :  { %v406_v40 = vpop.f32.mrb[5].mxu0 }
  0xff   :  { %v310_v42 = vmax.f32 %v298_v38, 0.0  ;;  %v407_v43 = vadd.f32 %v406_v40, %v405_v39  ;;  %v408_v44 = vpop.f32.mrb[6].mxu0 }
 0x100   :  { %v409_v45 = vpop.f32.mrb[7].mxu0 }
 0x101   :  { %v375_v46 = vpack.c.bf16 %v310_v42, %v309_v41  ;;  %v254_v47 = vadd.f32 %v407_v43, %v337_v30  ;;  %v410_v48 = vadd.f32 %v409_v45, %v408_v44 }
 0x103   :  { %376 = vst [vmem:[%s553_s3] sm:$0xff] %v375_v46   ;;  %v303_v49 = vadd.f32 %v421_v24, %v254_v47  ;;  %v257_v50 = vadd.f32 %v410_v48, %v337_v30 }
 0x105   :  { %v306_v51 = vadd.f32 %v422_v26, %v257_v50  ;;  %v311_v52 = vmax.f32 %v303_v49, 0.0 }
 0x107   :  { %v312_v53 = vmax.f32 %v306_v51, 0.0 }
 0x109   :  { %v380_v54 = vpack.c.bf16 %v312_v53, %v311_v52 }
 0x10b   :  { %382 = vst [vmem:[%s553_s3 + $0x8] sm:$0xff] %v380_v54  }

// kernel: deeplab_forward.44
= control target key start
LH: loop header
LB: loop body
LE: loop exit
PB: predicated region body
PF: predicated region fallthrough
CT: control target
= control target key end

     0   :  { %vm55_vm0 = vcmask 261120   ;;  %s254_s1 = inlined_call_operand.vmem [shape: bf16[32,128], index: 1, kind: input, shape index: {}]   ;;  %s255_s0 = inlined_call_operand.vmem [shape: bf16[32,32], index: 0, kind: input, shape index: {}]   ;;  %s256_s3 = inlined_call_operand.vmem [shape: bf16[32,128], index: 3, kind: input, shape index: {}]   ;;  %s257_s2 = inlined_call_operand.vmem [shape: f32[1,128], index: 2, kind: input, shape index: {}]   ;;  %s258_s4 = inlined_call_operand.vmem [shape: bf16[32,128], index: 4, kind: output, shape index: {}]  }
   0x1   :  { %v198_v0 = vld [vmem:[%s254_s1] sm:$0xff]   ;;  %v199_v1 = vld [vmem:[%s254_s1 + $0x8] sm:$0xff]  }
   0x2   :  { %190 = vmatprep.subr.bf16.mxu0 %v198_v0  ;;  %v200_v2 = vld [vmem:[%s255_s0] sm:$0xff]   ;;  %v201_v3 = vld [vmem:[%s255_s0 + $0x8] sm:$0xff]  }
   0x3   :  { %191 = vmatpush3.bf16.msra.mxu0 %v198_v0  ;;  %194 = vmatprep.mubr.msk.bf16.mxu0 %vm55_vm0, %v200_v2  ;;  %v184_v4 = vld [vmem:[%s256_s3 + $0x8] sm:$0xff]   ;;  %v167_v5 = vld [vmem:[%s256_s3] sm:$0xff]  }
   0x4   :  { %192 = vmatprep.subr.bf16.mxu0 %v199_v1  ;;  %v151_v6 = vld [vmem:[%s257_s2] ss:$0 sm:$0xff]  ;;  %v172_v7 = vunpack.c.l.bf16 %v184_v4  ;;  %v168_v9 = vunpack.c.l.bf16 %v167_v5  ;;  %v173_v12 = vunpack.c.h.bf16 %v184_v4  ;;  %v169_v15 = vunpack.c.h.bf16 %v167_v5 }
   0x7   :  { %193 = vmatpush3.bf16.msra.mxu0 %v199_v1 }
   0xa   :  { %195 = vmatmul.mubr.msk.bf16.vlgmr.msra.gmra.mrb[0].mxu0 %vm55_vm0, %v201_v3 }
  0xdd   :  { %v196_v8 = vpop.f32.mrb[0].mxu0 }
  0xde   :  { %v105_v10 = vadd.f32 %v196_v8, %v151_v6  ;;  %v96_v11 = vpop.f32.mrb[1].mxu0 }
  0xdf   :  { %v97_v13 = vadd.f32 %v151_v6, %v96_v11  ;;  %v197_v14 = vpop.f32.mrb[2].mxu0 }
  0xe0   :  { %v121_v16 = vadd.f32 %v172_v7, %v105_v10  ;;  %v108_v17 = vadd.f32 %v197_v14, %v151_v6  ;;  %v99_v18 = vpop.f32.mrb[3].mxu0 }
  0xe1   :  { %v119_v19 = vadd.f32 %v168_v9, %v97_v13  ;;  %v100_v20 = vadd.f32 %v151_v6, %v99_v18 }
  0xe2   :  { %v122_v21 = vadd.f32 %v173_v12, %v108_v17  ;;  %v125_v23 = vmax.f32 %v121_v16, 0.0 }
  0xe3   :  { %v120_v22 = vadd.f32 %v169_v15, %v100_v20  ;;  %v123_v25 = vmax.f32 %v119_v19, 0.0 }
  0xe4   :  { %v126_v24 = vmax.f32 %v122_v21, 0.0 }
  0xe5   :  { %v124_v26 = vmax.f32 %v120_v22, 0.0 }
  0xe6   :  { %v182_v27 = vpack.c.bf16 %v126_v24, %v125_v23 }
  0xe7   :  { %v177_v28 = vpack.c.bf16 %v124_v26, %v123_v25 }
  0xe8   :  { %185 = vst [vmem:[%s258_s4 + $0x8] sm:$0xff] %v182_v27  }
  0xe9   :  { %178 = vst [vmem:[%s258_s4] sm:$0xff] %v177_v28  }

// kernel: deeplab_forward.41
= control target key start
LH: loop header
LB: loop body
LE: loop exit
PB: predicated region body
PF: predicated region fallthrough
CT: control target
= control target key end

     0   :  { %vm68_vm0 = vcmask 523264   ;;  %s247_s1 = inlined_call_operand.vmem [shape: bf16[64,128], index: 1, kind: input, shape index: {}]   ;;  %s248_s0 = inlined_call_operand.vmem [shape: bf16[32,64], index: 0, kind: input, shape index: {}]   ;;  %s249_s2 = inlined_call_operand.vmem [shape: f32[1,128], index: 2, kind: input, shape index: {}]   ;;  %s250_s3 = inlined_call_operand.vmem [shape: bf16[32,128], index: 3, kind: output, shape index: {}]  }
   0x1   :  { %v194_v0 = vld [vmem:[%s247_s1] sm:$0xff]   ;;  %v195_v1 = vld [vmem:[%s247_s1 + $0x8] sm:$0xff]   ;;  %v196_v2 = vld [vmem:[%s247_s1 + $0x10] sm:$0xff]  }
   0x2   :  { %182 = vmatprep.subr.bf16.mxu0 %v194_v0  ;;  %v198_v3 = vld [vmem:[%s248_s0] sm:$0xff]   ;;  %v197_v4 = vld [vmem:[%s247_s1 + $0x18] sm:$0xff]   ;;  %v199_v5 = vld [vmem:[%s248_s0 + $0x8] sm:$0xff]  }
   0x3   :  { %183 = vmatpush3.bf16.msra.mxu0 %v194_v0  ;;  %190 = vmatprep.mubr.msk.bf16.mxu0 %vm68_vm0, %v198_v3  ;;  %v148_v7 = vld [vmem:[%s249_s2] ss:$0 sm:$0xff] }
   0x4   :  { %184 = vmatprep.subr.bf16.mxu0 %v195_v1 }
   0x7   :  { %185 = vmatpush3.bf16.msra.mxu0 %v195_v1 }
   0x8   :  { %186 = vmatprep.subr.bf16.mxu0 %v196_v2 }
   0xb   :  { %187 = vmatpush3.bf16.msra.mxu0 %v196_v2 }
   0xc   :  { %188 = vmatprep.subr.bf16.mxu0 %v197_v4 }
   0xf   :  { %189 = vmatpush3.bf16.msra.mxu0 %v197_v4 }
  0x12   :  { %191 = vmatmul.mubr.msk.bf16.vlgmr.msra.gmra.mrb[0].mxu0 %vm68_vm0, %v199_v5 }
  0xe5   :  { %v192_v6 = vpop.f32.mrb[0].mxu0 }
  0xe6   :  { %v109_v8 = vpop.f32.mrb[1].mxu0  ;;  %v118_v10 = vadd.f32 %v192_v6, %v148_v7 }
  0xe7   :  { %v193_v9 = vpop.f32.mrb[2].mxu0  ;;  %v110_v13 = vadd.f32 %v148_v7, %v109_v8 }
  0xe8   :  { %v121_v11 = vadd.f32 %v193_v9, %v148_v7  ;;  %v112_v12 = vpop.f32.mrb[3].mxu0 }
  0xe9   :  { %v113_v14 = vadd.f32 %v148_v7, %v112_v12 }
  0xea   :  { %v173_v15 = vpack.c.bf16 %v121_v11, %v118_v10 }
  0xeb   :  { %v168_v16 = vpack.c.bf16 %v113_v14, %v110_v13 }
  0xec   :  { %175 = vst [vmem:[%s250_s3 + $0x8] sm:$0xff] %v173_v15  }
  0xed   :  { %169 = vst [vmem:[%s250_s3] sm:$0xff] %v168_v16  }

// kernel: deeplab_forward.45
= control target key start
LH: loop header
LB: loop body
LE: loop exit
PB: predicated region body
PF: predicated region fallthrough
CT: control target
= control target key end

     0   :  { %v293_v1 = vmov 0   ;;  %v37_v19 = vlaneseq  ;;  %s383_s1 = inlined_call_operand.vmem [shape: bf16[128,256], index: 1, kind: input, shape index: {}]   ;;  %s384_s0 = inlined_call_operand.vmem [shape: bf16[32,128], index: 0, kind: input, shape index: {}]   ;;  %s385_s2 = inlined_call_operand.vmem [shape: f32[1,256], index: 2, kind: input, shape index: {}]   ;;  %s386_s3 = inlined_call_operand.vmem [shape: bf16[32,256], index: 3, kind: output, shape index: {}]  }
   0x1   :  { %v267_v0 = vld [vmem:[%s383_s1 + $0x4] ss:$8 sps:$4 sm:$0xff]   ;;  %171 = vmatprep.mubr.bf16.mxu0 %v293_v1  ;;  %181 = vmatprep.mubr.bf16.mxu1 %v293_v1  ;;  %v269_v2 = vld [vmem:[%s383_s1] ss:$8 sps:$4 sm:$0xff]   ;;  %v270_v3 = vld [vmem:[%s383_s1 + $0x14] ss:$8 sps:$4 sm:$0xff]  }
   0x2   :  { %139 = vmatprep.subr.bf16.mxu0 %v267_v0  ;;  %250 = vmatprep.subr.bf16.mxu1 %v267_v0  ;;  %v272_v4 = vld [vmem:[%s383_s1 + $0x10] ss:$8 sps:$4 sm:$0xff]   ;;  %v273_v5 = vld [vmem:[%s383_s1 + $0x24] ss:$8 sps:$4 sm:$0xff]   ;;  %v275_v6 = vld [vmem:[%s383_s1 + $0x20] ss:$8 sps:$4 sm:$0xff]  }
   0x3   :  { %140 = vmatpush1.bf16.msra.mxu0 %v269_v2  ;;  %258 = vmatpush1.bf16.msra.mxu1 %v269_v2  ;;  %v276_v7 = vld [vmem:[%s383_s1 + $0x34] ss:$8 sps:$4 sm:$0xff]   ;;  %v278_v8 = vld [vmem:[%s383_s1 + $0x30] ss:$8 sps:$4 sm:$0xff]   ;;  %v279_v9 = vld [vmem:[%s383_s1 + $0x44] ss:$8 sps:$4 sm:$0xff]  }
   0x4   :  { %141 = vmatprep.subr.bf16.mxu0 %v270_v3  ;;  %251 = vmatprep.subr.bf16.mxu1 %v270_v3  ;;  %v281_v10 = vld [vmem:[%s383_s1 + $0x40] ss:$8 sps:$4 sm:$0xff]   ;;  %v282_v11 = vld [vmem:[%s383_s1 + $0x54] ss:$8 sps:$4 sm:$0xff]   ;;  %v284_v12 = vld [vmem:[%s383_s1 + $0x50] ss:$8 sps:$4 sm:$0xff]  }
   0x5   :  { %v285_v13 = vld [vmem:[%s383_s1 + $0x64] ss:$8 sps:$4 sm:$0xff]   ;;  %v287_v14 = vld [vmem:[%s383_s1 + $0x60] ss:$8 sps:$4 sm:$0xff]   ;;  %v288_v15 = vld [vmem:[%s383_s1 + $0x74] ss:$8 sps:$4 sm:$0xff]  }
   0x6   :  { %v290_v16 = vld [vmem:[%s383_s1 + $0x70] ss:$8 sps:$4 sm:$0xff]   ;;  %v291_v17 = vld [vmem:[%s384_s0] sm:$0xff]   ;;  %v292_v18 = vld [vmem:[%s384_s0 + $0x8] sm:$0xff]   ;;  %v38_v20 = vshrl.u32 %v37_v19, 7 }
   0x7   :  { %142 = vmatpush1.bf16.msra.mxu0 %v272_v4  ;;  %259 = vmatpush1.bf16.msra.mxu1 %v272_v4  ;;  %v35_v22 = vld [vmem:[%s385_s2] sm:$0x3] }
   0x8   :  { %143 = vmatprep.subr.bf16.mxu0 %v273_v5  ;;  %252 = vmatprep.subr.bf16.mxu1 %v273_v5  ;;  %v39_v21 = vsub.s32 0, %v38_v20  ;;  %v43_v23 = vsub.s32 1, %v38_v20 }
   0xa   :  { %v40_v24 = vrot.slane %v35_v22, %v39_v21  ;;  %v44_v25 = vrot.slane %v35_v22, %v43_v23 }
   0xb   :  { %144 = vmatpush1.bf16.msra.mxu0 %v275_v6  ;;  %260 = vmatpush1.bf16.msra.mxu1 %v275_v6 }
   0xc   :  { %145 = vmatprep.subr.bf16.mxu0 %v276_v7  ;;  %253 = vmatprep.subr.bf16.mxu1 %v276_v7 }
   0xf   :  { %146 = vmatpush1.bf16.msra.mxu0 %v278_v8  ;;  %261 = vmatpush1.bf16.msra.mxu1 %v278_v8 }
  0x10   :  { %147 = vmatprep.subr.bf16.mxu0 %v279_v9  ;;  %254 = vmatprep.subr.bf16.mxu1 %v279_v9 }
  0x13   :  { %148 = vmatpush1.bf16.msra.mxu0 %v281_v10  ;;  %262 = vmatpush1.bf16.msra.mxu1 %v281_v10 }
  0x14   :  { %149 = vmatprep.subr.bf16.mxu0 %v282_v11  ;;  %255 = vmatprep.subr.bf16.mxu1 %v282_v11 }
  0x17   :  { %150 = vmatpush1.bf16.msra.mxu0 %v284_v12  ;;  %263 = vmatpush1.bf16.msra.mxu1 %v284_v12 }
  0x18   :  { %151 = vmatprep.subr.bf16.mxu0 %v285_v13  ;;  %256 = vmatprep.subr.bf16.mxu1 %v285_v13 }
  0x1b   :  { %152 = vmatpush1.bf16.msra.mxu0 %v287_v14  ;;  %264 = vmatpush1.bf16.msra.mxu1 %v287_v14 }
  0x1c   :  { %153 = vmatprep.subr.bf16.mxu0 %v288_v15  ;;  %257 = vmatprep.subr.bf16.mxu1 %v288_v15 }
  0x1f   :  { %154 = vmatpush1.bf16.msra.mxu0 %v290_v16  ;;  %265 = vmatpush1.bf16.msra.mxu1 %v290_v16 }
  0x22   :  { %172 = vmatmul.mubr.bf16.vlgmr.msra.gmra.mrb[0].mxu0 %v291_v17  ;;  %182 = vmatmul.mubr.bf16.vlgmr.msra.gmra.mrb[0].mxu1 %v292_v18 }
  0xf5   :  { %v173_v26 = vpop.f32.mrb[0].mxu0  ;;  %v183_v27 = vpop.f32.mrb[0].mxu1 }
  0xf6   :  { %v174_v28 = vadd.f32 %v173_v26, %v40_v24  ;;  %v184_v29 = vadd.f32 %v183_v27, %v40_v24  ;;  %v175_v30 = vpop.f32.mrb[1].mxu0  ;;  %v185_v31 = vpop.f32.mrb[1].mxu1 }
  0xf7   :  { %v176_v32 = vadd.f32 %v175_v30, %v44_v25  ;;  %v186_v33 = vadd.f32 %v185_v31, %v44_v25  ;;  %v177_v34 = vpop.f32.mrb[2].mxu0  ;;  %v187_v35 = vpop.f32.mrb[2].mxu1 }
  0xf8   :  { %v178_v36 = vadd.f32 %v177_v34, %v40_v24  ;;  %v188_v37 = vadd.f32 %v187_v35, %v40_v24  ;;  %v179_v38 = vpop.f32.mrb[3].mxu0  ;;  %v189_v39 = vpop.f32.mrb[3].mxu1 }
  0xf9   :  { %v246_v40 = vpack.c.bf16 %v176_v32, %v174_v28  ;;  %v248_v41 = vpack.c.bf16 %v186_v33, %v184_v29  ;;  %v180_v42 = vadd.f32 %v179_v38, %v44_v25  ;;  %v190_v43 = vadd.f32 %v189_v39, %v44_v25 }
  0xfb   :  { %216 = vst [vmem:[%s386_s3] sm:$0xff] %v246_v40  ;;  %218 = vst [vmem:[%s386_s3 + $0x10] sm:$0xff] %v248_v41  ;;  %v247_v44 = vpack.c.bf16 %v180_v42, %v178_v36  ;;  %v249_v45 = vpack.c.bf16 %v190_v43, %v188_v37 }
  0xfd   :  { %217 = vst [vmem:[%s386_s3 + $0x8] sm:$0xff] %v247_v44  ;;  %219 = vst [vmem:[%s386_s3 + $0x18] sm:$0xff] %v249_v45 }

// kernel: deeplab_forward.48
= control target key start
LH: loop header
LB: loop body
LE: loop exit
PB: predicated region body
PF: predicated region fallthrough
CT: control target
= control target key end

     0   :  { %v255_v1 = vmov 0   ;;  %vm92_vm0 = vcmask 523264   ;;  %v32_v11 = vlaneseq  ;;  %s338_s1 = inlined_call_operand.vmem [shape: bf16[64,256], index: 1, kind: input, shape index: {}]   ;;  %s339_s0 = inlined_call_operand.vmem [shape: bf16[32,64], index: 0, kind: input, shape index: {}]   ;;  %s340_s2 = inlined_call_operand.vmem [shape: f32[1,256], index: 2, kind: input, shape index: {}]   ;;  %s341_s3 = inlined_call_operand.vmem [shape: bf16[32,256], index: 3, kind: input, shape index: {}]   ;;  %s342_s4 = inlined_call_operand.vmem [shape: bf16[32,256], index: 4, kind: output, shape index: {}]  }
   0x1   :  { %v241_v0 = vld [vmem:[%s338_s1 + $0x4] ss:$8 sps:$4 sm:$0xff]   ;;  %131 = vmatprep.mubr.bf16.mxu0 %v255_v1  ;;  %141 = vmatprep.mubr.bf16.mxu1 %v255_v1  ;;  %v243_v2 = vld [vmem:[%s338_s1] ss:$8 sps:$4 sm:$0xff]   ;;  %v244_v3 = vld [vmem:[%s338_s1 + $0x14] ss:$8 sps:$4 sm:$0xff]  }
   0x2   :  { %99 = vmatprep.subr.bf16.mxu0 %v241_v0  ;;  %232 = vmatprep.subr.bf16.mxu1 %v241_v0  ;;  %v246_v4 = vld [vmem:[%s338_s1 + $0x10] ss:$8 sps:$4 sm:$0xff]   ;;  %v247_v5 = vld [vmem:[%s338_s1 + $0x24] ss:$8 sps:$4 sm:$0xff]   ;;  %v249_v6 = vld [vmem:[%s338_s1 + $0x20] ss:$8 sps:$4 sm:$0xff]  }
   0x3   :  { %100 = vmatpush1.bf16.msra.mxu0 %v243_v2  ;;  %236 = vmatpush1.bf16.msra.mxu1 %v243_v2  ;;  %v250_v7 = vld [vmem:[%s338_s1 + $0x34] ss:$8 sps:$4 sm:$0xff]   ;;  %v252_v8 = vld [vmem:[%s338_s1 + $0x30] ss:$8 sps:$4 sm:$0xff]   ;;  %v253_v9 = vld [vmem:[%s339_s0] sm:$0xff]   ;;  %v33_v12 = vshrl.u32 %v32_v11, 7 }
   0x4   :  { %101 = vmatprep.subr.bf16.mxu0 %v244_v3  ;;  %233 = vmatprep.subr.bf16.mxu1 %v244_v3  ;;  %v254_v10 = vld [vmem:[%s339_s0 + $0x8] sm:$0xff]   ;;  %v30_v14 = vld [vmem:[%s340_s2] sm:$0x3]  ;;  %v154_v17 = vld [vmem:[%s341_s3 + $0x10] sm:$0xff] }
   0x5   :  { %v34_v13 = vsub.s32 0, %v33_v12  ;;  %v38_v15 = vsub.s32 1, %v33_v12  ;;  %v152_v16 = vld [vmem:[%s341_s3] sm:$0xff]  ;;  %v153_v20 = vld [vmem:[%s341_s3 + $0x8] sm:$0xff]  ;;  %v155_v21 = vld [vmem:[%s341_s3 + $0x18] sm:$0xff]  ;;  %v160_v23 = vunpack.c.l.bf16 %v154_v17  ;;  %v161_v27 = vunpack.c.h.bf16 %v154_v17 }
   0x6   :  { %v156_v22 = vunpack.c.l.bf16 %v152_v16  ;;  %v157_v26 = vunpack.c.h.bf16 %v152_v16  ;;  %v158_v32 = vunpack.c.l.bf16 %v153_v20  ;;  %v162_v33 = vunpack.c.l.bf16 %v155_v21 }
   0x7   :  { %102 = vmatpush1.bf16.msra.mxu0 %v246_v4  ;;  %237 = vmatpush1.bf16.msra.mxu1 %v246_v4  ;;  %v35_v18 = vrot.slane %v30_v14, %v34_v13  ;;  %v39_v19 = vrot.slane %v30_v14, %v38_v15  ;;  %v159_v38 = vunpack.c.h.bf16 %v153_v20  ;;  %v163_v39 = vunpack.c.h.bf16 %v155_v21 }
   0x8   :  { %103 = vmatprep.subr.bf16.mxu0 %v247_v5  ;;  %234 = vmatprep.subr.bf16.mxu1 %v247_v5 }
   0xb   :  { %104 = vmatpush1.bf16.msra.mxu0 %v249_v6  ;;  %238 = vmatpush1.bf16.msra.mxu1 %v249_v6 }
   0xc   :  { %105 = vmatprep.subr.bf16.mxu0 %v250_v7  ;;  %235 = vmatprep.subr.bf16.mxu1 %v250_v7 }
   0xf   :  { %106 = vmatpush1.bf16.msra.mxu0 %v252_v8  ;;  %239 = vmatpush1.bf16.msra.mxu1 %v252_v8 }
  0x12   :  { %222 = vmatmul.mubr.msk.bf16.vlgmr.msra.gmra.mrb[0].mxu0 %vm92_vm0, %v253_v9  ;;  %223 = vmatmul.mubr.msk.bf16.vlgmr.msra.gmra.mrb[0].mxu1 %vm92_vm0, %v254_v10 }
  0xe5   :  { %v133_v24 = vpop.f32.mrb[0].mxu0  ;;  %v143_v25 = vpop.f32.mrb[0].mxu1 }
  0xe6   :  { %v134_v28 = vadd.f32 %v133_v24, %v35_v18  ;;  %v144_v29 = vadd.f32 %v143_v25, %v35_v18  ;;  %v135_v30 = vpop.f32.mrb[1].mxu0  ;;  %v145_v31 = vpop.f32.mrb[1].mxu1 }
  0xe7   :  { %v136_v34 = vadd.f32 %v135_v30, %v39_v19  ;;  %v146_v35 = vadd.f32 %v145_v31, %v39_v19  ;;  %v137_v36 = vpop.f32.mrb[2].mxu0  ;;  %v147_v37 = vpop.f32.mrb[2].mxu1 }
  0xe8   :  { %v164_v40 = vadd.f32 %v156_v22, %v134_v28  ;;  %v168_v41 = vadd.f32 %v160_v23, %v144_v29  ;;  %v138_v42 = vadd.f32 %v137_v36, %v35_v18  ;;  %v148_v43 = vadd.f32 %v147_v37, %v35_v18  ;;  %v139_v44 = vpop.f32.mrb[3].mxu0  ;;  %v149_v45 = vpop.f32.mrb[3].mxu1 }
  0xe9   :  { %v165_v46 = vadd.f32 %v157_v26, %v136_v34  ;;  %v169_v47 = vadd.f32 %v161_v27, %v146_v35  ;;  %v140_v48 = vadd.f32 %v139_v44, %v39_v19  ;;  %v150_v49 = vadd.f32 %v149_v45, %v39_v19 }
  0xea   :  { %v172_v50 = vmax.f32 %v164_v40, 0.0  ;;  %v176_v51 = vmax.f32 %v168_v41, 0.0  ;;  %v166_v52 = vadd.f32 %v158_v32, %v138_v42  ;;  %v170_v53 = vadd.f32 %v162_v33, %v148_v43 }
  0xeb   :  { %v173_v54 = vmax.f32 %v165_v46, 0.0  ;;  %v177_v55 = vmax.f32 %v169_v47, 0.0  ;;  %v167_v56 = vadd.f32 %v159_v38, %v140_v48  ;;  %v171_v57 = vadd.f32 %v163_v39, %v150_v49 }
  0xec   :  { %v174_v58 = vmax.f32 %v166_v52, 0.0  ;;  %v178_v59 = vmax.f32 %v170_v53, 0.0 }
  0xed   :  { %v228_v60 = vpack.c.bf16 %v173_v54, %v172_v50  ;;  %v230_v61 = vpack.c.bf16 %v177_v55, %v176_v51  ;;  %v175_v62 = vmax.f32 %v167_v56, 0.0  ;;  %v179_v63 = vmax.f32 %v171_v57, 0.0 }
  0xef   :  { %204 = vst [vmem:[%s342_s4] sm:$0xff] %v228_v60  ;;  %206 = vst [vmem:[%s342_s4 + $0x10] sm:$0xff] %v230_v61  ;;  %v229_v0 = vpack.c.bf16 %v175_v62, %v174_v58  ;;  %v231_v1 = vpack.c.bf16 %v179_v63, %v178_v59 }
  0xf1   :  { %205 = vst [vmem:[%s342_s4 + $0x8] sm:$0xff] %v229_v0  ;;  %207 = vst [vmem:[%s342_s4 + $0x18] sm:$0xff] %v231_v1 }

// kernel: deeplab_forward.47
= control target key start
LH: loop header
LB: loop body
LE: loop exit
PB: predicated region body
PF: predicated region fallthrough
CT: control target
= control target key end

     0   :  { %vm372_vm0 = vcmask 523264   ;;  %s913_s1 = inlined_call_operand.vmem [shape: bf16[576,128], index: 1, kind: input, shape index: {}]   ;;  %s914_s0 = inlined_call_operand.vmem [shape: bf16[32,576], index: 0, kind: input, shape index: {}]   ;;  %s915_s2 = inlined_call_operand.vmem [shape: f32[1,128], index: 2, kind: input, shape index: {}]   ;;  %s916_s3 = inlined_call_operand.vmem [shape: bf16[32,128], index: 3, kind: output, shape index: {}]  }
   0x1   :  { %v696_v0 = vld [vmem:[%s913_s1 + $0x40] sm:$0xff]   ;;  %v700_v4 = vld [vmem:[%s913_s1 + $0x48] sm:$0xff]   ;;  %v704_v8 = vld [vmem:[%s913_s1 + $0x50] sm:$0xff]  }
   0x2   :  { %v697_v1 = vld [vmem:[%s913_s1] sm:$0xff]   ;;  %622 = vmatprep.subr.bf16.mxu0 %v696_v0  ;;  %v701_v5 = vld [vmem:[%s913_s1 + $0x8] sm:$0xff]   ;;  %v705_v9 = vld [vmem:[%s913_s1 + $0x10] sm:$0xff]  }
   0x3   :  { %v698_v2 = vld [vmem:[%s913_s1 + $0xc0] sm:$0xff]   ;;  %623 = vmatpush3.bf16.msra.mxu0 %v697_v1  ;;  %v702_v6 = vld [vmem:[%s913_s1 + $0xc8] sm:$0xff]   ;;  %v706_v10 = vld [vmem:[%s913_s1 + $0xd0] sm:$0xff]  }
   0x4   :  { %v699_v3 = vld [vmem:[%s913_s1 + $0x80] sm:$0xff]   ;;  %650 = vmatprep.subr.bf16.mxu1 %v698_v2  ;;  %624 = vmatprep.subr.bf16.mxu0 %v700_v4  ;;  %v703_v7 = vld [vmem:[%s913_s1 + $0x88] sm:$0xff]   ;;  %v707_v11 = vld [vmem:[%s913_s1 + $0x90] sm:$0xff]  }
   0x5   :  { %651 = vmatpush3.bf16.msra.mxu1 %v699_v3  ;;  %v708_v12 = vld [vmem:[%s913_s1 + $0x58] sm:$0xff]   ;;  %v712_v16 = vld [vmem:[%s913_s1 + $0x60] sm:$0xff]   ;;  %v716_v20 = vld [vmem:[%s913_s1 + $0x68] sm:$0xff]  }
   0x6   :  { %652 = vmatprep.subr.bf16.mxu1 %v702_v6  ;;  %v709_v13 = vld [vmem:[%s913_s1 + $0x18] sm:$0xff]   ;;  %v713_v17 = vld [vmem:[%s913_s1 + $0x20] sm:$0xff]   ;;  %v717_v21 = vld [vmem:[%s913_s1 + $0x28] sm:$0xff]  }
   0x7   :  { %625 = vmatpush3.bf16.msra.mxu0 %v701_v5  ;;  %v710_v14 = vld [vmem:[%s913_s1 + $0xd8] sm:$0xff]   ;;  %v714_v18 = vld [vmem:[%s913_s1 + $0xe0] sm:$0xff]   ;;  %v718_v22 = vld [vmem:[%s913_s1 + $0xe8] sm:$0xff]  }
   0x8   :  { %626 = vmatprep.subr.bf16.mxu0 %v704_v8  ;;  %v711_v15 = vld [vmem:[%s913_s1 + $0x98] sm:$0xff]   ;;  %v715_v19 = vld [vmem:[%s913_s1 + $0xa0] sm:$0xff]   ;;  %v719_v23 = vld [vmem:[%s913_s1 + $0xa8] sm:$0xff]  }
   0x9   :  { %653 = vmatpush3.bf16.msra.mxu1 %v703_v7  ;;  %v720_v24 = vld [vmem:[%s913_s1 + $0x70] sm:$0xff]   ;;  %v724_v28 = vld [vmem:[%s913_s1 + $0x78] sm:$0xff]   ;;  %v731_v34 = vld [vmem:[%s913_s1 + $0x100] sm:$0xff]  }
   0xa   :  { %654 = vmatprep.subr.bf16.mxu1 %v706_v10  ;;  %v721_v25 = vld [vmem:[%s913_s1 + $0x30] sm:$0xff]   ;;  %v725_v29 = vld [vmem:[%s913_s1 + $0x38] sm:$0xff]   ;;  %v734_v36 = vld [vmem:[%s914_s0 + $0xc] ss:$20 sps:$4 sm:$0xff]  }
   0xb   :  { %627 = vmatpush3.bf16.msra.mxu0 %v705_v9  ;;  %v722_v26 = vld [vmem:[%s913_s1 + $0xf0] sm:$0xff]   ;;  %v726_v30 = vld [vmem:[%s913_s1 + $0xf8] sm:$0xff]   ;;  %v735_v37 = vld [vmem:[%s913_s1 + $0x108] sm:$0xff]   ;;  %460 = vmatprep.mubr.bf16.mxu1 %v734_v36 }
   0xc   :  { %628 = vmatprep.subr.bf16.mxu0 %v708_v12  ;;  %v723_v27 = vld [vmem:[%s913_s1 + $0xb0] sm:$0xff]   ;;  %v729_v32 = vld [vmem:[%s914_s0 + $0x4] ss:$20 sps:$4 sm:$0xff]   ;;  %v732_v35 = vld [vmem:[%s914_s0 + $0x8] ss:$20 sps:$4 sm:$0xff]  }
   0xd   :  { %655 = vmatpush3.bf16.msra.mxu1 %v707_v11  ;;  %v727_v31 = vld [vmem:[%s914_s0] ss:$20 sps:$4 sm:$0xff]   ;;  %v730_v33 = vld [vmem:[%s913_s1 + $0xb8] sm:$0xff]   ;;  %411 = vmatprep.mubr.bf16.mxu0 %v729_v32  ;;  %v742_v42 = vld [vmem:[%s914_s0 + $0x30] ss:$20 sps:$4 sm:$0xff]  }
   0xe   :  { %656 = vmatprep.subr.bf16.mxu1 %v710_v14  ;;  %v736_v38 = vld [vmem:[%s914_s0 + $0x2c] ss:$20 sps:$4 sm:$0xff]   ;;  %v738_v39 = vld [vmem:[%s914_s0 + $0x28] ss:$20 sps:$4 sm:$0xff]   ;;  %v739_v40 = vld [vmem:[%s913_s1 + $0x110] sm:$0xff]  }
   0xf   :  { %629 = vmatpush3.bf16.msra.mxu0 %v709_v13  ;;  %v740_v41 = vld [vmem:[%s914_s0 + $0x34] ss:$20 sps:$4 sm:$0xff]   ;;  %v743_v43 = vld [vmem:[%s913_s1 + $0x118] sm:$0xff]   ;;  %v744_v44 = vld [vmem:[%s914_s0 + $0x10] ss:$20 sps:$4 sm:$0xff]  }
  0x10   :  { %630 = vmatprep.subr.bf16.mxu0 %v712_v16  ;;  %v745_v45 = vld [vmem:[%s914_s0 + $0x38] ss:$20 sps:$4 sm:$0xff]   ;;  %v554_v47 = vld [vmem:[%s915_s2] ss:$0 sm:$0xff] }
  0x11   :  { %657 = vmatpush3.bf16.msra.mxu1 %v711_v15 }
  0x12   :  { %658 = vmatprep.subr.bf16.mxu1 %v714_v18 }
  0x13   :  { %631 = vmatpush3.bf16.msra.mxu0 %v713_v17 }
  0x14   :  { %632 = vmatprep.subr.bf16.mxu0 %v716_v20 }
  0x15   :  { %659 = vmatpush3.bf16.msra.mxu1 %v715_v19 }
  0x16   :  { %660 = vmatprep.subr.bf16.mxu1 %v718_v22 }
  0x17   :  { %633 = vmatpush3.bf16.msra.mxu0 %v717_v21 }
  0x18   :  { %634 = vmatprep.subr.bf16.mxu0 %v720_v24 }
  0x19   :  { %661 = vmatpush3.bf16.msra.mxu1 %v719_v23 }
  0x1a   :  { %662 = vmatprep.subr.bf16.mxu1 %v722_v26 }
  0x1b   :  { %635 = vmatpush3.bf16.msra.mxu0 %v721_v25 }
  0x1c   :  { %636 = vmatprep.subr.bf16.mxu0 %v724_v28 }
  0x1d   :  { %663 = vmatpush3.bf16.msra.mxu1 %v723_v27 }
  0x1e   :  { %664 = vmatprep.subr.bf16.mxu1 %v726_v30 }
  0x1f   :  { %637 = vmatpush3.bf16.msra.mxu0 %v725_v29 }
  0x20   :  { %684 = vmatprep.subr.bf16.mxu0 %v731_v34 }
  0x21   :  { %665 = vmatpush3.bf16.msra.mxu1 %v730_v33 }
  0x22   :  { %412 = vmatmul.mubr.bf16.vlgmr.msra.gmra.mrb[0].mxu0 %v727_v31 }
  0x23   :  { %685 = vmatpush3.bf16.msra.mxu0 %v731_v34  ;;  %419 = vmatprep.mubr.bf16.mxu0 %v736_v38 }
  0x24   :  { %461 = vmatmul.mubr.bf16.vlgmr.msra.gmra.mrb[0].mxu1 %v732_v35  ;;  %686 = vmatprep.subr.bf16.mxu0 %v735_v37 }
  0x25   :  { %468 = vmatprep.mubr.bf16.mxu1 %v740_v41 }
  0x27   :  { %687 = vmatpush3.bf16.msra.mxu0 %v735_v37 }
  0x28   :  { %688 = vmatprep.subr.bf16.mxu0 %v739_v40 }
  0x2a   :  { %420 = vmatmul.mubr.bf16.gmra.mrb[4].mxu0 %v738_v39 }
  0x2b   :  { %692 = vmatprep.mubr.msk.bf16.mxu0 %vm372_vm0, %v744_v44  ;;  %689 = vmatpush3.bf16.msra.mxu0 %v739_v40 }
  0x2c   :  { %469 = vmatmul.mubr.bf16.gmra.mrb[4].mxu1 %v742_v42  ;;  %690 = vmatprep.subr.bf16.mxu0 %v743_v43 }
  0x2f   :  { %691 = vmatpush3.bf16.msra.mxu0 %v743_v43 }
  0x32   :  { %693 = vmatmul.mubr.msk.bf16.vlgmr.msra.gmra.mrb[8].mxu0 %vm372_vm0, %v745_v45 }
  0xf5   :  { %v638_v46 = vpop.f32.mrb[0].mxu0 }
  0xf6   :  { %v639_v48 = vpop.f32.mrb[1].mxu0 }
  0xf7   :  { %v640_v49 = vadd.f32 %v639_v48, %v638_v46  ;;  %v641_v50 = vpop.f32.mrb[2].mxu0  ;;  %v666_v51 = vpop.f32.mrb[0].mxu1 }
  0xf8   :  { %v642_v52 = vpop.f32.mrb[3].mxu0  ;;  %v667_v55 = vpop.f32.mrb[1].mxu1 }
  0xf9   :  { %v414_v53 = vadd.f32 %v640_v49, %v554_v47  ;;  %v643_v54 = vadd.f32 %v642_v52, %v641_v50  ;;  %v668_v56 = vadd.f32 %v667_v55, %v666_v51  ;;  %v669_v57 = vpop.f32.mrb[2].mxu1 }
  0xfa   :  { %v670_v59 = vpop.f32.mrb[3].mxu1 }
  0xfb   :  { %v417_v58 = vadd.f32 %v643_v54, %v554_v47  ;;  %v671_v60 = vadd.f32 %v670_v59, %v669_v57  ;;  %v463_v61 = vadd.f32 %v668_v56, %v414_v53 }
  0xfd   :  { %v644_v62 = vpop.f32.mrb[4].mxu0  ;;  %v466_v0 = vadd.f32 %v671_v60, %v417_v58 }
  0xfe   :  { %v645_v63 = vpop.f32.mrb[5].mxu0 }
  0xff   :  { %v646_v1 = vadd.f32 %v645_v63, %v644_v62  ;;  %v647_v2 = vpop.f32.mrb[6].mxu0  ;;  %v672_v3 = vpop.f32.mrb[4].mxu1 }
 0x100   :  { %v648_v4 = vpop.f32.mrb[7].mxu0  ;;  %v673_v7 = vpop.f32.mrb[5].mxu1 }
 0x101   :  { %v422_v5 = vadd.f32 %v646_v1, %v554_v47  ;;  %v649_v6 = vadd.f32 %v648_v4, %v647_v2  ;;  %v674_v8 = vadd.f32 %v673_v7, %v672_v3  ;;  %v675_v9 = vpop.f32.mrb[6].mxu1 }
 0x102   :  { %v676_v11 = vpop.f32.mrb[7].mxu1 }
 0x103   :  { %v425_v10 = vadd.f32 %v649_v6, %v554_v47  ;;  %v677_v12 = vadd.f32 %v676_v11, %v675_v9  ;;  %v471_v13 = vadd.f32 %v674_v8, %v422_v5 }
 0x105   :  { %v694_v14 = vpop.f32.mrb[8].mxu0  ;;  %v474_v15 = vadd.f32 %v677_v12, %v425_v10 }
 0x106   :  { %v520_v16 = vadd.f32 %v694_v14, %v471_v13  ;;  %v511_v17 = vpop.f32.mrb[9].mxu0 }
 0x107   :  { %v512_v18 = vadd.f32 %v511_v17, %v463_v61  ;;  %v695_v19 = vpop.f32.mrb[10].mxu0 }
 0x108   :  { %v523_v20 = vadd.f32 %v695_v19, %v474_v15  ;;  %v514_v21 = vpop.f32.mrb[11].mxu0  ;;  %v528_v23 = vmax.f32 %v520_v16, 0.0 }
 0x109   :  { %v515_v22 = vadd.f32 %v514_v21, %v466_v0  ;;  %v526_v25 = vmax.f32 %v512_v18, 0.0 }
 0x10a   :  { %v529_v24 = vmax.f32 %v523_v20, 0.0 }
 0x10b   :  { %v527_v26 = vmax.f32 %v515_v22, 0.0 }
 0x10c   :  { %v619_v27 = vpack.c.bf16 %v529_v24, %v528_v23 }
 0x10d   :  { %v614_v28 = vpack.c.bf16 %v527_v26, %v526_v25 }
 0x10e   :  { %621 = vst [vmem:[%s916_s3 + $0x8] sm:$0xff] %v619_v27  }
 0x10f   :  { %615 = vst [vmem:[%s916_s3] sm:$0xff] %v614_v28  }

// kernel: deeplab_forward.53
= control target key start
LH: loop header
LB: loop body
LE: loop exit
PB: predicated region body
PF: predicated region fallthrough
CT: control target
= control target key end

     0   :  { %s602_s12 = smov 0   ;;  %s604_s13 = smov 0   ;;  %s681_s0 = inlined_call_operand.vmem [shape: bf16[16,16], index: 0, kind: input, shape index: {}]   ;;  %s682_s1 = inlined_call_operand.vmem [shape: bf16[16,512], index: 1, kind: input, shape index: {}]   ;;  %s683_s2 = inlined_call_operand.vmem [shape: f32[1,512], index: 2, kind: input, shape index: {}]   ;;  %s684_s3 = inlined_call_operand.vmem [shape: f32[16,512], index: 3, kind: output, shape index: {}]  }
   0x1   :  { %s606_s14 = smov 0   ;;  %s608_s15 = smov 0  }
   0x2   :  { %s610_s16 = smov 0  }
   0x3 LB: > { %s22_s17 = sadd.s32 1, %s575_s15  ;;  %s473_s18 = sadd.s32 4294967295, %s579_s16   ;;  %s579_s16 = sphi %s610_s16, %s13_s16   ;;  %s575_s15 = sphi %s608_s15, %s689_s15   ;;  %s571_s14 = sphi %s606_s14, %s688_s14   ;;  %s567_s13 = sphi %s604_s13, %s687_s13   ;;  %s563_s12 = sphi %s602_s12, %s686_s12  }
   0x4   : > { %p23_p0 = scmp.ge.s32.totalorder %s22_s17, 2  ;;  %p65_p1 = scmp.ne.s32.totalorder %s567_s13, %s563_s12 }
   0x5   : > { %p66_p2 = scmp.eq.s32.totalorder %s579_s16, 0  ;;  %p123_p4 = scmp.eq.s32.totalorder %s473_s18, 1 }
   0x6   : > { %s691_s17 = smov (%p23_p0, %s22_s17), 0  ;;  %s58_s20 = sadd.s32 1, %s567_s13 }
   0x7   : > { %p67_p3 = por %p66_p2, %p65_p1  ;;  %s55_s19 = ssub.s32 %s575_s15, %s691_s17 }
   0x8   : > { %p56_p5 = scmp.eq.s32.totalorder %s55_s19, 0  ;;  %p637_p6 = por %p123_p4, %p65_p1 }
   0x9   : > { %p477_p7 = scmp.ge.s32.totalorder %s579_s16, 2 }
   0xa   : > { %s642_s22 = scalar_select %p56_p5, %s567_s13, %s58_s20  }
   0xb   : > { %154 = sbr.rel (%p477_p7) target bundleno = 25 (0x19), region = 20 }
  0x12   : > { %157 = sbr.rel (!%p67_p3) target bundleno = 25 (0x19), region = 24  ;;  %s159_s23 = sand.u32 (%p67_p3), 1, %s567_s13  }
  0x13   : > { %s494_s24 = sshll.u32 (%p67_p3), %s575_s15, 3  ;;  %s478_s25 = sshll.u32 (%p67_p3), %s159_s23, 4 }
  0x14   : > { %s164_s28 = scalar_lea.vmem (%p67_p3), %s682_s1, %s494_s24  ;;  %s161_s29 = scalar_lea.vmem (%p67_p3), [#allocation2], %s478_s25 }
  0x15   : > { %v194_v0 = vld [vmem:[%s164_s28] sm:$0xff] (%p67_p3)  ;;  %v196_v1 = vld [vmem:[%s164_s28 + $0x10] sm:$0xff] (%p67_p3) }
  0x16   : > { %195 = vst [vmem:[%s161_s29] sm:$0xff] (%p67_p3), %v194_v0  ;;  %197 = vst [vmem:[%s161_s29 + $0x8] sm:$0xff] (%p67_p3), %v196_v1 }
  0x19 PF: > { %p481_p8 = scmp.ge.s32.totalorder %s579_s16, 1  ;;  %p210_p9 = scmp.lt.s32.totalorder %s579_s16, 3 }
  0x1b   : > { %p211_p10 = pnand %p481_p8, %p210_p9 }
  0x1c   : > { %s217_s30 = sand.u32 (!%p211_p10), 1, %s563_s12   ;;  %v581_v2 = vmov (!%p211_p10), 0   ;;  %v540_v5 = vld [vmem:[%s681_s0] sm:$0xff] (!%p211_p10)   ;;  %vm294_vm0 = vcmask (!%p211_p10), 130048   ;;  %s484_s8 = sshll.u32 (!%p211_p10), %s571_s14, 1  ;;  %v269_v6 = vlaneseq (!%p211_p10) }
  0x1d   : > { %214 = sbr.rel (%p211_p10) target bundleno = 262 (0x106), region = 66  ;;  %s482_s4 = sshll.u32 (!%p211_p10), %s217_s30, 4  ;;  %330 = vmatprep.mubr.bf16.mxu0 (!%p211_p10), %v581_v2 }
  0x1e   : > { %s219_s5 = scalar_lea.vmem (!%p211_p10), [#allocation2], %s482_s4  ;;  %p256_p11 = scmp.lt.s32.totalorder (!%p211_p10), %s484_s8, 3  ;;  %v270_v7 = vshrl.u32 (!%p211_p10), %v269_v6, 7 }
  0x1f   : > { %v537_v3 = vld [vmem:[%s219_s5 + $0x4] ss:$8 sps:$4 sm:$0xff] (!%p211_p10)   ;;  %v539_v4 = vld [vmem:[%s219_s5] ss:$8 sps:$4 sm:$0xff] (!%p211_p10)   ;;  %s483_s12 = sshll.u32 (!%p211_p10), %s217_s30, 5 }
  0x20   : > { %298 = vmatprep.subr.bf16.mxu0 (!%p211_p10), %v537_v3  ;;  %v271_v8 = vsub.s32 (!%p211_p10), 0, %v270_v7  ;;  %v275_v10 = vsub.s32 (!%p211_p10), 1, %v270_v7  ;;  %s247_s18 = scalar_lea.vmem (!%p211_p10), [#allocation3], %s483_s12 }
  0x21   : > { %299 = vmatpush1.bf16.msra.mxu0 (!%p211_p10), %v539_v4 }
  0x24   : > { %488 = vmatmul.mubr.msk.bf16.vlgmr.msra.gmra.mrb[0].mxu0 %vm294_vm0, %v540_v5  ;;  %s693_s8 = smov (!%p256_p11, %s484_s8), 3  ;;  %s495_s19 = sshll.u32 (%p637_p6), %s571_s14, 4 }
  0x25   : > { %s258_s11 = scalar_lea.vmem %s683_s2, %s693_s8  ;;  %s357_s24 = scalar_lea.vmem (%p637_p6), %s684_s3, %s495_s19 }
  0x26   : > { %v267_v9 = vld [vmem:[%s258_s11] sm:$0x3] }
  0x27   : > { %v272_v11 = vrot.slane %v267_v9, %v271_v8  ;;  %v276_v12 = vrot.slane %v267_v9, %v275_v10 }
  0xf7   : > { %v332_v13 = vpop.f32.mrb[0].mxu0  ;;  %351 = sbr.rel (!%p637_p6) target bundleno = 262 (0x106), region = 74 }
  0xf8   : > { %v333_v14 = vadd.f32 %v332_v13, %v272_v11  ;;  %v334_v15 = vpop.f32.mrb[1].mxu0 }
  0xf9   : > { %v335_v16 = vadd.f32 %v334_v15, %v276_v12  ;;  %v336_v17 = vpop.f32.mrb[2].mxu0 }
  0xfa   : > { %341 = vst [vmem:[%s247_s18] sm:$0xff] %v333_v14  ;;  %v337_v18 = vadd.f32 %v336_v17, %v272_v11  ;;  %v338_v19 = vpop.f32.mrb[3].mxu0 }
  0xfb   : > { %342 = vst [vmem:[%s247_s18 + $0x8] sm:$0xff] %v335_v16  ;;  %v339_v20 = vadd.f32 %v338_v19, %v276_v12 }
  0xfc   : > { %343 = vst [vmem:[%s247_s18 + $0x10] sm:$0xff] %v337_v18 }
  0xfd   : > { %344 = vst [vmem:[%s247_s18 + $0x18] sm:$0xff] %v339_v20 }
 0x101   : > { %v370_v21 = vld [vmem:[%s247_s18] sm:$0xff] }
 0x102   : > { %v372_v22 = vld [vmem:[%s247_s18 + $0x8] sm:$0xff]  ;;  %371 = vst [vmem:[%s357_s24] sm:$0xff] %v370_v21 }
 0x103   : > { %v374_v23 = vld [vmem:[%s247_s18 + $0x10] sm:$0xff]  ;;  %373 = vst [vmem:[%s357_s24 + $0x8] sm:$0xff] %v372_v22 }
 0x104   : > { %v376_v24 = vld [vmem:[%s247_s18 + $0x18] sm:$0xff]  ;;  %375 = vst [vmem:[%s357_s24 + $0x20] sm:$0xff] %v374_v23 }
 0x105   : > { %377 = vst [vmem:[%s357_s24 + $0x28] sm:$0xff] %v376_v24 }
 0x106 PF: > { %s13_s16 = sadd.s32 1, %s579_s16   ;;  %s686_s12 = smov %s567_s13 }
 0x107   : > { %p10_p12 = scmp.ge.s32.totalorder %s13_s16, 4   ;;  %s687_s13 = smov %s642_s22 }
 0x108   : > { %s688_s14 = smov %s575_s15  ;;  %s689_s15 = smov %s691_s17 }
 0x109   :  { %12 = sbr.rel (!%p10_p12) target bundleno = 3 (0x3), region = 134 }

// kernel: deeplab_forward.54
= control target key start
LH: loop header
LB: loop body
LE: loop exit
PB: predicated region body
PF: predicated region fallthrough
CT: control target
= control target key end

     0   :  { %s368_s1 = inlined_call_operand.vmem [shape: bf16[256,128], index: 1, kind: input, shape index: {}]   ;;  %s369_s0 = inlined_call_operand.vmem [shape: bf16[16,256], index: 0, kind: input, shape index: {}]   ;;  %s370_s2 = inlined_call_operand.vmem [shape: f32[1,128], index: 2, kind: input, shape index: {}]   ;;  %s371_s3 = inlined_call_operand.vmem [shape: bf16[16,128], index: 3, kind: output, shape index: {}]  }
   0x1   :  { %v269_v0 = vld [vmem:[%s368_s1 + $0x40] sm:$0xff]   ;;  %v271_v2 = vld [vmem:[%s368_s1 + $0x48] sm:$0xff]   ;;  %v273_v4 = vld [vmem:[%s368_s1 + $0x50] sm:$0xff]  }
   0x2   :  { %v270_v1 = vld [vmem:[%s368_s1] sm:$0xff]   ;;  %247 = vmatprep.subr.bf16.mxu0 %v269_v0  ;;  %v272_v3 = vld [vmem:[%s368_s1 + $0x8] sm:$0xff]   ;;  %v274_v5 = vld [vmem:[%s368_s1 + $0x10] sm:$0xff]  }
   0x3   :  { %248 = vmatpush3.bf16.msra.mxu0 %v270_v1  ;;  %v275_v6 = vld [vmem:[%s368_s1 + $0x58] sm:$0xff]   ;;  %v277_v8 = vld [vmem:[%s368_s1 + $0x60] sm:$0xff]   ;;  %v279_v10 = vld [vmem:[%s368_s1 + $0x68] sm:$0xff]  }
   0x4   :  { %249 = vmatprep.subr.bf16.mxu0 %v271_v2  ;;  %v276_v7 = vld [vmem:[%s368_s1 + $0x18] sm:$0xff]   ;;  %v278_v9 = vld [vmem:[%s368_s1 + $0x20] sm:$0xff]   ;;  %v280_v12 = vld [vmem:[%s368_s1 + $0x28] sm:$0xff]  }
   0x5   :  { %v287_v11 = vld [vmem:[%s369_s0 + $0x4] ss:$8 sps:$4 sm:$0xff]   ;;  %v281_v13 = vld [vmem:[%s368_s1 + $0x70] sm:$0xff]   ;;  %v283_v15 = vld [vmem:[%s368_s1 + $0x78] sm:$0xff]  }
   0x6   :  { %194 = vmatprep.mubr.bf16.mxu0 %v287_v11  ;;  %v282_v14 = vld [vmem:[%s368_s1 + $0x30] sm:$0xff]   ;;  %v284_v16 = vld [vmem:[%s368_s1 + $0x38] sm:$0xff]   ;;  %v285_v17 = vld [vmem:[%s369_s0] ss:$8 sps:$4 sm:$0xff]  }
   0x7   :  { %250 = vmatpush3.bf16.msra.mxu0 %v272_v3  ;;  %v219_v19 = vld [vmem:[%s370_s2] ss:$0 sm:$0xff] }
   0x8   :  { %251 = vmatprep.subr.bf16.mxu0 %v273_v4 }
   0xb   :  { %252 = vmatpush3.bf16.msra.mxu0 %v274_v5 }
   0xc   :  { %253 = vmatprep.subr.bf16.mxu0 %v275_v6 }
   0xf   :  { %254 = vmatpush3.bf16.msra.mxu0 %v276_v7 }
  0x10   :  { %255 = vmatprep.subr.bf16.mxu0 %v277_v8 }
  0x13   :  { %256 = vmatpush3.bf16.msra.mxu0 %v278_v9 }
  0x14   :  { %257 = vmatprep.subr.bf16.mxu0 %v279_v10 }
  0x17   :  { %258 = vmatpush3.bf16.msra.mxu0 %v280_v12 }
  0x18   :  { %259 = vmatprep.subr.bf16.mxu0 %v281_v13 }
  0x1b   :  { %260 = vmatpush3.bf16.msra.mxu0 %v282_v14 }
  0x1c   :  { %261 = vmatprep.subr.bf16.mxu0 %v283_v15 }
  0x1f   :  { %262 = vmatpush3.bf16.msra.mxu0 %v284_v16 }
  0x22   :  { %195 = vmatmul.mubr.bf16.vlgmr.msra.gmra.mrb[0].mxu0 %v285_v17 }
  0xf5   :  { %v263_v18 = vpop.f32.mrb[0].mxu0 }
  0xf6   :  { %v264_v20 = vpop.f32.mrb[1].mxu0 }
  0xf7   :  { %v265_v21 = vadd.f32 %v264_v20, %v263_v18  ;;  %v266_v22 = vpop.f32.mrb[2].mxu0 }
  0xf8   :  { %v267_v23 = vpop.f32.mrb[3].mxu0 }
  0xf9   :  { %v197_v24 = vadd.f32 %v265_v21, %v219_v19  ;;  %v268_v25 = vadd.f32 %v267_v23, %v266_v22 }
  0xfb   :  { %v200_v26 = vadd.f32 %v268_v25, %v219_v19  ;;  %v203_v27 = vmax.f32 %v197_v24, 0.0 }
  0xfd   :  { %v204_v28 = vmax.f32 %v200_v26, 0.0 }
  0xff   :  { %v245_v29 = vpack.c.bf16 %v204_v28, %v203_v27 }
 0x101   :  { %246 = vst [vmem:[%s371_s3] sm:$0xff] %v245_v29  }

// kernel: deeplab_forward.49
= control target key start
LH: loop header
LB: loop body
LE: loop exit
PB: predicated region body
PF: predicated region fallthrough
CT: control target
= control target key end

     0   :  { %s446_s1 = inlined_call_operand.vmem [shape: bf16[256,128], index: 1, kind: input, shape index: {}]   ;;  %s447_s0 = inlined_call_operand.vmem [shape: bf16[32,256], index: 0, kind: input, shape index: {}]   ;;  %s448_s2 = inlined_call_operand.vmem [shape: f32[1,128], index: 2, kind: input, shape index: {}]   ;;  %s449_s3 = inlined_call_operand.vmem [shape: bf16[32,128], index: 3, kind: output, shape index: {}]  }
   0x1   :  { %v335_v0 = vld [vmem:[%s446_s1 + $0x40] sm:$0xff]   ;;  %v337_v2 = vld [vmem:[%s446_s1 + $0x48] sm:$0xff]   ;;  %v339_v4 = vld [vmem:[%s446_s1 + $0x50] sm:$0xff]  }
   0x2   :  { %v336_v1 = vld [vmem:[%s446_s1] sm:$0xff]   ;;  %291 = vmatprep.subr.bf16.mxu0 %v335_v0  ;;  %319 = vmatprep.subr.bf16.mxu1 %v335_v0  ;;  %v338_v3 = vld [vmem:[%s446_s1 + $0x8] sm:$0xff]   ;;  %v340_v5 = vld [vmem:[%s446_s1 + $0x10] sm:$0xff]  }
   0x3   :  { %292 = vmatpush3.bf16.msra.mxu0 %v336_v1  ;;  %327 = vmatpush3.bf16.msra.mxu1 %v336_v1  ;;  %v341_v6 = vld [vmem:[%s446_s1 + $0x58] sm:$0xff]   ;;  %v343_v8 = vld [vmem:[%s446_s1 + $0x60] sm:$0xff]   ;;  %v345_v10 = vld [vmem:[%s446_s1 + $0x68] sm:$0xff]  }
   0x4   :  { %293 = vmatprep.subr.bf16.mxu0 %v337_v2  ;;  %320 = vmatprep.subr.bf16.mxu1 %v337_v2  ;;  %v342_v7 = vld [vmem:[%s446_s1 + $0x18] sm:$0xff]   ;;  %v344_v9 = vld [vmem:[%s446_s1 + $0x20] sm:$0xff]   ;;  %v346_v13 = vld [vmem:[%s446_s1 + $0x28] sm:$0xff]  }
   0x5   :  { %v353_v11 = vld [vmem:[%s447_s0 + $0x4] ss:$8 sps:$4 sm:$0xff]   ;;  %v356_v12 = vld [vmem:[%s447_s0 + $0x14] ss:$8 sps:$4 sm:$0xff]   ;;  %v351_v18 = vld [vmem:[%s447_s0] ss:$8 sps:$4 sm:$0xff]  }
   0x6   :  { %v347_v14 = vld [vmem:[%s446_s1 + $0x70] sm:$0xff]   ;;  %206 = vmatprep.mubr.bf16.mxu0 %v353_v11  ;;  %214 = vmatprep.mubr.bf16.mxu1 %v356_v12  ;;  %v349_v16 = vld [vmem:[%s446_s1 + $0x78] sm:$0xff]   ;;  %v251_v22 = vld [vmem:[%s448_s2] ss:$0 sm:$0xff] }
   0x7   :  { %294 = vmatpush3.bf16.msra.mxu0 %v338_v3  ;;  %328 = vmatpush3.bf16.msra.mxu1 %v338_v3  ;;  %v348_v15 = vld [vmem:[%s446_s1 + $0x30] sm:$0xff]   ;;  %v350_v17 = vld [vmem:[%s446_s1 + $0x38] sm:$0xff]  }
   0x8   :  { %295 = vmatprep.subr.bf16.mxu0 %v339_v4  ;;  %321 = vmatprep.subr.bf16.mxu1 %v339_v4  ;;  %v354_v19 = vld [vmem:[%s447_s0 + $0x10] ss:$8 sps:$4 sm:$0xff]  }
   0xb   :  { %296 = vmatpush3.bf16.msra.mxu0 %v340_v5  ;;  %329 = vmatpush3.bf16.msra.mxu1 %v340_v5 }
   0xc   :  { %297 = vmatprep.subr.bf16.mxu0 %v341_v6  ;;  %322 = vmatprep.subr.bf16.mxu1 %v341_v6 }
   0xf   :  { %298 = vmatpush3.bf16.msra.mxu0 %v342_v7  ;;  %330 = vmatpush3.bf16.msra.mxu1 %v342_v7 }
  0x10   :  { %299 = vmatprep.subr.bf16.mxu0 %v343_v8  ;;  %323 = vmatprep.subr.bf16.mxu1 %v343_v8 }
  0x13   :  { %300 = vmatpush3.bf16.msra.mxu0 %v344_v9  ;;  %331 = vmatpush3.bf16.msra.mxu1 %v344_v9 }
  0x14   :  { %301 = vmatprep.subr.bf16.mxu0 %v345_v10  ;;  %324 = vmatprep.subr.bf16.mxu1 %v345_v10 }
  0x17   :  { %302 = vmatpush3.bf16.msra.mxu0 %v346_v13  ;;  %332 = vmatpush3.bf16.msra.mxu1 %v346_v13 }
  0x18   :  { %303 = vmatprep.subr.bf16.mxu0 %v347_v14  ;;  %325 = vmatprep.subr.bf16.mxu1 %v347_v14 }
  0x1b   :  { %304 = vmatpush3.bf16.msra.mxu0 %v348_v15  ;;  %333 = vmatpush3.bf16.msra.mxu1 %v348_v15 }
  0x1c   :  { %305 = vmatprep.subr.bf16.mxu0 %v349_v16  ;;  %326 = vmatprep.subr.bf16.mxu1 %v349_v16 }
  0x1f   :  { %306 = vmatpush3.bf16.msra.mxu0 %v350_v17  ;;  %334 = vmatpush3.bf16.msra.mxu1 %v350_v17 }
  0x22   :  { %207 = vmatmul.mubr.bf16.vlgmr.msra.gmra.mrb[0].mxu0 %v351_v18  ;;  %215 = vmatmul.mubr.bf16.vlgmr.msra.gmra.mrb[0].mxu1 %v354_v19 }
  0xf5   :  { %v307_v20 = vpop.f32.mrb[0].mxu0  ;;  %v313_v21 = vpop.f32.mrb[0].mxu1 }
  0xf6   :  { %v308_v23 = vpop.f32.mrb[1].mxu0  ;;  %v314_v24 = vpop.f32.mrb[1].mxu1 }
  0xf7   :  { %v309_v25 = vadd.f32 %v308_v23, %v307_v20  ;;  %v315_v26 = vadd.f32 %v314_v24, %v313_v21  ;;  %v310_v27 = vpop.f32.mrb[2].mxu0  ;;  %v316_v28 = vpop.f32.mrb[2].mxu1 }
  0xf8   :  { %v311_v29 = vpop.f32.mrb[3].mxu0  ;;  %v317_v30 = vpop.f32.mrb[3].mxu1 }
  0xf9   :  { %v209_v31 = vadd.f32 %v309_v25, %v251_v22  ;;  %v217_v32 = vadd.f32 %v315_v26, %v251_v22  ;;  %v312_v33 = vadd.f32 %v311_v29, %v310_v27  ;;  %v318_v34 = vadd.f32 %v317_v30, %v316_v28 }
  0xfb   :  { %v212_v35 = vadd.f32 %v312_v33, %v251_v22  ;;  %v220_v36 = vadd.f32 %v318_v34, %v251_v22  ;;  %v223_v37 = vmax.f32 %v209_v31, 0.0  ;;  %v225_v38 = vmax.f32 %v217_v32, 0.0 }
  0xfd   :  { %v224_v39 = vmax.f32 %v212_v35, 0.0  ;;  %v226_v40 = vmax.f32 %v220_v36, 0.0 }
  0xff   :  { %v283_v41 = vpack.c.bf16 %v224_v39, %v223_v37  ;;  %v288_v42 = vpack.c.bf16 %v226_v40, %v225_v38 }
 0x101   :  { %284 = vst [vmem:[%s449_s3] sm:$0xff] %v283_v41   ;;  %290 = vst [vmem:[%s449_s3 + $0x8] sm:$0xff] %v288_v42  }

// kernel: deeplab_forward.50
= control target key start
LH: loop header
LB: loop body
LE: loop exit
PB: predicated region body
PF: predicated region fallthrough
CT: control target
= control target key end

     0   :  { %s3094_s1 = inlined_call_operand.vmem [shape: bf16[2304,128], index: 1, kind: input, shape index: {}]   ;;  %s3095_s0 = inlined_call_operand.vmem [shape: bf16[32,2304], index: 0, kind: input, shape index: {}]   ;;  %s3096_s2 = inlined_call_operand.vmem [shape: f32[1,128], index: 2, kind: input, shape index: {}]   ;;  %s3097_s3 = inlined_call_operand.vmem [shape: bf16[32,128], index: 3, kind: output, shape index: {}]  }
   0x1   :  { %v2327_v0 = vld [vmem:[%s3094_s1 + $0x40] sm:$0xff]   ;;  %v2331_v4 = vld [vmem:[%s3094_s1 + $0x48] sm:$0xff]   ;;  %v2335_v8 = vld [vmem:[%s3094_s1 + $0x50] sm:$0xff]  }
   0x2   :  { %v2328_v1 = vld [vmem:[%s3094_s1 + $0xc0] sm:$0xff]   ;;  %2059 = vmatprep.subr.bf16.mxu0 %v2327_v0  ;;  %v2332_v5 = vld [vmem:[%s3094_s1 + $0xc8] sm:$0xff]   ;;  %v2336_v9 = vld [vmem:[%s3094_s1 + $0xd0] sm:$0xff]  }
   0x3   :  { %v2329_v2 = vld [vmem:[%s3094_s1] sm:$0xff]   ;;  %2087 = vmatprep.subr.bf16.mxu1 %v2328_v1  ;;  %v2333_v6 = vld [vmem:[%s3094_s1 + $0x8] sm:$0xff]   ;;  %v2337_v10 = vld [vmem:[%s3094_s1 + $0x10] sm:$0xff]  }
   0x4   :  { %v2330_v3 = vld [vmem:[%s3094_s1 + $0x80] sm:$0xff]   ;;  %2060 = vmatpush3.bf16.msra.mxu0 %v2329_v2  ;;  %v2334_v7 = vld [vmem:[%s3094_s1 + $0x88] sm:$0xff]   ;;  %v2338_v11 = vld [vmem:[%s3094_s1 + $0x90] sm:$0xff]  }
   0x5   :  { %2088 = vmatpush3.bf16.msra.mxu1 %v2330_v3  ;;  %2061 = vmatprep.subr.bf16.mxu0 %v2331_v4  ;;  %v2339_v12 = vld [vmem:[%s3094_s1 + $0x58] sm:$0xff]   ;;  %v2343_v16 = vld [vmem:[%s3094_s1 + $0x60] sm:$0xff]   ;;  %v2347_v20 = vld [vmem:[%s3094_s1 + $0x68] sm:$0xff]  }
   0x6   :  { %2089 = vmatprep.subr.bf16.mxu1 %v2332_v5  ;;  %v2340_v13 = vld [vmem:[%s3094_s1 + $0xd8] sm:$0xff]   ;;  %v2344_v17 = vld [vmem:[%s3094_s1 + $0xe0] sm:$0xff]   ;;  %v2348_v21 = vld [vmem:[%s3094_s1 + $0xe8] sm:$0xff]  }
   0x7   :  { %v2341_v14 = vld [vmem:[%s3094_s1 + $0x18] sm:$0xff]   ;;  %v2345_v18 = vld [vmem:[%s3094_s1 + $0x20] sm:$0xff]   ;;  %v2349_v22 = vld [vmem:[%s3094_s1 + $0x28] sm:$0xff]  }
   0x8   :  { %2062 = vmatpush3.bf16.msra.mxu0 %v2333_v6  ;;  %v2342_v15 = vld [vmem:[%s3094_s1 + $0x98] sm:$0xff]   ;;  %v2346_v19 = vld [vmem:[%s3094_s1 + $0xa0] sm:$0xff]   ;;  %v2350_v23 = vld [vmem:[%s3094_s1 + $0xa8] sm:$0xff]  }
   0x9   :  { %2090 = vmatpush3.bf16.msra.mxu1 %v2334_v7  ;;  %2063 = vmatprep.subr.bf16.mxu0 %v2335_v8  ;;  %v2351_v24 = vld [vmem:[%s3094_s1 + $0x70] sm:$0xff]   ;;  %v2355_v28 = vld [vmem:[%s3094_s1 + $0x78] sm:$0xff]   ;;  %v2359_v32 = vld [vmem:[%s3095_s0] ss:$72 sps:$4 sm:$0xff]  }
   0xa   :  { %2091 = vmatprep.subr.bf16.mxu1 %v2336_v9  ;;  %v2352_v25 = vld [vmem:[%s3094_s1 + $0xf0] sm:$0xff]   ;;  %v2356_v29 = vld [vmem:[%s3094_s1 + $0xf8] sm:$0xff]   ;;  %v2361_v33 = vld [vmem:[%s3095_s0 + $0x4] ss:$72 sps:$4 sm:$0xff]  }
   0xb   :  { %v2353_v26 = vld [vmem:[%s3094_s1 + $0x30] sm:$0xff]   ;;  %v2357_v30 = vld [vmem:[%s3094_s1 + $0x38] sm:$0xff]   ;;  %1422 = vmatprep.mubr.bf16.mxu0 %v2361_v33  ;;  %v2365_v36 = vld [vmem:[%s3094_s1 + $0x140] sm:$0xff]  }
   0xc   :  { %2064 = vmatpush3.bf16.msra.mxu0 %v2337_v10  ;;  %v2354_v27 = vld [vmem:[%s3094_s1 + $0xb0] sm:$0xff]   ;;  %v2358_v31 = vld [vmem:[%s3094_s1 + $0xb8] sm:$0xff]   ;;  %v2366_v37 = vld [vmem:[%s3094_s1 + $0x1c0] sm:$0xff]  }
   0xd   :  { %2092 = vmatpush3.bf16.msra.mxu1 %v2338_v11  ;;  %2065 = vmatprep.subr.bf16.mxu0 %v2339_v12  ;;  %v2362_v34 = vld [vmem:[%s3095_s0 + $0x8] ss:$72 sps:$4 sm:$0xff]   ;;  %v2364_v35 = vld [vmem:[%s3095_s0 + $0xc] ss:$72 sps:$4 sm:$0xff]   ;;  %v2367_v38 = vld [vmem:[%s3094_s1 + $0x100] sm:$0xff]  }
   0xe   :  { %2093 = vmatprep.subr.bf16.mxu1 %v2340_v13  ;;  %1471 = vmatprep.mubr.bf16.mxu1 %v2364_v35  ;;  %v2368_v39 = vld [vmem:[%s3094_s1 + $0x180] sm:$0xff]   ;;  %v2369_v40 = vld [vmem:[%s3094_s1 + $0x148] sm:$0xff]   ;;  %v2373_v44 = vld [vmem:[%s3094_s1 + $0x150] sm:$0xff]  }
   0xf   :  { %v2370_v41 = vld [vmem:[%s3094_s1 + $0x1c8] sm:$0xff]   ;;  %v2374_v45 = vld [vmem:[%s3094_s1 + $0x1d0] sm:$0xff]   ;;  %v2377_v48 = vld [vmem:[%s3094_s1 + $0x158] sm:$0xff]  }
  0x10   :  { %2066 = vmatpush3.bf16.msra.mxu0 %v2341_v14  ;;  %v2371_v42 = vld [vmem:[%s3094_s1 + $0x108] sm:$0xff]   ;;  %v2375_v46 = vld [vmem:[%s3094_s1 + $0x110] sm:$0xff]   ;;  %v2378_v49 = vld [vmem:[%s3094_s1 + $0x1d8] sm:$0xff]  }
  0x11   :  { %2094 = vmatpush3.bf16.msra.mxu1 %v2342_v15  ;;  %2067 = vmatprep.subr.bf16.mxu0 %v2343_v16  ;;  %v2372_v43 = vld [vmem:[%s3094_s1 + $0x188] sm:$0xff]   ;;  %v2376_v47 = vld [vmem:[%s3094_s1 + $0x190] sm:$0xff]   ;;  %v2379_v50 = vld [vmem:[%s3094_s1 + $0x118] sm:$0xff]  }
  0x12   :  { %2095 = vmatprep.subr.bf16.mxu1 %v2344_v17  ;;  %v2380_v51 = vld [vmem:[%s3094_s1 + $0x198] sm:$0xff]   ;;  %v2381_v52 = vld [vmem:[%s3094_s1 + $0x160] sm:$0xff]   ;;  %v2388_v58 = vld [vmem:[%s3094_s1 + $0x168] sm:$0xff]  }
  0x13   :  { %v2382_v53 = vld [vmem:[%s3094_s1 + $0x1e0] sm:$0xff]   ;;  %v2385_v56 = vld [vmem:[%s3095_s0 + $0x94] ss:$72 sps:$4 sm:$0xff]   ;;  %v2387_v57 = vld [vmem:[%s3095_s0 + $0x90] ss:$72 sps:$4 sm:$0xff]  }
  0x14   :  { %2068 = vmatpush3.bf16.msra.mxu0 %v2345_v18  ;;  %v2383_v54 = vld [vmem:[%s3094_s1 + $0x120] sm:$0xff]   ;;  %v2389_v59 = vld [vmem:[%s3094_s1 + $0x1e8] sm:$0xff]   ;;  %v2395_v0 = vld [vmem:[%s3094_s1 + $0x170] sm:$0xff]  }
  0x15   :  { %2096 = vmatpush3.bf16.msra.mxu1 %v2346_v19  ;;  %2069 = vmatprep.subr.bf16.mxu0 %v2347_v20  ;;  %v2384_v55 = vld [vmem:[%s3094_s1 + $0x1a0] sm:$0xff]   ;;  %v2392_v61 = vld [vmem:[%s3094_s1 + $0x128] sm:$0xff]   ;;  %v2396_v1 = vld [vmem:[%s3094_s1 + $0x1f0] sm:$0xff]  }
  0x16   :  { %2097 = vmatprep.subr.bf16.mxu1 %v2348_v21  ;;  %v2390_v60 = vld [vmem:[%s3095_s0 + $0x9c] ss:$72 sps:$4 sm:$0xff]   ;;  %v2393_v62 = vld [vmem:[%s3094_s1 + $0x1a8] sm:$0xff]   ;;  %v2394_v63 = vld [vmem:[%s3095_s0 + $0x98] ss:$72 sps:$4 sm:$0xff]  }
  0x17   :  { %v2397_v2 = vld [vmem:[%s3094_s1 + $0x130] sm:$0xff]   ;;  %v2399_v4 = vld [vmem:[%s3094_s1 + $0x178] sm:$0xff]   ;;  %v2409_v12 = vld [vmem:[%s3094_s1 + $0x240] sm:$0xff]  }
  0x18   :  { %2070 = vmatpush3.bf16.msra.mxu0 %v2349_v22  ;;  %v2398_v3 = vld [vmem:[%s3094_s1 + $0x1b0] sm:$0xff]   ;;  %v2400_v5 = vld [vmem:[%s3094_s1 + $0x1f8] sm:$0xff]   ;;  %v2410_v13 = vld [vmem:[%s3094_s1 + $0x2c0] sm:$0xff]  }
  0x19   :  { %2098 = vmatpush3.bf16.msra.mxu1 %v2350_v23  ;;  %2071 = vmatprep.subr.bf16.mxu0 %v2351_v24  ;;  %v2401_v6 = vld [vmem:[%s3094_s1 + $0x138] sm:$0xff]   ;;  %v2411_v14 = vld [vmem:[%s3094_s1 + $0x200] sm:$0xff]   ;;  %v2413_v16 = vld [vmem:[%s3094_s1 + $0x248] sm:$0xff]  }
  0x1a   :  { %2099 = vmatprep.subr.bf16.mxu1 %v2352_v25  ;;  %v2402_v7 = vld [vmem:[%s3094_s1 + $0x1b8] sm:$0xff]   ;;  %v2412_v15 = vld [vmem:[%s3094_s1 + $0x280] sm:$0xff]   ;;  %v2414_v17 = vld [vmem:[%s3094_s1 + $0x2c8] sm:$0xff]  }
  0x1b   :  { %v2403_v8 = vld [vmem:[%s3095_s0 + $0x10] ss:$72 sps:$4 sm:$0xff]   ;;  %v2405_v9 = vld [vmem:[%s3095_s0 + $0x14] ss:$72 sps:$4 sm:$0xff]   ;;  %v2415_v18 = vld [vmem:[%s3094_s1 + $0x208] sm:$0xff]  }
  0x1c   :  { %2072 = vmatpush3.bf16.msra.mxu0 %v2353_v26  ;;  %v2406_v10 = vld [vmem:[%s3095_s0 + $0x18] ss:$72 sps:$4 sm:$0xff]   ;;  %v2408_v11 = vld [vmem:[%s3095_s0 + $0x1c] ss:$72 sps:$4 sm:$0xff]   ;;  %v2416_v19 = vld [vmem:[%s3094_s1 + $0x288] sm:$0xff]  }
  0x1d   :  { %2100 = vmatpush3.bf16.msra.mxu1 %v2354_v27  ;;  %2073 = vmatprep.subr.bf16.mxu0 %v2355_v28  ;;  %v2417_v20 = vld [vmem:[%s3095_s0 + $0xa4] ss:$72 sps:$4 sm:$0xff]   ;;  %v2419_v21 = vld [vmem:[%s3095_s0 + $0xa0] ss:$72 sps:$4 sm:$0xff]   ;;  %v2420_v22 = vld [vmem:[%s3094_s1 + $0x250] sm:$0xff]  }
  0x1e   :  { %2101 = vmatprep.subr.bf16.mxu1 %v2356_v29  ;;  %v2421_v23 = vld [vmem:[%s3094_s1 + $0x2d0] sm:$0xff]   ;;  %v2427_v28 = vld [vmem:[%s3094_s1 + $0x258] sm:$0xff]   ;;  %v2432_v33 = vld [vmem:[%s3094_s1 + $0x2e0] sm:$0xff]  }
  0x1f   :  { %v2422_v24 = vld [vmem:[%s3095_s0 + $0xac] ss:$72 sps:$4 sm:$0xff]   ;;  %v2426_v27 = vld [vmem:[%s3095_s0 + $0xa8] ss:$72 sps:$4 sm:$0xff]   ;;  %v2428_v29 = vld [vmem:[%s3094_s1 + $0x2d8] sm:$0xff]  }
  0x20   :  { %2074 = vmatpush3.bf16.msra.mxu0 %v2357_v30  ;;  %v2424_v25 = vld [vmem:[%s3094_s1 + $0x210] sm:$0xff]   ;;  %v2429_v30 = vld [vmem:[%s3094_s1 + $0x218] sm:$0xff]   ;;  %v2434_v35 = vld [vmem:[%s3094_s1 + $0x2a0] sm:$0xff]  }
  0x21   :  { %2102 = vmatpush3.bf16.msra.mxu1 %v2358_v31  ;;  %2115 = vmatprep.subr.bf16.mxu0 %v2365_v36  ;;  %v2425_v26 = vld [vmem:[%s3094_s1 + $0x290] sm:$0xff]   ;;  %v2430_v31 = vld [vmem:[%s3094_s1 + $0x298] sm:$0xff]   ;;  %v2435_v36 = vld [vmem:[%s3094_s1 + $0x268] sm:$0xff]  }
  0x22   :  { %2143 = vmatprep.subr.bf16.mxu1 %v2366_v37  ;;  %v2436_v37 = vld [vmem:[%s3094_s1 + $0x2e8] sm:$0xff]  }
  0x23   :  { %1423 = vmatmul.mubr.bf16.vlgmr.msra.gmra.mrb[0].mxu0 %v2359_v32  ;;  %v2431_v32 = vld [vmem:[%s3094_s1 + $0x260] sm:$0xff]  }
  0x24   :  { %1472 = vmatmul.mubr.bf16.vlgmr.msra.gmra.mrb[0].mxu1 %v2362_v34  ;;  %2116 = vmatpush3.bf16.msra.mxu0 %v2367_v38  ;;  %v2433_v34 = vld [vmem:[%s3094_s1 + $0x220] sm:$0xff]   ;;  %v2437_v38 = vld [vmem:[%s3094_s1 + $0x228] sm:$0xff]  }
  0x25   :  { %2144 = vmatpush3.bf16.msra.mxu1 %v2368_v39  ;;  %2117 = vmatprep.subr.bf16.mxu0 %v2369_v40  ;;  %v2438_v39 = vld [vmem:[%s3094_s1 + $0x2a8] sm:$0xff]   ;;  %v2439_v40 = vld [vmem:[%s3094_s1 + $0x270] sm:$0xff]  }
  0x26   :  { %2145 = vmatprep.subr.bf16.mxu1 %v2370_v41  ;;  %1430 = vmatprep.mubr.bf16.mxu0 %v2385_v56  ;;  %v2440_v41 = vld [vmem:[%s3094_s1 + $0x2f0] sm:$0xff]   ;;  %v2457_v56 = vld [vmem:[%s3094_s1 + $0x348] sm:$0xff]  }
  0x27   :  { %1479 = vmatprep.mubr.bf16.mxu1 %v2390_v60  ;;  %v2461_v60 = vld [vmem:[%s3095_s0 + $0xb4] ss:$72 sps:$4 sm:$0xff]  }
  0x28   :  { %2118 = vmatpush3.bf16.msra.mxu0 %v2371_v42  ;;  %v2441_v42 = vld [vmem:[%s3094_s1 + $0x230] sm:$0xff]  }
  0x29   :  { %2146 = vmatpush3.bf16.msra.mxu1 %v2372_v43  ;;  %2119 = vmatprep.subr.bf16.mxu0 %v2373_v44  ;;  %v2442_v43 = vld [vmem:[%s3094_s1 + $0x2b0] sm:$0xff]   ;;  %v2443_v44 = vld [vmem:[%s3094_s1 + $0x278] sm:$0xff]  }
  0x2a   :  { %2147 = vmatprep.subr.bf16.mxu1 %v2374_v45  ;;  %v2444_v45 = vld [vmem:[%s3094_s1 + $0x2f8] sm:$0xff]  }
  0x2b   :  { %1431 = vmatmul.mubr.bf16.gmra.mrb[4].mxu0 %v2387_v57  ;;  %v2458_v57 = vld [vmem:[%s3094_s1 + $0x3c8] sm:$0xff]  }
  0x2c   :  { %2120 = vmatpush3.bf16.msra.mxu0 %v2375_v46  ;;  %1480 = vmatmul.mubr.bf16.gmra.mrb[4].mxu1 %v2394_v63  ;;  %v2445_v46 = vld [vmem:[%s3094_s1 + $0x238] sm:$0xff]   ;;  %v2465_v63 = vld [vmem:[%s3094_s1 + $0x3d0] sm:$0xff]  }
  0x2d   :  { %2148 = vmatpush3.bf16.msra.mxu1 %v2376_v47  ;;  %2121 = vmatprep.subr.bf16.mxu0 %v2377_v48  ;;  %v2446_v47 = vld [vmem:[%s3094_s1 + $0x2b8] sm:$0xff]   ;;  %v2447_v48 = vld [vmem:[%s3095_s0 + $0x20] ss:$72 sps:$4 sm:$0xff]  }
  0x2e   :  { %2149 = vmatprep.subr.bf16.mxu1 %v2378_v49  ;;  %1520 = vmatprep.mubr.bf16.mxu0 %v2405_v9  ;;  %v2449_v49 = vld [vmem:[%s3095_s0 + $0x24] ss:$72 sps:$4 sm:$0xff]  }
  0x2f   :  { %1569 = vmatprep.mubr.bf16.mxu1 %v2408_v11  ;;  %v2476_v9 = vld [vmem:[%s3094_s1 + $0x3e0] sm:$0xff]  }
  0x30   :  { %2122 = vmatpush3.bf16.msra.mxu0 %v2379_v50  ;;  %v2450_v50 = vld [vmem:[%s3095_s0 + $0x28] ss:$72 sps:$4 sm:$0xff]   ;;  %v2478_v11 = vld [vmem:[%s3094_s1 + $0x3a0] sm:$0xff]  }
  0x31   :  { %2150 = vmatpush3.bf16.msra.mxu1 %v2380_v51  ;;  %2123 = vmatprep.subr.bf16.mxu0 %v2381_v52  ;;  %v2452_v51 = vld [vmem:[%s3095_s0 + $0x2c] ss:$72 sps:$4 sm:$0xff]   ;;  %v2453_v52 = vld [vmem:[%s3094_s1 + $0x340] sm:$0xff]  }
  0x32   :  { %2151 = vmatprep.subr.bf16.mxu1 %v2382_v53  ;;  %v2454_v53 = vld [vmem:[%s3094_s1 + $0x3c0] sm:$0xff]  }
  0x34   :  { %2124 = vmatpush3.bf16.msra.mxu0 %v2383_v54  ;;  %v2455_v54 = vld [vmem:[%s3094_s1 + $0x300] sm:$0xff]  }
  0x35   :  { %2152 = vmatpush3.bf16.msra.mxu1 %v2384_v55  ;;  %2125 = vmatprep.subr.bf16.mxu0 %v2388_v58  ;;  %v2456_v55 = vld [vmem:[%s3094_s1 + $0x380] sm:$0xff]   ;;  %v2459_v58 = vld [vmem:[%s3094_s1 + $0x308] sm:$0xff]  }
  0x36   :  { %2153 = vmatprep.subr.bf16.mxu1 %v2389_v59  ;;  %v2460_v59 = vld [vmem:[%s3094_s1 + $0x388] sm:$0xff]  }
  0x38   :  { %2126 = vmatpush3.bf16.msra.mxu0 %v2392_v61  ;;  %v2463_v61 = vld [vmem:[%s3095_s0 + $0xb0] ss:$72 sps:$4 sm:$0xff]  }
  0x39   :  { %2154 = vmatpush3.bf16.msra.mxu1 %v2393_v62  ;;  %2127 = vmatprep.subr.bf16.mxu0 %v2395_v0  ;;  %v2464_v62 = vld [vmem:[%s3094_s1 + $0x350] sm:$0xff]   ;;  %v2466_v0 = vld [vmem:[%s3095_s0 + $0xbc] ss:$72 sps:$4 sm:$0xff]  }
  0x3a   :  { %2155 = vmatprep.subr.bf16.mxu1 %v2396_v1  ;;  %v2468_v1 = vld [vmem:[%s3094_s1 + $0x310] sm:$0xff]  }
  0x3c   :  { %2128 = vmatpush3.bf16.msra.mxu0 %v2397_v2  ;;  %v2469_v2 = vld [vmem:[%s3094_s1 + $0x390] sm:$0xff]  }
  0x3d   :  { %2156 = vmatpush3.bf16.msra.mxu1 %v2398_v3  ;;  %2129 = vmatprep.subr.bf16.mxu0 %v2399_v4  ;;  %v2470_v3 = vld [vmem:[%s3095_s0 + $0xb8] ss:$72 sps:$4 sm:$0xff]  }
  0x3e   :  { %2157 = vmatprep.subr.bf16.mxu1 %v2400_v5  ;;  %v2471_v4 = vld [vmem:[%s3094_s1 + $0x358] sm:$0xff]  }
  0x3f   :  { %v2472_v5 = vld [vmem:[%s3094_s1 + $0x3d8] sm:$0xff]  }
  0x40   :  { %2130 = vmatpush3.bf16.msra.mxu0 %v2401_v6  ;;  %v2473_v6 = vld [vmem:[%s3094_s1 + $0x318] sm:$0xff]  }
  0x41   :  { %2158 = vmatpush3.bf16.msra.mxu1 %v2402_v7  ;;  %2171 = vmatprep.subr.bf16.mxu0 %v2409_v12  ;;  %v2474_v7 = vld [vmem:[%s3094_s1 + $0x398] sm:$0xff]   ;;  %v2479_v12 = vld [vmem:[%s3094_s1 + $0x368] sm:$0xff]  }
  0x42   :  { %2199 = vmatprep.subr.bf16.mxu1 %v2410_v13  ;;  %v2480_v13 = vld [vmem:[%s3094_s1 + $0x3e8] sm:$0xff]  }
  0x43   :  { %1521 = vmatmul.mubr.bf16.vlgmr.msra.gmra.mrb[8].mxu0 %v2403_v8  ;;  %v2475_v8 = vld [vmem:[%s3094_s1 + $0x360] sm:$0xff]  }
  0x44   :  { %1570 = vmatmul.mubr.bf16.vlgmr.msra.gmra.mrb[8].mxu1 %v2406_v10  ;;  %2172 = vmatpush3.bf16.msra.mxu0 %v2411_v14  ;;  %v2477_v10 = vld [vmem:[%s3094_s1 + $0x320] sm:$0xff]   ;;  %v2481_v14 = vld [vmem:[%s3094_s1 + $0x328] sm:$0xff]  }
  0x45   :  { %2200 = vmatpush3.bf16.msra.mxu1 %v2412_v15  ;;  %2173 = vmatprep.subr.bf16.mxu0 %v2413_v16  ;;  %v2482_v15 = vld [vmem:[%s3094_s1 + $0x3a8] sm:$0xff]   ;;  %v2483_v16 = vld [vmem:[%s3094_s1 + $0x370] sm:$0xff]  }
  0x46   :  { %2201 = vmatprep.subr.bf16.mxu1 %v2414_v17  ;;  %1528 = vmatprep.mubr.bf16.mxu0 %v2417_v20  ;;  %v2484_v17 = vld [vmem:[%s3094_s1 + $0x3f0] sm:$0xff]   ;;  %v2487_v20 = vld [vmem:[%s3094_s1 + $0x378] sm:$0xff]  }
  0x47   :  { %1577 = vmatprep.mubr.bf16.mxu1 %v2422_v24  ;;  %v2491_v24 = vld [vmem:[%s3095_s0 + $0x30] ss:$72 sps:$4 sm:$0xff]  }
  0x48   :  { %2174 = vmatpush3.bf16.msra.mxu0 %v2415_v18  ;;  %v2485_v18 = vld [vmem:[%s3094_s1 + $0x330] sm:$0xff]  }
  0x49   :  { %2202 = vmatpush3.bf16.msra.mxu1 %v2416_v19  ;;  %2175 = vmatprep.subr.bf16.mxu0 %v2420_v22  ;;  %v2486_v19 = vld [vmem:[%s3094_s1 + $0x3b0] sm:$0xff]   ;;  %v2489_v22 = vld [vmem:[%s3094_s1 + $0x338] sm:$0xff]  }
  0x4a   :  { %2203 = vmatprep.subr.bf16.mxu1 %v2421_v23  ;;  %v2490_v23 = vld [vmem:[%s3094_s1 + $0x3b8] sm:$0xff]  }
  0x4b   :  { %1529 = vmatmul.mubr.bf16.gmra.mrb[12].mxu0 %v2419_v21  ;;  %v2488_v21 = vld [vmem:[%s3094_s1 + $0x3f8] sm:$0xff]  }
  0x4c   :  { %2176 = vmatpush3.bf16.msra.mxu0 %v2424_v25  ;;  %1578 = vmatmul.mubr.bf16.gmra.mrb[12].mxu1 %v2426_v27  ;;  %v2493_v25 = vld [vmem:[%s3095_s0 + $0x34] ss:$72 sps:$4 sm:$0xff]  }
  0x4d   :  { %2204 = vmatpush3.bf16.msra.mxu1 %v2425_v26  ;;  %2177 = vmatprep.subr.bf16.mxu0 %v2427_v28  ;;  %v2494_v26 = vld [vmem:[%s3095_s0 + $0x38] ss:$72 sps:$4 sm:$0xff]   ;;  %v2496_v27 = vld [vmem:[%s3095_s0 + $0x3c] ss:$72 sps:$4 sm:$0xff]  }
  0x4e   :  { %2205 = vmatprep.subr.bf16.mxu1 %v2428_v29  ;;  %1618 = vmatprep.mubr.bf16.mxu0 %v2449_v49  ;;  %v2497_v28 = vld [vmem:[%s3094_s1 + $0x440] sm:$0xff]   ;;  %v2518_v49 = vld [vmem:[%s3094_s1 + $0x438] sm:$0xff]  }
  0x4f   :  { %1667 = vmatprep.mubr.bf16.mxu1 %v2452_v51  ;;  %v2498_v29 = vld [vmem:[%s3094_s1 + $0x400] sm:$0xff]   ;;  %v2522_v51 = vld [vmem:[%s3095_s0 + $0xd0] ss:$72 sps:$4 sm:$0xff]  }
  0x50   :  { %2178 = vmatpush3.bf16.msra.mxu0 %v2429_v30  ;;  %v2499_v30 = vld [vmem:[%s3094_s1 + $0x448] sm:$0xff]  }
  0x51   :  { %2206 = vmatpush3.bf16.msra.mxu1 %v2430_v31  ;;  %2179 = vmatprep.subr.bf16.mxu0 %v2431_v32  ;;  %v2500_v31 = vld [vmem:[%s3094_s1 + $0x408] sm:$0xff]  }
  0x52   :  { %2207 = vmatprep.subr.bf16.mxu1 %v2432_v33  ;;  %v2501_v32 = vld [vmem:[%s3095_s0 + $0xc4] ss:$72 sps:$4 sm:$0xff]   ;;  %v2503_v33 = vld [vmem:[%s3095_s0 + $0xc0] ss:$72 sps:$4 sm:$0xff]  }
  0x54   :  { %2180 = vmatpush3.bf16.msra.mxu0 %v2433_v34  ;;  %v2504_v34 = vld [vmem:[%s3094_s1 + $0x450] sm:$0xff]  }
  0x55   :  { %2208 = vmatpush3.bf16.msra.mxu1 %v2434_v35  ;;  %2181 = vmatprep.subr.bf16.mxu0 %v2435_v36  ;;  %v2505_v35 = vld [vmem:[%s3095_s0 + $0xcc] ss:$72 sps:$4 sm:$0xff]  }
  0x56   :  { %2209 = vmatprep.subr.bf16.mxu1 %v2436_v37  ;;  %v2507_v36 = vld [vmem:[%s3094_s1 + $0x410] sm:$0xff]  }
  0x57   :  { %v2508_v37 = vld [vmem:[%s3095_s0 + $0xc8] ss:$72 sps:$4 sm:$0xff]  }
  0x58   :  { %2182 = vmatpush3.bf16.msra.mxu0 %v2437_v38  ;;  %v2509_v38 = vld [vmem:[%s3094_s1 + $0x458] sm:$0xff]  }
  0x59   :  { %2210 = vmatpush3.bf16.msra.mxu1 %v2438_v39  ;;  %2183 = vmatprep.subr.bf16.mxu0 %v2439_v40  ;;  %v2510_v39 = vld [vmem:[%s3094_s1 + $0x418] sm:$0xff]   ;;  %v2511_v40 = vld [vmem:[%s3094_s1 + $0x460] sm:$0xff]  }
  0x5a   :  { %2211 = vmatprep.subr.bf16.mxu1 %v2440_v41  ;;  %v2512_v41 = vld [vmem:[%s3094_s1 + $0x420] sm:$0xff]  }
  0x5c   :  { %2184 = vmatpush3.bf16.msra.mxu0 %v2441_v42  ;;  %v2513_v42 = vld [vmem:[%s3094_s1 + $0x468] sm:$0xff]  }
  0x5d   :  { %2212 = vmatpush3.bf16.msra.mxu1 %v2442_v43  ;;  %2185 = vmatprep.subr.bf16.mxu0 %v2443_v44  ;;  %v2514_v43 = vld [vmem:[%s3094_s1 + $0x428] sm:$0xff]  }
  0x5e   :  { %2213 = vmatprep.subr.bf16.mxu1 %v2444_v45  ;;  %v2521_v44 = vld [vmem:[%s3095_s0 + $0x44] ss:$72 sps:$4 sm:$0xff]   ;;  %v2515_v45 = vld [vmem:[%s3094_s1 + $0x470] sm:$0xff]  }
  0x60   :  { %2186 = vmatpush3.bf16.msra.mxu0 %v2445_v46  ;;  %v2524_v46 = vld [vmem:[%s3095_s0 + $0xd4] ss:$72 sps:$4 sm:$0xff]  }
  0x61   :  { %2214 = vmatpush3.bf16.msra.mxu1 %v2446_v47  ;;  %2227 = vmatprep.subr.bf16.mxu0 %v2453_v52  ;;  %v2516_v47 = vld [vmem:[%s3094_s1 + $0x430] sm:$0xff]  }
  0x62   :  { %2255 = vmatprep.subr.bf16.mxu1 %v2454_v53 }
  0x63   :  { %1619 = vmatmul.mubr.bf16.vlgmr.msra.gmra.mrb[16].mxu0 %v2447_v48  ;;  %v2517_v48 = vld [vmem:[%s3094_s1 + $0x478] sm:$0xff]  }
  0x64   :  { %1668 = vmatmul.mubr.bf16.vlgmr.msra.gmra.mrb[16].mxu1 %v2450_v50  ;;  %2228 = vmatpush3.bf16.msra.mxu0 %v2455_v54  ;;  %v2519_v50 = vld [vmem:[%s3095_s0 + $0x40] ss:$72 sps:$4 sm:$0xff]  }
  0x65   :  { %2256 = vmatpush3.bf16.msra.mxu1 %v2456_v55  ;;  %2229 = vmatprep.subr.bf16.mxu0 %v2457_v56  ;;  %v1859_v54 = vld [vmem:[%s3096_s2] ss:$0 sm:$0xff] }
  0x66   :  { %2257 = vmatprep.subr.bf16.mxu1 %v2458_v57  ;;  %1626 = vmatprep.mubr.bf16.mxu0 %v2461_v60 }
  0x67   :  { %1675 = vmatprep.mubr.bf16.mxu1 %v2466_v0 }
  0x68   :  { %2230 = vmatpush3.bf16.msra.mxu0 %v2459_v58 }
  0x69   :  { %2258 = vmatpush3.bf16.msra.mxu1 %v2460_v59  ;;  %2231 = vmatprep.subr.bf16.mxu0 %v2464_v62 }
  0x6a   :  { %2259 = vmatprep.subr.bf16.mxu1 %v2465_v63 }
  0x6b   :  { %1627 = vmatmul.mubr.bf16.gmra.mrb[20].mxu0 %v2463_v61 }
  0x6c   :  { %2232 = vmatpush3.bf16.msra.mxu0 %v2468_v1  ;;  %1676 = vmatmul.mubr.bf16.gmra.mrb[20].mxu1 %v2470_v3 }
  0x6d   :  { %2260 = vmatpush3.bf16.msra.mxu1 %v2469_v2  ;;  %2233 = vmatprep.subr.bf16.mxu0 %v2471_v4 }
  0x6e   :  { %2261 = vmatprep.subr.bf16.mxu1 %v2472_v5  ;;  %1716 = vmatprep.mubr.bf16.mxu0 %v2493_v25 }
  0x6f   :  { %1765 = vmatprep.mubr.bf16.mxu1 %v2496_v27 }
  0x70   :  { %2234 = vmatpush3.bf16.msra.mxu0 %v2473_v6 }
  0x71   :  { %2262 = vmatpush3.bf16.msra.mxu1 %v2474_v7  ;;  %2235 = vmatprep.subr.bf16.mxu0 %v2475_v8 }
  0x72   :  { %2263 = vmatprep.subr.bf16.mxu1 %v2476_v9 }
  0x74   :  { %2236 = vmatpush3.bf16.msra.mxu0 %v2477_v10 }
  0x75   :  { %2264 = vmatpush3.bf16.msra.mxu1 %v2478_v11  ;;  %2237 = vmatprep.subr.bf16.mxu0 %v2479_v12 }
  0x76   :  { %2265 = vmatprep.subr.bf16.mxu1 %v2480_v13 }
  0x78   :  { %2238 = vmatpush3.bf16.msra.mxu0 %v2481_v14 }
  0x79   :  { %2266 = vmatpush3.bf16.msra.mxu1 %v2482_v15  ;;  %2239 = vmatprep.subr.bf16.mxu0 %v2483_v16 }
  0x7a   :  { %2267 = vmatprep.subr.bf16.mxu1 %v2484_v17 }
  0x7c   :  { %2240 = vmatpush3.bf16.msra.mxu0 %v2485_v18 }
  0x7d   :  { %2268 = vmatpush3.bf16.msra.mxu1 %v2486_v19  ;;  %2241 = vmatprep.subr.bf16.mxu0 %v2487_v20 }
  0x7e   :  { %2269 = vmatprep.subr.bf16.mxu1 %v2488_v21 }
  0x80   :  { %2242 = vmatpush3.bf16.msra.mxu0 %v2489_v22 }
  0x81   :  { %2270 = vmatpush3.bf16.msra.mxu1 %v2490_v23  ;;  %2283 = vmatprep.subr.bf16.mxu0 %v2497_v28 }
  0x82   :  { %2311 = vmatprep.subr.bf16.mxu1 %v2497_v28 }
  0x83   :  { %1717 = vmatmul.mubr.bf16.vlgmr.msra.gmra.mrb[24].mxu0 %v2491_v24 }
  0x84   :  { %1766 = vmatmul.mubr.bf16.vlgmr.msra.gmra.mrb[24].mxu1 %v2494_v26  ;;  %2284 = vmatpush3.bf16.msra.mxu0 %v2498_v29 }
  0x85   :  { %2319 = vmatpush3.bf16.msra.mxu1 %v2498_v29  ;;  %2285 = vmatprep.subr.bf16.mxu0 %v2499_v30 }
  0x86   :  { %2312 = vmatprep.subr.bf16.mxu1 %v2499_v30  ;;  %1724 = vmatprep.mubr.bf16.mxu0 %v2501_v32 }
  0x87   :  { %1773 = vmatprep.mubr.bf16.mxu1 %v2505_v35 }
  0x88   :  { %2286 = vmatpush3.bf16.msra.mxu0 %v2500_v31 }
  0x89   :  { %2320 = vmatpush3.bf16.msra.mxu1 %v2500_v31  ;;  %2287 = vmatprep.subr.bf16.mxu0 %v2504_v34 }
  0x8a   :  { %2313 = vmatprep.subr.bf16.mxu1 %v2504_v34 }
  0x8b   :  { %1725 = vmatmul.mubr.bf16.gmra.mrb[28].mxu0 %v2503_v33 }
  0x8c   :  { %2288 = vmatpush3.bf16.msra.mxu0 %v2507_v36  ;;  %1774 = vmatmul.mubr.bf16.gmra.mrb[28].mxu1 %v2508_v37 }
  0x8d   :  { %2321 = vmatpush3.bf16.msra.mxu1 %v2507_v36  ;;  %2289 = vmatprep.subr.bf16.mxu0 %v2509_v38 }
  0x8e   :  { %2314 = vmatprep.subr.bf16.mxu1 %v2509_v38  ;;  %1814 = vmatprep.mubr.bf16.mxu0 %v2521_v44 }
  0x8f   :  { %1822 = vmatprep.mubr.bf16.mxu1 %v2524_v46 }
  0x90   :  { %2290 = vmatpush3.bf16.msra.mxu0 %v2510_v39 }
  0x91   :  { %2322 = vmatpush3.bf16.msra.mxu1 %v2510_v39  ;;  %2291 = vmatprep.subr.bf16.mxu0 %v2511_v40 }
  0x92   :  { %2315 = vmatprep.subr.bf16.mxu1 %v2511_v40 }
  0x94   :  { %2292 = vmatpush3.bf16.msra.mxu0 %v2512_v41 }
  0x95   :  { %2323 = vmatpush3.bf16.msra.mxu1 %v2512_v41  ;;  %2293 = vmatprep.subr.bf16.mxu0 %v2513_v42 }
  0x96   :  { %2316 = vmatprep.subr.bf16.mxu1 %v2513_v42 }
  0x98   :  { %2294 = vmatpush3.bf16.msra.mxu0 %v2514_v43 }
  0x99   :  { %2324 = vmatpush3.bf16.msra.mxu1 %v2514_v43  ;;  %2295 = vmatprep.subr.bf16.mxu0 %v2515_v45 }
  0x9a   :  { %2317 = vmatprep.subr.bf16.mxu1 %v2515_v45 }
  0x9c   :  { %2296 = vmatpush3.bf16.msra.mxu0 %v2516_v47 }
  0x9d   :  { %2325 = vmatpush3.bf16.msra.mxu1 %v2516_v47  ;;  %2297 = vmatprep.subr.bf16.mxu0 %v2517_v48 }
  0x9e   :  { %2318 = vmatprep.subr.bf16.mxu1 %v2517_v48 }
  0xa0   :  { %2298 = vmatpush3.bf16.msra.mxu0 %v2518_v49 }
  0xa1   :  { %2326 = vmatpush3.bf16.msra.mxu1 %v2518_v49 }
  0xa3   :  { %1815 = vmatmul.mubr.bf16.vlgmr.msra.gmra.mrb[32].mxu0 %v2519_v50 }
  0xa4   :  { %1823 = vmatmul.mubr.bf16.vlgmr.msra.gmra.mrb[32].mxu1 %v2522_v51 }
  0xf6   :  { %v2075_v52 = vpop.f32.mrb[0].mxu0 }
  0xf7   :  { %v2103_v53 = vpop.f32.mrb[0].mxu1  ;;  %v2076_v55 = vpop.f32.mrb[1].mxu0 }
  0xf8   :  { %v2077_v56 = vadd.f32 %v2076_v55, %v2075_v52  ;;  %v2104_v57 = vpop.f32.mrb[1].mxu1  ;;  %v2078_v58 = vpop.f32.mrb[2].mxu0 }
  0xf9   :  { %v2105_v59 = vadd.f32 %v2104_v57, %v2103_v53  ;;  %v2106_v60 = vpop.f32.mrb[2].mxu1  ;;  %v2079_v61 = vpop.f32.mrb[3].mxu0 }
  0xfa   :  { %v1425_v62 = vadd.f32 %v2077_v56, %v1859_v54  ;;  %v2080_v63 = vadd.f32 %v2079_v61, %v2078_v58  ;;  %v2107_v0 = vpop.f32.mrb[3].mxu1 }
  0xfb   :  { %v2108_v1 = vadd.f32 %v2107_v0, %v2106_v60 }
  0xfc   :  { %v1474_v2 = vadd.f32 %v2105_v59, %v1425_v62  ;;  %v1428_v3 = vadd.f32 %v2080_v63, %v1859_v54 }
  0xfe   :  { %v1477_v4 = vadd.f32 %v2108_v1, %v1428_v3  ;;  %v2081_v5 = vpop.f32.mrb[4].mxu0 }
  0xff   :  { %v2082_v6 = vpop.f32.mrb[5].mxu0  ;;  %v2109_v12 = vpop.f32.mrb[4].mxu1 }
 0x100   :  { %v2083_v7 = vadd.f32 %v2082_v6, %v2081_v5  ;;  %v2084_v8 = vpop.f32.mrb[6].mxu0  ;;  %v2110_v13 = vpop.f32.mrb[5].mxu1 }
 0x101   :  { %v2085_v9 = vpop.f32.mrb[7].mxu0  ;;  %v2111_v15 = vadd.f32 %v2110_v13, %v2109_v12  ;;  %v2112_v16 = vpop.f32.mrb[6].mxu1 }
 0x102   :  { %v2086_v10 = vadd.f32 %v2085_v9, %v2084_v8  ;;  %v1433_v11 = vadd.f32 %v2083_v7, %v1859_v54  ;;  %v2113_v17 = vpop.f32.mrb[7].mxu1 }
 0x103   :  { %v2114_v19 = vadd.f32 %v2113_v17, %v2112_v16 }
 0x104   :  { %v1436_v14 = vadd.f32 %v2086_v10, %v1859_v54  ;;  %v1482_v18 = vadd.f32 %v2111_v15, %v1433_v11 }
 0x106   :  { %v1485_v20 = vadd.f32 %v2114_v19, %v1436_v14 }
 0x116   :  { %v2131_v21 = vpop.f32.mrb[8].mxu0 }
 0x117   :  { %v2159_v22 = vpop.f32.mrb[8].mxu1  ;;  %v2132_v23 = vpop.f32.mrb[9].mxu0 }
 0x118   :  { %v2133_v24 = vadd.f32 %v2132_v23, %v2131_v21  ;;  %v2160_v25 = vpop.f32.mrb[9].mxu1  ;;  %v2134_v26 = vpop.f32.mrb[10].mxu0 }
 0x119   :  { %v2161_v27 = vadd.f32 %v2160_v25, %v2159_v22  ;;  %v2162_v28 = vpop.f32.mrb[10].mxu1  ;;  %v2135_v29 = vpop.f32.mrb[11].mxu0 }
 0x11a   :  { %v1523_v30 = vadd.f32 %v2133_v24, %v1474_v2  ;;  %v2136_v31 = vadd.f32 %v2135_v29, %v2134_v26  ;;  %v2163_v32 = vpop.f32.mrb[11].mxu1 }
 0x11b   :  { %v2164_v33 = vadd.f32 %v2163_v32, %v2162_v28 }
 0x11c   :  { %v1572_v34 = vadd.f32 %v2161_v27, %v1523_v30  ;;  %v1526_v35 = vadd.f32 %v2136_v31, %v1477_v4 }
 0x11e   :  { %v1575_v36 = vadd.f32 %v2164_v33, %v1526_v35  ;;  %v2137_v37 = vpop.f32.mrb[12].mxu0 }
 0x11f   :  { %v2138_v38 = vpop.f32.mrb[13].mxu0  ;;  %v2165_v44 = vpop.f32.mrb[12].mxu1 }
 0x120   :  { %v2139_v39 = vadd.f32 %v2138_v38, %v2137_v37  ;;  %v2140_v40 = vpop.f32.mrb[14].mxu0  ;;  %v2166_v46 = vpop.f32.mrb[13].mxu1 }
 0x121   :  { %v2141_v41 = vpop.f32.mrb[15].mxu0  ;;  %v2167_v47 = vadd.f32 %v2166_v46, %v2165_v44  ;;  %v2168_v48 = vpop.f32.mrb[14].mxu1 }
 0x122   :  { %v1531_v42 = vadd.f32 %v2139_v39, %v1482_v18  ;;  %v2142_v43 = vadd.f32 %v2141_v41, %v2140_v40  ;;  %v2169_v49 = vpop.f32.mrb[15].mxu1 }
 0x123   :  { %v2170_v51 = vadd.f32 %v2169_v49, %v2168_v48 }
 0x124   :  { %v1534_v45 = vadd.f32 %v2142_v43, %v1485_v20  ;;  %v1580_v50 = vadd.f32 %v2167_v47, %v1531_v42 }
 0x126   :  { %v1583_v52 = vadd.f32 %v2170_v51, %v1534_v45 }
 0x136   :  { %v2187_v53 = vpop.f32.mrb[16].mxu0 }
 0x137   :  { %v2188_v54 = vpop.f32.mrb[17].mxu0  ;;  %v2215_v55 = vpop.f32.mrb[16].mxu1 }
 0x138   :  { %v2189_v56 = vadd.f32 %v2188_v54, %v2187_v53  ;;  %v2190_v57 = vpop.f32.mrb[18].mxu0  ;;  %v2216_v58 = vpop.f32.mrb[17].mxu1 }
 0x139   :  { %v2191_v59 = vpop.f32.mrb[19].mxu0  ;;  %v2217_v61 = vadd.f32 %v2216_v58, %v2215_v55  ;;  %v2218_v62 = vpop.f32.mrb[18].mxu1 }
 0x13a   :  { %v1621_v60 = vadd.f32 %v2189_v56, %v1572_v34  ;;  %v2192_v63 = vadd.f32 %v2191_v59, %v2190_v57  ;;  %v2219_v0 = vpop.f32.mrb[19].mxu1 }
 0x13b   :  { %v2220_v3 = vadd.f32 %v2219_v0, %v2218_v62 }
 0x13c   :  { %v1670_v1 = vadd.f32 %v2217_v61, %v1621_v60  ;;  %v1624_v2 = vadd.f32 %v2192_v63, %v1575_v36 }
 0x13e   :  { %v1673_v4 = vadd.f32 %v2220_v3, %v1624_v2  ;;  %v2193_v5 = vpop.f32.mrb[20].mxu0 }
 0x13f   :  { %v2194_v6 = vpop.f32.mrb[21].mxu0  ;;  %v2221_v12 = vpop.f32.mrb[20].mxu1 }
 0x140   :  { %v2195_v7 = vadd.f32 %v2194_v6, %v2193_v5  ;;  %v2196_v8 = vpop.f32.mrb[22].mxu0  ;;  %v2222_v14 = vpop.f32.mrb[21].mxu1 }
 0x141   :  { %v2197_v9 = vpop.f32.mrb[23].mxu0  ;;  %v2223_v15 = vadd.f32 %v2222_v14, %v2221_v12  ;;  %v2224_v16 = vpop.f32.mrb[22].mxu1 }
 0x142   :  { %v1629_v10 = vadd.f32 %v2195_v7, %v1580_v50  ;;  %v2198_v11 = vadd.f32 %v2197_v9, %v2196_v8  ;;  %v2225_v17 = vpop.f32.mrb[23].mxu1 }
 0x143   :  { %v2226_v19 = vadd.f32 %v2225_v17, %v2224_v16 }
 0x144   :  { %v1632_v13 = vadd.f32 %v2198_v11, %v1583_v52  ;;  %v1678_v18 = vadd.f32 %v2223_v15, %v1629_v10 }
 0x146   :  { %v1681_v20 = vadd.f32 %v2226_v19, %v1632_v13 }
 0x156   :  { %v2243_v21 = vpop.f32.mrb[24].mxu0 }
 0x157   :  { %v2271_v22 = vpop.f32.mrb[24].mxu1  ;;  %v2244_v23 = vpop.f32.mrb[25].mxu0 }
 0x158   :  { %v2245_v24 = vadd.f32 %v2244_v23, %v2243_v21  ;;  %v2272_v25 = vpop.f32.mrb[25].mxu1  ;;  %v2246_v26 = vpop.f32.mrb[26].mxu0 }
 0x159   :  { %v2273_v27 = vadd.f32 %v2272_v25, %v2271_v22  ;;  %v2274_v28 = vpop.f32.mrb[26].mxu1  ;;  %v2247_v29 = vpop.f32.mrb[27].mxu0 }
 0x15a   :  { %v1719_v30 = vadd.f32 %v2245_v24, %v1670_v1  ;;  %v2248_v31 = vadd.f32 %v2247_v29, %v2246_v26  ;;  %v2275_v32 = vpop.f32.mrb[27].mxu1 }
 0x15b   :  { %v2276_v33 = vadd.f32 %v2275_v32, %v2274_v28 }
 0x15c   :  { %v1768_v34 = vadd.f32 %v2273_v27, %v1719_v30  ;;  %v1722_v35 = vadd.f32 %v2248_v31, %v1673_v4 }
 0x15e   :  { %v1771_v36 = vadd.f32 %v2276_v33, %v1722_v35  ;;  %v2249_v37 = vpop.f32.mrb[28].mxu0 }
 0x15f   :  { %v2250_v38 = vpop.f32.mrb[29].mxu0  ;;  %v2277_v41 = vpop.f32.mrb[28].mxu1 }
 0x160   :  { %v2251_v39 = vadd.f32 %v2250_v38, %v2249_v37  ;;  %v2252_v40 = vpop.f32.mrb[30].mxu0  ;;  %v2278_v43 = vpop.f32.mrb[29].mxu1 }
 0x161   :  { %v2253_v42 = vpop.f32.mrb[31].mxu0  ;;  %v2279_v46 = vadd.f32 %v2278_v43, %v2277_v41  ;;  %v2280_v47 = vpop.f32.mrb[30].mxu1 }
 0x162   :  { %v1727_v44 = vadd.f32 %v2251_v39, %v1678_v18  ;;  %v2254_v45 = vadd.f32 %v2253_v42, %v2252_v40  ;;  %v2281_v48 = vpop.f32.mrb[31].mxu1 }
 0x163   :  { %v2282_v51 = vadd.f32 %v2281_v48, %v2280_v47 }
 0x164   :  { %v1730_v49 = vadd.f32 %v2254_v45, %v1681_v20  ;;  %v1776_v50 = vadd.f32 %v2279_v46, %v1727_v44 }
 0x166   :  { %v1779_v52 = vadd.f32 %v2282_v51, %v1730_v49 }
 0x176   :  { %v2299_v53 = vpop.f32.mrb[32].mxu0 }
 0x177   :  { %v2305_v54 = vpop.f32.mrb[32].mxu1  ;;  %v2300_v55 = vpop.f32.mrb[33].mxu0 }
 0x178   :  { %v2301_v56 = vadd.f32 %v2300_v55, %v2299_v53  ;;  %v2306_v57 = vpop.f32.mrb[33].mxu1  ;;  %v2302_v58 = vpop.f32.mrb[34].mxu0 }
 0x179   :  { %v2307_v59 = vadd.f32 %v2306_v57, %v2305_v54  ;;  %v2308_v60 = vpop.f32.mrb[34].mxu1  ;;  %v2303_v61 = vpop.f32.mrb[35].mxu0 }
 0x17a   :  { %v1817_v62 = vadd.f32 %v2301_v56, %v1768_v34  ;;  %v2304_v63 = vadd.f32 %v2303_v61, %v2302_v58  ;;  %v2309_v0 = vpop.f32.mrb[35].mxu1 }
 0x17b   :  { %v1825_v1 = vadd.f32 %v2307_v59, %v1776_v50  ;;  %v2310_v2 = vadd.f32 %v2309_v0, %v2308_v60 }
 0x17c   :  { %v1820_v3 = vadd.f32 %v2304_v63, %v1771_v36  ;;  %v1831_v5 = vmax.f32 %v1817_v62, 0.0 }
 0x17d   :  { %v1828_v4 = vadd.f32 %v2310_v2, %v1779_v52  ;;  %v1833_v7 = vmax.f32 %v1825_v1, 0.0 }
 0x17e   :  { %v1832_v6 = vmax.f32 %v1820_v3, 0.0 }
 0x17f   :  { %v1834_v8 = vmax.f32 %v1828_v4, 0.0 }
 0x180   :  { %v2051_v9 = vpack.c.bf16 %v1832_v6, %v1831_v5 }
 0x181   :  { %v2056_v10 = vpack.c.bf16 %v1834_v8, %v1833_v7 }
 0x182   :  { %2052 = vst [vmem:[%s3097_s3] sm:$0xff] %v2051_v9  }
 0x183   :  { %2058 = vst [vmem:[%s3097_s3 + $0x8] sm:$0xff] %v2056_v10  }

// kernel: deeplab_forward.57
= control target key start
LH: loop header
LB: loop body
LE: loop exit
PB: predicated region body
PF: predicated region fallthrough
CT: control target
= control target key end

     0   :  { %s629_s12 = smov 0   ;;  %s631_s13 = smov 0   ;;  %s712_s0 = inlined_call_operand.vmem [shape: bf16[16,16], index: 0, kind: input, shape index: {}]   ;;  %s713_s1 = inlined_call_operand.vmem [shape: bf16[16,512], index: 1, kind: input, shape index: {}]   ;;  %s714_s2 = inlined_call_operand.vmem [shape: f32[1,512], index: 2, kind: input, shape index: {}]   ;;  %s715_s3 = inlined_call_operand.vmem [shape: bf16[16,512], index: 3, kind: output, shape index: {}]  }
   0x1   :  { %s633_s14 = smov 0   ;;  %s635_s15 = smov 0  }
   0x2   :  { %s637_s16 = smov 0  }
   0x3 LB: > { %s22_s17 = sadd.s32 1, %s602_s15  ;;  %s496_s18 = sadd.s32 4294967295, %s606_s16   ;;  %s606_s16 = sphi %s637_s16, %s13_s16   ;;  %s602_s15 = sphi %s635_s15, %s720_s15   ;;  %s598_s14 = sphi %s633_s14, %s719_s14   ;;  %s594_s13 = sphi %s631_s13, %s718_s13   ;;  %s590_s12 = sphi %s629_s12, %s717_s12  }
   0x4   : > { %p23_p0 = scmp.ge.s32.totalorder %s22_s17, 2  ;;  %p65_p1 = scmp.ne.s32.totalorder %s594_s13, %s590_s12 }
   0x5   : > { %p66_p2 = scmp.eq.s32.totalorder %s606_s16, 0  ;;  %p123_p4 = scmp.eq.s32.totalorder %s496_s18, 1 }
   0x6   : > { %s722_s17 = smov (%p23_p0, %s22_s17), 0  ;;  %s58_s20 = sadd.s32 1, %s594_s13 }
   0x7   : > { %p67_p3 = por %p66_p2, %p65_p1  ;;  %s55_s19 = ssub.s32 %s602_s15, %s722_s17 }
   0x8   : > { %p56_p5 = scmp.eq.s32.totalorder %s55_s19, 0  ;;  %p664_p6 = por %p123_p4, %p65_p1 }
   0x9   : > { %p500_p7 = scmp.ge.s32.totalorder %s606_s16, 2 }
   0xa   : > { %s669_s22 = scalar_select %p56_p5, %s594_s13, %s58_s20  }
   0xb   : > { %154 = sbr.rel (%p500_p7) target bundleno = 25 (0x19), region = 20 }
  0x12   : > { %157 = sbr.rel (!%p67_p3) target bundleno = 25 (0x19), region = 24  ;;  %s159_s23 = sand.u32 (%p67_p3), 1, %s594_s13  }
  0x13   : > { %s519_s24 = sshll.u32 (%p67_p3), %s602_s15, 3  ;;  %s501_s25 = sshll.u32 (%p67_p3), %s159_s23, 4 }
  0x14   : > { %s164_s28 = scalar_lea.vmem (%p67_p3), %s713_s1, %s519_s24  ;;  %s161_s29 = scalar_lea.vmem (%p67_p3), [#allocation2], %s501_s25 }
  0x15   : > { %v194_v0 = vld [vmem:[%s164_s28] sm:$0xff] (%p67_p3)  ;;  %v196_v1 = vld [vmem:[%s164_s28 + $0x10] sm:$0xff] (%p67_p3) }
  0x16   : > { %195 = vst [vmem:[%s161_s29] sm:$0xff] (%p67_p3), %v194_v0  ;;  %197 = vst [vmem:[%s161_s29 + $0x8] sm:$0xff] (%p67_p3), %v196_v1 }
  0x19 PF: > { %p504_p8 = scmp.ge.s32.totalorder %s606_s16, 1  ;;  %p210_p9 = scmp.lt.s32.totalorder %s606_s16, 3 }
  0x1b   : > { %p211_p10 = pnand %p504_p8, %p210_p9 }
  0x1c   : > { %s217_s30 = sand.u32 (!%p211_p10), 1, %s590_s12   ;;  %v608_v2 = vmov (!%p211_p10), 0   ;;  %v567_v5 = vld [vmem:[%s712_s0] sm:$0xff] (!%p211_p10)   ;;  %vm294_vm0 = vcmask (!%p211_p10), 130048   ;;  %s507_s8 = sshll.u32 (!%p211_p10), %s598_s14, 1  ;;  %v269_v6 = vlaneseq (!%p211_p10) }
  0x1d   : > { %214 = sbr.rel (%p211_p10) target bundleno = 264 (0x108), region = 66  ;;  %s680_s4 = sshll.u32 (!%p211_p10), %s217_s30, 4  ;;  %330 = vmatprep.mubr.bf16.mxu0 (!%p211_p10), %v608_v2 }
  0x1e   : > { %s219_s5 = scalar_lea.vmem (!%p211_p10), [#allocation2], %s680_s4  ;;  %p256_p11 = scmp.lt.s32.totalorder (!%p211_p10), %s507_s8, 3  ;;  %v270_v7 = vshrl.u32 (!%p211_p10), %v269_v6, 7 }
  0x1f   : > { %v564_v3 = vld [vmem:[%s219_s5 + $0x4] ss:$8 sps:$4 sm:$0xff] (!%p211_p10)   ;;  %v566_v4 = vld [vmem:[%s219_s5] ss:$8 sps:$4 sm:$0xff] (!%p211_p10)   ;;  %s247_s12 = scalar_lea.vmem (!%p211_p10), [#allocation3], %s680_s4 }
  0x20   : > { %298 = vmatprep.subr.bf16.mxu0 (!%p211_p10), %v564_v3  ;;  %v271_v8 = vsub.s32 (!%p211_p10), 0, %v270_v7  ;;  %v275_v10 = vsub.s32 (!%p211_p10), 1, %v270_v7 }
  0x21   : > { %299 = vmatpush1.bf16.msra.mxu0 (!%p211_p10), %v566_v4 }
  0x24   : > { %511 = vmatmul.mubr.msk.bf16.vlgmr.msra.gmra.mrb[0].mxu0 %vm294_vm0, %v567_v5  ;;  %s724_s8 = smov (!%p256_p11, %s507_s8), 3  ;;  %s522_s18 = sshll.u32 (%p664_p6), %s598_s14, 3 }
  0x25   : > { %s258_s11 = scalar_lea.vmem %s714_s2, %s724_s8  ;;  %s367_s23 = scalar_lea.vmem (%p664_p6), %s715_s3, %s522_s18 }
  0x26   : > { %v267_v9 = vld [vmem:[%s258_s11] sm:$0x3] }
  0x27   : > { %v272_v11 = vrot.slane %v267_v9, %v271_v8  ;;  %v276_v12 = vrot.slane %v267_v9, %v275_v10 }
  0xf7   : > { %v332_v13 = vpop.f32.mrb[0].mxu0 }
  0xf8   : > { %v333_v14 = vadd.f32 %v332_v13, %v272_v11  ;;  %v334_v15 = vpop.f32.mrb[1].mxu0 }
  0xf9   : > { %v335_v16 = vadd.f32 %v334_v15, %v276_v12  ;;  %v336_v17 = vpop.f32.mrb[2].mxu0  ;;  %361 = sbr.rel (!%p664_p6) target bundleno = 264 (0x108), region = 74 }
  0xfa   : > { %v337_v18 = vadd.f32 %v336_v17, %v272_v11  ;;  %v338_v19 = vpop.f32.mrb[3].mxu0 }
  0xfb   : > { %v520_v20 = vpack.c.bf16 %v335_v16, %v333_v14  ;;  %v339_v21 = vadd.f32 %v338_v19, %v276_v12 }
  0xfd   : > { %353 = vst [vmem:[%s247_s12] sm:$0xff] %v520_v20  ;;  %v521_v22 = vpack.c.bf16 %v339_v21, %v337_v18 }
  0xff   : > { %354 = vst [vmem:[%s247_s12 + $0x8] sm:$0xff] %v521_v22 }
 0x104   : > { %v397_v23 = vld [vmem:[%s247_s12] sm:$0xff] }
 0x105   : > { %398 = vst [vmem:[%s367_s23] sm:$0xff] %v397_v23 }
 0x106   : > { %v399_v24 = vld [vmem:[%s247_s12 + $0x8] sm:$0xff] }
 0x107   : > { %400 = vst [vmem:[%s367_s23 + $0x10] sm:$0xff] %v399_v24 }
 0x108 PF: > { %s13_s16 = sadd.s32 1, %s606_s16   ;;  %s717_s12 = smov %s594_s13 }
 0x109   : > { %p10_p12 = scmp.ge.s32.totalorder %s13_s16, 4   ;;  %s718_s13 = smov %s669_s22 }
 0x10a   : > { %s719_s14 = smov %s602_s15  ;;  %s720_s15 = smov %s722_s17 }
 0x10b   :  { %12 = sbr.rel (!%p10_p12) target bundleno = 3 (0x3), region = 149 }

// kernel: deeplab_forward.55
= control target key start
LH: loop header
LB: loop body
LE: loop exit
PB: predicated region body
PF: predicated region fallthrough
CT: control target
= control target key end

     0   :  { %vm220_vm0 = vcmask 523264   ;;  %s582_s1 = inlined_call_operand.vmem [shape: bf16[320,128], index: 1, kind: input, shape index: {}]   ;;  %s583_s0 = inlined_call_operand.vmem [shape: bf16[32,320], index: 0, kind: input, shape index: {}]   ;;  %s584_s2 = inlined_call_operand.vmem [shape: f32[1,128], index: 2, kind: input, shape index: {}]   ;;  %s585_s3 = inlined_call_operand.vmem [shape: bf16[32,128], index: 3, kind: output, shape index: {}]  }
   0x1   :  { %v447_v0 = vld [vmem:[%s582_s1 + $0x40] sm:$0xff]   ;;  %v449_v2 = vld [vmem:[%s582_s1 + $0x48] sm:$0xff]   ;;  %v451_v4 = vld [vmem:[%s582_s1 + $0x50] sm:$0xff]  }
   0x2   :  { %v448_v1 = vld [vmem:[%s582_s1] sm:$0xff]   ;;  %401 = vmatprep.subr.bf16.mxu0 %v447_v0  ;;  %v450_v3 = vld [vmem:[%s582_s1 + $0x8] sm:$0xff]   ;;  %v452_v5 = vld [vmem:[%s582_s1 + $0x10] sm:$0xff]  }
   0x3   :  { %402 = vmatpush3.bf16.msra.mxu0 %v448_v1  ;;  %v453_v6 = vld [vmem:[%s582_s1 + $0x58] sm:$0xff]   ;;  %v458_v8 = vld [vmem:[%s582_s1 + $0x80] sm:$0xff]   ;;  %v461_v10 = vld [vmem:[%s582_s1 + $0x88] sm:$0xff]  }
   0x4   :  { %403 = vmatprep.subr.bf16.mxu0 %v449_v2  ;;  %v454_v7 = vld [vmem:[%s582_s1 + $0x18] sm:$0xff]   ;;  %v455_v9 = vld [vmem:[%s582_s1 + $0x60] sm:$0xff]   ;;  %435 = vmatprep.subr.bf16.mxu1 %v458_v8  ;;  %v457_v12 = vld [vmem:[%s582_s1 + $0x68] sm:$0xff]  }
   0x5   :  { %436 = vmatpush3.bf16.msra.mxu1 %v458_v8  ;;  %v456_v11 = vld [vmem:[%s582_s1 + $0x20] sm:$0xff]   ;;  %v464_v13 = vld [vmem:[%s582_s1 + $0x90] sm:$0xff]   ;;  %v459_v14 = vld [vmem:[%s582_s1 + $0x28] sm:$0xff]  }
   0x6   :  { %437 = vmatprep.subr.bf16.mxu1 %v461_v10  ;;  %v460_v15 = vld [vmem:[%s582_s1 + $0x70] sm:$0xff]   ;;  %v469_v17 = vld [vmem:[%s582_s1 + $0x98] sm:$0xff]   ;;  %v471_v21 = vld [vmem:[%s583_s0 + $0x20] ss:$12 sps:$4 sm:$0xff]  }
   0x7   :  { %404 = vmatpush3.bf16.msra.mxu0 %v450_v3  ;;  %v468_v16 = vld [vmem:[%s583_s0 + $0x4] ss:$12 sps:$4 sm:$0xff]   ;;  %v470_v18 = vld [vmem:[%s583_s0 + $0x8] ss:$12 sps:$4 sm:$0xff]   ;;  %v463_v20 = vld [vmem:[%s582_s1 + $0x78] sm:$0xff]  }
   0x8   :  { %405 = vmatprep.subr.bf16.mxu0 %v451_v4  ;;  %259 = vmatprep.mubr.bf16.mxu0 %v468_v16  ;;  %v462_v19 = vld [vmem:[%s582_s1 + $0x30] sm:$0xff]   ;;  %v465_v22 = vld [vmem:[%s582_s1 + $0x38] sm:$0xff]   ;;  %v466_v23 = vld [vmem:[%s583_s0] ss:$12 sps:$4 sm:$0xff]  }
   0x9   :  { %438 = vmatpush3.bf16.msra.mxu1 %v461_v10  ;;  %443 = vmatprep.mubr.msk.bf16.mxu1 %vm220_vm0, %v470_v18  ;;  %v472_v24 = vld [vmem:[%s583_s0 + $0x1c] ss:$12 sps:$4 sm:$0xff]   ;;  %v474_v25 = vld [vmem:[%s583_s0 + $0x18] ss:$12 sps:$4 sm:$0xff]   ;;  %v353_v32 = vld [vmem:[%s584_s2] ss:$0 sm:$0xff] }
   0xa   :  { %439 = vmatprep.subr.bf16.mxu1 %v464_v13 }
   0xb   :  { %406 = vmatpush3.bf16.msra.mxu0 %v452_v5 }
   0xc   :  { %407 = vmatprep.subr.bf16.mxu0 %v453_v6 }
   0xd   :  { %440 = vmatpush3.bf16.msra.mxu1 %v464_v13 }
   0xe   :  { %441 = vmatprep.subr.bf16.mxu1 %v469_v17 }
   0xf   :  { %408 = vmatpush3.bf16.msra.mxu0 %v454_v7 }
  0x10   :  { %409 = vmatprep.subr.bf16.mxu0 %v455_v9 }
  0x11   :  { %442 = vmatpush3.bf16.msra.mxu1 %v469_v17 }
  0x13   :  { %410 = vmatpush3.bf16.msra.mxu0 %v456_v11 }
  0x14   :  { %411 = vmatprep.subr.bf16.mxu0 %v457_v12  ;;  %444 = vmatmul.mubr.msk.bf16.vlgmr.msra.gmra.mrb[0].mxu1 %vm220_vm0, %v471_v21 }
  0x17   :  { %412 = vmatpush3.bf16.msra.mxu0 %v459_v14 }
  0x18   :  { %413 = vmatprep.subr.bf16.mxu0 %v460_v15 }
  0x1b   :  { %414 = vmatpush3.bf16.msra.mxu0 %v462_v19 }
  0x1c   :  { %415 = vmatprep.subr.bf16.mxu0 %v463_v20 }
  0x1f   :  { %416 = vmatpush3.bf16.msra.mxu0 %v465_v22 }
  0x22   :  { %260 = vmatmul.mubr.bf16.vlgmr.msra.gmra.mrb[0].mxu0 %v466_v23 }
  0x23   :  { %267 = vmatprep.mubr.bf16.mxu0 %v472_v24 }
  0x2a   :  { %268 = vmatmul.mubr.bf16.gmra.mrb[4].mxu0 %v474_v25 }
  0xe7   :  { %v445_v26 = vpop.f32.mrb[0].mxu1 }
  0xe8   :  { %v310_v27 = vpop.f32.mrb[1].mxu1 }
  0xe9   :  { %v446_v28 = vpop.f32.mrb[2].mxu1 }
  0xea   :  { %v313_v29 = vpop.f32.mrb[3].mxu1 }
  0xf5   :  { %v417_v30 = vpop.f32.mrb[0].mxu0 }
  0xf6   :  { %v418_v31 = vpop.f32.mrb[1].mxu0 }
  0xf7   :  { %v419_v33 = vadd.f32 %v418_v31, %v417_v30  ;;  %v420_v34 = vpop.f32.mrb[2].mxu0 }
  0xf8   :  { %v421_v35 = vpop.f32.mrb[3].mxu0 }
  0xf9   :  { %v422_v36 = vadd.f32 %v421_v35, %v420_v34  ;;  %v262_v37 = vadd.f32 %v419_v33, %v353_v32 }
  0xfb   :  { %v311_v38 = vadd.f32 %v310_v27, %v262_v37  ;;  %v265_v39 = vadd.f32 %v422_v36, %v353_v32 }
  0xfd   :  { %v314_v40 = vadd.f32 %v313_v29, %v265_v39  ;;  %v423_v41 = vpop.f32.mrb[4].mxu0  ;;  %v325_v43 = vmax.f32 %v311_v38, 0.0 }
  0xfe   :  { %v424_v42 = vpop.f32.mrb[5].mxu0 }
  0xff   :  { %v326_v44 = vmax.f32 %v314_v40, 0.0  ;;  %v425_v45 = vadd.f32 %v424_v42, %v423_v41  ;;  %v426_v46 = vpop.f32.mrb[6].mxu0 }
 0x100   :  { %v427_v47 = vpop.f32.mrb[7].mxu0 }
 0x101   :  { %v393_v48 = vpack.c.bf16 %v326_v44, %v325_v43  ;;  %v270_v49 = vadd.f32 %v425_v45, %v353_v32  ;;  %v428_v50 = vadd.f32 %v427_v47, %v426_v46 }
 0x103   :  { %394 = vst [vmem:[%s585_s3] sm:$0xff] %v393_v48   ;;  %v319_v51 = vadd.f32 %v445_v26, %v270_v49  ;;  %v273_v52 = vadd.f32 %v428_v50, %v353_v32 }
 0x105   :  { %v322_v53 = vadd.f32 %v446_v28, %v273_v52  ;;  %v327_v54 = vmax.f32 %v319_v51, 0.0 }
 0x107   :  { %v328_v55 = vmax.f32 %v322_v53, 0.0 }
 0x109   :  { %v398_v56 = vpack.c.bf16 %v328_v55, %v327_v54 }
 0x10b   :  { %400 = vst [vmem:[%s585_s3 + $0x8] sm:$0xff] %v398_v56  }

// kernel: deeplab_forward.58
= control target key start
LH: loop header
LB: loop body
LE: loop exit
PB: predicated region body
PF: predicated region fallthrough
CT: control target
= control target key end

     0   :  { %s629_s12 = smov 0   ;;  %s631_s13 = smov 0   ;;  %s712_s0 = inlined_call_operand.vmem [shape: bf16[16,16], index: 0, kind: input, shape index: {}]   ;;  %s713_s1 = inlined_call_operand.vmem [shape: bf16[16,2048], index: 1, kind: input, shape index: {}]   ;;  %s714_s2 = inlined_call_operand.vmem [shape: f32[1,2048], index: 2, kind: input, shape index: {}]   ;;  %s715_s3 = inlined_call_operand.vmem [shape: bf16[16,2048], index: 3, kind: output, shape index: {}]  }
   0x1   :  { %s633_s14 = smov 0   ;;  %s635_s15 = smov 0  }
   0x2   :  { %s637_s16 = smov 0  }
   0x3 LB: > { %s22_s17 = sadd.s32 1, %s602_s15  ;;  %s496_s18 = sadd.s32 4294967295, %s606_s16   ;;  %s606_s16 = sphi %s637_s16, %s13_s16   ;;  %s602_s15 = sphi %s635_s15, %s720_s15   ;;  %s598_s14 = sphi %s633_s14, %s719_s14   ;;  %s594_s13 = sphi %s631_s13, %s718_s13   ;;  %s590_s12 = sphi %s629_s12, %s717_s12  }
   0x4   : > { %p23_p0 = scmp.ge.s32.totalorder %s22_s17, 8  ;;  %p65_p1 = scmp.ne.s32.totalorder %s594_s13, %s590_s12 }
   0x5   : > { %p66_p2 = scmp.eq.s32.totalorder %s606_s16, 0  ;;  %p123_p4 = scmp.eq.s32.totalorder %s496_s18, 7 }
   0x6   : > { %s722_s17 = smov (%p23_p0, %s22_s17), 0  ;;  %s58_s20 = sadd.s32 1, %s594_s13 }
   0x7   : > { %p67_p3 = por %p66_p2, %p65_p1  ;;  %s55_s19 = ssub.s32 %s602_s15, %s722_s17 }
   0x8   : > { %p56_p5 = scmp.eq.s32.totalorder %s55_s19, 0  ;;  %p664_p6 = por %p123_p4, %p65_p1 }
   0x9   : > { %p500_p7 = scmp.ge.s32.totalorder %s606_s16, 8 }
   0xa   : > { %s669_s22 = scalar_select %p56_p5, %s594_s13, %s58_s20  }
   0xb   : > { %154 = sbr.rel (%p500_p7) target bundleno = 25 (0x19), region = 20 }
  0x12   : > { %157 = sbr.rel (!%p67_p3) target bundleno = 25 (0x19), region = 24  ;;  %s159_s23 = sand.u32 (%p67_p3), 1, %s594_s13  }
  0x13   : > { %s519_s24 = sshll.u32 (%p67_p3), %s602_s15, 3  ;;  %s501_s25 = sshll.u32 (%p67_p3), %s159_s23, 4 }
  0x14   : > { %s164_s28 = scalar_lea.vmem (%p67_p3), %s713_s1, %s519_s24  ;;  %s161_s29 = scalar_lea.vmem (%p67_p3), [#allocation2], %s501_s25 }
  0x15   : > { %v194_v0 = vld [vmem:[%s164_s28] sm:$0xff] (%p67_p3) }
  0x16   : > { %v196_v1 = vld [vmem:[%s164_s28 + $0x40] sm:$0xff] (%p67_p3)  ;;  %195 = vst [vmem:[%s161_s29] sm:$0xff] (%p67_p3), %v194_v0 }
  0x17   : > { %197 = vst [vmem:[%s161_s29 + $0x8] sm:$0xff] (%p67_p3), %v196_v1 }
  0x19 PF: > { %p504_p8 = scmp.ge.s32.totalorder %s606_s16, 1  ;;  %p210_p9 = scmp.lt.s32.totalorder %s606_s16, 9 }
  0x1b   : > { %p211_p10 = pnand %p504_p8, %p210_p9 }
  0x1c   : > { %s217_s30 = sand.u32 (!%p211_p10), 1, %s590_s12   ;;  %v608_v2 = vmov (!%p211_p10), 0   ;;  %v567_v5 = vld [vmem:[%s712_s0] sm:$0xff] (!%p211_p10)   ;;  %vm294_vm0 = vcmask (!%p211_p10), 130048   ;;  %s507_s8 = sshll.u32 (!%p211_p10), %s598_s14, 1  ;;  %v269_v6 = vlaneseq (!%p211_p10) }
  0x1d   : > { %214 = sbr.rel (%p211_p10) target bundleno = 264 (0x108), region = 66  ;;  %s680_s4 = sshll.u32 (!%p211_p10), %s217_s30, 4  ;;  %330 = vmatprep.mubr.bf16.mxu0 (!%p211_p10), %v608_v2 }
  0x1e   : > { %s219_s5 = scalar_lea.vmem (!%p211_p10), [#allocation2], %s680_s4  ;;  %p256_p11 = scmp.lt.s32.totalorder (!%p211_p10), %s507_s8, 15  ;;  %v270_v7 = vshrl.u32 (!%p211_p10), %v269_v6, 7 }
  0x1f   : > { %v564_v3 = vld [vmem:[%s219_s5 + $0x4] ss:$8 sps:$4 sm:$0xff] (!%p211_p10)   ;;  %v566_v4 = vld [vmem:[%s219_s5] ss:$8 sps:$4 sm:$0xff] (!%p211_p10)   ;;  %s247_s12 = scalar_lea.vmem (!%p211_p10), [#allocation3], %s680_s4 }
  0x20   : > { %298 = vmatprep.subr.bf16.mxu0 (!%p211_p10), %v564_v3  ;;  %v271_v8 = vsub.s32 (!%p211_p10), 0, %v270_v7  ;;  %v275_v10 = vsub.s32 (!%p211_p10), 1, %v270_v7 }
  0x21   : > { %299 = vmatpush1.bf16.msra.mxu0 (!%p211_p10), %v566_v4 }
  0x24   : > { %511 = vmatmul.mubr.msk.bf16.vlgmr.msra.gmra.mrb[0].mxu0 %vm294_vm0, %v567_v5  ;;  %s724_s8 = smov (!%p256_p11, %s507_s8), 15  ;;  %s522_s18 = sshll.u32 (%p664_p6), %s598_s14, 3 }
  0x25   : > { %s258_s11 = scalar_lea.vmem %s714_s2, %s724_s8  ;;  %s367_s23 = scalar_lea.vmem (%p664_p6), %s715_s3, %s522_s18 }
  0x26   : > { %v267_v9 = vld [vmem:[%s258_s11] sm:$0x3] }
  0x27   : > { %v272_v11 = vrot.slane %v267_v9, %v271_v8  ;;  %v276_v12 = vrot.slane %v267_v9, %v275_v10 }
  0xf7   : > { %v332_v13 = vpop.f32.mrb[0].mxu0 }
  0xf8   : > { %v333_v14 = vadd.f32 %v332_v13, %v272_v11  ;;  %v334_v15 = vpop.f32.mrb[1].mxu0 }
  0xf9   : > { %v335_v16 = vadd.f32 %v334_v15, %v276_v12  ;;  %v336_v17 = vpop.f32.mrb[2].mxu0  ;;  %361 = sbr.rel (!%p664_p6) target bundleno = 264 (0x108), region = 74 }
  0xfa   : > { %v337_v18 = vadd.f32 %v336_v17, %v272_v11  ;;  %v338_v19 = vpop.f32.mrb[3].mxu0 }
  0xfb   : > { %v520_v20 = vpack.c.bf16 %v335_v16, %v333_v14  ;;  %v339_v21 = vadd.f32 %v338_v19, %v276_v12 }
  0xfd   : > { %353 = vst [vmem:[%s247_s12] sm:$0xff] %v520_v20  ;;  %v521_v22 = vpack.c.bf16 %v339_v21, %v337_v18 }
  0xff   : > { %354 = vst [vmem:[%s247_s12 + $0x8] sm:$0xff] %v521_v22 }
 0x104   : > { %v397_v23 = vld [vmem:[%s247_s12] sm:$0xff] }
 0x105   : > { %398 = vst [vmem:[%s367_s23] sm:$0xff] %v397_v23 }
 0x106   : > { %v399_v24 = vld [vmem:[%s247_s12 + $0x8] sm:$0xff] }
 0x107   : > { %400 = vst [vmem:[%s367_s23 + $0x40] sm:$0xff] %v399_v24 }
 0x108 PF: > { %s13_s16 = sadd.s32 1, %s606_s16   ;;  %s717_s12 = smov %s594_s13 }
 0x109   : > { %p10_p12 = scmp.ge.s32.totalorder %s13_s16, 10   ;;  %s718_s13 = smov %s669_s22 }
 0x10a   : > { %s719_s14 = smov %s602_s15  ;;  %s720_s15 = smov %s722_s17 }
 0x10b   :  { %12 = sbr.rel (!%p10_p12) target bundleno = 3 (0x3), region = 149 }

// kernel: deeplab_forward.59
= control target key start
LH: loop header
LB: loop body
LE: loop exit
PB: predicated region body
PF: predicated region fallthrough
CT: control target
= control target key end

     0   :  { %s2812_s12 = smov 0   ;;  %s2814_s13 = smov 0   ;;  %s3262_s0 = inlined_call_operand.vmem [shape: bf16[512,720], index: 0, kind: input, shape index: {}]   ;;  %s3263_s1 = inlined_call_operand.vmem [shape: bf16[720,128], index: 1, kind: input, shape index: {}]   ;;  %s3264_s2 = inlined_call_operand.vmem [shape: f32[1,128], index: 2, kind: input, shape index: {}]   ;;  %s3265_s3 = inlined_call_operand.vmem [shape: bf16[512,128], index: 3, kind: output, shape index: {}]  }
   0x1   :  { %s2816_s14 = smov 0  }
   0x2 LB: > { %s25_s15 = sadd.s32 1, %s2785_s13  ;;  %p1988_p0 = scmp.ge.s32.totalorder %s2789_s14, 1  ;;  %s2789_s14 = sphi %s2816_s14, %s13_s14   ;;  %s2785_s13 = sphi %s2814_s13, %s3267_s13   ;;  %s2781_s12 = sphi %s2812_s12, %s3266_s12  }
   0x3   : > { %p27_p1 = scmp.ge.s32.totalorder %s25_s15, 2  ;;  %p170_p2 = scmp.lt.s32.totalorder %s2789_s14, 3 }
   0x5   : > { %s3269_s15 = smov (%p27_p1, %s25_s15), 0  ;;  %p171_p3 = pnand %p1988_p0, %p170_p2 }
   0x6   : > { %v2578_v0 = vld [vmem:[%s3263_s1 + $0x40] sm:$0xff] (!%p171_p3)   ;;  %s1989_s18 = sshll.u32 (!%p171_p3), %s2781_s12, 5  ;;  %v2580_v2 = vld [vmem:[%s3263_s1 + $0x48] sm:$0xff] (!%p171_p3)   ;;  %v2582_v4 = vld [vmem:[%s3263_s1 + $0x50] sm:$0xff] (!%p171_p3)   ;;  %v2791_v23 = vmov (!%p171_p3), 0   ;;  %vm1156_vm0 = vcmask (!%p171_p3), 654336  }
   0x7   : > { %174 = sbr.rel (%p171_p3) target bundleno = 449 (0x1c1), region = 32  ;;  %v2579_v1 = vld [vmem:[%s3263_s1] sm:$0xff] (!%p171_p3)   ;;  %2536 = vmatprep.subr.bf16.mxu1 (!%p171_p3), %v2578_v0  ;;  %2312 = vmatprep.subr.bf16.mxu0 (!%p171_p3), %v2578_v0  ;;  %p206_p4 = scmp.lt.s32.totalorder (!%p171_p3), %s1989_s18, 63  ;;  %v2581_v3 = vld [vmem:[%s3263_s1 + $0x8] sm:$0xff] (!%p171_p3)   ;;  %v2583_v5 = vld [vmem:[%s3263_s1 + $0x10] sm:$0xff] (!%p171_p3)  }
   0x8   : > { %2544 = vmatpush3.bf16.msra.mxu1 (!%p171_p3), %v2579_v1  ;;  %2313 = vmatpush3.bf16.msra.mxu0 (!%p171_p3), %v2579_v1  ;;  %v2584_v6 = vld [vmem:[%s3263_s1 + $0x58] sm:$0xff] (!%p171_p3)   ;;  %v2586_v8 = vld [vmem:[%s3263_s1 + $0x60] sm:$0xff] (!%p171_p3)   ;;  %v2588_v10 = vld [vmem:[%s3263_s1 + $0x68] sm:$0xff] (!%p171_p3)  }
   0x9   : > { %2537 = vmatprep.subr.bf16.mxu1 (!%p171_p3), %v2580_v2  ;;  %2314 = vmatprep.subr.bf16.mxu0 (!%p171_p3), %v2580_v2  ;;  %v2585_v7 = vld [vmem:[%s3263_s1 + $0x18] sm:$0xff] (!%p171_p3)   ;;  %v2587_v9 = vld [vmem:[%s3263_s1 + $0x20] sm:$0xff] (!%p171_p3)   ;;  %v2589_v12 = vld [vmem:[%s3263_s1 + $0x28] sm:$0xff] (!%p171_p3)  }
   0xa   : > { %v2590_v13 = vld [vmem:[%s3263_s1 + $0x70] sm:$0xff] (!%p171_p3)   ;;  %v2592_v16 = vld [vmem:[%s3263_s1 + $0x78] sm:$0xff] (!%p171_p3)   ;;  %v2597_v19 = vld [vmem:[%s3263_s1 + $0xc0] sm:$0xff] (!%p171_p3)  }
   0xb   : > { %v2591_v15 = vld [vmem:[%s3263_s1 + $0x30] sm:$0xff] (!%p171_p3)   ;;  %v2593_v17 = vld [vmem:[%s3263_s1 + $0x38] sm:$0xff] (!%p171_p3)   ;;  %v2598_v20 = vld [vmem:[%s3263_s1 + $0x80] sm:$0xff] (!%p171_p3)  }
   0xc   : > { %2545 = vmatpush3.bf16.msra.mxu1 (!%p171_p3), %v2581_v3  ;;  %2315 = vmatpush3.bf16.msra.mxu0 (!%p171_p3), %v2581_v3  ;;  %v2602_v22 = vld [vmem:[%s3263_s1 + $0x100] sm:$0xff] (!%p171_p3)   ;;  %v2606_v25 = vld [vmem:[%s3263_s1 + $0xc8] sm:$0xff] (!%p171_p3)   ;;  %v2615_v30 = vld [vmem:[%s3263_s1 + $0xd0] sm:$0xff] (!%p171_p3)  }
   0xd   : > { %2538 = vmatprep.subr.bf16.mxu1 (!%p171_p3), %v2582_v4  ;;  %2316 = vmatprep.subr.bf16.mxu0 (!%p171_p3), %v2582_v4  ;;  %v2607_v27 = vld [vmem:[%s3263_s1 + $0x88] sm:$0xff] (!%p171_p3)   ;;  %v2616_v33 = vld [vmem:[%s3263_s1 + $0x110] sm:$0xff] (!%p171_p3)   ;;  %v2625_v36 = vld [vmem:[%s3263_s1 + $0xd8] sm:$0xff] (!%p171_p3)  }
   0xe   : > { %s3271_s18 = smov (!%p206_p4, %s1989_s18), 63  ;;  %v2611_v28 = vld [vmem:[%s3263_s1 + $0x108] sm:$0xff]   ;;  %v2617_v34 = vld [vmem:[%s3263_s1 + $0x90] sm:$0xff]   ;;  %v2621_v37 = vld [vmem:[%s3263_s1 + $0x118] sm:$0xff]  }
   0xf   : > { %s2552_s4 = smul.u32 24, %s3271_s18  ;;  %v2626_v40 = vld [vmem:[%s3263_s1 + $0x98] sm:$0xff]   ;;  %v2635_v41 = vld [vmem:[%s3263_s1 + $0xe0] sm:$0xff]   ;;  %v2644_v46 = vld [vmem:[%s3263_s1 + $0xe8] sm:$0xff]  }
  0x10   : > { %2546 = vmatpush3.bf16.msra.mxu1 %v2583_v5  ;;  %2317 = vmatpush3.bf16.msra.mxu0 %v2583_v5  ;;  %v2629_v44 = vld [vmem:[%s3263_s1 + $0x120] sm:$0xff]   ;;  %v2633_v47 = vld [vmem:[%s3263_s1 + $0x128] sm:$0xff]   ;;  %v2640_v53 = vld [vmem:[%s3263_s1 + $0x130] sm:$0xff]  }
  0x11   : > { %2539 = vmatprep.subr.bf16.mxu1 %v2584_v6  ;;  %2318 = vmatprep.subr.bf16.mxu0 %v2584_v6  ;;  %s2863_s11 = scalar_lea.vmem %s3262_s0, %s2552_s4  ;;  %v2636_v45 = vld [vmem:[%s3263_s1 + $0xa0] sm:$0xff]   ;;  %v2645_v50 = vld [vmem:[%s3263_s1 + $0xa8] sm:$0xff]   ;;  %v2654_v54 = vld [vmem:[%s3263_s1 + $0xf0] sm:$0xff]  }
  0x12   : > { %v2596_v11 = vld [vmem:[%s2863_s11 + $0x184] ss:$24 sps:$4 sm:$0xff]   ;;  %v2594_v18 = vld [vmem:[%s2863_s11 + $0x180] ss:$24 sps:$4 sm:$0xff]   ;;  %v2603_v24 = vld [vmem:[%s2863_s11 + $0x1b4] ss:$24 sps:$4 sm:$0xff]  }
  0x13   : > { %v2601_v14 = vld [vmem:[%s2863_s11 + $0x4] ss:$24 sps:$4 sm:$0xff]   ;;  %1301 = vmatprep.mubr.bf16.mxu1 %v2596_v11  ;;  %v2599_v21 = vld [vmem:[%s2863_s11] ss:$24 sps:$4 sm:$0xff]   ;;  %v2608_v26 = vld [vmem:[%s2863_s11 + $0x34] ss:$24 sps:$4 sm:$0xff]  }
  0x14   : > { %2547 = vmatpush3.bf16.msra.mxu1 %v2585_v7  ;;  %2319 = vmatpush3.bf16.msra.mxu0 %v2585_v7  ;;  %v2605_v29 = vld [vmem:[%s2863_s11 + $0x1b0] ss:$24 sps:$4 sm:$0xff]   ;;  %v2612_v32 = vld [vmem:[%s2863_s11 + $0x1e4] ss:$24 sps:$4 sm:$0xff]   ;;  %v2614_v38 = vld [vmem:[%s2863_s11 + $0x1e0] ss:$24 sps:$4 sm:$0xff]  }
  0x15   : > { %2540 = vmatprep.subr.bf16.mxu1 %v2586_v8  ;;  %2320 = vmatprep.subr.bf16.mxu0 %v2586_v8  ;;  %v2610_v31 = vld [vmem:[%s2863_s11 + $0x30] ss:$24 sps:$4 sm:$0xff]   ;;  %v2618_v35 = vld [vmem:[%s2863_s11 + $0x64] ss:$24 sps:$4 sm:$0xff]   ;;  %v2620_v39 = vld [vmem:[%s2863_s11 + $0x60] ss:$24 sps:$4 sm:$0xff]  }
  0x16   : > { %1237 = vmatprep.mubr.bf16.mxu0 %v2601_v14  ;;  %v2622_v42 = vld [vmem:[%s2863_s11 + $0x214] ss:$24 sps:$4 sm:$0xff]   ;;  %v2624_v48 = vld [vmem:[%s2863_s11 + $0x210] ss:$24 sps:$4 sm:$0xff]   ;;  %v2631_v51 = vld [vmem:[%s2863_s11 + $0x244] ss:$24 sps:$4 sm:$0xff]  }
  0x17   : > { %v2627_v43 = vld [vmem:[%s2863_s11 + $0x94] ss:$24 sps:$4 sm:$0xff]   ;;  %v2630_v49 = vld [vmem:[%s2863_s11 + $0x90] ss:$24 sps:$4 sm:$0xff]   ;;  %v2637_v52 = vld [vmem:[%s2863_s11 + $0xc4] ss:$24 sps:$4 sm:$0xff]  }
  0x18   : > { %2548 = vmatpush3.bf16.msra.mxu1 %v2587_v9  ;;  %2321 = vmatpush3.bf16.msra.mxu0 %v2587_v9  ;;  %v2655_v55 = vld [vmem:[%s3263_s1 + $0xb0] sm:$0xff]   ;;  %v2646_v56 = vld [vmem:[%s3263_s1 + $0x138] sm:$0xff]   ;;  %v2650_v63 = vld [vmem:[%s3263_s1 + $0x140] sm:$0xff]  }
  0x19   : > { %2541 = vmatprep.subr.bf16.mxu1 %v2588_v10  ;;  %2322 = vmatprep.subr.bf16.mxu0 %v2588_v10  ;;  %v2634_v57 = vld [vmem:[%s2863_s11 + $0x240] ss:$24 sps:$4 sm:$0xff]   ;;  %v2641_v60 = vld [vmem:[%s2863_s11 + $0x274] ss:$24 sps:$4 sm:$0xff]   ;;  %v2643_v1 = vld [vmem:[%s2863_s11 + $0x270] ss:$24 sps:$4 sm:$0xff]  }
  0x1a   : > { %v2639_v58 = vld [vmem:[%s2863_s11 + $0xc0] ss:$24 sps:$4 sm:$0xff]   ;;  %v2647_v62 = vld [vmem:[%s2863_s11 + $0xf4] ss:$24 sps:$4 sm:$0xff]   ;;  %v2649_v2 = vld [vmem:[%s2863_s11 + $0xf0] ss:$24 sps:$4 sm:$0xff]  }
  0x1b   : > { %v2663_v59 = vld [vmem:[%s3263_s1 + $0xf8] sm:$0xff]   ;;  %v2659_v0 = vld [vmem:[%s3263_s1 + $0x148] sm:$0xff]   ;;  %v2664_v5 = vld [vmem:[%s3263_s1 + $0x150] sm:$0xff]  }
  0x1c   : > { %2549 = vmatpush3.bf16.msra.mxu1 %v2589_v12  ;;  %2323 = vmatpush3.bf16.msra.mxu0 %v2589_v12  ;;  %v2665_v61 = vld [vmem:[%s3263_s1 + $0xb8] sm:$0xff]   ;;  %v2660_v9 = vld [vmem:[%s2863_s11 + $0x2d4] ss:$24 sps:$4 sm:$0xff]   ;;  %v2673_v11 = vld [vmem:[%s3263_s1 + $0x160] sm:$0xff]  }
  0x1d   : > { %2542 = vmatprep.subr.bf16.mxu1 %v2590_v13  ;;  %2324 = vmatprep.subr.bf16.mxu0 %v2590_v13  ;;  %v2651_v3 = vld [vmem:[%s2863_s11 + $0x2a4] ss:$24 sps:$4 sm:$0xff]   ;;  %v2653_v7 = vld [vmem:[%s2863_s11 + $0x2a0] ss:$24 sps:$4 sm:$0xff]   ;;  %v2666_v10 = vld [vmem:[%s2863_s11 + $0x154] ss:$24 sps:$4 sm:$0xff]  }
  0x1e   : > { %v2656_v4 = vld [vmem:[%s2863_s11 + $0x124] ss:$24 sps:$4 sm:$0xff]   ;;  %v2658_v8 = vld [vmem:[%s2863_s11 + $0x120] ss:$24 sps:$4 sm:$0xff]   ;;  %v2662_v12 = vld [vmem:[%s2863_s11 + $0x2d0] ss:$24 sps:$4 sm:$0xff]  }
  0x1f   : > { %v2669_v6 = vld [vmem:[%s3263_s1 + $0x158] sm:$0xff]   ;;  %v2668_v13 = vld [vmem:[%s2863_s11 + $0x150] ss:$24 sps:$4 sm:$0xff]   ;;  %v2672_v14 = vld [vmem:[%s2863_s11 + $0xc] ss:$24 sps:$4 sm:$0xff]  }
  0x20   : > { %2550 = vmatpush3.bf16.msra.mxu1 %v2591_v15  ;;  %2325 = vmatpush3.bf16.msra.mxu0 %v2591_v15  ;;  %v2676_v15 = vld [vmem:[%s2863_s11 + $0x14] ss:$24 sps:$4 sm:$0xff]  }
  0x21   : > { %2543 = vmatprep.subr.bf16.mxu1 %v2592_v16  ;;  %2326 = vmatprep.subr.bf16.mxu0 %v2592_v16  ;;  %v2670_v16 = vld [vmem:[%s2863_s11 + $0x8] ss:$24 sps:$4 sm:$0xff]  }
  0x24   : > { %2551 = vmatpush3.bf16.msra.mxu1 %v2593_v17  ;;  %2327 = vmatpush3.bf16.msra.mxu0 %v2593_v17  ;;  %v2674_v17 = vld [vmem:[%s2863_s11 + $0x10] ss:$24 sps:$4 sm:$0xff]  }
  0x25   : > { %2424 = vmatprep.subr.bf16.mxu1 %v2597_v19  ;;  %1527 = vmatprep.subr.bf16.mxu0 %v2791_v23  ;;  %v2680_v19 = vld [vmem:[%s2863_s11 + $0x44] ss:$24 sps:$4 sm:$0xff]  }
  0x27   : > { %1302 = vmatmul.mubr.bf16.vlgmr.msra.gmra.mrb[0].mxu1 %v2594_v18  ;;  %1238 = vmatmul.mubr.bf16.vlgmr.msra.gmra.mrb[0].mxu0 %v2599_v21  ;;  %v2677_v18 = vld [vmem:[%s2863_s11 + $0x3c] ss:$24 sps:$4 sm:$0xff]   ;;  %v2682_v21 = vld [vmem:[%s2863_s11 + $0x40] ss:$24 sps:$4 sm:$0xff]  }
  0x28   : > { %2425 = vmatpush3.bf16.msra.mxu1 %v2598_v20  ;;  %1528 = vmatpush1.bf16.msra.mxu0 %v2602_v22  ;;  %v2679_v20 = vld [vmem:[%s2863_s11 + $0x38] ss:$24 sps:$4 sm:$0xff]   ;;  %v2683_v22 = vld [vmem:[%s2863_s11 + $0x6c] ss:$24 sps:$4 sm:$0xff]  }
  0x29   : > { %1309 = vmatprep.mubr.bf16.mxu1 %v2603_v24  ;;  %2426 = vmatprep.subr.bf16.mxu1 %v2606_v25  ;;  %v2685_v24 = vld [vmem:[%s2863_s11 + $0x68] ss:$24 sps:$4 sm:$0xff]  }
  0x2a   : > { %1245 = vmatprep.mubr.bf16.mxu0 %v2608_v26  ;;  %1529 = vmatprep.subr.bf16.mxu0 %v2791_v23  ;;  %v2688_v25 = vld [vmem:[%s2863_s11 + $0x70] ss:$24 sps:$4 sm:$0xff]   ;;  %v2689_v26 = vld [vmem:[%s2863_s11 + $0x9c] ss:$24 sps:$4 sm:$0xff]  }
  0x2c   : > { %2427 = vmatpush3.bf16.msra.mxu1 %v2607_v27  ;;  %1530 = vmatpush1.bf16.msra.mxu0 %v2611_v28  ;;  %v2692_v27 = vld [vmem:[%s2863_s11 + $0xa4] ss:$24 sps:$4 sm:$0xff]   ;;  %v2691_v28 = vld [vmem:[%s2863_s11 + $0x98] ss:$24 sps:$4 sm:$0xff]  }
  0x2d   : > { %1531 = vmatprep.subr.bf16.mxu0 %v2791_v23  ;;  %2428 = vmatprep.subr.bf16.mxu1 %v2615_v30  ;;  %v2695_v30 = vld [vmem:[%s2863_s11 + $0xcc] ss:$24 sps:$4 sm:$0xff]  }
  0x2f   : > { %1310 = vmatmul.mubr.bf16.gmra.mrb[4].mxu1 %v2605_v29  ;;  %1246 = vmatmul.mubr.bf16.gmra.mrb[4].mxu0 %v2610_v31  ;;  %v2694_v29 = vld [vmem:[%s2863_s11 + $0xa0] ss:$24 sps:$4 sm:$0xff]   ;;  %v2698_v31 = vld [vmem:[%s2863_s11 + $0xd4] ss:$24 sps:$4 sm:$0xff]  }
  0x30   : > { %1317 = vmatprep.mubr.bf16.mxu1 %v2612_v32  ;;  %1532 = vmatpush1.bf16.msra.mxu0 %v2616_v33  ;;  %v2697_v32 = vld [vmem:[%s2863_s11 + $0xc8] ss:$24 sps:$4 sm:$0xff]  }
  0x31   : > { %2429 = vmatpush3.bf16.msra.mxu1 %v2617_v34  ;;  %1253 = vmatprep.mubr.bf16.mxu0 %v2618_v35  ;;  %v2700_v33 = vld [vmem:[%s2863_s11 + $0xd0] ss:$24 sps:$4 sm:$0xff]   ;;  %v2701_v34 = vld [vmem:[%s2863_s11 + $0xfc] ss:$24 sps:$4 sm:$0xff]  }
  0x32   : > { %1533 = vmatprep.subr.bf16.mxu0 %v2791_v23  ;;  %2430 = vmatprep.subr.bf16.mxu1 %v2625_v36  ;;  %v2704_v35 = vld [vmem:[%s2863_s11 + $0x104] ss:$24 sps:$4 sm:$0xff]   ;;  %v2703_v36 = vld [vmem:[%s2863_s11 + $0xf8] ss:$24 sps:$4 sm:$0xff]  }
  0x34   : > { %1534 = vmatpush1.bf16.msra.mxu0 %v2621_v37  ;;  %v2706_v37 = vld [vmem:[%s2863_s11 + $0x100] ss:$24 sps:$4 sm:$0xff]  }
  0x35   : > { %2431 = vmatpush3.bf16.msra.mxu1 %v2626_v40  ;;  %1535 = vmatprep.subr.bf16.mxu0 %v2791_v23  ;;  %v2709_v40 = vld [vmem:[%s2863_s11 + $0x128] ss:$24 sps:$4 sm:$0xff]  }
  0x36   : > { %2432 = vmatprep.subr.bf16.mxu1 %v2635_v41  ;;  %v2712_v41 = vld [vmem:[%s2863_s11 + $0x130] ss:$24 sps:$4 sm:$0xff]  }
  0x37   : > { %1318 = vmatmul.mubr.bf16.gmra.mrb[8].mxu1 %v2614_v38  ;;  %1254 = vmatmul.mubr.bf16.gmra.mrb[8].mxu0 %v2620_v39  ;;  %v2707_v38 = vld [vmem:[%s2863_s11 + $0x12c] ss:$24 sps:$4 sm:$0xff]  }
  0x38   : > { %1325 = vmatprep.mubr.bf16.mxu1 %v2622_v42  ;;  %1261 = vmatprep.mubr.bf16.mxu0 %v2627_v43  ;;  %v2710_v39 = vld [vmem:[%s2863_s11 + $0x134] ss:$24 sps:$4 sm:$0xff]   ;;  %v2716_v43 = vld [vmem:[%s2863_s11 + $0x164] ss:$24 sps:$4 sm:$0xff]  }
  0x39   : > { %1536 = vmatpush1.bf16.msra.mxu0 %v2629_v44  ;;  %2433 = vmatpush3.bf16.msra.mxu1 %v2636_v45  ;;  %v2713_v42 = vld [vmem:[%s2863_s11 + $0x15c] ss:$24 sps:$4 sm:$0xff]   ;;  %v2715_v44 = vld [vmem:[%s2863_s11 + $0x158] ss:$24 sps:$4 sm:$0xff]  }
  0x3a   : > { %1537 = vmatprep.subr.bf16.mxu0 %v2791_v23  ;;  %2434 = vmatprep.subr.bf16.mxu1 %v2644_v46  ;;  %v2718_v45 = vld [vmem:[%s2863_s11 + $0x160] ss:$24 sps:$4 sm:$0xff]   ;;  %v2719_v46 = vld [vmem:[%s2863_s11 + $0x18c] ss:$24 sps:$4 sm:$0xff]  }
  0x3d   : > { %1538 = vmatpush1.bf16.msra.mxu0 %v2633_v47  ;;  %2435 = vmatpush3.bf16.msra.mxu1 %v2645_v50  ;;  %v2722_v47 = vld [vmem:[%s2863_s11 + $0x194] ss:$24 sps:$4 sm:$0xff]  }
  0x3e   : > { %1539 = vmatprep.subr.bf16.mxu0 %v2791_v23  ;;  %2436 = vmatprep.subr.bf16.mxu1 %v2654_v54  ;;  %v2725_v50 = vld [vmem:[%s2863_s11 + $0x1bc] ss:$24 sps:$4 sm:$0xff]   ;;  %v2731_v54 = vld [vmem:[%s2863_s11 + $0x1ec] ss:$24 sps:$4 sm:$0xff]  }
  0x3f   : > { %1326 = vmatmul.mubr.bf16.gmra.mrb[12].mxu1 %v2624_v48  ;;  %1262 = vmatmul.mubr.bf16.gmra.mrb[12].mxu0 %v2630_v49  ;;  %v2721_v48 = vld [vmem:[%s2863_s11 + $0x188] ss:$24 sps:$4 sm:$0xff]  }
  0x40   : > { %1333 = vmatprep.mubr.bf16.mxu1 %v2631_v51  ;;  %1269 = vmatprep.mubr.bf16.mxu0 %v2637_v52  ;;  %v2724_v49 = vld [vmem:[%s2863_s11 + $0x190] ss:$24 sps:$4 sm:$0xff]   ;;  %v2728_v51 = vld [vmem:[%s2863_s11 + $0x1c4] ss:$24 sps:$4 sm:$0xff]  }
  0x41   : > { %1540 = vmatpush1.bf16.msra.mxu0 %v2640_v53  ;;  %2437 = vmatpush3.bf16.msra.mxu1 %v2655_v55  ;;  %v2727_v52 = vld [vmem:[%s2863_s11 + $0x1b8] ss:$24 sps:$4 sm:$0xff]   ;;  %v2734_v55 = vld [vmem:[%s2863_s11 + $0x1f4] ss:$24 sps:$4 sm:$0xff]  }
  0x42   : > { %1541 = vmatprep.subr.bf16.mxu0 %v2791_v23  ;;  %2438 = vmatprep.subr.bf16.mxu1 %v2663_v59  ;;  %v2730_v53 = vld [vmem:[%s2863_s11 + $0x1c0] ss:$24 sps:$4 sm:$0xff]   ;;  %v2740_v59 = vld [vmem:[%s2863_s11 + $0x224] ss:$24 sps:$4 sm:$0xff]  }
  0x45   : > { %1542 = vmatpush1.bf16.msra.mxu0 %v2646_v56  ;;  %2439 = vmatpush3.bf16.msra.mxu1 %v2665_v61  ;;  %v2733_v56 = vld [vmem:[%s2863_s11 + $0x1e8] ss:$24 sps:$4 sm:$0xff]  }
  0x46   : > { %1543 = vmatprep.subr.bf16.mxu0 %v2791_v23  ;;  %v2742_v61 = vld [vmem:[%s2863_s11 + $0x220] ss:$24 sps:$4 sm:$0xff]  }
  0x47   : > { %1334 = vmatmul.mubr.bf16.gmra.mrb[16].mxu1 %v2634_v57  ;;  %1270 = vmatmul.mubr.bf16.gmra.mrb[16].mxu0 %v2639_v58  ;;  %v2736_v57 = vld [vmem:[%s2863_s11 + $0x1f0] ss:$24 sps:$4 sm:$0xff]   ;;  %v2737_v58 = vld [vmem:[%s2863_s11 + $0x21c] ss:$24 sps:$4 sm:$0xff]  }
  0x48   : > { %1341 = vmatprep.mubr.bf16.mxu1 %v2641_v60  ;;  %1277 = vmatprep.mubr.bf16.mxu0 %v2647_v62  ;;  %v2739_v60 = vld [vmem:[%s2863_s11 + $0x218] ss:$24 sps:$4 sm:$0xff]   ;;  %v2743_v62 = vld [vmem:[%s2863_s11 + $0x24c] ss:$24 sps:$4 sm:$0xff]  }
  0x49   : > { %1544 = vmatpush1.bf16.msra.mxu0 %v2650_v63  ;;  %v2746_v63 = vld [vmem:[%s2863_s11 + $0x254] ss:$24 sps:$4 sm:$0xff]  }
  0x4a   : > { %1545 = vmatprep.subr.bf16.mxu0 %v2791_v23 }
  0x4d   : > { %1546 = vmatpush1.bf16.msra.mxu0 %v2659_v0  ;;  %v2745_v0 = vld [vmem:[%s2863_s11 + $0x248] ss:$24 sps:$4 sm:$0xff]  }
  0x4e   : > { %1547 = vmatprep.subr.bf16.mxu0 %v2791_v23 }
  0x4f   : > { %1342 = vmatmul.mubr.bf16.gmra.mrb[20].mxu1 %v2643_v1  ;;  %1278 = vmatmul.mubr.bf16.gmra.mrb[20].mxu0 %v2649_v2  ;;  %v2748_v1 = vld [vmem:[%s2863_s11 + $0x250] ss:$24 sps:$4 sm:$0xff]   ;;  %v2749_v2 = vld [vmem:[%s2863_s11 + $0x27c] ss:$24 sps:$4 sm:$0xff]  }
  0x50   : > { %1349 = vmatprep.mubr.bf16.mxu1 %v2651_v3  ;;  %1285 = vmatprep.mubr.bf16.mxu0 %v2656_v4  ;;  %v2752_v3 = vld [vmem:[%s2863_s11 + $0x284] ss:$24 sps:$4 sm:$0xff]   ;;  %v2751_v4 = vld [vmem:[%s2863_s11 + $0x278] ss:$24 sps:$4 sm:$0xff]  }
  0x51   : > { %1548 = vmatpush1.bf16.msra.mxu0 %v2664_v5  ;;  %v2754_v5 = vld [vmem:[%s2863_s11 + $0x280] ss:$24 sps:$4 sm:$0xff]  }
  0x52   : > { %1549 = vmatprep.subr.bf16.mxu0 %v2791_v23 }
  0x55   : > { %1550 = vmatpush1.bf16.msra.mxu0 %v2669_v6  ;;  %v2755_v6 = vld [vmem:[%s2863_s11 + $0x2ac] ss:$24 sps:$4 sm:$0xff]  }
  0x56   : > { %1551 = vmatprep.subr.bf16.mxu0 %v2791_v23  ;;  %v2686_v23 = vld [vmem:[%s2863_s11 + $0x74] ss:$24 sps:$4 sm:$0xff]  }
  0x57   : > { %1350 = vmatmul.mubr.bf16.gmra.mrb[24].mxu1 %v2653_v7  ;;  %1286 = vmatmul.mubr.bf16.gmra.mrb[24].mxu0 %v2658_v8  ;;  %v2758_v7 = vld [vmem:[%s2863_s11 + $0x2b4] ss:$24 sps:$4 sm:$0xff]   ;;  %v2757_v8 = vld [vmem:[%s2863_s11 + $0x2a8] ss:$24 sps:$4 sm:$0xff]  }
  0x58   : > { %1357 = vmatprep.mubr.bf16.mxu1 %v2660_v9  ;;  %1293 = vmatprep.mubr.bf16.mxu0 %v2666_v10  ;;  %v2760_v9 = vld [vmem:[%s2863_s11 + $0x2b0] ss:$24 sps:$4 sm:$0xff]   ;;  %v2761_v10 = vld [vmem:[%s2863_s11 + $0x2dc] ss:$24 sps:$4 sm:$0xff]  }
  0x59   : > { %1552 = vmatpush1.bf16.msra.mxu0 %v2673_v11  ;;  %v2764_v11 = vld [vmem:[%s2863_s11 + $0x2e4] ss:$24 sps:$4 sm:$0xff]  }
  0x5f   : > { %1358 = vmatmul.mubr.bf16.gmra.mrb[28].mxu1 %v2662_v12  ;;  %1294 = vmatmul.mubr.bf16.gmra.mrb[28].mxu0 %v2668_v13  ;;  %v2763_v12 = vld [vmem:[%s2863_s11 + $0x2d8] ss:$24 sps:$4 sm:$0xff]  }
  0x60   : > { %1398 = vmatprep.mubr.bf16.mxu1 %v2672_v14  ;;  %2135 = vmatprep.mubr.msk.bf16.mxu0 %vm1156_vm0, %v2676_v15  ;;  %v2766_v13 = vld [vmem:[%s2863_s11 + $0x2e0] ss:$24 sps:$4 sm:$0xff]   ;;  %s1992_s11 = sshll.u32 %s3271_s18, 2 }
  0x61   : > { %s3193_s26 = scalar_lea.vmem %s3265_s3, %s1992_s11 }
  0x67   : > { %1399 = vmatmul.mubr.bf16.vlgmr.msra.gmra.mrb[32].mxu1 %v2670_v16  ;;  %1560 = vmatmul.mubr.bf16.vlgmr.msra.gmra.mrb[32].mxu0 %v2674_v17  ;;  %v3101_v16 = vld [vmem:[%s3264_s2] ss:$0 sm:$0xff] }
  0x68   : > { %1406 = vmatprep.mubr.bf16.mxu1 %v2677_v18  ;;  %2136 = vmatprep.mubr.msk.bf16.mxu0 %vm1156_vm0, %v2680_v19 }
  0x6f   : > { %1407 = vmatmul.mubr.bf16.gmra.mrb[36].mxu1 %v2679_v20  ;;  %1568 = vmatmul.mubr.bf16.gmra.mrb[36].mxu0 %v2682_v21 }
  0x70   : > { %1414 = vmatprep.mubr.bf16.mxu1 %v2683_v22  ;;  %2137 = vmatprep.mubr.msk.bf16.mxu0 %vm1156_vm0, %v2686_v23 }
  0x77   : > { %1415 = vmatmul.mubr.bf16.gmra.mrb[40].mxu1 %v2685_v24  ;;  %1576 = vmatmul.mubr.bf16.gmra.mrb[40].mxu0 %v2688_v25 }
  0x78   : > { %1422 = vmatprep.mubr.bf16.mxu1 %v2689_v26  ;;  %2138 = vmatprep.mubr.msk.bf16.mxu0 %vm1156_vm0, %v2692_v27 }
  0x7f   : > { %1423 = vmatmul.mubr.bf16.gmra.mrb[44].mxu1 %v2691_v28  ;;  %1584 = vmatmul.mubr.bf16.gmra.mrb[44].mxu0 %v2694_v29 }
  0x80   : > { %1430 = vmatprep.mubr.bf16.mxu1 %v2695_v30  ;;  %2139 = vmatprep.mubr.msk.bf16.mxu0 %vm1156_vm0, %v2698_v31 }
  0x87   : > { %1431 = vmatmul.mubr.bf16.gmra.mrb[48].mxu1 %v2697_v32  ;;  %1592 = vmatmul.mubr.bf16.gmra.mrb[48].mxu0 %v2700_v33 }
  0x88   : > { %1438 = vmatprep.mubr.bf16.mxu1 %v2701_v34  ;;  %2140 = vmatprep.mubr.msk.bf16.mxu0 %vm1156_vm0, %v2704_v35 }
  0x8f   : > { %1439 = vmatmul.mubr.bf16.gmra.mrb[52].mxu1 %v2703_v36  ;;  %1600 = vmatmul.mubr.bf16.gmra.mrb[52].mxu0 %v2706_v37 }
  0x90   : > { %1446 = vmatprep.mubr.bf16.mxu1 %v2707_v38  ;;  %2141 = vmatprep.mubr.msk.bf16.mxu0 %vm1156_vm0, %v2710_v39 }
  0x97   : > { %1447 = vmatmul.mubr.bf16.gmra.mrb[56].mxu1 %v2709_v40  ;;  %1608 = vmatmul.mubr.bf16.gmra.mrb[56].mxu0 %v2712_v41 }
  0x98   : > { %1454 = vmatprep.mubr.bf16.mxu1 %v2713_v42  ;;  %2142 = vmatprep.mubr.msk.bf16.mxu0 %vm1156_vm0, %v2716_v43 }
  0x9f   : > { %1455 = vmatmul.mubr.bf16.gmra.mrb[60].mxu1 %v2715_v44  ;;  %1616 = vmatmul.mubr.bf16.gmra.mrb[60].mxu0 %v2718_v45 }
  0xa0   : > { %1462 = vmatprep.mubr.bf16.mxu1 %v2719_v46  ;;  %2143 = vmatprep.mubr.msk.bf16.mxu0 %vm1156_vm0, %v2722_v47 }
  0xa7   : > { %1463 = vmatmul.mubr.bf16.gmra.mrb[64].mxu1 %v2721_v48  ;;  %1624 = vmatmul.mubr.bf16.gmra.mrb[64].mxu0 %v2724_v49 }
  0xa8   : > { %1470 = vmatprep.mubr.bf16.mxu1 %v2725_v50  ;;  %2144 = vmatprep.mubr.msk.bf16.mxu0 %vm1156_vm0, %v2728_v51 }
  0xaf   : > { %1471 = vmatmul.mubr.bf16.gmra.mrb[68].mxu1 %v2727_v52  ;;  %1632 = vmatmul.mubr.bf16.gmra.mrb[68].mxu0 %v2730_v53 }
  0xb0   : > { %1478 = vmatprep.mubr.bf16.mxu1 %v2731_v54  ;;  %2145 = vmatprep.mubr.msk.bf16.mxu0 %vm1156_vm0, %v2734_v55 }
  0xb7   : > { %1479 = vmatmul.mubr.bf16.gmra.mrb[72].mxu1 %v2733_v56  ;;  %1640 = vmatmul.mubr.bf16.gmra.mrb[72].mxu0 %v2736_v57 }
  0xb8   : > { %1486 = vmatprep.mubr.bf16.mxu1 %v2737_v58  ;;  %2146 = vmatprep.mubr.msk.bf16.mxu0 %vm1156_vm0, %v2740_v59 }
  0xbf   : > { %1487 = vmatmul.mubr.bf16.gmra.mrb[76].mxu1 %v2739_v60  ;;  %1648 = vmatmul.mubr.bf16.gmra.mrb[76].mxu0 %v2742_v61 }
  0xc0   : > { %1494 = vmatprep.mubr.bf16.mxu1 %v2743_v62  ;;  %2147 = vmatprep.mubr.msk.bf16.mxu0 %vm1156_vm0, %v2746_v63 }
  0xc7   : > { %1495 = vmatmul.mubr.bf16.gmra.mrb[80].mxu1 %v2745_v0  ;;  %1656 = vmatmul.mubr.bf16.gmra.mrb[80].mxu0 %v2748_v1 }
  0xc8   : > { %1502 = vmatprep.mubr.bf16.mxu1 %v2749_v2  ;;  %2148 = vmatprep.mubr.msk.bf16.mxu0 %vm1156_vm0, %v2752_v3 }
  0xcf   : > { %1503 = vmatmul.mubr.bf16.gmra.mrb[84].mxu1 %v2751_v4  ;;  %1664 = vmatmul.mubr.bf16.gmra.mrb[84].mxu0 %v2754_v5 }
  0xd0   : > { %1510 = vmatprep.mubr.bf16.mxu1 %v2755_v6  ;;  %2149 = vmatprep.mubr.msk.bf16.mxu0 %vm1156_vm0, %v2758_v7 }
  0xd7   : > { %1511 = vmatmul.mubr.bf16.gmra.mrb[88].mxu1 %v2757_v8  ;;  %1672 = vmatmul.mubr.bf16.gmra.mrb[88].mxu0 %v2760_v9 }
  0xd8   : > { %1518 = vmatprep.mubr.bf16.mxu1 %v2761_v10  ;;  %2150 = vmatprep.mubr.msk.bf16.mxu0 %vm1156_vm0, %v2764_v11 }
  0xdf   : > { %1519 = vmatmul.mubr.bf16.gmra.mrb[92].mxu1 %v2763_v12  ;;  %1680 = vmatmul.mubr.bf16.gmra.mrb[92].mxu0 %v2766_v13 }
  0xfa   : > { %v2376_v14 = vpop.f32.mrb[0].mxu1  ;;  %v2328_v15 = vpop.f32.mrb[0].mxu0 }
  0xfb   : > { %v2377_v17 = vpop.f32.mrb[1].mxu1  ;;  %v2329_v18 = vpop.f32.mrb[1].mxu0 }
  0xfc   : > { %v2378_v19 = vadd.f32 %v2377_v17, %v2376_v14  ;;  %v2379_v20 = vpop.f32.mrb[2].mxu1  ;;  %v3103_v21 = vadd.f32 %v2329_v18, %v2328_v15  ;;  %v2331_v22 = vpop.f32.mrb[2].mxu0 }
  0xfd   : > { %v2380_v23 = vpop.f32.mrb[3].mxu1  ;;  %v2332_v24 = vpop.f32.mrb[3].mxu0 }
  0xfe   : > { %v3106_v25 = vadd.f32 %v2378_v19, %v3101_v16  ;;  %v2381_v26 = vadd.f32 %v2380_v23, %v2379_v20  ;;  %v3108_v27 = vadd.f32 %v2332_v24, %v2331_v22 }
 0x100   : > { %v3111_v28 = vadd.f32 %v2381_v26, %v3101_v16 }
 0x102   : > { %v2382_v29 = vpop.f32.mrb[4].mxu1  ;;  %v2334_v30 = vpop.f32.mrb[4].mxu0 }
 0x103   : > { %v2383_v31 = vpop.f32.mrb[5].mxu1  ;;  %v2335_v32 = vpop.f32.mrb[5].mxu0 }
 0x104   : > { %v2384_v33 = vadd.f32 %v2383_v31, %v2382_v29  ;;  %v2385_v34 = vpop.f32.mrb[6].mxu1  ;;  %v3113_v35 = vadd.f32 %v2335_v32, %v2334_v30  ;;  %v2337_v36 = vpop.f32.mrb[6].mxu0 }
 0x105   : > { %v2386_v37 = vpop.f32.mrb[7].mxu1  ;;  %v2338_v38 = vpop.f32.mrb[7].mxu0 }
 0x106   : > { %v3116_v39 = vadd.f32 %v2384_v33, %v3101_v16  ;;  %v2387_v40 = vadd.f32 %v2386_v37, %v2385_v34  ;;  %v3118_v41 = vadd.f32 %v2338_v38, %v2337_v36 }
 0x108   : > { %v3121_v42 = vadd.f32 %v2387_v40, %v3101_v16 }
 0x10a   : > { %v2388_v43 = vpop.f32.mrb[8].mxu1  ;;  %v2340_v44 = vpop.f32.mrb[8].mxu0 }
 0x10b   : > { %v2389_v45 = vpop.f32.mrb[9].mxu1  ;;  %v2341_v46 = vpop.f32.mrb[9].mxu0 }
 0x10c   : > { %v2390_v47 = vadd.f32 %v2389_v45, %v2388_v43  ;;  %v2391_v48 = vpop.f32.mrb[10].mxu1  ;;  %v3123_v49 = vadd.f32 %v2341_v46, %v2340_v44  ;;  %v2343_v50 = vpop.f32.mrb[10].mxu0 }
 0x10d   : > { %v2392_v51 = vpop.f32.mrb[11].mxu1  ;;  %v2344_v52 = vpop.f32.mrb[11].mxu0 }
 0x10e   : > { %v3126_v53 = vadd.f32 %v2390_v47, %v3101_v16  ;;  %v2393_v54 = vadd.f32 %v2392_v51, %v2391_v48  ;;  %v3128_v55 = vadd.f32 %v2344_v52, %v2343_v50 }
 0x110   : > { %v3131_v56 = vadd.f32 %v2393_v54, %v3101_v16 }
 0x112   : > { %v2394_v57 = vpop.f32.mrb[12].mxu1  ;;  %v2346_v58 = vpop.f32.mrb[12].mxu0 }
 0x113   : > { %v2395_v59 = vpop.f32.mrb[13].mxu1  ;;  %v2347_v60 = vpop.f32.mrb[13].mxu0 }
 0x114   : > { %v2396_v61 = vadd.f32 %v2395_v59, %v2394_v57  ;;  %v2397_v62 = vpop.f32.mrb[14].mxu1  ;;  %v3133_v63 = vadd.f32 %v2347_v60, %v2346_v58  ;;  %v2349_v0 = vpop.f32.mrb[14].mxu0 }
 0x115   : > { %v2398_v1 = vpop.f32.mrb[15].mxu1  ;;  %v2350_v2 = vpop.f32.mrb[15].mxu0 }
 0x116   : > { %v3136_v3 = vadd.f32 %v2396_v61, %v3101_v16  ;;  %v2399_v4 = vadd.f32 %v2398_v1, %v2397_v62  ;;  %v3138_v5 = vadd.f32 %v2350_v2, %v2349_v0 }
 0x118   : > { %v3141_v6 = vadd.f32 %v2399_v4, %v3101_v16 }
 0x11a   : > { %v2400_v7 = vpop.f32.mrb[16].mxu1  ;;  %v2352_v8 = vpop.f32.mrb[16].mxu0 }
 0x11b   : > { %v2401_v9 = vpop.f32.mrb[17].mxu1  ;;  %v2353_v10 = vpop.f32.mrb[17].mxu0 }
 0x11c   : > { %v2402_v11 = vadd.f32 %v2401_v9, %v2400_v7  ;;  %v2403_v12 = vpop.f32.mrb[18].mxu1  ;;  %v3143_v13 = vadd.f32 %v2353_v10, %v2352_v8  ;;  %v2355_v14 = vpop.f32.mrb[18].mxu0 }
 0x11d   : > { %v2404_v15 = vpop.f32.mrb[19].mxu1  ;;  %v2356_v17 = vpop.f32.mrb[19].mxu0 }
 0x11e   : > { %v3146_v18 = vadd.f32 %v2402_v11, %v3101_v16  ;;  %v2405_v19 = vadd.f32 %v2404_v15, %v2403_v12  ;;  %v3148_v20 = vadd.f32 %v2356_v17, %v2355_v14 }
 0x120   : > { %v3151_v22 = vadd.f32 %v2405_v19, %v3101_v16 }
 0x122   : > { %v2406_v23 = vpop.f32.mrb[20].mxu1  ;;  %v2358_v24 = vpop.f32.mrb[20].mxu0 }
 0x123   : > { %v2407_v26 = vpop.f32.mrb[21].mxu1  ;;  %v2359_v29 = vpop.f32.mrb[21].mxu0 }
 0x124   : > { %v2408_v30 = vadd.f32 %v2407_v26, %v2406_v23  ;;  %v2409_v31 = vpop.f32.mrb[22].mxu1  ;;  %v3153_v32 = vadd.f32 %v2359_v29, %v2358_v24  ;;  %v2361_v33 = vpop.f32.mrb[22].mxu0  ;;  %v1240_v29 = vadd.f32 %v3103_v21, %v3101_v16  ;;  %v1248_v21 = vadd.f32 %v3113_v35, %v3101_v16 }
 0x125   : > { %v2410_v34 = vpop.f32.mrb[23].mxu1  ;;  %v2362_v36 = vpop.f32.mrb[23].mxu0 }
 0x126   : > { %v3156_v37 = vadd.f32 %v2408_v30, %v3101_v16  ;;  %v2411_v38 = vadd.f32 %v2410_v34, %v2409_v31  ;;  %v3158_v40 = vadd.f32 %v2362_v36, %v2361_v33 }
 0x128   : > { %v3161_v43 = vadd.f32 %v2411_v38, %v3101_v16  ;;  %v1243_v38 = vadd.f32 %v3108_v27, %v3101_v16 }
 0x12a   : > { %v2412_v44 = vpop.f32.mrb[24].mxu1  ;;  %v2364_v45 = vpop.f32.mrb[24].mxu0 }
 0x12b   : > { %v2413_v46 = vpop.f32.mrb[25].mxu1  ;;  %v2365_v47 = vpop.f32.mrb[25].mxu0 }
 0x12c   : > { %v2414_v48 = vadd.f32 %v2413_v46, %v2412_v44  ;;  %v2415_v50 = vpop.f32.mrb[26].mxu1  ;;  %v3163_v51 = vadd.f32 %v2365_v47, %v2364_v45  ;;  %v2367_v52 = vpop.f32.mrb[26].mxu0 }
 0x12d   : > { %v2416_v54 = vpop.f32.mrb[27].mxu1  ;;  %v2368_v57 = vpop.f32.mrb[27].mxu0 }
 0x12e   : > { %v3166_v58 = vadd.f32 %v2414_v48, %v3101_v16  ;;  %v2417_v59 = vadd.f32 %v2416_v54, %v2415_v50  ;;  %v3168_v60 = vadd.f32 %v2368_v57, %v2367_v52 }
 0x130   : > { %v3171_v61 = vadd.f32 %v2417_v59, %v3101_v16 }
 0x132   : > { %v2418_v62 = vpop.f32.mrb[28].mxu1  ;;  %v2370_v0 = vpop.f32.mrb[28].mxu0 }
 0x133   : > { %v2419_v1 = vpop.f32.mrb[29].mxu1  ;;  %v2371_v2 = vpop.f32.mrb[29].mxu0 }
 0x134   : > { %v2420_v4 = vadd.f32 %v2419_v1, %v2418_v62  ;;  %v2421_v7 = vpop.f32.mrb[30].mxu1  ;;  %v3173_v8 = vadd.f32 %v2371_v2, %v2370_v0  ;;  %v2373_v9 = vpop.f32.mrb[30].mxu0 }
 0x135   : > { %v2422_v10 = vpop.f32.mrb[31].mxu1  ;;  %v2374_v11 = vpop.f32.mrb[31].mxu0 }
 0x136   : > { %v3176_v12 = vadd.f32 %v2420_v4, %v3101_v16  ;;  %v2423_v14 = vadd.f32 %v2422_v10, %v2421_v7  ;;  %v3178_v15 = vadd.f32 %v2374_v11, %v2373_v9  ;;  %v1251_v7 = vadd.f32 %v3118_v41, %v3101_v16 }
 0x138   : > { %v3181_v17 = vadd.f32 %v2423_v14, %v3101_v16 }
 0x13a   : > { %v2440_v19 = vpop.f32.mrb[32].mxu1  ;;  %v1561_v23 = vpop.f32.mrb[32].mxu0 }
 0x13b   : > { %v2441_v24 = vpop.f32.mrb[33].mxu1  ;;  %v1563_v26 = vpop.f32.mrb[33].mxu0 }
 0x13c   : > { %v2442_v30 = vadd.f32 %v2441_v24, %v2440_v19  ;;  %v2443_v31 = vpop.f32.mrb[34].mxu1  ;;  %v1564_v33 = vpop.f32.mrb[34].mxu0 }
 0x13d   : > { %v2444_v34 = vpop.f32.mrb[35].mxu1  ;;  %v1566_v36 = vpop.f32.mrb[35].mxu0 }
 0x13e   : > { %v2445_v44 = vadd.f32 %v2444_v34, %v2443_v31  ;;  %v1401_v45 = vadd.f32 %v2442_v30, %v1240_v29  ;;  %v1256_v30 = vadd.f32 %v3123_v49, %v3101_v16 }
 0x140   : > { %v1562_v46 = vadd.f32 %v1561_v23, %v1401_v45  ;;  %v1404_v47 = vadd.f32 %v2445_v44, %v1243_v38  ;;  %v1259_v45 = vadd.f32 %v3128_v55, %v3101_v16 }
 0x142   : > { %v1565_v48 = vadd.f32 %v1564_v33, %v1404_v47  ;;  %v2446_v50 = vpop.f32.mrb[36].mxu1  ;;  %v1569_v52 = vpop.f32.mrb[36].mxu0  ;;  %v1688_v59 = vmax.f32 %v1562_v46, 0.0 }
 0x143   : > { %v2447_v54 = vpop.f32.mrb[37].mxu1  ;;  %v1571_v57 = vpop.f32.mrb[37].mxu0 }
 0x144   : > { %v1689_v62 = vmax.f32 %v1565_v48, 0.0  ;;  %v2448_v0 = vadd.f32 %v2447_v54, %v2446_v50  ;;  %v2449_v1 = vpop.f32.mrb[38].mxu1  ;;  %v1572_v2 = vpop.f32.mrb[38].mxu0 }
 0x145   : > { %v2450_v27 = vpop.f32.mrb[39].mxu1  ;;  %v1574_v4 = vpop.f32.mrb[39].mxu0 }
 0x146   : > { %v2220_v9 = vpack.c.bf16 %v1689_v62, %v1688_v59  ;;  %v2451_v10 = vadd.f32 %v2450_v27, %v2449_v1  ;;  %v1409_v11 = vadd.f32 %v2448_v0, %v1248_v21  ;;  %v1264_v62 = vadd.f32 %v3133_v63, %v3101_v16 }
 0x148   : > { %2221 = vst [vmem:[%s3193_s26] sm:$0xff] %v2220_v9   ;;  %v1570_v35 = vadd.f32 %v1569_v52, %v1409_v11  ;;  %v1412_v14 = vadd.f32 %v2451_v10, %v1251_v7  ;;  %v1267_v9 = vadd.f32 %v3138_v5, %v3101_v16 }
 0x14a   : > { %v1573_v19 = vadd.f32 %v1572_v2, %v1412_v14  ;;  %v2452_v23 = vpop.f32.mrb[40].mxu1  ;;  %v1577_v24 = vpop.f32.mrb[40].mxu0  ;;  %v1690_v31 = vmax.f32 %v1570_v35, 0.0 }
 0x14b   : > { %v2453_v26 = vpop.f32.mrb[41].mxu1  ;;  %v1579_v29 = vpop.f32.mrb[41].mxu0 }
 0x14c   : > { %v1691_v33 = vmax.f32 %v1573_v19, 0.0  ;;  %v2454_v34 = vadd.f32 %v2453_v26, %v2452_v23  ;;  %v2455_v36 = vpop.f32.mrb[42].mxu1  ;;  %v1580_v41 = vpop.f32.mrb[42].mxu0 }
 0x14d   : > { %v2456_v38 = vpop.f32.mrb[43].mxu1  ;;  %v1582_v44 = vpop.f32.mrb[43].mxu0 }
 0x14e   : > { %v2225_v46 = vpack.c.bf16 %v1691_v33, %v1690_v31  ;;  %v2457_v47 = vadd.f32 %v2456_v38, %v2455_v36  ;;  %v1417_v48 = vadd.f32 %v2454_v34, %v1256_v30  ;;  %v1272_v30 = vadd.f32 %v3143_v13, %v3101_v16 }
 0x14f   : > { %v1275_v44 = vadd.f32 %v3148_v20, %v3101_v16 }
 0x150   : > { %2297 = vst [vmem:[%s3193_s26 + $0x8] sm:$0xff] %v2225_v46   ;;  %v1578_v50 = vadd.f32 %v1577_v24, %v1417_v48  ;;  %v1420_v52 = vadd.f32 %v2457_v47, %v1259_v45 }
 0x152   : > { %v1581_v54 = vadd.f32 %v1580_v41, %v1420_v52  ;;  %v2458_v57 = vpop.f32.mrb[44].mxu1  ;;  %v1585_v49 = vpop.f32.mrb[44].mxu0  ;;  %v1692_v0 = vmax.f32 %v1578_v50, 0.0 }
 0x153   : > { %v2459_v21 = vpop.f32.mrb[45].mxu1  ;;  %v1587_v59 = vpop.f32.mrb[45].mxu0 }
 0x154   : > { %v1693_v1 = vmax.f32 %v1581_v54, 0.0  ;;  %v2460_v2 = vadd.f32 %v2459_v21, %v2458_v57  ;;  %v2461_v27 = vpop.f32.mrb[46].mxu1  ;;  %v1588_v55 = vpop.f32.mrb[46].mxu0  ;;  %v1280_v21 = vadd.f32 %v3153_v32, %v3101_v16 }
 0x155   : > { %v2462_v4 = vpop.f32.mrb[47].mxu1  ;;  %v1590_v7 = vpop.f32.mrb[47].mxu0 }
 0x156   : > { %v2230_v10 = vpack.c.bf16 %v1693_v1, %v1692_v0  ;;  %v2463_v11 = vadd.f32 %v2462_v4, %v2461_v27  ;;  %v1425_v35 = vadd.f32 %v2460_v2, %v1264_v62 }
 0x158   : > { %2298 = vst [vmem:[%s3193_s26 + $0x10] sm:$0xff] %v2230_v10   ;;  %v1586_v14 = vadd.f32 %v1585_v49, %v1425_v35  ;;  %v1428_v19 = vadd.f32 %v2463_v11, %v1267_v9 }
 0x15a   : > { %v1589_v23 = vadd.f32 %v1588_v55, %v1428_v19  ;;  %v2464_v24 = vpop.f32.mrb[48].mxu1  ;;  %v1593_v63 = vpop.f32.mrb[48].mxu0  ;;  %v1694_v31 = vmax.f32 %v1586_v14, 0.0  ;;  %v1283_v55 = vadd.f32 %v3158_v40, %v3101_v16 }
 0x15b   : > { %v2465_v26 = vpop.f32.mrb[49].mxu1  ;;  %v1595_v29 = vpop.f32.mrb[49].mxu0 }
 0x15c   : > { %v1695_v33 = vmax.f32 %v1589_v23, 0.0  ;;  %v2466_v34 = vadd.f32 %v2465_v26, %v2464_v24  ;;  %v2467_v36 = vpop.f32.mrb[50].mxu1  ;;  %v1596_v5 = vpop.f32.mrb[50].mxu0  ;;  %v1288_v24 = vadd.f32 %v3163_v51, %v3101_v16 }
 0x15d   : > { %v2468_v41 = vpop.f32.mrb[51].mxu1  ;;  %v1598_v38 = vpop.f32.mrb[51].mxu0 }
 0x15e   : > { %v2235_v45 = vpack.c.bf16 %v1695_v33, %v1694_v31  ;;  %v2469_v46 = vadd.f32 %v2468_v41, %v2467_v36  ;;  %v1433_v47 = vadd.f32 %v2466_v34, %v1272_v30  ;;  %v1291_v34 = vadd.f32 %v3168_v60, %v3101_v16 }
 0x160   : > { %2299 = vst [vmem:[%s3193_s26 + $0x18] sm:$0xff] %v2235_v45   ;;  %v1594_v48 = vadd.f32 %v1593_v63, %v1433_v47  ;;  %v1436_v50 = vadd.f32 %v2469_v46, %v1275_v44 }
 0x162   : > { %v1597_v52 = vadd.f32 %v1596_v5, %v1436_v50  ;;  %v2470_v54 = vpop.f32.mrb[52].mxu1  ;;  %v1601_v13 = vpop.f32.mrb[52].mxu0  ;;  %v1696_v59 = vmax.f32 %v1594_v48, 0.0  ;;  %v1296_v50 = vadd.f32 %v3173_v8, %v3101_v16 }
 0x163   : > { %v2471_v57 = vpop.f32.mrb[53].mxu1  ;;  %v1603_v49 = vpop.f32.mrb[53].mxu0 }
 0x164   : > { %v1697_v62 = vmax.f32 %v1597_v52, 0.0  ;;  %v2472_v0 = vadd.f32 %v2471_v57, %v2470_v54  ;;  %v2473_v1 = vpop.f32.mrb[54].mxu1  ;;  %v1604_v20 = vpop.f32.mrb[54].mxu0 }
 0x165   : > { %v2474_v2 = vpop.f32.mrb[55].mxu1  ;;  %v1606_v27 = vpop.f32.mrb[55].mxu0 }
 0x166   : > { %v2240_v4 = vpack.c.bf16 %v1697_v62, %v1696_v59  ;;  %v2475_v7 = vadd.f32 %v2474_v2, %v2473_v1  ;;  %v1441_v9 = vadd.f32 %v2472_v0, %v1280_v21  ;;  %v1299_v59 = vadd.f32 %v3178_v15, %v3101_v16 }
 0x168   : > { %2300 = vst [vmem:[%s3193_s26 + $0x20] sm:$0xff] %v2240_v4   ;;  %v1602_v10 = vadd.f32 %v1601_v13, %v1441_v9  ;;  %v1444_v11 = vadd.f32 %v2475_v7, %v1283_v55 }
 0x16a   : > { %v1605_v35 = vadd.f32 %v1604_v20, %v1444_v11  ;;  %v2476_v14 = vpop.f32.mrb[56].mxu1  ;;  %v1609_v32 = vpop.f32.mrb[56].mxu0  ;;  %v1698_v63 = vmax.f32 %v1602_v10, 0.0 }
 0x16b   : > { %v2477_v19 = vpop.f32.mrb[57].mxu1  ;;  %v1611_v23 = vpop.f32.mrb[57].mxu0 }
 0x16c   : > { %v1699_v26 = vmax.f32 %v1605_v35, 0.0  ;;  %v2478_v29 = vadd.f32 %v2477_v19, %v2476_v14  ;;  %v2479_v30 = vpop.f32.mrb[58].mxu1  ;;  %v1612_v40 = vpop.f32.mrb[58].mxu0 }
 0x16d   : > { %v2480_v31 = vpop.f32.mrb[59].mxu1  ;;  %v1614_v33 = vpop.f32.mrb[59].mxu0 }
 0x16e   : > { %v2245_v36 = vpack.c.bf16 %v1699_v26, %v1698_v63  ;;  %v2481_v5 = vadd.f32 %v2480_v31, %v2479_v30  ;;  %v1449_v41 = vadd.f32 %v2478_v29, %v1288_v24 }
 0x170   : > { %2301 = vst [vmem:[%s3193_s26 + $0x28] sm:$0xff] %v2245_v36   ;;  %v1610_v38 = vadd.f32 %v1609_v32, %v1449_v41  ;;  %v1452_v44 = vadd.f32 %v2481_v5, %v1291_v34 }
 0x172   : > { %v1613_v45 = vadd.f32 %v1612_v40, %v1452_v44  ;;  %v2482_v46 = vpop.f32.mrb[60].mxu1  ;;  %v1617_v51 = vpop.f32.mrb[60].mxu0  ;;  %v1700_v52 = vmax.f32 %v1610_v38, 0.0 }
 0x173   : > { %v2483_v47 = vpop.f32.mrb[61].mxu1  ;;  %v1619_v48 = vpop.f32.mrb[61].mxu0 }
 0x174   : > { %v1701_v54 = vmax.f32 %v1613_v45, 0.0  ;;  %v2484_v13 = vadd.f32 %v2483_v47, %v2482_v46  ;;  %v2485_v57 = vpop.f32.mrb[62].mxu1  ;;  %v1620_v60 = vpop.f32.mrb[62].mxu0 }
 0x175   : > { %v2486_v49 = vpop.f32.mrb[63].mxu1  ;;  %v1622_v21 = vpop.f32.mrb[63].mxu0 }
 0x176   : > { %v2250_v62 = vpack.c.bf16 %v1701_v54, %v1700_v52  ;;  %v2487_v0 = vadd.f32 %v2486_v49, %v2485_v57  ;;  %v1457_v1 = vadd.f32 %v2484_v13, %v1296_v50 }
 0x178   : > { %2302 = vst [vmem:[%s3193_s26 + $0x30] sm:$0xff] %v2250_v62   ;;  %v1618_v20 = vadd.f32 %v1617_v51, %v1457_v1  ;;  %v1460_v2 = vadd.f32 %v2487_v0, %v1299_v59 }
 0x17a   : > { %v1621_v27 = vadd.f32 %v1620_v60, %v1460_v2  ;;  %v2488_v55 = vpop.f32.mrb[64].mxu1  ;;  %v1625_v8 = vpop.f32.mrb[64].mxu0  ;;  %v1702_v9 = vmax.f32 %v1618_v20, 0.0 }
 0x17b   : > { %v2489_v4 = vpop.f32.mrb[65].mxu1  ;;  %v1627_v7 = vpop.f32.mrb[65].mxu0 }
 0x17c   : > { %v1703_v10 = vmax.f32 %v1621_v27, 0.0  ;;  %v2490_v11 = vadd.f32 %v2489_v4, %v2488_v55  ;;  %v2491_v35 = vpop.f32.mrb[66].mxu1  ;;  %v1628_v14 = vpop.f32.mrb[66].mxu0 }
 0x17d   : > { %v2492_v32 = vpop.f32.mrb[67].mxu1  ;;  %v1630_v19 = vpop.f32.mrb[67].mxu0 }
 0x17e   : > { %v2255_v16 = vpack.c.bf16 %v1703_v10, %v1702_v9  ;;  %v2493_v15 = vadd.f32 %v2492_v32, %v2491_v35  ;;  %v1465_v23 = vadd.f32 %v2490_v11, %v3106_v25 }
 0x180   : > { %2303 = vst [vmem:[%s3193_s26 + $0x38] sm:$0xff] %v2255_v16   ;;  %v1626_v24 = vadd.f32 %v1625_v8, %v1465_v23  ;;  %v1468_v63 = vadd.f32 %v2493_v15, %v3111_v28 }
 0x182   : > { %v1629_v26 = vadd.f32 %v1628_v14, %v1468_v63  ;;  %v2494_v29 = vpop.f32.mrb[68].mxu1  ;;  %v1633_v30 = vpop.f32.mrb[68].mxu0  ;;  %v1704_v33 = vmax.f32 %v1626_v24, 0.0 }
 0x183   : > { %v2495_v40 = vpop.f32.mrb[69].mxu1  ;;  %v1635_v31 = vpop.f32.mrb[69].mxu0 }
 0x184   : > { %v1705_v34 = vmax.f32 %v1629_v26, 0.0  ;;  %v2496_v36 = vadd.f32 %v2495_v40, %v2494_v29  ;;  %v2497_v5 = vpop.f32.mrb[70].mxu1  ;;  %v1636_v41 = vpop.f32.mrb[70].mxu0 }
 0x185   : > { %v2498_v38 = vpop.f32.mrb[71].mxu1  ;;  %v1638_v44 = vpop.f32.mrb[71].mxu0 }
 0x186   : > { %v2260_v45 = vpack.c.bf16 %v1705_v34, %v1704_v33  ;;  %v2499_v46 = vadd.f32 %v2498_v38, %v2497_v5  ;;  %v1473_v25 = vadd.f32 %v2496_v36, %v3116_v39 }
 0x188   : > { %2304 = vst [vmem:[%s3193_s26 + $0x40] sm:$0xff] %v2260_v45   ;;  %v1634_v51 = vadd.f32 %v1633_v30, %v1473_v25  ;;  %v1476_v28 = vadd.f32 %v2499_v46, %v3121_v42 }
 0x18a   : > { %v1637_v47 = vadd.f32 %v1636_v41, %v1476_v28  ;;  %v2500_v48 = vpop.f32.mrb[72].mxu1  ;;  %v1641_v50 = vpop.f32.mrb[72].mxu0  ;;  %v1706_v13 = vmax.f32 %v1634_v51, 0.0 }
 0x18b   : > { %v2501_v52 = vpop.f32.mrb[73].mxu1  ;;  %v1643_v54 = vpop.f32.mrb[73].mxu0 }
 0x18c   : > { %v1707_v57 = vmax.f32 %v1637_v47, 0.0  ;;  %v2502_v60 = vadd.f32 %v2501_v52, %v2500_v48  ;;  %v2503_v49 = vpop.f32.mrb[74].mxu1  ;;  %v1644_v21 = vpop.f32.mrb[74].mxu0 }
 0x18d   : > { %v2504_v59 = vpop.f32.mrb[75].mxu1  ;;  %v1646_v62 = vpop.f32.mrb[75].mxu0 }
 0x18e   : > { %v2265_v0 = vpack.c.bf16 %v1707_v57, %v1706_v13  ;;  %v2505_v1 = vadd.f32 %v2504_v59, %v2503_v49  ;;  %v1481_v39 = vadd.f32 %v2502_v60, %v3126_v53 }
 0x190   : > { %2305 = vst [vmem:[%s3193_s26 + $0x48] sm:$0xff] %v2265_v0   ;;  %v1642_v20 = vadd.f32 %v1641_v50, %v1481_v39  ;;  %v1484_v42 = vadd.f32 %v2505_v1, %v3131_v56 }
 0x192   : > { %v1645_v2 = vadd.f32 %v1644_v21, %v1484_v42  ;;  %v2506_v27 = vpop.f32.mrb[76].mxu1  ;;  %v1649_v55 = vpop.f32.mrb[76].mxu0  ;;  %v1708_v7 = vmax.f32 %v1642_v20, 0.0 }
 0x193   : > { %v2507_v8 = vpop.f32.mrb[77].mxu1  ;;  %v1651_v4 = vpop.f32.mrb[77].mxu0 }
 0x194   : > { %v1709_v9 = vmax.f32 %v1645_v2, 0.0  ;;  %v2508_v10 = vadd.f32 %v2507_v8, %v2506_v27  ;;  %v2509_v11 = vpop.f32.mrb[78].mxu1  ;;  %v1652_v35 = vpop.f32.mrb[78].mxu0 }
 0x195   : > { %v2510_v14 = vpop.f32.mrb[79].mxu1  ;;  %v1654_v32 = vpop.f32.mrb[79].mxu0 }
 0x196   : > { %v2270_v19 = vpack.c.bf16 %v1709_v9, %v1708_v7  ;;  %v2511_v16 = vadd.f32 %v2510_v14, %v2509_v11  ;;  %v1489_v53 = vadd.f32 %v2508_v10, %v3136_v3 }
 0x198   : > { %2306 = vst [vmem:[%s3193_s26 + $0x50] sm:$0xff] %v2270_v19   ;;  %v1650_v15 = vadd.f32 %v1649_v55, %v1489_v53  ;;  %v1492_v56 = vadd.f32 %v2511_v16, %v3141_v6 }
 0x19a   : > { %v1653_v23 = vadd.f32 %v1652_v35, %v1492_v56  ;;  %v2512_v24 = vpop.f32.mrb[80].mxu1  ;;  %v1657_v63 = vpop.f32.mrb[80].mxu0  ;;  %v1710_v30 = vmax.f32 %v1650_v15, 0.0 }
 0x19b   : > { %v2513_v26 = vpop.f32.mrb[81].mxu1  ;;  %v1659_v29 = vpop.f32.mrb[81].mxu0 }
 0x19c   : > { %v1711_v40 = vmax.f32 %v1653_v23, 0.0  ;;  %v2514_v31 = vadd.f32 %v2513_v26, %v2512_v24  ;;  %v2515_v33 = vpop.f32.mrb[82].mxu1  ;;  %v1660_v34 = vpop.f32.mrb[82].mxu0 }
 0x19d   : > { %v2516_v36 = vpop.f32.mrb[83].mxu1  ;;  %v1662_v5 = vpop.f32.mrb[83].mxu0 }
 0x19e   : > { %v2275_v41 = vpack.c.bf16 %v1711_v40, %v1710_v30  ;;  %v2517_v38 = vadd.f32 %v2516_v36, %v2515_v33  ;;  %v1497_v3 = vadd.f32 %v2514_v31, %v3146_v18 }
 0x1a0   : > { %2307 = vst [vmem:[%s3193_s26 + $0x58] sm:$0xff] %v2275_v41   ;;  %v1658_v44 = vadd.f32 %v1657_v63, %v1497_v3  ;;  %v1500_v6 = vadd.f32 %v2517_v38, %v3151_v22 }
 0x1a2   : > { %v1661_v45 = vadd.f32 %v1660_v34, %v1500_v6  ;;  %v2518_v46 = vpop.f32.mrb[84].mxu1  ;;  %v1665_v25 = vpop.f32.mrb[84].mxu0  ;;  %v1712_v47 = vmax.f32 %v1658_v44, 0.0 }
 0x1a3   : > { %v2519_v51 = vpop.f32.mrb[85].mxu1  ;;  %v1667_v28 = vpop.f32.mrb[85].mxu0 }
 0x1a4   : > { %v1713_v48 = vmax.f32 %v1661_v45, 0.0  ;;  %v2520_v50 = vadd.f32 %v2519_v51, %v2518_v46  ;;  %v2521_v52 = vpop.f32.mrb[86].mxu1  ;;  %v1668_v54 = vpop.f32.mrb[86].mxu0 }
 0x1a5   : > { %v2522_v13 = vpop.f32.mrb[87].mxu1  ;;  %v1670_v57 = vpop.f32.mrb[87].mxu0 }
 0x1a6   : > { %v2280_v60 = vpack.c.bf16 %v1713_v48, %v1712_v47  ;;  %v2523_v49 = vadd.f32 %v2522_v13, %v2521_v52  ;;  %v1505_v18 = vadd.f32 %v2520_v50, %v3156_v37 }
 0x1a8   : > { %2308 = vst [vmem:[%s3193_s26 + $0x60] sm:$0xff] %v2280_v60   ;;  %v1666_v21 = vadd.f32 %v1665_v25, %v1505_v18  ;;  %v1508_v22 = vadd.f32 %v2523_v49, %v3161_v43 }
 0x1aa   : > { %v1669_v59 = vadd.f32 %v1668_v54, %v1508_v22  ;;  %v2524_v62 = vpop.f32.mrb[88].mxu1  ;;  %v1673_v0 = vpop.f32.mrb[88].mxu0  ;;  %v1714_v20 = vmax.f32 %v1666_v21, 0.0 }
 0x1ab   : > { %v2525_v1 = vpop.f32.mrb[89].mxu1  ;;  %v1675_v39 = vpop.f32.mrb[89].mxu0 }
 0x1ac   : > { %v1715_v42 = vmax.f32 %v1669_v59, 0.0  ;;  %v2526_v2 = vadd.f32 %v2525_v1, %v2524_v62  ;;  %v2527_v27 = vpop.f32.mrb[90].mxu1  ;;  %v1676_v55 = vpop.f32.mrb[90].mxu0 }
 0x1ad   : > { %v2528_v8 = vpop.f32.mrb[91].mxu1  ;;  %v1678_v4 = vpop.f32.mrb[91].mxu0 }
 0x1ae   : > { %v2285_v7 = vpack.c.bf16 %v1715_v42, %v1714_v20  ;;  %v2529_v9 = vadd.f32 %v2528_v8, %v2527_v27  ;;  %v1513_v37 = vadd.f32 %v2526_v2, %v3166_v58 }
 0x1b0   : > { %2309 = vst [vmem:[%s3193_s26 + $0x68] sm:$0xff] %v2285_v7   ;;  %v1674_v10 = vadd.f32 %v1673_v0, %v1513_v37  ;;  %v1516_v43 = vadd.f32 %v2529_v9, %v3171_v61 }
 0x1b2   : > { %v1677_v11 = vadd.f32 %v1676_v55, %v1516_v43  ;;  %v2530_v35 = vpop.f32.mrb[92].mxu1  ;;  %v1681_v14 = vpop.f32.mrb[92].mxu0  ;;  %v1716_v16 = vmax.f32 %v1674_v10, 0.0 }
 0x1b3   : > { %v2531_v32 = vpop.f32.mrb[93].mxu1  ;;  %v1683_v19 = vpop.f32.mrb[93].mxu0 }
 0x1b4   : > { %v1717_v53 = vmax.f32 %v1677_v11, 0.0  ;;  %v2532_v15 = vadd.f32 %v2531_v32, %v2530_v35  ;;  %v2533_v56 = vpop.f32.mrb[94].mxu1  ;;  %v1684_v23 = vpop.f32.mrb[94].mxu0 }
 0x1b5   : > { %v2534_v24 = vpop.f32.mrb[95].mxu1  ;;  %v1686_v63 = vpop.f32.mrb[95].mxu0 }
 0x1b6   : > { %v2290_v26 = vpack.c.bf16 %v1717_v53, %v1716_v16  ;;  %v2535_v58 = vadd.f32 %v2534_v24, %v2533_v56  ;;  %v1521_v29 = vadd.f32 %v2532_v15, %v3176_v12 }
 0x1b8   : > { %2310 = vst [vmem:[%s3193_s26 + $0x70] sm:$0xff] %v2290_v26   ;;  %v1682_v61 = vadd.f32 %v1681_v14, %v1521_v29  ;;  %v1524_v30 = vadd.f32 %v2535_v58, %v3181_v17 }
 0x1ba   : > { %v1685_v40 = vadd.f32 %v1684_v23, %v1524_v30  ;;  %v1718_v31 = vmax.f32 %v1682_v61, 0.0 }
 0x1bc   : > { %v1719_v33 = vmax.f32 %v1685_v40, 0.0 }
 0x1be   : > { %v2295_v34 = vpack.c.bf16 %v1719_v33, %v1718_v31 }
 0x1c0   : > { %2311 = vst [vmem:[%s3193_s26 + $0x78] sm:$0xff] %v2295_v34  }
 0x1c1 PF: > { %s13_s14 = sadd.s32 1, %s2789_s14   ;;  %s3266_s12 = smov %s2785_s13 }
 0x1c2   : > { %p10_p5 = scmp.ge.s32.totalorder %s13_s14, 4   ;;  %s3267_s13 = smov %s3269_s15 }
 0x1c4   :  { %12 = sbr.rel (!%p10_p5) target bundleno = 2 (0x2), region = 68 }

// kernel: deeplab_forward.61
= control target key start
LH: loop header
LB: loop body
LE: loop exit
PB: predicated region body
PF: predicated region fallthrough
CT: control target
= control target key end

     0   :  { %s1214_s12 = smov 0   ;;  %s1216_s13 = smov 0   ;;  %s1355_s0 = inlined_call_operand.vmem [shape: bf16[512,64], index: 0, kind: input, shape index: {}]   ;;  %s1356_s1 = inlined_call_operand.vmem [shape: bf16[64,128], index: 1, kind: input, shape index: {}]   ;;  %s1357_s2 = inlined_call_operand.vmem [shape: f32[1,128], index: 2, kind: input, shape index: {}]   ;;  %s1358_s3 = inlined_call_operand.vmem [shape: bf16[512,128], index: 3, kind: output, shape index: {}]  }
   0x1   :  { %s1218_s14 = smov 0  }
   0x2 LB: > { %s25_s15 = sadd.s32 1, %s1188_s13  ;;  %p855_p0 = scmp.ge.s32.totalorder %s1192_s14, 1  ;;  %s1192_s14 = sphi %s1218_s14, %s13_s14   ;;  %s1188_s13 = sphi %s1216_s13, %s1360_s13   ;;  %s1184_s12 = sphi %s1214_s12, %s1359_s12  }
   0x3   : > { %p27_p1 = scmp.ge.s32.totalorder %s25_s15, 2  ;;  %p169_p2 = scmp.lt.s32.totalorder %s1192_s14, 3 }
   0x5   : > { %s1362_s15 = smov (%p27_p1, %s25_s15), 0  ;;  %p170_p3 = pnand %p855_p0, %p169_p2 }
   0x6   : > { %v1150_v0 = vld [vmem:[%s1356_s1] sm:$0xff] (!%p170_p3)   ;;  %s856_s18 = sshll.u32 (!%p170_p3), %s1184_s12, 5  ;;  %v1151_v1 = vld [vmem:[%s1356_s1 + $0x8] sm:$0xff] (!%p170_p3)   ;;  %v1152_v2 = vld [vmem:[%s1356_s1 + $0x10] sm:$0xff] (!%p170_p3)   ;;  %vm377_vm0 = vcmask (!%p170_p3), 523264  }
   0x7   : > { %173 = sbr.rel (%p170_p3) target bundleno = 267 (0x10b), region = 32  ;;  %p204_p4 = scmp.lt.s32.totalorder (!%p170_p3), %s856_s18, 63  ;;  %1078 = vmatprep.subr.bf16.mxu0 (!%p170_p3), %v1150_v0  ;;  %1118 = vmatprep.subr.bf16.mxu1 (!%p170_p3), %v1150_v0  ;;  %v1153_v3 = vld [vmem:[%s1356_s1 + $0x18] sm:$0xff] (!%p170_p3)   ;;  %v1289_v21 = vld [vmem:[%s1357_s2] ss:$0 sm:$0xff] (!%p170_p3) }
   0x8   : > { %1079 = vmatpush3.bf16.msra.mxu0 (!%p170_p3), %v1150_v0  ;;  %1122 = vmatpush3.bf16.msra.mxu1 (!%p170_p3), %v1150_v0 }
   0x9   : > { %1080 = vmatprep.subr.bf16.mxu0 (!%p170_p3), %v1151_v1  ;;  %1119 = vmatprep.subr.bf16.mxu1 (!%p170_p3), %v1151_v1 }
   0xc   : > { %1081 = vmatpush3.bf16.msra.mxu0 (!%p170_p3), %v1151_v1  ;;  %1123 = vmatpush3.bf16.msra.mxu1 (!%p170_p3), %v1151_v1 }
   0xd   : > { %1082 = vmatprep.subr.bf16.mxu0 (!%p170_p3), %v1152_v2  ;;  %1120 = vmatprep.subr.bf16.mxu1 (!%p170_p3), %v1152_v2 }
   0xe   : > { %s1364_s18 = smov (!%p204_p4, %s856_s18), 63 }
   0xf   : > { %s857_s23 = sshll.u32 %s1364_s18, 2 }
  0x10   : > { %s1252_s28 = scalar_lea.vmem %s1355_s0, %s857_s23  ;;  %1083 = vmatpush3.bf16.msra.mxu0 %v1152_v2  ;;  %1124 = vmatpush3.bf16.msra.mxu1 %v1152_v2  ;;  %s1302_s6 = scalar_lea.vmem %s1358_s3, %s857_s23 }
  0x11   : > { %v1154_v4 = vld [vmem:[%s1252_s28] sm:$0xff]   ;;  %1084 = vmatprep.subr.bf16.mxu0 %v1153_v3  ;;  %1121 = vmatprep.subr.bf16.mxu1 %v1153_v3  ;;  %v1156_v6 = vld [vmem:[%s1252_s28 + $0x8] sm:$0xff]   ;;  %v1158_v8 = vld [vmem:[%s1252_s28 + $0x10] sm:$0xff]  }
  0x12   : > { %v1155_v5 = vld [vmem:[%s1252_s28 + $0x40] sm:$0xff]   ;;  %1086 = vmatprep.mubr.msk.bf16.mxu0 %vm377_vm0, %v1154_v4  ;;  %v1157_v7 = vld [vmem:[%s1252_s28 + $0x48] sm:$0xff]   ;;  %v1159_v9 = vld [vmem:[%s1252_s28 + $0x50] sm:$0xff]  }
  0x13   : > { %1102 = vmatprep.mubr.msk.bf16.mxu1 %vm377_vm0, %v1155_v5  ;;  %v1160_v10 = vld [vmem:[%s1252_s28 + $0x18] sm:$0xff]   ;;  %v1162_v12 = vld [vmem:[%s1252_s28 + $0x20] sm:$0xff]   ;;  %v1164_v14 = vld [vmem:[%s1252_s28 + $0x28] sm:$0xff]  }
  0x14   : > { %1085 = vmatpush3.bf16.msra.mxu0 %v1153_v3  ;;  %1125 = vmatpush3.bf16.msra.mxu1 %v1153_v3  ;;  %v1161_v11 = vld [vmem:[%s1252_s28 + $0x58] sm:$0xff]   ;;  %v1163_v13 = vld [vmem:[%s1252_s28 + $0x60] sm:$0xff]   ;;  %v1165_v15 = vld [vmem:[%s1252_s28 + $0x68] sm:$0xff]  }
  0x15   : > { %v1166_v16 = vld [vmem:[%s1252_s28 + $0x30] sm:$0xff]   ;;  %v1168_v18 = vld [vmem:[%s1252_s28 + $0x38] sm:$0xff]  }
  0x16   : > { %v1167_v17 = vld [vmem:[%s1252_s28 + $0x70] sm:$0xff]   ;;  %v1169_v19 = vld [vmem:[%s1252_s28 + $0x78] sm:$0xff]  }
  0x17   : > { %1087 = vmatmul.mubr.msk.bf16.vlgmr.msra.gmra.mrb[0].mxu0 %vm377_vm0, %v1156_v6  ;;  %1103 = vmatmul.mubr.msk.bf16.vlgmr.msra.gmra.mrb[0].mxu1 %vm377_vm0, %v1157_v7 }
  0x18   : > { %1090 = vmatprep.mubr.msk.bf16.mxu0 %vm377_vm0, %v1158_v8  ;;  %1106 = vmatprep.mubr.msk.bf16.mxu1 %vm377_vm0, %v1159_v9 }
  0x1f   : > { %1091 = vmatmul.mubr.msk.bf16.gmra.mrb[4].mxu0 %vm377_vm0, %v1160_v10  ;;  %1107 = vmatmul.mubr.msk.bf16.gmra.mrb[4].mxu1 %vm377_vm0, %v1161_v11 }
  0x20   : > { %1094 = vmatprep.mubr.msk.bf16.mxu0 %vm377_vm0, %v1162_v12  ;;  %1110 = vmatprep.mubr.msk.bf16.mxu1 %vm377_vm0, %v1163_v13 }
  0x27   : > { %1095 = vmatmul.mubr.msk.bf16.gmra.mrb[8].mxu0 %vm377_vm0, %v1164_v14  ;;  %1111 = vmatmul.mubr.msk.bf16.gmra.mrb[8].mxu1 %vm377_vm0, %v1165_v15 }
  0x28   : > { %1098 = vmatprep.mubr.msk.bf16.mxu0 %vm377_vm0, %v1166_v16  ;;  %1114 = vmatprep.mubr.msk.bf16.mxu1 %vm377_vm0, %v1167_v17 }
  0x2f   : > { %1099 = vmatmul.mubr.msk.bf16.gmra.mrb[12].mxu0 %vm377_vm0, %v1168_v18  ;;  %1115 = vmatmul.mubr.msk.bf16.gmra.mrb[12].mxu1 %vm377_vm0, %v1169_v19 }
  0xea   : > { %v1088_v20 = vpop.f32.mrb[0].mxu0  ;;  %v1104_v22 = vpop.f32.mrb[0].mxu1 }
  0xeb   : > { %v460_v23 = vpop.f32.mrb[1].mxu0  ;;  %v524_v24 = vpop.f32.mrb[1].mxu1  ;;  %v469_v27 = vadd.f32 %v1088_v20, %v1289_v21  ;;  %v533_v28 = vadd.f32 %v1104_v22, %v1289_v21 }
  0xec   : > { %v1089_v25 = vpop.f32.mrb[2].mxu0  ;;  %v1105_v26 = vpop.f32.mrb[2].mxu1  ;;  %v461_v33 = vadd.f32 %v1289_v21, %v460_v23  ;;  %v525_v34 = vadd.f32 %v1289_v21, %v524_v24 }
  0xed   : > { %v472_v29 = vadd.f32 %v1089_v25, %v1289_v21  ;;  %v536_v30 = vadd.f32 %v1105_v26, %v1289_v21  ;;  %v463_v31 = vpop.f32.mrb[3].mxu0  ;;  %v527_v32 = vpop.f32.mrb[3].mxu1 }
  0xee   : > { %v464_v35 = vadd.f32 %v1289_v21, %v463_v31  ;;  %v528_v36 = vadd.f32 %v1289_v21, %v527_v32 }
  0xef   : > { %v971_v37 = vpack.c.bf16 %v472_v29, %v469_v27  ;;  %v1011_v38 = vpack.c.bf16 %v536_v30, %v533_v28 }
  0xf0   : > { %v966_v39 = vpack.c.bf16 %v464_v35, %v461_v33  ;;  %v1006_v40 = vpack.c.bf16 %v528_v36, %v525_v34 }
  0xf1   : > { %1043 = vst [vmem:[%s1302_s6 + $0x8] sm:$0xff] %v971_v37   ;;  %1051 = vst [vmem:[%s1302_s6 + $0x48] sm:$0xff] %v1011_v38  }
  0xf2   : > { %967 = vst [vmem:[%s1302_s6] sm:$0xff] %v966_v39   ;;  %1050 = vst [vmem:[%s1302_s6 + $0x40] sm:$0xff] %v1006_v40   ;;  %v1092_v41 = vpop.f32.mrb[4].mxu0  ;;  %v1108_v42 = vpop.f32.mrb[4].mxu1 }
  0xf3   : > { %v476_v43 = vpop.f32.mrb[5].mxu0  ;;  %v540_v44 = vpop.f32.mrb[5].mxu1  ;;  %v485_v47 = vadd.f32 %v1092_v41, %v1289_v21  ;;  %v549_v48 = vadd.f32 %v1108_v42, %v1289_v21 }
  0xf4   : > { %v1093_v45 = vpop.f32.mrb[6].mxu0  ;;  %v1109_v46 = vpop.f32.mrb[6].mxu1  ;;  %v477_v53 = vadd.f32 %v1289_v21, %v476_v43  ;;  %v541_v54 = vadd.f32 %v1289_v21, %v540_v44 }
  0xf5   : > { %v488_v49 = vadd.f32 %v1093_v45, %v1289_v21  ;;  %v552_v50 = vadd.f32 %v1109_v46, %v1289_v21  ;;  %v479_v51 = vpop.f32.mrb[7].mxu0  ;;  %v543_v52 = vpop.f32.mrb[7].mxu1 }
  0xf6   : > { %v480_v55 = vadd.f32 %v1289_v21, %v479_v51  ;;  %v544_v56 = vadd.f32 %v1289_v21, %v543_v52 }
  0xf7   : > { %v981_v57 = vpack.c.bf16 %v488_v49, %v485_v47  ;;  %v1021_v58 = vpack.c.bf16 %v552_v50, %v549_v48 }
  0xf8   : > { %v976_v59 = vpack.c.bf16 %v480_v55, %v477_v53  ;;  %v1016_v60 = vpack.c.bf16 %v544_v56, %v541_v54 }
  0xf9   : > { %1045 = vst [vmem:[%s1302_s6 + $0x18] sm:$0xff] %v981_v57   ;;  %1053 = vst [vmem:[%s1302_s6 + $0x58] sm:$0xff] %v1021_v58  }
  0xfa   : > { %1044 = vst [vmem:[%s1302_s6 + $0x10] sm:$0xff] %v976_v59   ;;  %1052 = vst [vmem:[%s1302_s6 + $0x50] sm:$0xff] %v1016_v60   ;;  %v1096_v61 = vpop.f32.mrb[8].mxu0  ;;  %v1112_v62 = vpop.f32.mrb[8].mxu1 }
  0xfb   : > { %v492_v63 = vpop.f32.mrb[9].mxu0  ;;  %v556_v0 = vpop.f32.mrb[9].mxu1  ;;  %v501_v3 = vadd.f32 %v1096_v61, %v1289_v21  ;;  %v565_v4 = vadd.f32 %v1112_v62, %v1289_v21 }
  0xfc   : > { %v1097_v1 = vpop.f32.mrb[10].mxu0  ;;  %v1113_v2 = vpop.f32.mrb[10].mxu1  ;;  %v493_v9 = vadd.f32 %v1289_v21, %v492_v63  ;;  %v557_v10 = vadd.f32 %v1289_v21, %v556_v0 }
  0xfd   : > { %v504_v5 = vadd.f32 %v1097_v1, %v1289_v21  ;;  %v568_v6 = vadd.f32 %v1113_v2, %v1289_v21  ;;  %v495_v7 = vpop.f32.mrb[11].mxu0  ;;  %v559_v8 = vpop.f32.mrb[11].mxu1 }
  0xfe   : > { %v496_v11 = vadd.f32 %v1289_v21, %v495_v7  ;;  %v560_v12 = vadd.f32 %v1289_v21, %v559_v8 }
  0xff   : > { %v991_v13 = vpack.c.bf16 %v504_v5, %v501_v3  ;;  %v1031_v14 = vpack.c.bf16 %v568_v6, %v565_v4 }
 0x100   : > { %v986_v15 = vpack.c.bf16 %v496_v11, %v493_v9  ;;  %v1026_v16 = vpack.c.bf16 %v560_v12, %v557_v10 }
 0x101   : > { %1047 = vst [vmem:[%s1302_s6 + $0x28] sm:$0xff] %v991_v13   ;;  %1055 = vst [vmem:[%s1302_s6 + $0x68] sm:$0xff] %v1031_v14  }
 0x102   : > { %1046 = vst [vmem:[%s1302_s6 + $0x20] sm:$0xff] %v986_v15   ;;  %1054 = vst [vmem:[%s1302_s6 + $0x60] sm:$0xff] %v1026_v16   ;;  %v1100_v17 = vpop.f32.mrb[12].mxu0  ;;  %v1116_v18 = vpop.f32.mrb[12].mxu1 }
 0x103   : > { %v508_v19 = vpop.f32.mrb[13].mxu0  ;;  %v572_v20 = vpop.f32.mrb[13].mxu1  ;;  %v517_v24 = vadd.f32 %v1100_v17, %v1289_v21  ;;  %v581_v25 = vadd.f32 %v1116_v18, %v1289_v21 }
 0x104   : > { %v1101_v22 = vpop.f32.mrb[14].mxu0  ;;  %v1117_v23 = vpop.f32.mrb[14].mxu1  ;;  %v509_v30 = vadd.f32 %v1289_v21, %v508_v19  ;;  %v573_v31 = vadd.f32 %v1289_v21, %v572_v20 }
 0x105   : > { %v520_v26 = vadd.f32 %v1101_v22, %v1289_v21  ;;  %v584_v27 = vadd.f32 %v1117_v23, %v1289_v21  ;;  %v511_v28 = vpop.f32.mrb[15].mxu0  ;;  %v575_v29 = vpop.f32.mrb[15].mxu1 }
 0x106   : > { %v512_v32 = vadd.f32 %v1289_v21, %v511_v28  ;;  %v576_v33 = vadd.f32 %v1289_v21, %v575_v29 }
 0x107   : > { %v1001_v34 = vpack.c.bf16 %v520_v26, %v517_v24  ;;  %v1041_v35 = vpack.c.bf16 %v584_v27, %v581_v25 }
 0x108   : > { %v996_v36 = vpack.c.bf16 %v512_v32, %v509_v30  ;;  %v1036_v37 = vpack.c.bf16 %v576_v33, %v573_v31 }
 0x109   : > { %1049 = vst [vmem:[%s1302_s6 + $0x38] sm:$0xff] %v1001_v34   ;;  %1057 = vst [vmem:[%s1302_s6 + $0x78] sm:$0xff] %v1041_v35  }
 0x10a   : > { %1048 = vst [vmem:[%s1302_s6 + $0x30] sm:$0xff] %v996_v36   ;;  %1056 = vst [vmem:[%s1302_s6 + $0x70] sm:$0xff] %v1036_v37  }
 0x10b PF: > { %s13_s14 = sadd.s32 1, %s1192_s14   ;;  %s1359_s12 = smov %s1188_s13 }
 0x10c   : > { %p10_p5 = scmp.ge.s32.totalorder %s13_s14, 4   ;;  %s1360_s13 = smov %s1362_s15 }
 0x10e   :  { %12 = sbr.rel (!%p10_p5) target bundleno = 2 (0x2), region = 68 }

// kernel: deeplab_forward.62
= control target key start
LH: loop header
LB: loop body
LE: loop exit
PB: predicated region body
PF: predicated region fallthrough
CT: control target
= control target key end

     0   :  { %s778_s12 = smov 0   ;;  %s780_s13 = smov 0   ;;  %s888_s0 = inlined_call_operand.vmem [shape: bf16[64,16], index: 0, kind: input, shape index: {}]   ;;  %s889_s1 = inlined_call_operand.vmem [shape: bf16[16,768], index: 1, kind: input, shape index: {}]   ;;  %s890_s2 = inlined_call_operand.vmem [shape: f32[1,768], index: 2, kind: input, shape index: {}]   ;;  %s891_s3 = inlined_call_operand.vmem [shape: bf16[64,768], index: 3, kind: output, shape index: {}]  }
   0x1   :  { %s782_s14 = smov 0   ;;  %s784_s15 = smov 0  }
   0x2   :  { %s786_s16 = smov 0  }
   0x3 LB: > { %s22_s17 = sadd.s32 1, %s751_s15  ;;  %s622_s18 = sadd.s32 4294967295, %s755_s16   ;;  %s755_s16 = sphi %s786_s16, %s13_s16   ;;  %s751_s15 = sphi %s784_s15, %s896_s15   ;;  %s747_s14 = sphi %s782_s14, %s895_s14   ;;  %s743_s13 = sphi %s780_s13, %s894_s13   ;;  %s739_s12 = sphi %s778_s12, %s893_s12  }
   0x4   : > { %p23_p0 = scmp.ge.s32.totalorder %s22_s17, 3  ;;  %p65_p1 = scmp.ne.s32.totalorder %s743_s13, %s739_s12 }
   0x5   : > { %p66_p2 = scmp.eq.s32.totalorder %s755_s16, 0  ;;  %p123_p4 = scmp.eq.s32.totalorder %s622_s18, 2 }
   0x6   : > { %s898_s17 = smov (%p23_p0, %s22_s17), 0  ;;  %s58_s20 = sadd.s32 1, %s743_s13 }
   0x7   : > { %p67_p3 = por %p66_p2, %p65_p1  ;;  %s55_s19 = ssub.s32 %s751_s15, %s898_s17 }
   0x8   : > { %p56_p5 = scmp.eq.s32.totalorder %s55_s19, 0  ;;  %p813_p6 = por %p123_p4, %p65_p1 }
   0x9   : > { %p626_p7 = scmp.ge.s32.totalorder %s755_s16, 3 }
   0xa   : > { %s818_s22 = scalar_select %p56_p5, %s743_s13, %s58_s20  }
   0xb   : > { %154 = sbr.rel (%p626_p7) target bundleno = 25 (0x19), region = 20 }
  0x12   : > { %157 = sbr.rel (!%p67_p3) target bundleno = 25 (0x19), region = 24  ;;  %s159_s23 = sand.u32 (%p67_p3), 1, %s743_s13  }
  0x13   : > { %s657_s24 = sshll.u32 (%p67_p3), %s751_s15, 3  ;;  %s627_s25 = sshll.u32 (%p67_p3), %s159_s23, 4 }
  0x14   : > { %s164_s28 = scalar_lea.vmem (%p67_p3), %s889_s1, %s657_s24  ;;  %s161_s29 = scalar_lea.vmem (%p67_p3), [#allocation2], %s627_s25 }
  0x15   : > { %v194_v0 = vld [vmem:[%s164_s28] sm:$0xff] (%p67_p3)  ;;  %v196_v1 = vld [vmem:[%s164_s28 + $0x18] sm:$0xff] (%p67_p3) }
  0x16   : > { %195 = vst [vmem:[%s161_s29] sm:$0xff] (%p67_p3), %v194_v0  ;;  %197 = vst [vmem:[%s161_s29 + $0x8] sm:$0xff] (%p67_p3), %v196_v1 }
  0x19 PF: > { %p630_p8 = scmp.ge.s32.totalorder %s755_s16, 1  ;;  %p210_p9 = scmp.lt.s32.totalorder %s755_s16, 4 }
  0x1b   : > { %p211_p10 = pnand %p630_p8, %p210_p9 }
  0x1c   : > { %s217_s30 = sand.u32 (!%p211_p10), 1, %s739_s12   ;;  %v757_v2 = vmov (!%p211_p10), 0   ;;  %v713_v4 = vld [vmem:[%s888_s0] sm:$0xff] (!%p211_p10)   ;;  %v714_v6 = vld [vmem:[%s888_s0 + $0x10] sm:$0xff] (!%p211_p10)   ;;  %vm315_vm0 = vcmask (!%p211_p10), 130048   ;;  %v715_v7 = vld [vmem:[%s888_s0 + $0x8] sm:$0xff] (!%p211_p10)   ;;  %v275_v9 = vlaneseq (!%p211_p10) }
  0x1d   : > { %214 = sbr.rel (%p211_p10) target bundleno = 273 (0x111), region = 66  ;;  %s631_s4 = sshll.u32 (!%p211_p10), %s217_s30, 4  ;;  %360 = vmatprep.mubr.bf16.mxu0 (!%p211_p10), %v757_v2  ;;  %380 = vmatprep.mubr.bf16.mxu1 (!%p211_p10), %v757_v2  ;;  %v716_v8 = vld [vmem:[%s888_s0 + $0x18] sm:$0xff] (!%p211_p10)  }
  0x1e   : > { %s219_s5 = scalar_lea.vmem (!%p211_p10), [#allocation2], %s631_s4  ;;  %s633_s20 = sshll.u32 (!%p211_p10), %s747_s14, 1  ;;  %v276_v10 = vshrl.u32 (!%p211_p10), %v275_v9, 7 }
  0x1f   : > { %v710_v3 = vld [vmem:[%s219_s5 + $0x4] ss:$8 sps:$4 sm:$0xff] (!%p211_p10)   ;;  %v712_v5 = vld [vmem:[%s219_s5] ss:$8 sps:$4 sm:$0xff] (!%p211_p10)   ;;  %p256_p11 = scmp.lt.s32.totalorder (!%p211_p10), %s633_s20, 5  ;;  %s632_s26 = sshll.u32 (!%p211_p10), %s217_s30, 6 }
  0x20   : > { %328 = vmatprep.subr.bf16.mxu0 (!%p211_p10), %v710_v3  ;;  %667 = vmatprep.subr.bf16.mxu1 (!%p211_p10), %v710_v3  ;;  %v277_v11 = vsub.s32 (!%p211_p10), 0, %v276_v10  ;;  %v281_v13 = vsub.s32 (!%p211_p10), 1, %v276_v10  ;;  %s849_s12 = scalar_lea.vmem (!%p211_p10), [#allocation3], %s632_s26 }
  0x21   : > { %329 = vmatpush1.bf16.msra.mxu0 (!%p211_p10), %v712_v5  ;;  %668 = vmatpush1.bf16.msra.mxu1 (!%p211_p10), %v712_v5 }
  0x24   : > { %640 = vmatmul.mubr.msk.bf16.vlgmr.msra.gmra.mrb[0].mxu0 %vm315_vm0, %v713_v4  ;;  %642 = vmatmul.mubr.msk.bf16.vlgmr.msra.gmra.mrb[0].mxu1 %vm315_vm0, %v714_v6  ;;  %s900_s20 = smov (!%p256_p11, %s633_s20), 5  ;;  %s666_s27 = sshll.u32 (%p813_p6), %s747_s14, 3 }
  0x25   : > { %370 = vmatprep.mubr.bf16.mxu0 %v757_v2  ;;  %390 = vmatprep.mubr.bf16.mxu1 %v757_v2  ;;  %s258_s25 = scalar_lea.vmem %s890_s2, %s900_s20  ;;  %s469_s30 = scalar_lea.vmem (%p813_p6), %s891_s3, %s666_s27 }
  0x26   : > { %v273_v12 = vld [vmem:[%s258_s25] sm:$0x3] }
  0x27   : > { %v278_v14 = vrot.slane %v273_v12, %v277_v11  ;;  %v282_v15 = vrot.slane %v273_v12, %v281_v13 }
  0x2c   : > { %641 = vmatmul.mubr.msk.bf16.gmra.mrb[4].mxu0 %vm315_vm0, %v715_v7  ;;  %643 = vmatmul.mubr.msk.bf16.gmra.mrb[4].mxu1 %vm315_vm0, %v716_v8 }
  0xf7   : > { %v362_v16 = vpop.f32.mrb[0].mxu0  ;;  %v382_v17 = vpop.f32.mrb[0].mxu1 }
  0xf8   : > { %v363_v18 = vadd.f32 %v362_v16, %v278_v14  ;;  %v383_v19 = vadd.f32 %v382_v17, %v278_v14  ;;  %v364_v20 = vpop.f32.mrb[1].mxu0  ;;  %v384_v21 = vpop.f32.mrb[1].mxu1 }
  0xf9   : > { %v365_v22 = vadd.f32 %v364_v20, %v282_v15  ;;  %v385_v23 = vadd.f32 %v384_v21, %v282_v15  ;;  %v366_v24 = vpop.f32.mrb[2].mxu0  ;;  %v386_v25 = vpop.f32.mrb[2].mxu1 }
  0xfa   : > { %v367_v26 = vadd.f32 %v366_v24, %v278_v14  ;;  %v387_v27 = vadd.f32 %v386_v25, %v278_v14  ;;  %v368_v28 = vpop.f32.mrb[3].mxu0  ;;  %v388_v29 = vpop.f32.mrb[3].mxu1 }
  0xfb   : > { %v658_v30 = vpack.c.bf16 %v365_v22, %v363_v18  ;;  %v662_v31 = vpack.c.bf16 %v385_v23, %v383_v19  ;;  %v369_v32 = vadd.f32 %v368_v28, %v282_v15  ;;  %v389_v33 = vadd.f32 %v388_v29, %v282_v15 }
  0xfd   : > { %449 = vst [vmem:[%s849_s12] sm:$0xff] %v658_v30  ;;  %453 = vst [vmem:[%s849_s12 + $0x20] sm:$0xff] %v662_v31  ;;  %v659_v34 = vpack.c.bf16 %v369_v32, %v367_v26  ;;  %v663_v35 = vpack.c.bf16 %v389_v33, %v387_v27 }
  0xff   : > { %450 = vst [vmem:[%s849_s12 + $0x8] sm:$0xff] %v659_v34  ;;  %454 = vst [vmem:[%s849_s12 + $0x28] sm:$0xff] %v663_v35  ;;  %v372_v36 = vpop.f32.mrb[4].mxu0  ;;  %v392_v37 = vpop.f32.mrb[4].mxu1 }
 0x100   : > { %v373_v38 = vadd.f32 %v372_v36, %v278_v14  ;;  %v393_v39 = vadd.f32 %v392_v37, %v278_v14  ;;  %v374_v40 = vpop.f32.mrb[5].mxu0  ;;  %v394_v41 = vpop.f32.mrb[5].mxu1 }
 0x101   : > { %v375_v42 = vadd.f32 %v374_v40, %v282_v15  ;;  %v395_v43 = vadd.f32 %v394_v41, %v282_v15  ;;  %v376_v44 = vpop.f32.mrb[6].mxu0  ;;  %v396_v45 = vpop.f32.mrb[6].mxu1  ;;  %463 = sbr.rel (!%p813_p6) target bundleno = 273 (0x111), region = 74 }
 0x102   : > { %v377_v46 = vadd.f32 %v376_v44, %v278_v14  ;;  %v397_v47 = vadd.f32 %v396_v45, %v278_v14  ;;  %v378_v48 = vpop.f32.mrb[7].mxu0  ;;  %v398_v49 = vpop.f32.mrb[7].mxu1 }
 0x103   : > { %v660_v50 = vpack.c.bf16 %v375_v42, %v373_v38  ;;  %v664_v51 = vpack.c.bf16 %v395_v43, %v393_v39  ;;  %v379_v52 = vadd.f32 %v378_v48, %v282_v15  ;;  %v399_v53 = vadd.f32 %v398_v49, %v282_v15 }
 0x104   : > { %v511_v56 = vld [vmem:[%s849_s12] sm:$0xff] (%p813_p6) }
 0x105   : > { %451 = vst [vmem:[%s849_s12 + $0x10] sm:$0xff] %v660_v50  ;;  %455 = vst [vmem:[%s849_s12 + $0x30] sm:$0xff] %v664_v51  ;;  %v661_v54 = vpack.c.bf16 %v379_v52, %v377_v46  ;;  %v665_v55 = vpack.c.bf16 %v399_v53, %v397_v47  ;;  %v519_v60 = vld [vmem:[%s849_s12 + $0x20] sm:$0xff] (%p813_p6) }
 0x106   : > { %v513_v57 = vld [vmem:[%s849_s12 + $0x8] sm:$0xff] (%p813_p6)  ;;  %512 = vst [vmem:[%s469_s30] sm:$0xff] (%p813_p6), %v511_v56  ;;  %520 = vst [vmem:[%s469_s30 + $0x60] sm:$0xff] (%p813_p6), %v519_v60 }
 0x107   : > { %452 = vst [vmem:[%s849_s12 + $0x18] sm:$0xff] %v661_v54  ;;  %456 = vst [vmem:[%s849_s12 + $0x38] sm:$0xff] %v665_v55  ;;  %v521_v61 = vld [vmem:[%s849_s12 + $0x28] sm:$0xff] (%p813_p6) }
 0x108   : > { %514 = vst [vmem:[%s469_s30 + $0x18] sm:$0xff] %v513_v57  ;;  %522 = vst [vmem:[%s469_s30 + $0x78] sm:$0xff] %v521_v61 }
 0x10c   : > { %v515_v58 = vld [vmem:[%s849_s12 + $0x10] sm:$0xff] }
 0x10d   : > { %516 = vst [vmem:[%s469_s30 + $0x30] sm:$0xff] %v515_v58  ;;  %v523_v62 = vld [vmem:[%s849_s12 + $0x30] sm:$0xff] }
 0x10e   : > { %v517_v59 = vld [vmem:[%s849_s12 + $0x18] sm:$0xff]  ;;  %524 = vst [vmem:[%s469_s30 + $0x90] sm:$0xff] %v523_v62 }
 0x10f   : > { %518 = vst [vmem:[%s469_s30 + $0x48] sm:$0xff] %v517_v59  ;;  %v525_v63 = vld [vmem:[%s849_s12 + $0x38] sm:$0xff] }
 0x110   : > { %526 = vst [vmem:[%s469_s30 + $0xa8] sm:$0xff] %v525_v63 }
 0x111 PF: > { %s13_s16 = sadd.s32 1, %s755_s16   ;;  %s893_s12 = smov %s743_s13 }
 0x112   : > { %p10_p12 = scmp.ge.s32.totalorder %s13_s16, 5   ;;  %s894_s13 = smov %s818_s22 }
 0x113   : > { %s895_s14 = smov %s751_s15  ;;  %s896_s15 = smov %s898_s17 }
 0x114   :  { %12 = sbr.rel (!%p10_p12) target bundleno = 3 (0x3), region = 149 }

// kernel: deeplab_forward.60
= control target key start
LH: loop header
LB: loop body
LE: loop exit
PB: predicated region body
PF: predicated region fallthrough
CT: control target
= control target key end

     0   :  { %s2668_s12 = smov 0   ;;  %s2670_s13 = smov 0   ;;  %s3077_s0 = inlined_call_operand.vmem [shape: bf16[512,576], index: 0, kind: input, shape index: {}]   ;;  %s3078_s1 = inlined_call_operand.vmem [shape: bf16[576,128], index: 1, kind: input, shape index: {}]   ;;  %s3079_s2 = inlined_call_operand.vmem [shape: f32[1,128], index: 2, kind: input, shape index: {}]   ;;  %s3080_s3 = inlined_call_operand.vmem [shape: bf16[512,128], index: 3, kind: output, shape index: {}]  }
   0x1   :  { %s2672_s14 = smov 0  }
   0x2 LB: > { %s25_s15 = sadd.s32 1, %s2642_s13  ;;  %p1852_p0 = scmp.ge.s32.totalorder %s2646_s14, 1  ;;  %s2646_s14 = sphi %s2672_s14, %s13_s14   ;;  %s2642_s13 = sphi %s2670_s13, %s3082_s13   ;;  %s2638_s12 = sphi %s2668_s12, %s3081_s12  }
   0x3   : > { %p27_p1 = scmp.ge.s32.totalorder %s25_s15, 2  ;;  %p170_p2 = scmp.lt.s32.totalorder %s2646_s14, 3 }
   0x5   : > { %s3084_s15 = smov (%p27_p1, %s25_s15), 0  ;;  %p171_p3 = pnand %p1852_p0, %p170_p2 }
   0x6   : > { %v2476_v0 = vld [vmem:[%s3078_s1 + $0x40] sm:$0xff] (!%p171_p3)   ;;  %s1853_s18 = sshll.u32 (!%p171_p3), %s2638_s12, 5  ;;  %v2478_v2 = vld [vmem:[%s3078_s1 + $0x48] sm:$0xff] (!%p171_p3)   ;;  %v2480_v4 = vld [vmem:[%s3078_s1 + $0x50] sm:$0xff] (!%p171_p3)   ;;  %vm1020_vm0 = vcmask (!%p171_p3), 523264  }
   0x7   : > { %174 = sbr.rel (%p171_p3) target bundleno = 417 (0x1a1), region = 32  ;;  %v2477_v1 = vld [vmem:[%s3078_s1] sm:$0xff] (!%p171_p3)   ;;  %2151 = vmatprep.subr.bf16.mxu0 (!%p171_p3), %v2476_v0  ;;  %2435 = vmatprep.subr.bf16.mxu1 (!%p171_p3), %v2476_v0  ;;  %p206_p4 = scmp.lt.s32.totalorder (!%p171_p3), %s1853_s18, 63  ;;  %v2479_v3 = vld [vmem:[%s3078_s1 + $0x8] sm:$0xff] (!%p171_p3)   ;;  %v2481_v5 = vld [vmem:[%s3078_s1 + $0x10] sm:$0xff] (!%p171_p3)  }
   0x8   : > { %2152 = vmatpush3.bf16.msra.mxu0 (!%p171_p3), %v2477_v1  ;;  %2443 = vmatpush3.bf16.msra.mxu1 (!%p171_p3), %v2477_v1  ;;  %v2482_v6 = vld [vmem:[%s3078_s1 + $0x58] sm:$0xff] (!%p171_p3)   ;;  %v2484_v8 = vld [vmem:[%s3078_s1 + $0x60] sm:$0xff] (!%p171_p3)   ;;  %v2486_v10 = vld [vmem:[%s3078_s1 + $0x68] sm:$0xff] (!%p171_p3)  }
   0x9   : > { %2153 = vmatprep.subr.bf16.mxu0 (!%p171_p3), %v2478_v2  ;;  %2436 = vmatprep.subr.bf16.mxu1 (!%p171_p3), %v2478_v2  ;;  %v2483_v7 = vld [vmem:[%s3078_s1 + $0x18] sm:$0xff] (!%p171_p3)   ;;  %v2485_v9 = vld [vmem:[%s3078_s1 + $0x20] sm:$0xff] (!%p171_p3)   ;;  %v2487_v13 = vld [vmem:[%s3078_s1 + $0x28] sm:$0xff] (!%p171_p3)  }
   0xa   : > { %v2488_v14 = vld [vmem:[%s3078_s1 + $0x70] sm:$0xff] (!%p171_p3)   ;;  %v2490_v16 = vld [vmem:[%s3078_s1 + $0x78] sm:$0xff] (!%p171_p3)   ;;  %v2498_v18 = vld [vmem:[%s3078_s1 + $0xc0] sm:$0xff] (!%p171_p3)  }
   0xb   : > { %v2489_v15 = vld [vmem:[%s3078_s1 + $0x30] sm:$0xff] (!%p171_p3)   ;;  %v2491_v17 = vld [vmem:[%s3078_s1 + $0x38] sm:$0xff] (!%p171_p3)   ;;  %v2501_v19 = vld [vmem:[%s3078_s1 + $0x100] sm:$0xff] (!%p171_p3)  }
   0xc   : > { %2154 = vmatpush3.bf16.msra.mxu0 (!%p171_p3), %v2479_v3  ;;  %2444 = vmatpush3.bf16.msra.mxu1 (!%p171_p3), %v2479_v3  ;;  %v2499_v22 = vld [vmem:[%s3078_s1 + $0x80] sm:$0xff] (!%p171_p3)   ;;  %v2500_v23 = vld [vmem:[%s3078_s1 + $0xc8] sm:$0xff] (!%p171_p3)   ;;  %v2509_v28 = vld [vmem:[%s3078_s1 + $0xd0] sm:$0xff] (!%p171_p3)  }
   0xd   : > { %2155 = vmatprep.subr.bf16.mxu0 (!%p171_p3), %v2480_v4  ;;  %2437 = vmatprep.subr.bf16.mxu1 (!%p171_p3), %v2480_v4  ;;  %v2502_v26 = vld [vmem:[%s3078_s1 + $0x88] sm:$0xff] (!%p171_p3)   ;;  %v2510_v30 = vld [vmem:[%s3078_s1 + $0x90] sm:$0xff] (!%p171_p3)   ;;  %v2511_v31 = vld [vmem:[%s3078_s1 + $0xd8] sm:$0xff] (!%p171_p3)  }
   0xe   : > { %s3086_s18 = smov (!%p206_p4, %s1853_s18), 63  ;;  %v2512_v34 = vld [vmem:[%s3078_s1 + $0x98] sm:$0xff]   ;;  %v2532_v35 = vld [vmem:[%s3078_s1 + $0x108] sm:$0xff]   ;;  %v2519_v37 = vld [vmem:[%s3078_s1 + $0xe0] sm:$0xff]  }
   0xf   : > { %s2451_s4 = smul.u32 20, %s3086_s18  ;;  %v2520_v39 = vld [vmem:[%s3078_s1 + $0xa0] sm:$0xff]   ;;  %v2521_v40 = vld [vmem:[%s3078_s1 + $0xe8] sm:$0xff]   ;;  %v2529_v46 = vld [vmem:[%s3078_s1 + $0xf0] sm:$0xff]   ;;  %s1856_s27 = sshll.u32 %s3086_s18, 2 }
  0x10   : > { %2156 = vmatpush3.bf16.msra.mxu0 %v2481_v5  ;;  %2445 = vmatpush3.bf16.msra.mxu1 %v2481_v5  ;;  %v2522_v43 = vld [vmem:[%s3078_s1 + $0xa8] sm:$0xff]   ;;  %v2552_v47 = vld [vmem:[%s3078_s1 + $0x110] sm:$0xff]   ;;  %v2531_v49 = vld [vmem:[%s3078_s1 + $0xf8] sm:$0xff]   ;;  %s2994_s30 = scalar_lea.vmem %s3080_s3, %s1856_s27 }
  0x11   : > { %2157 = vmatprep.subr.bf16.mxu0 %v2482_v6  ;;  %2438 = vmatprep.subr.bf16.mxu1 %v2482_v6  ;;  %s2719_s11 = scalar_lea.vmem %s3077_s0, %s2451_s4  ;;  %v2530_v48 = vld [vmem:[%s3078_s1 + $0xb0] sm:$0xff]   ;;  %v2533_v52 = vld [vmem:[%s3078_s1 + $0xb8] sm:$0xff]  }
  0x12   : > { %v2494_v11 = vld [vmem:[%s2719_s11 + $0x4] ss:$20 sps:$4 sm:$0xff]   ;;  %v2492_v20 = vld [vmem:[%s2719_s11] ss:$20 sps:$4 sm:$0xff]   ;;  %v2507_v27 = vld [vmem:[%s2719_s11 + $0x28] ss:$20 sps:$4 sm:$0xff]  }
  0x13   : > { %v2497_v12 = vld [vmem:[%s2719_s11 + $0x1e4] ss:$20 sps:$4 sm:$0xff]   ;;  %1101 = vmatprep.mubr.bf16.mxu0 %v2494_v11  ;;  %v2495_v21 = vld [vmem:[%s2719_s11 + $0x1e0] ss:$20 sps:$4 sm:$0xff]   ;;  %v2508_v29 = vld [vmem:[%s2719_s11 + $0x208] ss:$20 sps:$4 sm:$0xff]  }
  0x14   : > { %2158 = vmatpush3.bf16.msra.mxu0 %v2483_v7  ;;  %2446 = vmatpush3.bf16.msra.mxu1 %v2483_v7  ;;  %v2503_v24 = vld [vmem:[%s2719_s11 + $0x2c] ss:$20 sps:$4 sm:$0xff]   ;;  %v2513_v32 = vld [vmem:[%s2719_s11 + $0x54] ss:$20 sps:$4 sm:$0xff]   ;;  %v2517_v36 = vld [vmem:[%s2719_s11 + $0x50] ss:$20 sps:$4 sm:$0xff]  }
  0x15   : > { %2159 = vmatprep.subr.bf16.mxu0 %v2484_v8  ;;  %2439 = vmatprep.subr.bf16.mxu1 %v2484_v8  ;;  %v2505_v25 = vld [vmem:[%s2719_s11 + $0x20c] ss:$20 sps:$4 sm:$0xff]   ;;  %v2515_v33 = vld [vmem:[%s2719_s11 + $0x234] ss:$20 sps:$4 sm:$0xff]   ;;  %v2518_v38 = vld [vmem:[%s2719_s11 + $0x230] ss:$20 sps:$4 sm:$0xff]  }
  0x16   : > { %1197 = vmatprep.mubr.bf16.mxu1 %v2497_v12  ;;  %v2523_v41 = vld [vmem:[%s2719_s11 + $0x7c] ss:$20 sps:$4 sm:$0xff]   ;;  %v2527_v44 = vld [vmem:[%s2719_s11 + $0x78] ss:$20 sps:$4 sm:$0xff]   ;;  %v2539_v54 = vld [vmem:[%s2719_s11 + $0xa0] ss:$20 sps:$4 sm:$0xff]  }
  0x17   : > { %v2525_v42 = vld [vmem:[%s2719_s11 + $0x25c] ss:$20 sps:$4 sm:$0xff]   ;;  %v2528_v45 = vld [vmem:[%s2719_s11 + $0x258] ss:$20 sps:$4 sm:$0xff]   ;;  %v2542_v57 = vld [vmem:[%s2719_s11 + $0x34] ss:$20 sps:$4 sm:$0xff]  }
  0x18   : > { %2160 = vmatpush3.bf16.msra.mxu0 %v2485_v9  ;;  %2447 = vmatpush3.bf16.msra.mxu1 %v2485_v9  ;;  %v2534_v50 = vld [vmem:[%s2719_s11 + $0xa4] ss:$20 sps:$4 sm:$0xff]   ;;  %v2538_v51 = vld [vmem:[%s2719_s11 + $0xc] ss:$20 sps:$4 sm:$0xff]   ;;  %v2536_v53 = vld [vmem:[%s2719_s11 + $0x8] ss:$20 sps:$4 sm:$0xff]  }
  0x19   : > { %2161 = vmatprep.subr.bf16.mxu0 %v2486_v10  ;;  %2440 = vmatprep.subr.bf16.mxu1 %v2486_v10  ;;  %v2540_v55 = vld [vmem:[%s2719_s11 + $0xcc] ss:$20 sps:$4 sm:$0xff]   ;;  %v2571_v56 = vld [vmem:[%s3078_s1 + $0x118] sm:$0xff]   ;;  %v2545_v59 = vld [vmem:[%s2719_s11 + $0x30] ss:$20 sps:$4 sm:$0xff]  }
  0x1a   : > { %v2544_v58 = vld [vmem:[%s2719_s11 + $0xc8] ss:$20 sps:$4 sm:$0xff]   ;;  %v2550_v62 = vld [vmem:[%s2719_s11 + $0xf0] ss:$20 sps:$4 sm:$0xff]   ;;  %v2551_v63 = vld [vmem:[%s2719_s11 + $0x58] ss:$20 sps:$4 sm:$0xff]  }
  0x1b   : > { %v2546_v60 = vld [vmem:[%s2719_s11 + $0xf4] ss:$20 sps:$4 sm:$0xff]   ;;  %v2548_v61 = vld [vmem:[%s2719_s11 + $0x5c] ss:$20 sps:$4 sm:$0xff]   ;;  %v2555_v1 = vld [vmem:[%s2719_s11 + $0x84] ss:$20 sps:$4 sm:$0xff]  }
  0x1c   : > { %2162 = vmatpush3.bf16.msra.mxu0 %v2487_v13  ;;  %2448 = vmatpush3.bf16.msra.mxu1 %v2487_v13  ;;  %v2553_v0 = vld [vmem:[%s2719_s11 + $0x11c] ss:$20 sps:$4 sm:$0xff]   ;;  %v2557_v2 = vld [vmem:[%s2719_s11 + $0x118] ss:$20 sps:$4 sm:$0xff]   ;;  %v2558_v3 = vld [vmem:[%s2719_s11 + $0x80] ss:$20 sps:$4 sm:$0xff]  }
  0x1d   : > { %2163 = vmatprep.subr.bf16.mxu0 %v2488_v14  ;;  %2441 = vmatprep.subr.bf16.mxu1 %v2488_v14  ;;  %v2559_v4 = vld [vmem:[%s2719_s11 + $0x144] ss:$20 sps:$4 sm:$0xff]   ;;  %v2561_v5 = vld [vmem:[%s2719_s11 + $0xac] ss:$20 sps:$4 sm:$0xff]   ;;  %v2564_v7 = vld [vmem:[%s2719_s11 + $0xa8] ss:$20 sps:$4 sm:$0xff]  }
  0x1e   : > { %v2563_v6 = vld [vmem:[%s2719_s11 + $0x140] ss:$20 sps:$4 sm:$0xff]   ;;  %v2569_v10 = vld [vmem:[%s2719_s11 + $0x168] ss:$20 sps:$4 sm:$0xff]   ;;  %v2570_v11 = vld [vmem:[%s2719_s11 + $0xd0] ss:$20 sps:$4 sm:$0xff]  }
  0x1f   : > { %v2565_v8 = vld [vmem:[%s2719_s11 + $0x16c] ss:$20 sps:$4 sm:$0xff]   ;;  %v2567_v9 = vld [vmem:[%s2719_s11 + $0xd4] ss:$20 sps:$4 sm:$0xff]   ;;  %v2574_v13 = vld [vmem:[%s2719_s11 + $0xfc] ss:$20 sps:$4 sm:$0xff]  }
  0x20   : > { %2164 = vmatpush3.bf16.msra.mxu0 %v2489_v15  ;;  %2449 = vmatpush3.bf16.msra.mxu1 %v2489_v15  ;;  %v2572_v12 = vld [vmem:[%s2719_s11 + $0x194] ss:$20 sps:$4 sm:$0xff]   ;;  %v2576_v14 = vld [vmem:[%s2719_s11 + $0x190] ss:$20 sps:$4 sm:$0xff]   ;;  %v2577_v15 = vld [vmem:[%s2719_s11 + $0xf8] ss:$20 sps:$4 sm:$0xff]  }
  0x21   : > { %2165 = vmatprep.subr.bf16.mxu0 %v2490_v16  ;;  %2442 = vmatprep.subr.bf16.mxu1 %v2490_v16  ;;  %v2578_v16 = vld [vmem:[%s2719_s11 + $0x1bc] ss:$20 sps:$4 sm:$0xff]  }
  0x24   : > { %2166 = vmatpush3.bf16.msra.mxu0 %v2491_v17  ;;  %2450 = vmatpush3.bf16.msra.mxu1 %v2491_v17  ;;  %v2580_v17 = vld [vmem:[%s2719_s11 + $0x124] ss:$20 sps:$4 sm:$0xff]  }
  0x25   : > { %2263 = vmatprep.subr.bf16.mxu1 %v2498_v18  ;;  %2395 = vmatprep.subr.bf16.mxu0 %v2501_v19  ;;  %v2582_v18 = vld [vmem:[%s2719_s11 + $0x1b8] ss:$20 sps:$4 sm:$0xff]  }
  0x27   : > { %1102 = vmatmul.mubr.bf16.vlgmr.msra.gmra.mrb[0].mxu0 %v2492_v20  ;;  %1198 = vmatmul.mubr.bf16.vlgmr.msra.gmra.mrb[0].mxu1 %v2495_v21  ;;  %v2584_v20 = vld [vmem:[%s2719_s11 + $0x14c] ss:$20 sps:$4 sm:$0xff]   ;;  %v2586_v21 = vld [vmem:[%s2719_s11 + $0x10] ss:$20 sps:$4 sm:$0xff]  }
  0x28   : > { %2264 = vmatpush3.bf16.msra.mxu1 %v2499_v22  ;;  %2396 = vmatpush3.bf16.msra.mxu0 %v2501_v19  ;;  %v2583_v19 = vld [vmem:[%s2719_s11 + $0x120] ss:$20 sps:$4 sm:$0xff]   ;;  %v2587_v22 = vld [vmem:[%s2719_s11 + $0x148] ss:$20 sps:$4 sm:$0xff]  }
  0x29   : > { %2265 = vmatprep.subr.bf16.mxu1 %v2500_v23  ;;  %1109 = vmatprep.mubr.bf16.mxu0 %v2503_v24  ;;  %v2588_v23 = vld [vmem:[%s2719_s11 + $0x38] ss:$20 sps:$4 sm:$0xff]   ;;  %v2589_v24 = vld [vmem:[%s2719_s11 + $0x174] ss:$20 sps:$4 sm:$0xff]  }
  0x2a   : > { %1205 = vmatprep.mubr.bf16.mxu1 %v2505_v25  ;;  %2397 = vmatprep.subr.bf16.mxu0 %v2532_v35  ;;  %v2591_v25 = vld [vmem:[%s2719_s11 + $0x60] ss:$20 sps:$4 sm:$0xff]  }
  0x2c   : > { %2266 = vmatpush3.bf16.msra.mxu1 %v2502_v26  ;;  %2398 = vmatpush3.bf16.msra.mxu0 %v2532_v35  ;;  %v2592_v26 = vld [vmem:[%s2719_s11 + $0x170] ss:$20 sps:$4 sm:$0xff]   ;;  %v2603_v35 = vld [vmem:[%s2719_s11 + $0x128] ss:$20 sps:$4 sm:$0xff]  }
  0x2d   : > { %2267 = vmatprep.subr.bf16.mxu1 %v2509_v28  ;;  %2399 = vmatprep.subr.bf16.mxu0 %v2552_v47  ;;  %v2594_v28 = vld [vmem:[%s2719_s11 + $0x19c] ss:$20 sps:$4 sm:$0xff]  }
  0x2f   : > { %1110 = vmatmul.mubr.bf16.gmra.mrb[4].mxu0 %v2507_v27  ;;  %1206 = vmatmul.mubr.bf16.gmra.mrb[4].mxu1 %v2508_v29  ;;  %v2593_v27 = vld [vmem:[%s2719_s11 + $0x88] ss:$20 sps:$4 sm:$0xff]   ;;  %v2596_v29 = vld [vmem:[%s2719_s11 + $0xb0] ss:$20 sps:$4 sm:$0xff]  }
  0x30   : > { %2268 = vmatpush3.bf16.msra.mxu1 %v2510_v30  ;;  %1117 = vmatprep.mubr.bf16.mxu0 %v2513_v32  ;;  %v2597_v30 = vld [vmem:[%s2719_s11 + $0x198] ss:$20 sps:$4 sm:$0xff]  }
  0x31   : > { %2269 = vmatprep.subr.bf16.mxu1 %v2511_v31  ;;  %1213 = vmatprep.mubr.bf16.mxu1 %v2515_v33  ;;  %v2598_v31 = vld [vmem:[%s2719_s11 + $0xd8] ss:$20 sps:$4 sm:$0xff]   ;;  %v2601_v33 = vld [vmem:[%s2719_s11 + $0x100] ss:$20 sps:$4 sm:$0xff]  }
  0x32   : > { %2400 = vmatpush3.bf16.msra.mxu0 %v2552_v47  ;;  %v2599_v32 = vld [vmem:[%s2719_s11 + $0x1c4] ss:$20 sps:$4 sm:$0xff]  }
  0x33   : > { %2401 = vmatprep.subr.bf16.mxu0 %v2571_v56  ;;  %v2618_v47 = vld [vmem:[%s2719_s11 + $0x218] ss:$20 sps:$4 sm:$0xff]  }
  0x34   : > { %2270 = vmatpush3.bf16.msra.mxu1 %v2512_v34  ;;  %v2602_v34 = vld [vmem:[%s2719_s11 + $0x1c0] ss:$20 sps:$4 sm:$0xff]  }
  0x35   : > { %2271 = vmatprep.subr.bf16.mxu1 %v2519_v37  ;;  %v2606_v37 = vld [vmem:[%s2719_s11 + $0x150] ss:$20 sps:$4 sm:$0xff]  }
  0x36   : > { %2402 = vmatpush3.bf16.msra.mxu0 %v2571_v56 }
  0x37   : > { %1118 = vmatmul.mubr.bf16.gmra.mrb[8].mxu0 %v2517_v36  ;;  %1214 = vmatmul.mubr.bf16.gmra.mrb[8].mxu1 %v2518_v38  ;;  %v2604_v36 = vld [vmem:[%s2719_s11 + $0x1ec] ss:$20 sps:$4 sm:$0xff]   ;;  %v2607_v38 = vld [vmem:[%s2719_s11 + $0x1e8] ss:$20 sps:$4 sm:$0xff]  }
  0x38   : > { %2272 = vmatpush3.bf16.msra.mxu1 %v2520_v39  ;;  %1125 = vmatprep.mubr.bf16.mxu0 %v2523_v41  ;;  %v2608_v39 = vld [vmem:[%s2719_s11 + $0x178] ss:$20 sps:$4 sm:$0xff]   ;;  %v2611_v41 = vld [vmem:[%s2719_s11 + $0x1a0] ss:$20 sps:$4 sm:$0xff]  }
  0x39   : > { %2273 = vmatprep.subr.bf16.mxu1 %v2521_v40  ;;  %1221 = vmatprep.mubr.bf16.mxu1 %v2525_v42  ;;  %v2609_v40 = vld [vmem:[%s2719_s11 + $0x214] ss:$20 sps:$4 sm:$0xff]   ;;  %v2612_v42 = vld [vmem:[%s2719_s11 + $0x210] ss:$20 sps:$4 sm:$0xff]  }
  0x3c   : > { %2274 = vmatpush3.bf16.msra.mxu1 %v2522_v43  ;;  %v2613_v43 = vld [vmem:[%s2719_s11 + $0x1c8] ss:$20 sps:$4 sm:$0xff]  }
  0x3d   : > { %2275 = vmatprep.subr.bf16.mxu1 %v2529_v46  ;;  %v2617_v46 = vld [vmem:[%s2719_s11 + $0x238] ss:$20 sps:$4 sm:$0xff]  }
  0x3f   : > { %1126 = vmatmul.mubr.bf16.gmra.mrb[12].mxu0 %v2527_v44  ;;  %1222 = vmatmul.mubr.bf16.gmra.mrb[12].mxu1 %v2528_v45  ;;  %v2614_v44 = vld [vmem:[%s2719_s11 + $0x23c] ss:$20 sps:$4 sm:$0xff]  }
  0x40   : > { %2276 = vmatpush3.bf16.msra.mxu1 %v2530_v48  ;;  %1133 = vmatprep.mubr.bf16.mxu0 %v2534_v50  ;;  %v2616_v45 = vld [vmem:[%s2719_s11 + $0x1f0] ss:$20 sps:$4 sm:$0xff]   ;;  %v2622_v50 = vld [vmem:[%s2719_s11 + $0x260] ss:$20 sps:$4 sm:$0xff]  }
  0x41   : > { %2277 = vmatprep.subr.bf16.mxu1 %v2531_v49  ;;  %1262 = vmatprep.mubr.bf16.mxu1 %v2538_v51  ;;  %v2619_v48 = vld [vmem:[%s2719_s11 + $0x264] ss:$20 sps:$4 sm:$0xff]   ;;  %v2621_v49 = vld [vmem:[%s2719_s11 + $0x240] ss:$20 sps:$4 sm:$0xff]   ;;  %v2623_v51 = vld [vmem:[%s2719_s11 + $0x268] ss:$20 sps:$4 sm:$0xff]  }
  0x44   : > { %2278 = vmatpush3.bf16.msra.mxu1 %v2533_v52 }
  0x47   : > { %1134 = vmatmul.mubr.bf16.gmra.mrb[16].mxu0 %v2539_v54  ;;  %1263 = vmatmul.mubr.bf16.vlgmr.msra.gmra.mrb[16].mxu1 %v2536_v53 }
  0x48   : > { %1141 = vmatprep.mubr.bf16.mxu0 %v2540_v55  ;;  %1270 = vmatprep.mubr.bf16.mxu1 %v2542_v57 }
  0x4f   : > { %1142 = vmatmul.mubr.bf16.gmra.mrb[20].mxu0 %v2544_v58  ;;  %1271 = vmatmul.mubr.bf16.gmra.mrb[20].mxu1 %v2545_v59 }
  0x50   : > { %1149 = vmatprep.mubr.bf16.mxu0 %v2546_v60  ;;  %1278 = vmatprep.mubr.bf16.mxu1 %v2548_v61 }
  0x57   : > { %1150 = vmatmul.mubr.bf16.gmra.mrb[24].mxu0 %v2550_v62  ;;  %1279 = vmatmul.mubr.bf16.gmra.mrb[24].mxu1 %v2551_v63 }
  0x58   : > { %1157 = vmatprep.mubr.bf16.mxu0 %v2553_v0  ;;  %1286 = vmatprep.mubr.bf16.mxu1 %v2555_v1 }
  0x5f   : > { %1158 = vmatmul.mubr.bf16.gmra.mrb[28].mxu0 %v2557_v2  ;;  %1287 = vmatmul.mubr.bf16.gmra.mrb[28].mxu1 %v2558_v3 }
  0x60   : > { %1165 = vmatprep.mubr.bf16.mxu0 %v2559_v4  ;;  %1294 = vmatprep.mubr.bf16.mxu1 %v2561_v5 }
  0x67   : > { %1166 = vmatmul.mubr.bf16.gmra.mrb[32].mxu0 %v2563_v6  ;;  %1295 = vmatmul.mubr.bf16.gmra.mrb[32].mxu1 %v2564_v7 }
  0x68   : > { %1173 = vmatprep.mubr.bf16.mxu0 %v2565_v8  ;;  %1302 = vmatprep.mubr.bf16.mxu1 %v2567_v9 }
  0x6f   : > { %1174 = vmatmul.mubr.bf16.gmra.mrb[36].mxu0 %v2569_v10  ;;  %1303 = vmatmul.mubr.bf16.gmra.mrb[36].mxu1 %v2570_v11 }
  0x70   : > { %1181 = vmatprep.mubr.bf16.mxu0 %v2572_v12  ;;  %1310 = vmatprep.mubr.bf16.mxu1 %v2574_v13 }
  0x77   : > { %1182 = vmatmul.mubr.bf16.gmra.mrb[40].mxu0 %v2576_v14  ;;  %1311 = vmatmul.mubr.bf16.gmra.mrb[40].mxu1 %v2577_v15 }
  0x78   : > { %1189 = vmatprep.mubr.bf16.mxu0 %v2578_v16  ;;  %1318 = vmatprep.mubr.bf16.mxu1 %v2580_v17 }
  0x7f   : > { %1190 = vmatmul.mubr.bf16.gmra.mrb[44].mxu0 %v2582_v18  ;;  %1319 = vmatmul.mubr.bf16.gmra.mrb[44].mxu1 %v2583_v19 }
  0x80   : > { %1326 = vmatprep.mubr.bf16.mxu1 %v2584_v20  ;;  %2403 = vmatprep.mubr.msk.bf16.mxu0 %vm1020_vm0, %v2586_v21 }
  0x87   : > { %1327 = vmatmul.mubr.bf16.gmra.mrb[48].mxu1 %v2587_v22  ;;  %2404 = vmatmul.mubr.msk.bf16.vlgmr.msra.gmra.mrb[48].mxu0 %vm1020_vm0, %v2588_v23 }
  0x88   : > { %1334 = vmatprep.mubr.bf16.mxu1 %v2589_v24  ;;  %2407 = vmatprep.mubr.msk.bf16.mxu0 %vm1020_vm0, %v2591_v25 }
  0x8f   : > { %1335 = vmatmul.mubr.bf16.gmra.mrb[52].mxu1 %v2592_v26  ;;  %2408 = vmatmul.mubr.msk.bf16.gmra.mrb[52].mxu0 %vm1020_vm0, %v2593_v27 }
  0x90   : > { %1342 = vmatprep.mubr.bf16.mxu1 %v2594_v28  ;;  %2411 = vmatprep.mubr.msk.bf16.mxu0 %vm1020_vm0, %v2596_v29 }
  0x97   : > { %1343 = vmatmul.mubr.bf16.gmra.mrb[56].mxu1 %v2597_v30  ;;  %2412 = vmatmul.mubr.msk.bf16.gmra.mrb[56].mxu0 %vm1020_vm0, %v2598_v31 }
  0x98   : > { %1350 = vmatprep.mubr.bf16.mxu1 %v2599_v32  ;;  %2415 = vmatprep.mubr.msk.bf16.mxu0 %vm1020_vm0, %v2601_v33 }
  0x9f   : > { %1351 = vmatmul.mubr.bf16.gmra.mrb[60].mxu1 %v2602_v34  ;;  %2416 = vmatmul.mubr.msk.bf16.gmra.mrb[60].mxu0 %vm1020_vm0, %v2603_v35 }
  0xa0   : > { %1358 = vmatprep.mubr.bf16.mxu1 %v2604_v36  ;;  %2419 = vmatprep.mubr.msk.bf16.mxu0 %vm1020_vm0, %v2606_v37 }
  0xa7   : > { %1359 = vmatmul.mubr.bf16.gmra.mrb[64].mxu1 %v2607_v38  ;;  %2420 = vmatmul.mubr.msk.bf16.gmra.mrb[64].mxu0 %vm1020_vm0, %v2608_v39  ;;  %v2917_v38 = vld [vmem:[%s3079_s2] ss:$0 sm:$0xff] }
  0xa8   : > { %1366 = vmatprep.mubr.bf16.mxu1 %v2609_v40  ;;  %2423 = vmatprep.mubr.msk.bf16.mxu0 %vm1020_vm0, %v2611_v41 }
  0xaf   : > { %1367 = vmatmul.mubr.bf16.gmra.mrb[68].mxu1 %v2612_v42  ;;  %2424 = vmatmul.mubr.msk.bf16.gmra.mrb[68].mxu0 %vm1020_vm0, %v2613_v43 }
  0xb0   : > { %1374 = vmatprep.mubr.bf16.mxu1 %v2614_v44  ;;  %2427 = vmatprep.mubr.msk.bf16.mxu0 %vm1020_vm0, %v2616_v45 }
  0xb7   : > { %1375 = vmatmul.mubr.bf16.gmra.mrb[72].mxu1 %v2617_v46  ;;  %2428 = vmatmul.mubr.msk.bf16.gmra.mrb[72].mxu0 %vm1020_vm0, %v2618_v47 }
  0xb8   : > { %1382 = vmatprep.mubr.bf16.mxu1 %v2619_v48  ;;  %2431 = vmatprep.mubr.msk.bf16.mxu0 %vm1020_vm0, %v2621_v49 }
  0xbf   : > { %1383 = vmatmul.mubr.bf16.gmra.mrb[76].mxu1 %v2622_v50  ;;  %2432 = vmatmul.mubr.msk.bf16.gmra.mrb[76].mxu0 %vm1020_vm0, %v2623_v51 }
  0xfa   : > { %v2239_v52 = vpop.f32.mrb[0].mxu1  ;;  %v2167_v53 = vpop.f32.mrb[0].mxu0 }
  0xfb   : > { %v2240_v54 = vpop.f32.mrb[1].mxu1  ;;  %v2168_v55 = vpop.f32.mrb[1].mxu0 }
  0xfc   : > { %v2898_v56 = vadd.f32 %v2240_v54, %v2239_v52  ;;  %v2242_v57 = vpop.f32.mrb[2].mxu1  ;;  %v2169_v58 = vadd.f32 %v2168_v55, %v2167_v53  ;;  %v2170_v59 = vpop.f32.mrb[2].mxu0 }
  0xfd   : > { %v2243_v60 = vpop.f32.mrb[3].mxu1  ;;  %v2171_v61 = vpop.f32.mrb[3].mxu0 }
  0xfe   : > { %v2900_v62 = vadd.f32 %v2243_v60, %v2242_v57  ;;  %v2172_v63 = vadd.f32 %v2171_v61, %v2170_v59  ;;  %v1104_v41 = vadd.f32 %v2169_v58, %v2917_v38 }
 0x100   : > { %v1107_v48 = vadd.f32 %v2172_v63, %v2917_v38 }
 0x102   : > { %v2245_v0 = vpop.f32.mrb[4].mxu1  ;;  %v2173_v1 = vpop.f32.mrb[4].mxu0 }
 0x103   : > { %v2246_v2 = vpop.f32.mrb[5].mxu1  ;;  %v2174_v3 = vpop.f32.mrb[5].mxu0 }
 0x104   : > { %v2902_v4 = vadd.f32 %v2246_v2, %v2245_v0  ;;  %v2248_v5 = vpop.f32.mrb[6].mxu1  ;;  %v2175_v6 = vadd.f32 %v2174_v3, %v2173_v1  ;;  %v2176_v7 = vpop.f32.mrb[6].mxu0 }
 0x105   : > { %v2249_v8 = vpop.f32.mrb[7].mxu1  ;;  %v2177_v9 = vpop.f32.mrb[7].mxu0 }
 0x106   : > { %v2904_v10 = vadd.f32 %v2249_v8, %v2248_v5  ;;  %v2178_v11 = vadd.f32 %v2177_v9, %v2176_v7  ;;  %v1112_v58 = vadd.f32 %v2175_v6, %v2917_v38 }
 0x108   : > { %v1115_v63 = vadd.f32 %v2178_v11, %v2917_v38 }
 0x10a   : > { %v2251_v12 = vpop.f32.mrb[8].mxu1  ;;  %v2179_v13 = vpop.f32.mrb[8].mxu0 }
 0x10b   : > { %v2252_v14 = vpop.f32.mrb[9].mxu1  ;;  %v2180_v15 = vpop.f32.mrb[9].mxu0 }
 0x10c   : > { %v2906_v16 = vadd.f32 %v2252_v14, %v2251_v12  ;;  %v2254_v17 = vpop.f32.mrb[10].mxu1  ;;  %v2181_v18 = vadd.f32 %v2180_v15, %v2179_v13  ;;  %v2182_v19 = vpop.f32.mrb[10].mxu0 }
 0x10d   : > { %v2255_v20 = vpop.f32.mrb[11].mxu1  ;;  %v2183_v21 = vpop.f32.mrb[11].mxu0 }
 0x10e   : > { %v2908_v22 = vadd.f32 %v2255_v20, %v2254_v17  ;;  %v2184_v23 = vadd.f32 %v2183_v21, %v2182_v19  ;;  %v1120_v6 = vadd.f32 %v2181_v18, %v2917_v38 }
 0x110   : > { %v1123_v11 = vadd.f32 %v2184_v23, %v2917_v38 }
 0x112   : > { %v2257_v24 = vpop.f32.mrb[12].mxu1  ;;  %v2185_v25 = vpop.f32.mrb[12].mxu0 }
 0x113   : > { %v2258_v26 = vpop.f32.mrb[13].mxu1  ;;  %v2186_v27 = vpop.f32.mrb[13].mxu0 }
 0x114   : > { %v2910_v28 = vadd.f32 %v2258_v26, %v2257_v24  ;;  %v2260_v29 = vpop.f32.mrb[14].mxu1  ;;  %v2187_v30 = vadd.f32 %v2186_v27, %v2185_v25  ;;  %v2188_v31 = vpop.f32.mrb[14].mxu0 }
 0x115   : > { %v2261_v32 = vpop.f32.mrb[15].mxu1  ;;  %v2189_v33 = vpop.f32.mrb[15].mxu0 }
 0x116   : > { %v2912_v34 = vadd.f32 %v2261_v32, %v2260_v29  ;;  %v2190_v35 = vadd.f32 %v2189_v33, %v2188_v31  ;;  %v1128_v18 = vadd.f32 %v2187_v30, %v2917_v38 }
 0x118   : > { %v1131_v23 = vadd.f32 %v2190_v35, %v2917_v38 }
 0x11a   : > { %v2279_v36 = vpop.f32.mrb[16].mxu1  ;;  %v2191_v37 = vpop.f32.mrb[16].mxu0 }
 0x11b   : > { %v2280_v39 = vpop.f32.mrb[17].mxu1  ;;  %v2192_v40 = vpop.f32.mrb[17].mxu0 }
 0x11c   : > { %v2281_v42 = vadd.f32 %v2280_v39, %v2279_v36  ;;  %v2282_v43 = vpop.f32.mrb[18].mxu1  ;;  %v2193_v44 = vadd.f32 %v2192_v40, %v2191_v37  ;;  %v2194_v45 = vpop.f32.mrb[18].mxu0 }
 0x11d   : > { %v2283_v46 = vpop.f32.mrb[19].mxu1  ;;  %v2195_v47 = vpop.f32.mrb[19].mxu0 }
 0x11e   : > { %v2284_v49 = vadd.f32 %v2283_v46, %v2282_v43  ;;  %v2196_v50 = vadd.f32 %v2195_v47, %v2194_v45  ;;  %v2921_v51 = vadd.f32 %v2281_v42, %v1104_v41  ;;  %v1136_v30 = vadd.f32 %v2193_v44, %v2917_v38 }
 0x120   : > { %v2923_v52 = vadd.f32 %v2284_v49, %v1107_v48  ;;  %v1139_v35 = vadd.f32 %v2196_v50, %v2917_v38 }
 0x122   : > { %v2285_v53 = vpop.f32.mrb[20].mxu1  ;;  %v2197_v54 = vpop.f32.mrb[20].mxu0 }
 0x123   : > { %v2286_v55 = vpop.f32.mrb[21].mxu1  ;;  %v2198_v57 = vpop.f32.mrb[21].mxu0 }
 0x124   : > { %v2287_v59 = vadd.f32 %v2286_v55, %v2285_v53  ;;  %v2288_v60 = vpop.f32.mrb[22].mxu1  ;;  %v2199_v61 = vadd.f32 %v2198_v57, %v2197_v54  ;;  %v2200_v0 = vpop.f32.mrb[22].mxu0 }
 0x125   : > { %v2289_v1 = vpop.f32.mrb[23].mxu1  ;;  %v2201_v2 = vpop.f32.mrb[23].mxu0 }
 0x126   : > { %v2290_v3 = vadd.f32 %v2289_v1, %v2288_v60  ;;  %v2202_v5 = vadd.f32 %v2201_v2, %v2200_v0  ;;  %v2927_v7 = vadd.f32 %v2287_v59, %v1112_v58  ;;  %v1144_v44 = vadd.f32 %v2199_v61, %v2917_v38 }
 0x128   : > { %v2929_v8 = vadd.f32 %v2290_v3, %v1115_v63 }
 0x12a   : > { %v2291_v9 = vpop.f32.mrb[24].mxu1  ;;  %v2203_v12 = vpop.f32.mrb[24].mxu0 }
 0x12b   : > { %v2292_v13 = vpop.f32.mrb[25].mxu1  ;;  %v2204_v14 = vpop.f32.mrb[25].mxu0 }
 0x12c   : > { %v2293_v15 = vadd.f32 %v2292_v13, %v2291_v9  ;;  %v2294_v17 = vpop.f32.mrb[26].mxu1  ;;  %v2205_v19 = vadd.f32 %v2204_v14, %v2203_v12  ;;  %v2206_v20 = vpop.f32.mrb[26].mxu0 }
 0x12d   : > { %v2295_v21 = vpop.f32.mrb[27].mxu1  ;;  %v2207_v24 = vpop.f32.mrb[27].mxu0 }
 0x12e   : > { %v2296_v25 = vadd.f32 %v2295_v21, %v2294_v17  ;;  %v2208_v26 = vadd.f32 %v2207_v24, %v2206_v20  ;;  %v2933_v27 = vadd.f32 %v2293_v15, %v1120_v6 }
 0x130   : > { %v2935_v29 = vadd.f32 %v2296_v25, %v1123_v11  ;;  %v1147_v11 = vadd.f32 %v2202_v5, %v2917_v38 }
 0x132   : > { %v2297_v31 = vpop.f32.mrb[28].mxu1  ;;  %v2209_v32 = vpop.f32.mrb[28].mxu0 }
 0x133   : > { %v2298_v33 = vpop.f32.mrb[29].mxu1  ;;  %v2210_v36 = vpop.f32.mrb[29].mxu0 }
 0x134   : > { %v2299_v37 = vadd.f32 %v2298_v33, %v2297_v31  ;;  %v2300_v39 = vpop.f32.mrb[30].mxu1  ;;  %v2211_v40 = vadd.f32 %v2210_v36, %v2209_v32  ;;  %v2212_v41 = vpop.f32.mrb[30].mxu0 }
 0x135   : > { %v2301_v42 = vpop.f32.mrb[31].mxu1  ;;  %v2213_v43 = vpop.f32.mrb[31].mxu0 }
 0x136   : > { %v2302_v45 = vadd.f32 %v2301_v42, %v2300_v39  ;;  %v2214_v46 = vadd.f32 %v2213_v43, %v2212_v41  ;;  %v2939_v47 = vadd.f32 %v2299_v37, %v1128_v18  ;;  %v1152_v39 = vadd.f32 %v2205_v19, %v2917_v38 }
 0x138   : > { %v2941_v48 = vadd.f32 %v2302_v45, %v1131_v23 }
 0x13a   : > { %v2303_v49 = vpop.f32.mrb[32].mxu1  ;;  %v2215_v53 = vpop.f32.mrb[32].mxu0 }
 0x13b   : > { %v2304_v54 = vpop.f32.mrb[33].mxu1  ;;  %v2216_v55 = vpop.f32.mrb[33].mxu0 }
 0x13c   : > { %v2305_v57 = vadd.f32 %v2304_v54, %v2303_v49  ;;  %v2306_v58 = vpop.f32.mrb[34].mxu1  ;;  %v2217_v59 = vadd.f32 %v2216_v55, %v2215_v53  ;;  %v2218_v60 = vpop.f32.mrb[34].mxu0  ;;  %v1155_v49 = vadd.f32 %v2208_v26, %v2917_v38 }
 0x13d   : > { %v2307_v0 = vpop.f32.mrb[35].mxu1  ;;  %v2219_v1 = vpop.f32.mrb[35].mxu0 }
 0x13e   : > { %v2308_v2 = vadd.f32 %v2307_v0, %v2306_v58  ;;  %v2945_v63 = vadd.f32 %v2219_v1, %v2218_v60  ;;  %v2947_v3 = vadd.f32 %v2305_v57, %v1136_v30  ;;  %v1160_v0 = vadd.f32 %v2211_v40, %v2917_v38 }
 0x140   : > { %v2949_v9 = vadd.f32 %v2308_v2, %v1139_v35 }
 0x142   : > { %v2309_v12 = vpop.f32.mrb[36].mxu1  ;;  %v2221_v13 = vpop.f32.mrb[36].mxu0 }
 0x143   : > { %v2310_v14 = vpop.f32.mrb[37].mxu1  ;;  %v2222_v6 = vpop.f32.mrb[37].mxu0 }
 0x144   : > { %v2311_v15 = vadd.f32 %v2310_v14, %v2309_v12  ;;  %v2312_v17 = vpop.f32.mrb[38].mxu1  ;;  %v2952_v20 = vadd.f32 %v2222_v6, %v2221_v13  ;;  %v2224_v21 = vpop.f32.mrb[38].mxu0  ;;  %v1163_v14 = vadd.f32 %v2214_v46, %v2917_v38 }
 0x145   : > { %v2313_v24 = vpop.f32.mrb[39].mxu1  ;;  %v2225_v50 = vpop.f32.mrb[39].mxu0 }
 0x146   : > { %v2314_v25 = vadd.f32 %v2313_v24, %v2312_v17  ;;  %v2955_v31 = vadd.f32 %v2225_v50, %v2224_v21  ;;  %v2957_v32 = vadd.f32 %v2311_v15, %v1144_v44 }
 0x148   : > { %v2959_v33 = vadd.f32 %v2314_v25, %v1147_v11  ;;  %v1168_v25 = vadd.f32 %v2217_v59, %v2917_v38 }
 0x14a   : > { %v2315_v36 = vpop.f32.mrb[40].mxu1  ;;  %v2227_v18 = vpop.f32.mrb[40].mxu0 }
 0x14b   : > { %v2316_v37 = vpop.f32.mrb[41].mxu1  ;;  %v2228_v61 = vpop.f32.mrb[41].mxu0 }
 0x14c   : > { %v2317_v41 = vadd.f32 %v2316_v37, %v2315_v36  ;;  %v2318_v42 = vpop.f32.mrb[42].mxu1  ;;  %v2962_v43 = vadd.f32 %v2228_v61, %v2227_v18  ;;  %v2230_v23 = vpop.f32.mrb[42].mxu0 }
 0x14d   : > { %v2319_v45 = vpop.f32.mrb[43].mxu1  ;;  %v2231_v5 = vpop.f32.mrb[43].mxu0 }
 0x14e   : > { %v2320_v53 = vadd.f32 %v2319_v45, %v2318_v42  ;;  %v2965_v54 = vadd.f32 %v2231_v5, %v2230_v23  ;;  %v2967_v55 = vadd.f32 %v2317_v41, %v1152_v39  ;;  %v1171_v42 = vadd.f32 %v2945_v63, %v2917_v38 }
 0x150   : > { %v2969_v30 = vadd.f32 %v2320_v53, %v1155_v49 }
 0x152   : > { %v2321_v57 = vpop.f32.mrb[44].mxu1  ;;  %v2233_v58 = vpop.f32.mrb[44].mxu0 }
 0x153   : > { %v2322_v60 = vpop.f32.mrb[45].mxu1  ;;  %v2234_v19 = vpop.f32.mrb[45].mxu0 }
 0x154   : > { %v2323_v1 = vadd.f32 %v2322_v60, %v2321_v57  ;;  %v2324_v35 = vpop.f32.mrb[46].mxu1  ;;  %v2972_v2 = vadd.f32 %v2234_v19, %v2233_v58  ;;  %v2236_v12 = vpop.f32.mrb[46].mxu0 }
 0x155   : > { %v2325_v13 = vpop.f32.mrb[47].mxu1  ;;  %v2237_v26 = vpop.f32.mrb[47].mxu0 }
 0x156   : > { %v2326_v6 = vadd.f32 %v2325_v13, %v2324_v35  ;;  %v2975_v44 = vadd.f32 %v2237_v26, %v2236_v12  ;;  %v2977_v15 = vadd.f32 %v2323_v1, %v1160_v0  ;;  %v1176_v0 = vadd.f32 %v2952_v20, %v2917_v38 }
 0x158   : > { %v2979_v17 = vadd.f32 %v2326_v6, %v1163_v14 }
 0x15a   : > { %v2327_v21 = vpop.f32.mrb[48].mxu1  ;;  %v2405_v24 = vpop.f32.mrb[48].mxu0 }
 0x15b   : > { %v1434_v40 = vadd.f32 %v2405_v24, %v2927_v7  ;;  %v2328_v50 = vpop.f32.mrb[49].mxu1  ;;  %v1425_v11 = vpop.f32.mrb[49].mxu0 }
 0x15c   : > { %v2329_v36 = vadd.f32 %v2328_v50, %v2327_v21  ;;  %v1426_v18 = vadd.f32 %v1425_v11, %v2921_v51  ;;  %v2330_v37 = vpop.f32.mrb[50].mxu1  ;;  %v2406_v46 = vpop.f32.mrb[50].mxu0  ;;  %v1179_v21 = vadd.f32 %v2955_v31, %v2917_v38 }
 0x15d   : > { %v1437_v61 = vadd.f32 %v2406_v46, %v2929_v8  ;;  %v2331_v39 = vpop.f32.mrb[51].mxu1  ;;  %v1428_v41 = vpop.f32.mrb[51].mxu0  ;;  %v1554_v5 = vmax.f32 %v1434_v40, 0.0 }
 0x15e   : > { %v2332_v23 = vadd.f32 %v2331_v39, %v2330_v37  ;;  %v1429_v7 = vadd.f32 %v1428_v41, %v2923_v52  ;;  %v2989_v45 = vadd.f32 %v2329_v36, %v1168_v25  ;;  %v1552_v49 = vmax.f32 %v1426_v18, 0.0 }
 0x15f   : > { %v1555_v59 = vmax.f32 %v1437_v61, 0.0 }
 0x160   : > { %v1553_v51 = vmax.f32 %v1429_v7, 0.0  ;;  %v2996_v8 = vadd.f32 %v2332_v23, %v1171_v42 }
 0x161   : > { %v2064_v53 = vpack.c.bf16 %v1555_v59, %v1554_v5 }
 0x162   : > { %v2059_v63 = vpack.c.bf16 %v1553_v51, %v1552_v49  ;;  %v2333_v57 = vpop.f32.mrb[52].mxu1  ;;  %v2409_v58 = vpop.f32.mrb[52].mxu0  ;;  %v1187_v49 = vadd.f32 %v2965_v54, %v2917_v38 }
 0x163   : > { %2136 = vst [vmem:[%s2994_s30 + $0x8] sm:$0xff] %v2064_v53   ;;  %v1450_v52 = vadd.f32 %v2409_v58, %v2939_v47  ;;  %v2334_v60 = vpop.f32.mrb[53].mxu1  ;;  %v1441_v19 = vpop.f32.mrb[53].mxu0 }
 0x164   : > { %2060 = vst [vmem:[%s2994_s30] sm:$0xff] %v2059_v63   ;;  %v2335_v1 = vadd.f32 %v2334_v60, %v2333_v57  ;;  %v1442_v35 = vadd.f32 %v1441_v19, %v2933_v27  ;;  %v2336_v12 = vpop.f32.mrb[54].mxu1  ;;  %v2410_v13 = vpop.f32.mrb[54].mxu0 }
 0x165   : > { %v1453_v26 = vadd.f32 %v2410_v13, %v2941_v48  ;;  %v2337_v14 = vpop.f32.mrb[55].mxu1  ;;  %v1444_v6 = vpop.f32.mrb[55].mxu0  ;;  %v1558_v20 = vmax.f32 %v1450_v52, 0.0 }
 0x166   : > { %v2338_v47 = vadd.f32 %v2337_v14, %v2336_v12  ;;  %v1445_v24 = vadd.f32 %v1444_v6, %v2935_v29  ;;  %v3008_v40 = vadd.f32 %v2335_v1, %v1176_v0  ;;  %v1556_v11 = vmax.f32 %v1442_v35, 0.0 }
 0x167   : > { %v1559_v50 = vmax.f32 %v1453_v26, 0.0  ;;  %v1184_v29 = vadd.f32 %v2962_v43, %v2917_v38 }
 0x168   : > { %v1557_v27 = vmax.f32 %v1445_v24, 0.0  ;;  %v3010_v25 = vadd.f32 %v2338_v47, %v1179_v21  ;;  %v1195_v47 = vadd.f32 %v2975_v44, %v2917_v38  ;;  %v1200_v44 = vadd.f32 %v2898_v56, %v2917_v38 }
 0x169   : > { %v2074_v36 = vpack.c.bf16 %v1559_v50, %v1558_v20 }
 0x16a   : > { %v2069_v48 = vpack.c.bf16 %v1557_v27, %v1556_v11  ;;  %v2339_v18 = vpop.f32.mrb[56].mxu1  ;;  %v2413_v37 = vpop.f32.mrb[56].mxu0 }
 0x16b   : > { %2138 = vst [vmem:[%s2994_s30 + $0x18] sm:$0xff] %v2074_v36   ;;  %v1466_v46 = vadd.f32 %v2413_v37, %v2957_v32  ;;  %v2340_v31 = vpop.f32.mrb[57].mxu1  ;;  %v1457_v61 = vpop.f32.mrb[57].mxu0 }
 0x16c   : > { %2137 = vst [vmem:[%s2994_s30 + $0x10] sm:$0xff] %v2069_v48   ;;  %v2341_v39 = vadd.f32 %v2340_v31, %v2339_v18  ;;  %v1458_v41 = vadd.f32 %v1457_v61, %v2947_v3  ;;  %v2342_v42 = vpop.f32.mrb[58].mxu1  ;;  %v2414_v23 = vpop.f32.mrb[58].mxu0 }
 0x16d   : > { %v1469_v7 = vadd.f32 %v2414_v23, %v2959_v33  ;;  %v2343_v5 = vpop.f32.mrb[59].mxu1  ;;  %v1460_v59 = vpop.f32.mrb[59].mxu0  ;;  %v1562_v43 = vmax.f32 %v1466_v46, 0.0 }
 0x16e   : > { %v2344_v32 = vadd.f32 %v2343_v5, %v2342_v42  ;;  %v1461_v51 = vadd.f32 %v1460_v59, %v2949_v9  ;;  %v3022_v53 = vadd.f32 %v2341_v39, %v1184_v29  ;;  %v1560_v57 = vmax.f32 %v1458_v41, 0.0 }
 0x16f   : > { %v1563_v63 = vmax.f32 %v1469_v7, 0.0  ;;  %v1192_v9 = vadd.f32 %v2972_v2, %v2917_v38  ;;  %v1203_v7 = vadd.f32 %v2900_v62, %v2917_v38  ;;  %v1208_v62 = vadd.f32 %v2902_v4, %v2917_v38 }
 0x170   : > { %v1561_v3 = vmax.f32 %v1461_v51, 0.0  ;;  %v3024_v58 = vadd.f32 %v2344_v32, %v1187_v49 }
 0x171   : > { %v2084_v52 = vpack.c.bf16 %v1563_v63, %v1562_v43 }
 0x172   : > { %v2079_v33 = vpack.c.bf16 %v1561_v3, %v1560_v57  ;;  %v2345_v60 = vpop.f32.mrb[60].mxu1  ;;  %v2417_v19 = vpop.f32.mrb[60].mxu0 }
 0x173   : > { %2140 = vst [vmem:[%s2994_s30 + $0x28] sm:$0xff] %v2084_v52   ;;  %v1482_v0 = vadd.f32 %v2417_v19, %v2977_v15  ;;  %v2346_v54 = vpop.f32.mrb[61].mxu1  ;;  %v1473_v1 = vpop.f32.mrb[61].mxu0 }
 0x174   : > { %2139 = vst [vmem:[%s2994_s30 + $0x20] sm:$0xff] %v2079_v33   ;;  %v2347_v35 = vadd.f32 %v2346_v54, %v2345_v60  ;;  %v1474_v12 = vadd.f32 %v1473_v1, %v2967_v55  ;;  %v2348_v13 = vpop.f32.mrb[62].mxu1  ;;  %v2418_v26 = vpop.f32.mrb[62].mxu0 }
 0x175   : > { %v1485_v14 = vadd.f32 %v2418_v26, %v2979_v17  ;;  %v2349_v6 = vpop.f32.mrb[63].mxu1  ;;  %v1476_v21 = vpop.f32.mrb[63].mxu0  ;;  %v1566_v2 = vmax.f32 %v1482_v0, 0.0 }
 0x176   : > { %v2350_v15 = vadd.f32 %v2349_v6, %v2348_v13  ;;  %v1477_v24 = vadd.f32 %v1476_v21, %v2969_v30  ;;  %v1353_v20 = vadd.f32 %v2347_v35, %v1192_v9  ;;  %v1564_v11 = vmax.f32 %v1474_v12, 0.0 }
 0x177   : > { %v1567_v50 = vmax.f32 %v1485_v14, 0.0  ;;  %v1211_v35 = vadd.f32 %v2904_v10, %v2917_v38  ;;  %v1216_v10 = vadd.f32 %v2906_v16, %v2917_v38 }
 0x178   : > { %v1565_v27 = vmax.f32 %v1477_v24, 0.0  ;;  %v1356_v55 = vadd.f32 %v2350_v15, %v1195_v47 }
 0x179   : > { %v2094_v36 = vpack.c.bf16 %v1567_v50, %v1566_v2 }
 0x17a   : > { %v2089_v48 = vpack.c.bf16 %v1565_v27, %v1564_v11  ;;  %v2351_v18 = vpop.f32.mrb[64].mxu1  ;;  %v2421_v17 = vpop.f32.mrb[64].mxu0 }
 0x17b   : > { %2142 = vst [vmem:[%s2994_s30 + $0x38] sm:$0xff] %v2094_v36   ;;  %v1498_v37 = vadd.f32 %v2421_v17, %v3008_v40  ;;  %v2352_v46 = vpop.f32.mrb[65].mxu1  ;;  %v1489_v31 = vpop.f32.mrb[65].mxu0 }
 0x17c   : > { %2141 = vst [vmem:[%s2994_s30 + $0x30] sm:$0xff] %v2089_v48   ;;  %v2353_v30 = vadd.f32 %v2352_v46, %v2351_v18  ;;  %v1490_v61 = vadd.f32 %v1489_v31, %v2989_v45  ;;  %v2354_v29 = vpop.f32.mrb[66].mxu1  ;;  %v2422_v39 = vpop.f32.mrb[66].mxu0 }
 0x17d   : > { %v1501_v41 = vadd.f32 %v2422_v39, %v3010_v25  ;;  %v2355_v42 = vpop.f32.mrb[67].mxu1  ;;  %v1492_v23 = vpop.f32.mrb[67].mxu0  ;;  %v1570_v56 = vmax.f32 %v1498_v37, 0.0  ;;  %v1219_v37 = vadd.f32 %v2908_v22, %v2917_v38 }
 0x17e   : > { %v2356_v40 = vadd.f32 %v2355_v42, %v2354_v29  ;;  %v1493_v5 = vadd.f32 %v1492_v23, %v2996_v8  ;;  %v1361_v59 = vadd.f32 %v2353_v30, %v1200_v44  ;;  %v1568_v32 = vmax.f32 %v1490_v61, 0.0 }
 0x17f   : > { %v1571_v49 = vmax.f32 %v1501_v41, 0.0 }
 0x180   : > { %v1569_v51 = vmax.f32 %v1493_v5, 0.0  ;;  %v1364_v45 = vadd.f32 %v2356_v40, %v1203_v7 }
 0x181   : > { %v2104_v43 = vpack.c.bf16 %v1571_v49, %v1570_v56 }
 0x182   : > { %v2099_v63 = vpack.c.bf16 %v1569_v51, %v1568_v32  ;;  %v2357_v57 = vpop.f32.mrb[68].mxu1  ;;  %v2425_v25 = vpop.f32.mrb[68].mxu0 }
 0x183   : > { %2144 = vst [vmem:[%s2994_s30 + $0x48] sm:$0xff] %v2104_v43   ;;  %v1514_v3 = vadd.f32 %v2425_v25, %v1353_v20  ;;  %v2358_v52 = vpop.f32.mrb[69].mxu1  ;;  %v1505_v33 = vpop.f32.mrb[69].mxu0  ;;  %v1227_v43 = vadd.f32 %v2912_v34, %v2917_v38 }
 0x184   : > { %2143 = vst [vmem:[%s2994_s30 + $0x40] sm:$0xff] %v2099_v63   ;;  %v2359_v8 = vadd.f32 %v2358_v52, %v2357_v57  ;;  %v1506_v60 = vadd.f32 %v1505_v33, %v3022_v53  ;;  %v2360_v19 = vpop.f32.mrb[70].mxu1  ;;  %v2426_v0 = vpop.f32.mrb[70].mxu0 }
 0x185   : > { %v1517_v54 = vadd.f32 %v2426_v0, %v1356_v55  ;;  %v2361_v1 = vpop.f32.mrb[71].mxu1  ;;  %v1508_v9 = vpop.f32.mrb[71].mxu0  ;;  %v1574_v14 = vmax.f32 %v1514_v3, 0.0 }
 0x186   : > { %v2362_v12 = vadd.f32 %v2361_v1, %v2360_v19  ;;  %v1509_v13 = vadd.f32 %v1508_v9, %v3024_v58  ;;  %v1369_v26 = vadd.f32 %v2359_v8, %v1208_v62  ;;  %v1572_v6 = vmax.f32 %v1506_v60, 0.0 }
 0x187   : > { %v1575_v4 = vmax.f32 %v1517_v54, 0.0 }
 0x188   : > { %v1573_v21 = vmax.f32 %v1509_v13, 0.0  ;;  %v1372_v47 = vadd.f32 %v2362_v12, %v1211_v35 }
 0x189   : > { %v2114_v53 = vpack.c.bf16 %v1575_v4, %v1574_v14 }
 0x18a   : > { %v2109_v15 = vpack.c.bf16 %v1573_v21, %v1572_v6  ;;  %v2363_v24 = vpop.f32.mrb[72].mxu1  ;;  %v2429_v20 = vpop.f32.mrb[72].mxu0 }
 0x18b   : > { %2146 = vst [vmem:[%s2994_s30 + $0x58] sm:$0xff] %v2114_v53   ;;  %v1530_v2 = vadd.f32 %v2429_v20, %v1369_v26  ;;  %v2364_v50 = vpop.f32.mrb[73].mxu1  ;;  %v1521_v11 = vpop.f32.mrb[73].mxu0 }
 0x18c   : > { %2145 = vst [vmem:[%s2994_s30 + $0x50] sm:$0xff] %v2109_v15   ;;  %v2365_v58 = vadd.f32 %v2364_v50, %v2363_v24  ;;  %v1522_v27 = vadd.f32 %v1521_v11, %v1361_v59  ;;  %v2366_v55 = vpop.f32.mrb[74].mxu1  ;;  %v2430_v36 = vpop.f32.mrb[74].mxu0  ;;  %v1224_v59 = vadd.f32 %v2910_v28, %v2917_v38 }
 0x18d   : > { %v1533_v48 = vadd.f32 %v2430_v36, %v1372_v47  ;;  %v2367_v18 = vpop.f32.mrb[75].mxu1  ;;  %v1524_v17 = vpop.f32.mrb[75].mxu0  ;;  %v1578_v30 = vmax.f32 %v1530_v2, 0.0 }
 0x18e   : > { %v2368_v46 = vadd.f32 %v2367_v18, %v2366_v55  ;;  %v1525_v31 = vadd.f32 %v1524_v17, %v1364_v45  ;;  %v1377_v44 = vadd.f32 %v2365_v58, %v1216_v10  ;;  %v1576_v29 = vmax.f32 %v1522_v27, 0.0 }
 0x18f   : > { %v1579_v61 = vmax.f32 %v1533_v48, 0.0 }
 0x190   : > { %v1577_v16 = vmax.f32 %v1525_v31, 0.0  ;;  %v1380_v39 = vadd.f32 %v2368_v46, %v1219_v37 }
 0x191   : > { %v2124_v41 = vpack.c.bf16 %v1579_v61, %v1578_v30 }
 0x192   : > { %v2119_v42 = vpack.c.bf16 %v1577_v16, %v1576_v29  ;;  %v2369_v23 = vpop.f32.mrb[76].mxu1  ;;  %v2433_v7 = vpop.f32.mrb[76].mxu0 }
 0x193   : > { %2148 = vst [vmem:[%s2994_s30 + $0x68] sm:$0xff] %v2124_v41   ;;  %v2370_v40 = vpop.f32.mrb[77].mxu1  ;;  %v1537_v5 = vpop.f32.mrb[77].mxu0 }
 0x194   : > { %2147 = vst [vmem:[%s2994_s30 + $0x60] sm:$0xff] %v2119_v42   ;;  %v2371_v22 = vadd.f32 %v2370_v40, %v2369_v23  ;;  %v1538_v56 = vadd.f32 %v1537_v5, %v1377_v44  ;;  %v2372_v49 = vpop.f32.mrb[78].mxu1  ;;  %v2434_v32 = vpop.f32.mrb[78].mxu0 }
 0x195   : > { %v2373_v51 = vpop.f32.mrb[79].mxu1  ;;  %v1540_v45 = vpop.f32.mrb[79].mxu0 }
 0x196   : > { %v1385_v63 = vadd.f32 %v2371_v22, %v1224_v59  ;;  %v2374_v57 = vadd.f32 %v2373_v51, %v2372_v49  ;;  %v1541_v25 = vadd.f32 %v1540_v45, %v1380_v39  ;;  %v1580_v52 = vmax.f32 %v1538_v56, 0.0 }
 0x198   : > { %v1546_v3 = vadd.f32 %v2433_v7, %v1385_v63  ;;  %v1388_v33 = vadd.f32 %v2374_v57, %v1227_v43  ;;  %v1581_v62 = vmax.f32 %v1541_v25, 0.0 }
 0x19a   : > { %v1549_v28 = vadd.f32 %v2434_v32, %v1388_v33  ;;  %v2129_v8 = vpack.c.bf16 %v1581_v62, %v1580_v52  ;;  %v1582_v60 = vmax.f32 %v1546_v3, 0.0 }
 0x19c   : > { %v1583_v19 = vmax.f32 %v1549_v28, 0.0  ;;  %2149 = vst [vmem:[%s2994_s30 + $0x70] sm:$0xff] %v2129_v8  }
 0x19e   : > { %v2134_v0 = vpack.c.bf16 %v1583_v19, %v1582_v60 }
 0x1a0   : > { %2150 = vst [vmem:[%s2994_s30 + $0x78] sm:$0xff] %v2134_v0  }
 0x1a1 PF: > { %s13_s14 = sadd.s32 1, %s2646_s14   ;;  %s3081_s12 = smov %s2642_s13 }
 0x1a2   : > { %p10_p5 = scmp.ge.s32.totalorder %s13_s14, 4   ;;  %s3082_s13 = smov %s3084_s15 }
 0x1a4   :  { %12 = sbr.rel (!%p10_p5) target bundleno = 2 (0x2), region = 68 }

// kernel: deeplab_forward.63
= control target key start
LH: loop header
LB: loop body
LE: loop exit
PB: predicated region body
PF: predicated region fallthrough
CT: control target
= control target key end

     0   :  { %s700_s12 = smov 0   ;;  %s702_s13 = smov 0   ;;  %s807_s0 = inlined_call_operand.vmem [shape: bf16[64,16], index: 0, kind: input, shape index: {}]   ;;  %s808_s1 = inlined_call_operand.vmem [shape: bf16[16,2688], index: 1, kind: input, shape index: {}]   ;;  %s809_s2 = inlined_call_operand.vmem [shape: f32[1,2688], index: 2, kind: input, shape index: {}]   ;;  %s810_s3 = inlined_call_operand.vmem [shape: f32[64,2688], index: 3, kind: output, shape index: {}]  }
   0x1   :  { %s704_s14 = smov 0   ;;  %s706_s15 = smov 0  }
   0x2   :  { %s708_s16 = smov 0  }
   0x3 LB: > { %s22_s17 = sadd.s32 1, %s674_s15  ;;  %s554_s18 = sadd.s32 4294967295, %s678_s16   ;;  %s678_s16 = sphi %s708_s16, %s13_s16   ;;  %s674_s15 = sphi %s706_s15, %s815_s15   ;;  %s670_s14 = sphi %s704_s14, %s814_s14   ;;  %s666_s13 = sphi %s702_s13, %s813_s13   ;;  %s662_s12 = sphi %s700_s12, %s812_s12  }
   0x4   : > { %p23_p0 = scmp.ge.s32.totalorder %s22_s17, 21  ;;  %p65_p1 = scmp.ne.s32.totalorder %s666_s13, %s662_s12 }
   0x5   : > { %p66_p2 = scmp.eq.s32.totalorder %s678_s16, 0  ;;  %p123_p4 = scmp.eq.s32.totalorder %s554_s18, 20 }
   0x6   : > { %s817_s17 = smov (%p23_p0, %s22_s17), 0  ;;  %s58_s20 = sadd.s32 1, %s666_s13 }
   0x7   : > { %p67_p3 = por %p66_p2, %p65_p1  ;;  %s55_s19 = ssub.s32 %s674_s15, %s817_s17 }
   0x8   : > { %p56_p5 = scmp.eq.s32.totalorder %s55_s19, 0  ;;  %p735_p6 = por %p123_p4, %p65_p1 }
   0x9   : > { %p558_p7 = scmp.ge.s32.totalorder %s678_s16, 21 }
   0xa   : > { %s740_s22 = scalar_select %p56_p5, %s666_s13, %s58_s20  }
   0xb   : > { %154 = sbr.rel (%p558_p7) target bundleno = 25 (0x19), region = 20 }
  0x12   : > { %157 = sbr.rel (!%p67_p3) target bundleno = 25 (0x19), region = 24  ;;  %s159_s23 = sand.u32 (%p67_p3), 1, %s666_s13  }
  0x13   : > { %s560_s24 = sshll.u32 (%p67_p3), %s674_s15, 2  ;;  %s559_s25 = sshll.u32 (%p67_p3), %s159_s23, 3 }
  0x14   : > { %s163_s28 = scalar_lea.vmem (%p67_p3), %s808_s1, %s560_s24  ;;  %s161_s29 = scalar_lea.vmem (%p67_p3), [#allocation2], %s559_s25 }
  0x15   : > { %v179_v0 = vld [vmem:[%s163_s28] sm:$0xf] (%p67_p3)  ;;  %v181_v1 = vld [vmem:[%s163_s28 + $0x54] sm:$0xf] (%p67_p3) }
  0x16   : > { %180 = vst [vmem:[%s161_s29] sm:$0xf] (%p67_p3), %v179_v0  ;;  %182 = vst [vmem:[%s161_s29 + $0x4] sm:$0xf] (%p67_p3), %v181_v1 }
  0x19 PF: > { %p561_p8 = scmp.ge.s32.totalorder %s678_s16, 1  ;;  %p214_p9 = scmp.lt.s32.totalorder %s678_s16, 22 }
  0x1b   : > { %p215_p10 = pnand %p561_p8, %p214_p9 }
  0x1c   : > { %s221_s30 = sand.u32 (!%p215_p10), 1, %s662_s12   ;;  %v636_v2 = vld [vmem:[%s807_s0] sm:$0xff] (!%p215_p10)   ;;  %vm305_vm0 = vcmask (!%p215_p10), 130048   ;;  %v637_v3 = vld [vmem:[%s807_s0 + $0x10] sm:$0xff] (!%p215_p10)   ;;  %v638_v5 = vld [vmem:[%s807_s0 + $0x8] sm:$0xff] (!%p215_p10)   ;;  %p257_p11 = scmp.lt.s32.totalorder (!%p215_p10), %s670_s14, 20 }
  0x1d   : > { %218 = sbr.rel (%p215_p10) target bundleno = 263 (0x107), region = 69  ;;  %s562_s6 = sshll.u32 (!%p215_p10), %s221_s30, 3  ;;  %585 = vmatprep.mubr.msk.bf16.mxu0 (!%p215_p10), %vm305_vm0, %v636_v2  ;;  %589 = vmatprep.mubr.msk.bf16.mxu1 (!%p215_p10), %vm305_vm0, %v637_v3  ;;  %v639_v6 = vld [vmem:[%s807_s0 + $0x18] sm:$0xff] (!%p215_p10)  }
  0x1e   : > { %s223_s9 = scalar_lea.vmem (!%p215_p10), [#allocation2], %s562_s6  ;;  %s563_s25 = sshll.u32 (!%p215_p10), %s221_s30, 6 }
  0x1f   : > { %v635_v4 = vld [vmem:[%s223_s9] sm:$0xff] (!%p215_p10)   ;;  %s768_s26 = scalar_lea.vmem (!%p215_p10), [#allocation3], %s563_s25 }
  0x20   : > { %583 = vmatprep.subr.bf16.mxu0 (!%p215_p10), %v635_v4  ;;  %593 = vmatprep.subr.bf16.mxu1 (!%p215_p10), %v635_v4 }
  0x21   : > { %584 = vmatpush3.bf16.msra.mxu0 (!%p215_p10), %v635_v4  ;;  %594 = vmatpush3.bf16.msra.mxu1 (!%p215_p10), %v635_v4 }
  0x24   : > { %586 = vmatmul.mubr.msk.bf16.vlgmr.msra.gmra.mrb[0].mxu0 %vm305_vm0, %v638_v5  ;;  %590 = vmatmul.mubr.msk.bf16.vlgmr.msra.gmra.mrb[0].mxu1 %vm305_vm0, %v639_v6  ;;  %s258_s19 = scalar_select %p257_p11, %s670_s14, 20 }
  0x25   : > { %s575_s27 = sshll.u32 (%p735_p6), %s670_s14, 3 }
  0x26   : > { %s259_s24 = scalar_lea.vmem %s809_s2, %s258_s19  ;;  %s402_s30 = scalar_lea.vmem (%p735_p6), %s810_s3, %s575_s27 }
  0x27   : > { %v564_v7 = vld [vmem:[%s259_s24] ss:$0 sm:$0xff] }
  0xf7   : > { %v587_v8 = vpop.f32.mrb[0].mxu0  ;;  %v591_v9 = vpop.f32.mrb[0].mxu1  ;;  %397 = sbr.rel (!%p735_p6) target bundleno = 263 (0x107), region = 77 }
  0xf8   : > { %v361_v10 = vadd.f32 %v587_v8, %v564_v7  ;;  %v377_v11 = vadd.f32 %v591_v9, %v564_v7  ;;  %v352_v12 = vpop.f32.mrb[1].mxu0  ;;  %v368_v13 = vpop.f32.mrb[1].mxu1 }
  0xf9   : > { %v353_v14 = vadd.f32 %v564_v7, %v352_v12  ;;  %v369_v15 = vadd.f32 %v564_v7, %v368_v13  ;;  %v588_v16 = vpop.f32.mrb[2].mxu0  ;;  %v592_v17 = vpop.f32.mrb[2].mxu1 }
  0xfa   : > { %385 = vst [vmem:[%s768_s26 + $0x10] sm:$0xff] %v361_v10  ;;  %389 = vst [vmem:[%s768_s26 + $0x30] sm:$0xff] %v377_v11  ;;  %v364_v18 = vadd.f32 %v588_v16, %v564_v7  ;;  %v380_v19 = vadd.f32 %v592_v17, %v564_v7  ;;  %v355_v20 = vpop.f32.mrb[3].mxu0  ;;  %v371_v21 = vpop.f32.mrb[3].mxu1 }
  0xfb   : > { %383 = vst [vmem:[%s768_s26] sm:$0xff] %v353_v14  ;;  %387 = vst [vmem:[%s768_s26 + $0x20] sm:$0xff] %v369_v15  ;;  %v356_v22 = vadd.f32 %v564_v7, %v355_v20  ;;  %v372_v23 = vadd.f32 %v564_v7, %v371_v21 }
  0xfc   : > { %386 = vst [vmem:[%s768_s26 + $0x18] sm:$0xff] %v364_v18  ;;  %390 = vst [vmem:[%s768_s26 + $0x38] sm:$0xff] %v380_v19 }
  0xfd   : > { %384 = vst [vmem:[%s768_s26 + $0x8] sm:$0xff] %v356_v22  ;;  %388 = vst [vmem:[%s768_s26 + $0x28] sm:$0xff] %v372_v23 }
 0x101   : > { %v448_v26 = vld [vmem:[%s768_s26 + $0x10] sm:$0xff] }
 0x102   : > { %v444_v24 = vld [vmem:[%s768_s26] sm:$0xff]  ;;  %449 = vst [vmem:[%s402_s30 + $0x150] sm:$0xff] %v448_v26  ;;  %v456_v30 = vld [vmem:[%s768_s26 + $0x30] sm:$0xff] }
 0x103   : > { %v450_v27 = vld [vmem:[%s768_s26 + $0x18] sm:$0xff]  ;;  %v452_v28 = vld [vmem:[%s768_s26 + $0x20] sm:$0xff]  ;;  %445 = vst [vmem:[%s402_s30] sm:$0xff] %v444_v24  ;;  %457 = vst [vmem:[%s402_s30 + $0x3f0] sm:$0xff] %v456_v30 }
 0x104   : > { %v446_v25 = vld [vmem:[%s768_s26 + $0x8] sm:$0xff]  ;;  %451 = vst [vmem:[%s402_s30 + $0x1f8] sm:$0xff] %v450_v27  ;;  %453 = vst [vmem:[%s402_s30 + $0x2a0] sm:$0xff] %v452_v28  ;;  %v458_v31 = vld [vmem:[%s768_s26 + $0x38] sm:$0xff] }
 0x105   : > { %v454_v29 = vld [vmem:[%s768_s26 + $0x28] sm:$0xff]  ;;  %447 = vst [vmem:[%s402_s30 + $0xa8] sm:$0xff] %v446_v25  ;;  %459 = vst [vmem:[%s402_s30 + $0x498] sm:$0xff] %v458_v31 }
 0x106   : > { %455 = vst [vmem:[%s402_s30 + $0x348] sm:$0xff] %v454_v29 }
 0x107 PF: > { %s13_s16 = sadd.s32 1, %s678_s16   ;;  %s812_s12 = smov %s666_s13 }
 0x108   : > { %p10_p12 = scmp.ge.s32.totalorder %s13_s16, 23   ;;  %s813_s13 = smov %s740_s22 }
 0x109   : > { %s814_s14 = smov %s674_s15  ;;  %s815_s15 = smov %s817_s17 }
 0x10a   :  { %12 = sbr.rel (!%p10_p12) target bundleno = 3 (0x3), region = 152 }

</bundles_post_ra>
